<compile_context>
chip_gen: v6e
topology: v6e:2x2x1
jax: 0.10.0
libtpu: 0.0.40
codegen_flags: <defaults>
</compile_context>

<pallas_src>
import functools

import jax
import jax.numpy as jnp
from jax import lax
from jax.experimental import pallas as pl
from jax.experimental.pallas import tpu as pltpu


_VMEM_LIMIT = 48 * 1024 * 1024  # headroom under v7x's 64 MiB physical VMEM


# ----------------------------------------------------------------------------
# In-kernel helpers
# ----------------------------------------------------------------------------
def _layernorm(r, g, b, eps):
    mu = jnp.mean(r, axis=-1, keepdims=True)
    var = jnp.mean(jnp.square(r - mu), axis=-1, keepdims=True)
    return (r - mu) * lax.rsqrt(var + eps) * g + b


def _mha(xq, xkv, wq_ref, bq_ref, wk_ref, bk_ref, wv_ref, bv_ref,
         wo_ref, bo_ref, mask, nhead):
    """Multi-head attention. xq: (Sq, D) f32, xkv: (Sk, D) f32.

    Per-head weights are indexed on the leading axis of (H, D, dh)/(H, dh, D)
    refs (free), matmuls run in bf16 with f32 accumulation, the out projection
    is accumulated per head into a resident (Sq, D) f32 accumulator.
    The 1/sqrt(dh) scale is already folded into wq/bq.
    Returns the attention output (out-proj + bias), WITHOUT the residual.
    """
    Sq, D = xq.shape
    xq_b = xq.astype(jnp.bfloat16)
    xkv_b = xkv.astype(jnp.bfloat16)
    acc = jnp.zeros((Sq, D), jnp.float32)
    for h in range(nhead):                      # static unroll; ref[h] is free
        qh = jnp.dot(xq_b, wq_ref[h], preferred_element_type=jnp.float32) + bq_ref[h]
        kh = jnp.dot(xkv_b, wk_ref[h], preferred_element_type=jnp.float32) + bk_ref[h]
        vh = jnp.dot(xkv_b, wv_ref[h], preferred_element_type=jnp.float32) + bv_ref[h]
        # Scores: contract on the last axes (no explicit K^T).
        s = lax.dot_general(qh.astype(jnp.bfloat16), kh.astype(jnp.bfloat16),
                            (((1,), (1,)), ((), ())),
                            preferred_element_type=jnp.float32)       # (Sq, Sk)
        if mask is not None:
            s = s + mask                       # (1, Sk) additive bias, bcast over Sq
        s = s - jnp.max(s, axis=-1, keepdims=True)
        p = jnp.exp(s)
        # approx reciprocal -> EUP slot (inference; not bit-exact vs torch).
        p = p * pl.reciprocal(jnp.sum(p, axis=-1, keepdims=True), approx=True)
        oh = jnp.dot(p.astype(jnp.bfloat16), vh.astype(jnp.bfloat16),
                     preferred_element_type=jnp.float32)               # (Sq, dh)
        acc = acc + jnp.dot(oh.astype(jnp.bfloat16), wo_ref[h],
                            preferred_element_type=jnp.float32)        # (Sq, D)
    return acc + bo_ref[...]


def _ffn(x, w1_ref, b1_ref, w2_ref, b2_ref):
    h = jnp.dot(x.astype(jnp.bfloat16), w1_ref[...],
                preferred_element_type=jnp.float32) + b1_ref[...]
    h = jnp.maximum(h, 0.0)
    return jnp.dot(h.astype(jnp.bfloat16), w2_ref[...],
                   preferred_element_type=jnp.float32) + b2_ref[...]


# ----------------------------------------------------------------------------
# Fused per-layer kernels (one grid step = one batch element)
# ----------------------------------------------------------------------------
def _enc_layer_kernel(*refs, nhead, eps, has_mask):
    idx = 0
    x_ref = refs[idx]; idx += 1
    mask_ref = None
    if has_mask:
        mask_ref = refs[idx]; idx += 1
    (wq, bq, wk, bk, wv, bv, wo, bo,
     ln1g, ln1b, fw1, fb1, fw2, fb2, ln2g, ln2b, o_ref) = refs[idx:]

    x = x_ref[0].astype(jnp.float32)                    # (S, D)
    mask = mask_ref[0] if has_mask else None            # (1, S)

    a = _mha(x, x, wq, bq, wk, bk, wv, bv, wo, bo, mask, nhead)
    h1 = _layernorm(x + a, ln1g[...], ln1b[...], eps)
    f = _ffn(h1, fw1, fb1, fw2, fb2)
    out = _layernorm(h1 + f, ln2g[...], ln2b[...], eps)
    o_ref[0] = out.astype(o_ref.dtype)


def _dec_layer_kernel(*refs, nhead, eps, has_mask):
    idx = 0
    y_ref = refs[idx]; idx += 1
    mem_ref = refs[idx]; idx += 1
    mask_ref = None
    if has_mask:
        mask_ref = refs[idx]; idx += 1
    (swq, sbq, swk, sbk, swv, sbv, swo, sbo, ln1g, ln1b,
     cwq, cbq, cwk, cbk, cwv, cbv, cwo, cbo, ln2g, ln2b,
     fw1, fb1, fw2, fb2, ln3g, ln3b, o_ref) = refs[idx:]

    y = y_ref[0].astype(jnp.float32)                    # (St, D)
    mem = mem_ref[0].astype(jnp.float32)                # (Ss, D)
    mask = mask_ref[0] if has_mask else None            # (1, St)

    a1 = _mha(y, y, swq, sbq, swk, sbk, swv, sbv, swo, sbo, mask, nhead)
    h1 = _layernorm(y + a1, ln1g[...], ln1b[...], eps)
    a2 = _mha(h1, mem, cwq, cbq, cwk, cbk, cwv, cbv, cwo, cbo, None, nhead)
    h2 = _layernorm(h1 + a2, ln2g[...], ln2b[...], eps)
    f = _ffn(h2, fw1, fb1, fw2, fb2)
    out = _layernorm(h2 + f, ln3g[...], ln3b[...], eps)
    o_ref[0] = out.astype(o_ref.dtype)


# ----------------------------------------------------------------------------
# Host-side wrappers
# ----------------------------------------------------------------------------
def _resident_spec(shape):
    """Constant-index (weight) block: single-buffered when supported."""
    nd = len(shape)
    index_map = lambda b: (0,) * nd
    try:
        return pl.BlockSpec(shape, index_map, pipeline_mode=pl.Buffered(1))
    except Exception:  # older JAX without pipeline_mode / Buffered
        return pl.BlockSpec(shape, index_map)


def _attn_weight_items(a, nhead, D):
    dh = D // nhead
    return [
        (a["wq"], (nhead, D, dh)), (a["bq"], (nhead, 1, dh)),
        (a["wk"], (nhead, D, dh)), (a["bk"], (nhead, 1, dh)),
        (a["wv"], (nhead, D, dh)), (a["bv"], (nhead, 1, dh)),
        (a["wo"], (nhead, dh, D)), (a["bo"], (1, D)),
    ]


def encoder_layer(x, p, mask_bias, *, nhead, eps):
    B, S, D = x.shape
    dff = p["ff_w1"].shape[1]
    has_mask = mask_bias is not None

    in_specs = [pl.BlockSpec((1, S, D), lambda b: (b, 0, 0))]
    args = [x]
    if has_mask:
        in_specs.append(pl.BlockSpec((1, 1, S), lambda b: (b, 0, 0)))
        args.append(mask_bias.reshape(B, 1, S))

    items = (_attn_weight_items(p["self_attn"], nhead, D) + [
        (p["ln1_g"], (1, D)), (p["ln1_b"], (1, D)),
        (p["ff_w1"], (D, dff)), (p["ff_b1"], (1, dff)),
        (p["ff_w2"], (dff, D)), (p["ff_b2"], (1, D)),
        (p["ln2_g"], (1, D)), (p["ln2_b"], (1, D)),
    ])
    for arr, shape in items:
        in_specs.append(_resident_spec(shape))
        args.append(arr)

    kernel = functools.partial(_enc_layer_kernel, nhead=nhead, eps=eps,
                               has_mask=has_mask)
    return pl.pallas_call(
        kernel,
        out_shape=jax.ShapeDtypeStruct((B, S, D), jnp.float32),
        grid=(B,),
        in_specs=in_specs,
        out_specs=pl.BlockSpec((1, S, D), lambda b: (b, 0, 0)),
        compiler_params=pltpu.CompilerParams(
            dimension_semantics=("parallel",),
            vmem_limit_bytes=_VMEM_LIMIT),
    )(*args)


def decoder_layer(y, memory, p, mask_bias, *, nhead, eps):
    B, St, D = y.shape
    Ss = memory.shape[1]
    dff = p["ff_w1"].shape[1]
    has_mask = mask_bias is not None

    in_specs = [pl.BlockSpec((1, St, D), lambda b: (b, 0, 0)),
                pl.BlockSpec((1, Ss, D), lambda b: (b, 0, 0))]
    args = [y, memory]
    if has_mask:
        in_specs.append(pl.BlockSpec((1, 1, St), lambda b: (b, 0, 0)))
        args.append(mask_bias.reshape(B, 1, St))

    items = (_attn_weight_items(p["self_attn"], nhead, D)
             + [(p["ln1_g"], (1, D)), (p["ln1_b"], (1, D))]
             + _attn_weight_items(p["cross_attn"], nhead, D)
             + [(p["ln2_g"], (1, D)), (p["ln2_b"], (1, D)),
                (p["ff_w1"], (D, dff)), (p["ff_b1"], (1, dff)),
                (p["ff_w2"], (dff, D)), (p["ff_b2"], (1, D)),
                (p["ln3_g"], (1, D)), (p["ln3_b"], (1, D))])
    for arr, shape in items:
        in_specs.append(_resident_spec(shape))
        args.append(arr)

    kernel = functools.partial(_dec_layer_kernel, nhead=nhead, eps=eps,
                               has_mask=has_mask)
    return pl.pallas_call(
        kernel,
        out_shape=jax.ShapeDtypeStruct((B, St, D), jnp.float32),
        grid=(B,),
        in_specs=in_specs,
        out_specs=pl.BlockSpec((1, St, D), lambda b: (b, 0, 0)),
        compiler_params=pltpu.CompilerParams(
            dimension_semantics=("parallel",),
            vmem_limit_bytes=_VMEM_LIMIT),
    )(*args)


def transformer_forward(params, x, y, encoder_padding_mask=None,
                        decoder_padding_mask=None, *, nhead, eps):
    enc_bias = (None if encoder_padding_mask is None
                else jnp.where(encoder_padding_mask, -1e9, 0.0).astype(jnp.float32))
    dec_bias = (None if decoder_padding_mask is None
                else jnp.where(decoder_padding_mask, -1e9, 0.0).astype(jnp.float32))
    # Encoder: x -> memory
    for p in params["enc"]:
        x = encoder_layer(x, p, enc_bias, nhead=nhead, eps=eps)
    # Decoder: y attends to itself (with padding bias) and to the memory
    for p in params["dec"]:
        y = decoder_layer(y, x, p, dec_bias, nhead=nhead, eps=eps)
    return y


# ----------------------------------------------------------------------------
# Deterministic parameter construction (weights stored bf16, per-head split,
# 1/sqrt(dh) folded into Wq / bq).
# ----------------------------------------------------------------------------
def make_params(key, d_model, nhead, num_encoder_layers, num_decoder_layers, dff):
    keys = iter(jax.random.split(key, 4096))
    dh = d_model // nhead
    scale = 1.0 / (float(dh) ** 0.5)

    def lin(din, dout):
        s = 1.0 / (float(din) ** 0.5)
        w = jax.random.uniform(next(keys), (din, dout), jnp.float32, -s, s)
        b = jax.random.uniform(next(keys), (dout,), jnp.float32, -s, s)
        return w, b

    def split_heads_cols(w, b, s=1.0):
        # (D, D) columns -> (H, D, dh); (D,) -> (H, 1, dh)
        wh = (w * s).reshape(d_model, nhead, dh).transpose(1, 0, 2)
        bh = (b * s).reshape(nhead, 1, dh)
        return wh.astype(jnp.bfloat16), bh.astype(jnp.float32)

    def attn():
        wq, bq = lin(d_model, d_model)
        wk, bk = lin(d_model, d_model)
        wv, bv = lin(d_model, d_model)
        wo, bo = lin(d_model, d_model)
        wqh, bqh = split_heads_cols(wq, bq, scale)   # fold 1/sqrt(dh)
        wkh, bkh = split_heads_cols(wk, bk)
        wvh, bvh = split_heads_cols(wv, bv)
        return dict(wq=wqh, bq=bqh, wk=wkh, bk=bkh, wv=wvh, bv=bvh,
                    wo=wo.reshape(nhead, dh, d_model).astype(jnp.bfloat16),
                    bo=bo.reshape(1, d_model))

    def ffn():
        w1, b1 = lin(d_model, dff)
        w2, b2 = lin(dff, d_model)
        return dict(ff_w1=w1.astype(jnp.bfloat16), ff_b1=b1.reshape(1, dff),
                    ff_w2=w2.astype(jnp.bfloat16), ff_b2=b2.reshape(1, d_model))

    ones = jnp.ones((1, d_model), jnp.float32)
    zeros = jnp.zeros((1, d_model), jnp.float32)

    enc = []
    for _ in range(num_encoder_layers):
        layer = dict(self_attn=attn(),
                     ln1_g=ones, ln1_b=zeros, ln2_g=ones, ln2_b=zeros)
        layer.update(ffn())
        enc.append(layer)

    dec = []
    for _ in range(num_decoder_layers):
        layer = dict(self_attn=attn(), cross_attn=attn(),
                     ln1_g=ones, ln1_b=zeros, ln2_g=ones, ln2_b=zeros,
                     ln3_g=ones, ln3_b=zeros)
        layer.update(ffn())
        dec.append(layer)

    return dict(enc=enc, dec=dec)


# ----------------------------------------------------------------------------
if __name__ == "__main__":
    # Small config consistent with the module (scaled down from 512/8/8/6/2048).
    d_model = 32
    nhead = 4
    num_encoder_layers = 2
    num_decoder_layers = 2
    dim_feedforward = 64
    layer_norm_eps = 1e-5

    batch, src_len, tgt_len = 2, 8, 8

    root = jax.random.PRNGKey(0)
    k_params, k_x, k_y = jax.random.split(root, 3)
    params = make_params(k_params, d_model, nhead,
                         num_encoder_layers, num_decoder_layers, dim_feedforward)

    x = jax.random.normal(k_x, (batch, src_len, d_model), jnp.float32)  # encoder input
    y = jax.random.normal(k_y, (batch, tgt_len, d_model), jnp.float32)  # decoder input

    # Exercise the key-padding-mask path: pad the last two source tokens of item 1.
    enc_mask = jnp.zeros((batch, src_len), dtype=bool).at[1, -2:].set(True)

    fwd = jax.jit(functools.partial(transformer_forward,
                                    nhead=nhead, eps=layer_norm_eps))
    out = fwd(params, x, y,
              encoder_padding_mask=enc_mask,
              decoder_padding_mask=None)
    out = jax.block_until_ready(out)
    assert out.shape == (batch, tgt_len, d_model)
    assert bool(jnp.all(jnp.isfinite(out)))
    print("KERNEL_OK")
</pallas_src>

<mosaic_0001>
module attributes {stable_mosaic.version = 11 : i64} {
  func.func @_enc_layer_kernel(%arg0: i32, %arg1: memref<1x8x32xf32, #tpu.memory_space<vmem>>, %arg2: memref<1x1x8xf32, #tpu.memory_space<vmem>>, %arg3: memref<4x32x8xbf16, #tpu.memory_space<vmem>>, %arg4: memref<4x1x8xf32, #tpu.memory_space<vmem>>, %arg5: memref<4x32x8xbf16, #tpu.memory_space<vmem>>, %arg6: memref<4x1x8xf32, #tpu.memory_space<vmem>>, %arg7: memref<4x32x8xbf16, #tpu.memory_space<vmem>>, %arg8: memref<4x1x8xf32, #tpu.memory_space<vmem>>, %arg9: memref<4x8x32xbf16, #tpu.memory_space<vmem>>, %arg10: memref<1x32xf32, #tpu.memory_space<vmem>>, %arg11: memref<1x32xf32, #tpu.memory_space<vmem>>, %arg12: memref<1x32xf32, #tpu.memory_space<vmem>>, %arg13: memref<32x64xbf16, #tpu.memory_space<vmem>>, %arg14: memref<1x64xf32, #tpu.memory_space<vmem>>, %arg15: memref<64x32xbf16, #tpu.memory_space<vmem>>, %arg16: memref<1x32xf32, #tpu.memory_space<vmem>>, %arg17: memref<1x32xf32, #tpu.memory_space<vmem>>, %arg18: memref<1x32xf32, #tpu.memory_space<vmem>>, %arg19: memref<1x8x32xf32, #tpu.memory_space<vmem>>) attributes {dimension_semantics = [#tpu.dimension_semantics<parallel>], iteration_bounds = array<i64: 2>, scalar_prefetch = 0 : i64, scratch_operands = 0 : i64, tpu.core_type = #tpu.core_type<tc>, window_params = [{transform_indices = @transform_0, window_bounds = array<i64: 1, 8, 32>}, {transform_indices = @transform_1, window_bounds = array<i64: 1, 1, 8>}, {pipeline_mode = #tpu.pipeline_mode<synchronous>, transform_indices = @transform_2, window_bounds = array<i64: 4, 32, 8>}, {pipeline_mode = #tpu.pipeline_mode<synchronous>, transform_indices = @transform_3, window_bounds = array<i64: 4, 1, 8>}, {pipeline_mode = #tpu.pipeline_mode<synchronous>, transform_indices = @transform_4, window_bounds = array<i64: 4, 32, 8>}, {pipeline_mode = #tpu.pipeline_mode<synchronous>, transform_indices = @transform_5, window_bounds = array<i64: 4, 1, 8>}, {pipeline_mode = #tpu.pipeline_mode<synchronous>, transform_indices = @transform_6, window_bounds = array<i64: 4, 32, 8>}, {pipeline_mode = #tpu.pipeline_mode<synchronous>, transform_indices = @transform_7, window_bounds = array<i64: 4, 1, 8>}, {pipeline_mode = #tpu.pipeline_mode<synchronous>, transform_indices = @transform_8, window_bounds = array<i64: 4, 8, 32>}, {pipeline_mode = #tpu.pipeline_mode<synchronous>, transform_indices = @transform_9, window_bounds = array<i64: 1, 32>}, {pipeline_mode = #tpu.pipeline_mode<synchronous>, transform_indices = @transform_10, window_bounds = array<i64: 1, 32>}, {pipeline_mode = #tpu.pipeline_mode<synchronous>, transform_indices = @transform_11, window_bounds = array<i64: 1, 32>}, {pipeline_mode = #tpu.pipeline_mode<synchronous>, transform_indices = @transform_12, window_bounds = array<i64: 32, 64>}, {pipeline_mode = #tpu.pipeline_mode<synchronous>, transform_indices = @transform_13, window_bounds = array<i64: 1, 64>}, {pipeline_mode = #tpu.pipeline_mode<synchronous>, transform_indices = @transform_14, window_bounds = array<i64: 64, 32>}, {pipeline_mode = #tpu.pipeline_mode<synchronous>, transform_indices = @transform_15, window_bounds = array<i64: 1, 32>}, {pipeline_mode = #tpu.pipeline_mode<synchronous>, transform_indices = @transform_16, window_bounds = array<i64: 1, 32>}, {pipeline_mode = #tpu.pipeline_mode<synchronous>, transform_indices = @transform_17, window_bounds = array<i64: 1, 32>}, {transform_indices = @transform_18, window_bounds = array<i64: 1, 8, 32>}]} {
    %c0 = arith.constant 0 : index
    %c0_0 = arith.constant 0 : index
    %c0_1 = arith.constant 0 : index
    %0 = vector.load %arg1[%c0, %c0_0, %c0_1] : memref<1x8x32xf32, #tpu.memory_space<vmem>>, vector<1x8x32xf32>
    %1 = vector.shape_cast %0 : vector<1x8x32xf32> to vector<8x32xf32>
    %c0_2 = arith.constant 0 : index
    %c0_3 = arith.constant 0 : index
    %c0_4 = arith.constant 0 : index
    %2 = vector.load %arg2[%c0_2, %c0_3, %c0_4] : memref<1x1x8xf32, #tpu.memory_space<vmem>>, vector<1x1x8xf32>
    %3 = vector.shape_cast %2 : vector<1x1x8xf32> to vector<1x8xf32>
    %4 = arith.truncf %1 : vector<8x32xf32> to vector<8x32xbf16>
    %5 = arith.truncf %1 : vector<8x32xf32> to vector<8x32xbf16>
    %cst = arith.constant 0.000000e+00 : f32
    %6 = vector.broadcast %cst : f32 to vector<8x32xf32>
    %c0_5 = arith.constant 0 : index
    %c0_6 = arith.constant 0 : index
    %c0_7 = arith.constant 0 : index
    %7 = vector.load %arg3[%c0_5, %c0_6, %c0_7] : memref<4x32x8xbf16, #tpu.memory_space<vmem>>, vector<1x32x8xbf16>
    %8 = vector.shape_cast %7 : vector<1x32x8xbf16> to vector<32x8xbf16>
    %cst_8 = arith.constant dense<0.000000e+00> : vector<8x8xf32>
    %9 = tpu.matmul %4, %8, %cst_8 {dimension_numbers = #tpu.dot_dimension_numbers<[1], [0], [0], [1], [0, 0, 1, 1], [], []>} : vector<8x32xbf16>, vector<32x8xbf16>, vector<8x8xf32> -> vector<8x8xf32>
    %c0_9 = arith.constant 0 : index
    %c0_10 = arith.constant 0 : index
    %c0_11 = arith.constant 0 : index
    %10 = vector.load %arg4[%c0_9, %c0_10, %c0_11] : memref<4x1x8xf32, #tpu.memory_space<vmem>>, vector<1x1x8xf32>
    %11 = vector.shape_cast %10 : vector<1x1x8xf32> to vector<1x8xf32>
    %12 = vector.broadcast %11 : vector<1x8xf32> to vector<8x8xf32>
    %13 = arith.addf %9, %12 : vector<8x8xf32>
    %c0_12 = arith.constant 0 : index
    %c0_13 = arith.constant 0 : index
    %c0_14 = arith.constant 0 : index
    %14 = vector.load %arg5[%c0_12, %c0_13, %c0_14] : memref<4x32x8xbf16, #tpu.memory_space<vmem>>, vector<1x32x8xbf16>
    %15 = vector.shape_cast %14 : vector<1x32x8xbf16> to vector<32x8xbf16>
    %cst_15 = arith.constant dense<0.000000e+00> : vector<8x8xf32>
    %16 = tpu.matmul %5, %15, %cst_15 {dimension_numbers = #tpu.dot_dimension_numbers<[1], [0], [0], [1], [0, 0, 1, 1], [], []>} : vector<8x32xbf16>, vector<32x8xbf16>, vector<8x8xf32> -> vector<8x8xf32>
    %c0_16 = arith.constant 0 : index
    %c0_17 = arith.constant 0 : index
    %c0_18 = arith.constant 0 : index
    %17 = vector.load %arg6[%c0_16, %c0_17, %c0_18] : memref<4x1x8xf32, #tpu.memory_space<vmem>>, vector<1x1x8xf32>
    %18 = vector.shape_cast %17 : vector<1x1x8xf32> to vector<1x8xf32>
    %19 = vector.broadcast %18 : vector<1x8xf32> to vector<8x8xf32>
    %20 = arith.addf %16, %19 : vector<8x8xf32>
    %c0_19 = arith.constant 0 : index
    %c0_20 = arith.constant 0 : index
    %c0_21 = arith.constant 0 : index
    %21 = vector.load %arg7[%c0_19, %c0_20, %c0_21] : memref<4x32x8xbf16, #tpu.memory_space<vmem>>, vector<1x32x8xbf16>
    %22 = vector.shape_cast %21 : vector<1x32x8xbf16> to vector<32x8xbf16>
    %cst_22 = arith.constant dense<0.000000e+00> : vector<8x8xf32>
    %23 = tpu.matmul %5, %22, %cst_22 {dimension_numbers = #tpu.dot_dimension_numbers<[1], [0], [0], [1], [0, 0, 1, 1], [], []>} : vector<8x32xbf16>, vector<32x8xbf16>, vector<8x8xf32> -> vector<8x8xf32>
    %c0_23 = arith.constant 0 : index
    %c0_24 = arith.constant 0 : index
    %c0_25 = arith.constant 0 : index
    %24 = vector.load %arg8[%c0_23, %c0_24, %c0_25] : memref<4x1x8xf32, #tpu.memory_space<vmem>>, vector<1x1x8xf32>
    %25 = vector.shape_cast %24 : vector<1x1x8xf32> to vector<1x8xf32>
    %26 = vector.broadcast %25 : vector<1x8xf32> to vector<8x8xf32>
    %27 = arith.addf %23, %26 : vector<8x8xf32>
    %28 = arith.truncf %13 : vector<8x8xf32> to vector<8x8xbf16>
    %29 = arith.truncf %20 : vector<8x8xf32> to vector<8x8xbf16>
    %cst_26 = arith.constant dense<0.000000e+00> : vector<8x8xf32>
    %30 = tpu.matmul %28, %29, %cst_26 {dimension_numbers = #tpu.dot_dimension_numbers<[1], [1], [0], [0], [0, 0, 1, 0], [], []>} : vector<8x8xbf16>, vector<8x8xbf16>, vector<8x8xf32> -> vector<8x8xf32>
    %31 = vector.broadcast %3 : vector<1x8xf32> to vector<8x8xf32>
    %32 = arith.addf %30, %31 : vector<8x8xf32>
    %cst_27 = arith.constant dense<0xFF800000> : vector<8xf32>
    %33 = vector.multi_reduction <maximumf>, %32, %cst_27 [1] : vector<8x8xf32> to vector<8xf32>
    %34 = vector.shape_cast %33 : vector<8xf32> to vector<8x1xf32>
    %35 = vector.broadcast %34 : vector<8x1xf32> to vector<8x8xf32>
    %36 = arith.subf %32, %35 : vector<8x8xf32>
    %37 = math.exp %36 : vector<8x8xf32>
    %cst_28 = arith.constant dense<0.000000e+00> : vector<8xf32>
    %38 = vector.multi_reduction <add>, %37, %cst_28 [1] : vector<8x8xf32> to vector<8xf32>
    %39 = vector.shape_cast %38 : vector<8xf32> to vector<8x1xf32>
    %40 = tpu.reciprocal %39 {approx = true} : vector<8x1xf32> -> vector<8x1xf32>
    %41 = vector.broadcast %40 : vector<8x1xf32> to vector<8x8xf32>
    %42 = arith.mulf %37, %41 : vector<8x8xf32>
    %43 = arith.truncf %42 : vector<8x8xf32> to vector<8x8xbf16>
    %44 = arith.truncf %27 : vector<8x8xf32> to vector<8x8xbf16>
    %cst_29 = arith.constant dense<0.000000e+00> : vector<8x8xf32>
    %45 = tpu.matmul %43, %44, %cst_29 {dimension_numbers = #tpu.dot_dimension_numbers<[1], [0], [0], [1], [0, 0, 1, 1], [], []>} : vector<8x8xbf16>, vector<8x8xbf16>, vector<8x8xf32> -> vector<8x8xf32>
    %46 = arith.truncf %45 : vector<8x8xf32> to vector<8x8xbf16>
    %c0_30 = arith.constant 0 : index
    %c0_31 = arith.constant 0 : index
    %c0_32 = arith.constant 0 : index
    %47 = vector.load %arg9[%c0_30, %c0_31, %c0_32] : memref<4x8x32xbf16, #tpu.memory_space<vmem>>, vector<1x8x32xbf16>
    %48 = vector.shape_cast %47 : vector<1x8x32xbf16> to vector<8x32xbf16>
    %cst_33 = arith.constant dense<0.000000e+00> : vector<8x32xf32>
    %49 = tpu.matmul %46, %48, %cst_33 {dimension_numbers = #tpu.dot_dimension_numbers<[1], [0], [0], [1], [0, 0, 1, 1], [], []>} : vector<8x8xbf16>, vector<8x32xbf16>, vector<8x32xf32> -> vector<8x32xf32>
    %50 = arith.addf %6, %49 : vector<8x32xf32>
    %c1 = arith.constant 1 : index
    %c0_34 = arith.constant 0 : index
    %c0_35 = arith.constant 0 : index
    %51 = vector.load %arg3[%c1, %c0_34, %c0_35] : memref<4x32x8xbf16, #tpu.memory_space<vmem>>, vector<1x32x8xbf16>
    %52 = vector.shape_cast %51 : vector<1x32x8xbf16> to vector<32x8xbf16>
    %cst_36 = arith.constant dense<0.000000e+00> : vector<8x8xf32>
    %53 = tpu.matmul %4, %52, %cst_36 {dimension_numbers = #tpu.dot_dimension_numbers<[1], [0], [0], [1], [0, 0, 1, 1], [], []>} : vector<8x32xbf16>, vector<32x8xbf16>, vector<8x8xf32> -> vector<8x8xf32>
    %c1_37 = arith.constant 1 : index
    %c0_38 = arith.constant 0 : index
    %c0_39 = arith.constant 0 : index
    %54 = vector.load %arg4[%c1_37, %c0_38, %c0_39] : memref<4x1x8xf32, #tpu.memory_space<vmem>>, vector<1x1x8xf32>
    %55 = vector.shape_cast %54 : vector<1x1x8xf32> to vector<1x8xf32>
    %56 = vector.broadcast %55 : vector<1x8xf32> to vector<8x8xf32>
    %57 = arith.addf %53, %56 : vector<8x8xf32>
    %c1_40 = arith.constant 1 : index
    %c0_41 = arith.constant 0 : index
    %c0_42 = arith.constant 0 : index
    %58 = vector.load %arg5[%c1_40, %c0_41, %c0_42] : memref<4x32x8xbf16, #tpu.memory_space<vmem>>, vector<1x32x8xbf16>
    %59 = vector.shape_cast %58 : vector<1x32x8xbf16> to vector<32x8xbf16>
    %cst_43 = arith.constant dense<0.000000e+00> : vector<8x8xf32>
    %60 = tpu.matmul %5, %59, %cst_43 {dimension_numbers = #tpu.dot_dimension_numbers<[1], [0], [0], [1], [0, 0, 1, 1], [], []>} : vector<8x32xbf16>, vector<32x8xbf16>, vector<8x8xf32> -> vector<8x8xf32>
    %c1_44 = arith.constant 1 : index
    %c0_45 = arith.constant 0 : index
    %c0_46 = arith.constant 0 : index
    %61 = vector.load %arg6[%c1_44, %c0_45, %c0_46] : memref<4x1x8xf32, #tpu.memory_space<vmem>>, vector<1x1x8xf32>
    %62 = vector.shape_cast %61 : vector<1x1x8xf32> to vector<1x8xf32>
    %63 = vector.broadcast %62 : vector<1x8xf32> to vector<8x8xf32>
    %64 = arith.addf %60, %63 : vector<8x8xf32>
    %c1_47 = arith.constant 1 : index
    %c0_48 = arith.constant 0 : index
    %c0_49 = arith.constant 0 : index
    %65 = vector.load %arg7[%c1_47, %c0_48, %c0_49] : memref<4x32x8xbf16, #tpu.memory_space<vmem>>, vector<1x32x8xbf16>
    %66 = vector.shape_cast %65 : vector<1x32x8xbf16> to vector<32x8xbf16>
    %cst_50 = arith.constant dense<0.000000e+00> : vector<8x8xf32>
    %67 = tpu.matmul %5, %66, %cst_50 {dimension_numbers = #tpu.dot_dimension_numbers<[1], [0], [0], [1], [0, 0, 1, 1], [], []>} : vector<8x32xbf16>, vector<32x8xbf16>, vector<8x8xf32> -> vector<8x8xf32>
    %c1_51 = arith.constant 1 : index
    %c0_52 = arith.constant 0 : index
    %c0_53 = arith.constant 0 : index
    %68 = vector.load %arg8[%c1_51, %c0_52, %c0_53] : memref<4x1x8xf32, #tpu.memory_space<vmem>>, vector<1x1x8xf32>
    %69 = vector.shape_cast %68 : vector<1x1x8xf32> to vector<1x8xf32>
    %70 = vector.broadcast %69 : vector<1x8xf32> to vector<8x8xf32>
    %71 = arith.addf %67, %70 : vector<8x8xf32>
    %72 = arith.truncf %57 : vector<8x8xf32> to vector<8x8xbf16>
    %73 = arith.truncf %64 : vector<8x8xf32> to vector<8x8xbf16>
    %cst_54 = arith.constant dense<0.000000e+00> : vector<8x8xf32>
    %74 = tpu.matmul %72, %73, %cst_54 {dimension_numbers = #tpu.dot_dimension_numbers<[1], [1], [0], [0], [0, 0, 1, 0], [], []>} : vector<8x8xbf16>, vector<8x8xbf16>, vector<8x8xf32> -> vector<8x8xf32>
    %75 = vector.broadcast %3 : vector<1x8xf32> to vector<8x8xf32>
    %76 = arith.addf %74, %75 : vector<8x8xf32>
    %cst_55 = arith.constant dense<0xFF800000> : vector<8xf32>
    %77 = vector.multi_reduction <maximumf>, %76, %cst_55 [1] : vector<8x8xf32> to vector<8xf32>
    %78 = vector.shape_cast %77 : vector<8xf32> to vector<8x1xf32>
    %79 = vector.broadcast %78 : vector<8x1xf32> to vector<8x8xf32>
    %80 = arith.subf %76, %79 : vector<8x8xf32>
    %81 = math.exp %80 : vector<8x8xf32>
    %cst_56 = arith.constant dense<0.000000e+00> : vector<8xf32>
    %82 = vector.multi_reduction <add>, %81, %cst_56 [1] : vector<8x8xf32> to vector<8xf32>
    %83 = vector.shape_cast %82 : vector<8xf32> to vector<8x1xf32>
    %84 = tpu.reciprocal %83 {approx = true} : vector<8x1xf32> -> vector<8x1xf32>
    %85 = vector.broadcast %84 : vector<8x1xf32> to vector<8x8xf32>
    %86 = arith.mulf %81, %85 : vector<8x8xf32>
    %87 = arith.truncf %86 : vector<8x8xf32> to vector<8x8xbf16>
    %88 = arith.truncf %71 : vector<8x8xf32> to vector<8x8xbf16>
    %cst_57 = arith.constant dense<0.000000e+00> : vector<8x8xf32>
    %89 = tpu.matmul %87, %88, %cst_57 {dimension_numbers = #tpu.dot_dimension_numbers<[1], [0], [0], [1], [0, 0, 1, 1], [], []>} : vector<8x8xbf16>, vector<8x8xbf16>, vector<8x8xf32> -> vector<8x8xf32>
    %90 = arith.truncf %89 : vector<8x8xf32> to vector<8x8xbf16>
    %c1_58 = arith.constant 1 : index
    %c0_59 = arith.constant 0 : index
    %c0_60 = arith.constant 0 : index
    %91 = vector.load %arg9[%c1_58, %c0_59, %c0_60] : memref<4x8x32xbf16, #tpu.memory_space<vmem>>, vector<1x8x32xbf16>
    %92 = vector.shape_cast %91 : vector<1x8x32xbf16> to vector<8x32xbf16>
    %cst_61 = arith.constant dense<0.000000e+00> : vector<8x32xf32>
    %93 = tpu.matmul %90, %92, %cst_61 {dimension_numbers = #tpu.dot_dimension_numbers<[1], [0], [0], [1], [0, 0, 1, 1], [], []>} : vector<8x8xbf16>, vector<8x32xbf16>, vector<8x32xf32> -> vector<8x32xf32>
    %94 = arith.addf %50, %93 : vector<8x32xf32>
    %c2 = arith.constant 2 : index
    %c0_62 = arith.constant 0 : index
    %c0_63 = arith.constant 0 : index
    %95 = vector.load %arg3[%c2, %c0_62, %c0_63] : memref<4x32x8xbf16, #tpu.memory_space<vmem>>, vector<1x32x8xbf16>
    %96 = vector.shape_cast %95 : vector<1x32x8xbf16> to vector<32x8xbf16>
    %cst_64 = arith.constant dense<0.000000e+00> : vector<8x8xf32>
    %97 = tpu.matmul %4, %96, %cst_64 {dimension_numbers = #tpu.dot_dimension_numbers<[1], [0], [0], [1], [0, 0, 1, 1], [], []>} : vector<8x32xbf16>, vector<32x8xbf16>, vector<8x8xf32> -> vector<8x8xf32>
    %c2_65 = arith.constant 2 : index
    %c0_66 = arith.constant 0 : index
    %c0_67 = arith.constant 0 : index
    %98 = vector.load %arg4[%c2_65, %c0_66, %c0_67] : memref<4x1x8xf32, #tpu.memory_space<vmem>>, vector<1x1x8xf32>
    %99 = vector.shape_cast %98 : vector<1x1x8xf32> to vector<1x8xf32>
    %100 = vector.broadcast %99 : vector<1x8xf32> to vector<8x8xf32>
    %101 = arith.addf %97, %100 : vector<8x8xf32>
    %c2_68 = arith.constant 2 : index
    %c0_69 = arith.constant 0 : index
    %c0_70 = arith.constant 0 : index
    %102 = vector.load %arg5[%c2_68, %c0_69, %c0_70] : memref<4x32x8xbf16, #tpu.memory_space<vmem>>, vector<1x32x8xbf16>
    %103 = vector.shape_cast %102 : vector<1x32x8xbf16> to vector<32x8xbf16>
    %cst_71 = arith.constant dense<0.000000e+00> : vector<8x8xf32>
    %104 = tpu.matmul %5, %103, %cst_71 {dimension_numbers = #tpu.dot_dimension_numbers<[1], [0], [0], [1], [0, 0, 1, 1], [], []>} : vector<8x32xbf16>, vector<32x8xbf16>, vector<8x8xf32> -> vector<8x8xf32>
    %c2_72 = arith.constant 2 : index
    %c0_73 = arith.constant 0 : index
    %c0_74 = arith.constant 0 : index
    %105 = vector.load %arg6[%c2_72, %c0_73, %c0_74] : memref<4x1x8xf32, #tpu.memory_space<vmem>>, vector<1x1x8xf32>
    %106 = vector.shape_cast %105 : vector<1x1x8xf32> to vector<1x8xf32>
    %107 = vector.broadcast %106 : vector<1x8xf32> to vector<8x8xf32>
    %108 = arith.addf %104, %107 : vector<8x8xf32>
    %c2_75 = arith.constant 2 : index
    %c0_76 = arith.constant 0 : index
    %c0_77 = arith.constant 0 : index
    %109 = vector.load %arg7[%c2_75, %c0_76, %c0_77] : memref<4x32x8xbf16, #tpu.memory_space<vmem>>, vector<1x32x8xbf16>
    %110 = vector.shape_cast %109 : vector<1x32x8xbf16> to vector<32x8xbf16>
    %cst_78 = arith.constant dense<0.000000e+00> : vector<8x8xf32>
    %111 = tpu.matmul %5, %110, %cst_78 {dimension_numbers = #tpu.dot_dimension_numbers<[1], [0], [0], [1], [0, 0, 1, 1], [], []>} : vector<8x32xbf16>, vector<32x8xbf16>, vector<8x8xf32> -> vector<8x8xf32>
    %c2_79 = arith.constant 2 : index
    %c0_80 = arith.constant 0 : index
    %c0_81 = arith.constant 0 : index
    %112 = vector.load %arg8[%c2_79, %c0_80, %c0_81] : memref<4x1x8xf32, #tpu.memory_space<vmem>>, vector<1x1x8xf32>
    %113 = vector.shape_cast %112 : vector<1x1x8xf32> to vector<1x8xf32>
    %114 = vector.broadcast %113 : vector<1x8xf32> to vector<8x8xf32>
    %115 = arith.addf %111, %114 : vector<8x8xf32>
    %116 = arith.truncf %101 : vector<8x8xf32> to vector<8x8xbf16>
    %117 = arith.truncf %108 : vector<8x8xf32> to vector<8x8xbf16>
    %cst_82 = arith.constant dense<0.000000e+00> : vector<8x8xf32>
    %118 = tpu.matmul %116, %117, %cst_82 {dimension_numbers = #tpu.dot_dimension_numbers<[1], [1], [0], [0], [0, 0, 1, 0], [], []>} : vector<8x8xbf16>, vector<8x8xbf16>, vector<8x8xf32> -> vector<8x8xf32>
    %119 = vector.broadcast %3 : vector<1x8xf32> to vector<8x8xf32>
    %120 = arith.addf %118, %119 : vector<8x8xf32>
    %cst_83 = arith.constant dense<0xFF800000> : vector<8xf32>
    %121 = vector.multi_reduction <maximumf>, %120, %cst_83 [1] : vector<8x8xf32> to vector<8xf32>
    %122 = vector.shape_cast %121 : vector<8xf32> to vector<8x1xf32>
    %123 = vector.broadcast %122 : vector<8x1xf32> to vector<8x8xf32>
    %124 = arith.subf %120, %123 : vector<8x8xf32>
    %125 = math.exp %124 : vector<8x8xf32>
    %cst_84 = arith.constant dense<0.000000e+00> : vector<8xf32>
    %126 = vector.multi_reduction <add>, %125, %cst_84 [1] : vector<8x8xf32> to vector<8xf32>
    %127 = vector.shape_cast %126 : vector<8xf32> to vector<8x1xf32>
    %128 = tpu.reciprocal %127 {approx = true} : vector<8x1xf32> -> vector<8x1xf32>
    %129 = vector.broadcast %128 : vector<8x1xf32> to vector<8x8xf32>
    %130 = arith.mulf %125, %129 : vector<8x8xf32>
    %131 = arith.truncf %130 : vector<8x8xf32> to vector<8x8xbf16>
    %132 = arith.truncf %115 : vector<8x8xf32> to vector<8x8xbf16>
    %cst_85 = arith.constant dense<0.000000e+00> : vector<8x8xf32>
    %133 = tpu.matmul %131, %132, %cst_85 {dimension_numbers = #tpu.dot_dimension_numbers<[1], [0], [0], [1], [0, 0, 1, 1], [], []>} : vector<8x8xbf16>, vector<8x8xbf16>, vector<8x8xf32> -> vector<8x8xf32>
    %134 = arith.truncf %133 : vector<8x8xf32> to vector<8x8xbf16>
    %c2_86 = arith.constant 2 : index
    %c0_87 = arith.constant 0 : index
    %c0_88 = arith.constant 0 : index
    %135 = vector.load %arg9[%c2_86, %c0_87, %c0_88] : memref<4x8x32xbf16, #tpu.memory_space<vmem>>, vector<1x8x32xbf16>
    %136 = vector.shape_cast %135 : vector<1x8x32xbf16> to vector<8x32xbf16>
    %cst_89 = arith.constant dense<0.000000e+00> : vector<8x32xf32>
    %137 = tpu.matmul %134, %136, %cst_89 {dimension_numbers = #tpu.dot_dimension_numbers<[1], [0], [0], [1], [0, 0, 1, 1], [], []>} : vector<8x8xbf16>, vector<8x32xbf16>, vector<8x32xf32> -> vector<8x32xf32>
    %138 = arith.addf %94, %137 : vector<8x32xf32>
    %c3 = arith.constant 3 : index
    %c0_90 = arith.constant 0 : index
    %c0_91 = arith.constant 0 : index
    %139 = vector.load %arg3[%c3, %c0_90, %c0_91] : memref<4x32x8xbf16, #tpu.memory_space<vmem>>, vector<1x32x8xbf16>
    %140 = vector.shape_cast %139 : vector<1x32x8xbf16> to vector<32x8xbf16>
    %cst_92 = arith.constant dense<0.000000e+00> : vector<8x8xf32>
    %141 = tpu.matmul %4, %140, %cst_92 {dimension_numbers = #tpu.dot_dimension_numbers<[1], [0], [0], [1], [0, 0, 1, 1], [], []>} : vector<8x32xbf16>, vector<32x8xbf16>, vector<8x8xf32> -> vector<8x8xf32>
    %c3_93 = arith.constant 3 : index
    %c0_94 = arith.constant 0 : index
    %c0_95 = arith.constant 0 : index
    %142 = vector.load %arg4[%c3_93, %c0_94, %c0_95] : memref<4x1x8xf32, #tpu.memory_space<vmem>>, vector<1x1x8xf32>
    %143 = vector.shape_cast %142 : vector<1x1x8xf32> to vector<1x8xf32>
    %144 = vector.broadcast %143 : vector<1x8xf32> to vector<8x8xf32>
    %145 = arith.addf %141, %144 : vector<8x8xf32>
    %c3_96 = arith.constant 3 : index
    %c0_97 = arith.constant 0 : index
    %c0_98 = arith.constant 0 : index
    %146 = vector.load %arg5[%c3_96, %c0_97, %c0_98] : memref<4x32x8xbf16, #tpu.memory_space<vmem>>, vector<1x32x8xbf16>
    %147 = vector.shape_cast %146 : vector<1x32x8xbf16> to vector<32x8xbf16>
    %cst_99 = arith.constant dense<0.000000e+00> : vector<8x8xf32>
    %148 = tpu.matmul %5, %147, %cst_99 {dimension_numbers = #tpu.dot_dimension_numbers<[1], [0], [0], [1], [0, 0, 1, 1], [], []>} : vector<8x32xbf16>, vector<32x8xbf16>, vector<8x8xf32> -> vector<8x8xf32>
    %c3_100 = arith.constant 3 : index
    %c0_101 = arith.constant 0 : index
    %c0_102 = arith.constant 0 : index
    %149 = vector.load %arg6[%c3_100, %c0_101, %c0_102] : memref<4x1x8xf32, #tpu.memory_space<vmem>>, vector<1x1x8xf32>
    %150 = vector.shape_cast %149 : vector<1x1x8xf32> to vector<1x8xf32>
    %151 = vector.broadcast %150 : vector<1x8xf32> to vector<8x8xf32>
    %152 = arith.addf %148, %151 : vector<8x8xf32>
    %c3_103 = arith.constant 3 : index
    %c0_104 = arith.constant 0 : index
    %c0_105 = arith.constant 0 : index
    %153 = vector.load %arg7[%c3_103, %c0_104, %c0_105] : memref<4x32x8xbf16, #tpu.memory_space<vmem>>, vector<1x32x8xbf16>
    %154 = vector.shape_cast %153 : vector<1x32x8xbf16> to vector<32x8xbf16>
    %cst_106 = arith.constant dense<0.000000e+00> : vector<8x8xf32>
    %155 = tpu.matmul %5, %154, %cst_106 {dimension_numbers = #tpu.dot_dimension_numbers<[1], [0], [0], [1], [0, 0, 1, 1], [], []>} : vector<8x32xbf16>, vector<32x8xbf16>, vector<8x8xf32> -> vector<8x8xf32>
    %c3_107 = arith.constant 3 : index
    %c0_108 = arith.constant 0 : index
    %c0_109 = arith.constant 0 : index
    %156 = vector.load %arg8[%c3_107, %c0_108, %c0_109] : memref<4x1x8xf32, #tpu.memory_space<vmem>>, vector<1x1x8xf32>
    %157 = vector.shape_cast %156 : vector<1x1x8xf32> to vector<1x8xf32>
    %158 = vector.broadcast %157 : vector<1x8xf32> to vector<8x8xf32>
    %159 = arith.addf %155, %158 : vector<8x8xf32>
    %160 = arith.truncf %145 : vector<8x8xf32> to vector<8x8xbf16>
    %161 = arith.truncf %152 : vector<8x8xf32> to vector<8x8xbf16>
    %cst_110 = arith.constant dense<0.000000e+00> : vector<8x8xf32>
    %162 = tpu.matmul %160, %161, %cst_110 {dimension_numbers = #tpu.dot_dimension_numbers<[1], [1], [0], [0], [0, 0, 1, 0], [], []>} : vector<8x8xbf16>, vector<8x8xbf16>, vector<8x8xf32> -> vector<8x8xf32>
    %163 = vector.broadcast %3 : vector<1x8xf32> to vector<8x8xf32>
    %164 = arith.addf %162, %163 : vector<8x8xf32>
    %cst_111 = arith.constant dense<0xFF800000> : vector<8xf32>
    %165 = vector.multi_reduction <maximumf>, %164, %cst_111 [1] : vector<8x8xf32> to vector<8xf32>
    %166 = vector.shape_cast %165 : vector<8xf32> to vector<8x1xf32>
    %167 = vector.broadcast %166 : vector<8x1xf32> to vector<8x8xf32>
    %168 = arith.subf %164, %167 : vector<8x8xf32>
    %169 = math.exp %168 : vector<8x8xf32>
    %cst_112 = arith.constant dense<0.000000e+00> : vector<8xf32>
    %170 = vector.multi_reduction <add>, %169, %cst_112 [1] : vector<8x8xf32> to vector<8xf32>
    %171 = vector.shape_cast %170 : vector<8xf32> to vector<8x1xf32>
    %172 = tpu.reciprocal %171 {approx = true} : vector<8x1xf32> -> vector<8x1xf32>
    %173 = vector.broadcast %172 : vector<8x1xf32> to vector<8x8xf32>
    %174 = arith.mulf %169, %173 : vector<8x8xf32>
    %175 = arith.truncf %174 : vector<8x8xf32> to vector<8x8xbf16>
    %176 = arith.truncf %159 : vector<8x8xf32> to vector<8x8xbf16>
    %cst_113 = arith.constant dense<0.000000e+00> : vector<8x8xf32>
    %177 = tpu.matmul %175, %176, %cst_113 {dimension_numbers = #tpu.dot_dimension_numbers<[1], [0], [0], [1], [0, 0, 1, 1], [], []>} : vector<8x8xbf16>, vector<8x8xbf16>, vector<8x8xf32> -> vector<8x8xf32>
    %178 = arith.truncf %177 : vector<8x8xf32> to vector<8x8xbf16>
    %c3_114 = arith.constant 3 : index
    %c0_115 = arith.constant 0 : index
    %c0_116 = arith.constant 0 : index
    %179 = vector.load %arg9[%c3_114, %c0_115, %c0_116] : memref<4x8x32xbf16, #tpu.memory_space<vmem>>, vector<1x8x32xbf16>
    %180 = vector.shape_cast %179 : vector<1x8x32xbf16> to vector<8x32xbf16>
    %cst_117 = arith.constant dense<0.000000e+00> : vector<8x32xf32>
    %181 = tpu.matmul %178, %180, %cst_117 {dimension_numbers = #tpu.dot_dimension_numbers<[1], [0], [0], [1], [0, 0, 1, 1], [], []>} : vector<8x8xbf16>, vector<8x32xbf16>, vector<8x32xf32> -> vector<8x32xf32>
    %182 = arith.addf %138, %181 : vector<8x32xf32>
    %c0_118 = arith.constant 0 : index
    %c0_119 = arith.constant 0 : index
    %183 = vector.load %arg10[%c0_118, %c0_119] : memref<1x32xf32, #tpu.memory_space<vmem>>, vector<1x32xf32>
    %184 = vector.broadcast %183 : vector<1x32xf32> to vector<8x32xf32>
    %185 = arith.addf %182, %184 : vector<8x32xf32>
    %186 = arith.addf %1, %185 : vector<8x32xf32>
    %c0_120 = arith.constant 0 : index
    %c0_121 = arith.constant 0 : index
    %187 = vector.load %arg11[%c0_120, %c0_121] : memref<1x32xf32, #tpu.memory_space<vmem>>, vector<1x32xf32>
    %c0_122 = arith.constant 0 : index
    %c0_123 = arith.constant 0 : index
    %188 = vector.load %arg12[%c0_122, %c0_123] : memref<1x32xf32, #tpu.memory_space<vmem>>, vector<1x32xf32>
    %cst_124 = arith.constant dense<0.000000e+00> : vector<8xf32>
    %189 = vector.multi_reduction <add>, %186, %cst_124 [1] : vector<8x32xf32> to vector<8xf32>
    %190 = vector.shape_cast %189 : vector<8xf32> to vector<8x1xf32>
    %cst_125 = arith.constant 3.200000e+01 : f32
    %191 = vector.broadcast %cst_125 : f32 to vector<8x1xf32>
    %192 = arith.divf %190, %191 : vector<8x1xf32>
    %193 = vector.broadcast %192 : vector<8x1xf32> to vector<8x32xf32>
    %194 = arith.subf %186, %193 : vector<8x32xf32>
    %195 = arith.mulf %194, %194 : vector<8x32xf32>
    %cst_126 = arith.constant dense<0.000000e+00> : vector<8xf32>
    %196 = vector.multi_reduction <add>, %195, %cst_126 [1] : vector<8x32xf32> to vector<8xf32>
    %197 = vector.shape_cast %196 : vector<8xf32> to vector<8x1xf32>
    %cst_127 = arith.constant 3.200000e+01 : f32
    %198 = vector.broadcast %cst_127 : f32 to vector<8x1xf32>
    %199 = arith.divf %197, %198 : vector<8x1xf32>
    %200 = vector.broadcast %192 : vector<8x1xf32> to vector<8x32xf32>
    %201 = arith.subf %186, %200 : vector<8x32xf32>
    %cst_128 = arith.constant 9.99999974E-6 : f32
    %202 = vector.broadcast %cst_128 : f32 to vector<8x1xf32>
    %203 = arith.addf %199, %202 : vector<8x1xf32>
    %204 = math.rsqrt %203 : vector<8x1xf32>
    %205 = vector.broadcast %204 : vector<8x1xf32> to vector<8x32xf32>
    %206 = arith.mulf %201, %205 : vector<8x32xf32>
    %207 = vector.broadcast %187 : vector<1x32xf32> to vector<8x32xf32>
    %208 = arith.mulf %206, %207 : vector<8x32xf32>
    %209 = vector.broadcast %188 : vector<1x32xf32> to vector<8x32xf32>
    %210 = arith.addf %208, %209 : vector<8x32xf32>
    %211 = arith.truncf %210 : vector<8x32xf32> to vector<8x32xbf16>
    %c0_129 = arith.constant 0 : index
    %c0_130 = arith.constant 0 : index
    %212 = vector.load %arg13[%c0_129, %c0_130] : memref<32x64xbf16, #tpu.memory_space<vmem>>, vector<32x64xbf16>
    %cst_131 = arith.constant dense<0.000000e+00> : vector<8x64xf32>
    %213 = tpu.matmul %211, %212, %cst_131 {dimension_numbers = #tpu.dot_dimension_numbers<[1], [0], [0], [1], [0, 0, 1, 1], [], []>} : vector<8x32xbf16>, vector<32x64xbf16>, vector<8x64xf32> -> vector<8x64xf32>
    %c0_132 = arith.constant 0 : index
    %c0_133 = arith.constant 0 : index
    %214 = vector.load %arg14[%c0_132, %c0_133] : memref<1x64xf32, #tpu.memory_space<vmem>>, vector<1x64xf32>
    %215 = vector.broadcast %214 : vector<1x64xf32> to vector<8x64xf32>
    %216 = arith.addf %213, %215 : vector<8x64xf32>
    %cst_134 = arith.constant 0.000000e+00 : f32
    %217 = vector.broadcast %cst_134 : f32 to vector<8x64xf32>
    %218 = arith.maximumf %216, %217 : vector<8x64xf32>
    %219 = arith.truncf %218 : vector<8x64xf32> to vector<8x64xbf16>
    %c0_135 = arith.constant 0 : index
    %c0_136 = arith.constant 0 : index
    %220 = vector.load %arg15[%c0_135, %c0_136] : memref<64x32xbf16, #tpu.memory_space<vmem>>, vector<64x32xbf16>
    %cst_137 = arith.constant dense<0.000000e+00> : vector<8x32xf32>
    %221 = tpu.matmul %219, %220, %cst_137 {dimension_numbers = #tpu.dot_dimension_numbers<[1], [0], [0], [1], [0, 0, 1, 1], [], []>} : vector<8x64xbf16>, vector<64x32xbf16>, vector<8x32xf32> -> vector<8x32xf32>
    %c0_138 = arith.constant 0 : index
    %c0_139 = arith.constant 0 : index
    %222 = vector.load %arg16[%c0_138, %c0_139] : memref<1x32xf32, #tpu.memory_space<vmem>>, vector<1x32xf32>
    %223 = vector.broadcast %222 : vector<1x32xf32> to vector<8x32xf32>
    %224 = arith.addf %221, %223 : vector<8x32xf32>
    %225 = arith.addf %210, %224 : vector<8x32xf32>
    %c0_140 = arith.constant 0 : index
    %c0_141 = arith.constant 0 : index
    %226 = vector.load %arg17[%c0_140, %c0_141] : memref<1x32xf32, #tpu.memory_space<vmem>>, vector<1x32xf32>
    %c0_142 = arith.constant 0 : index
    %c0_143 = arith.constant 0 : index
    %227 = vector.load %arg18[%c0_142, %c0_143] : memref<1x32xf32, #tpu.memory_space<vmem>>, vector<1x32xf32>
    %cst_144 = arith.constant dense<0.000000e+00> : vector<8xf32>
    %228 = vector.multi_reduction <add>, %225, %cst_144 [1] : vector<8x32xf32> to vector<8xf32>
    %229 = vector.shape_cast %228 : vector<8xf32> to vector<8x1xf32>
    %cst_145 = arith.constant 3.200000e+01 : f32
    %230 = vector.broadcast %cst_145 : f32 to vector<8x1xf32>
    %231 = arith.divf %229, %230 : vector<8x1xf32>
    %232 = vector.broadcast %231 : vector<8x1xf32> to vector<8x32xf32>
    %233 = arith.subf %225, %232 : vector<8x32xf32>
    %234 = arith.mulf %233, %233 : vector<8x32xf32>
    %cst_146 = arith.constant dense<0.000000e+00> : vector<8xf32>
    %235 = vector.multi_reduction <add>, %234, %cst_146 [1] : vector<8x32xf32> to vector<8xf32>
    %236 = vector.shape_cast %235 : vector<8xf32> to vector<8x1xf32>
    %cst_147 = arith.constant 3.200000e+01 : f32
    %237 = vector.broadcast %cst_147 : f32 to vector<8x1xf32>
    %238 = arith.divf %236, %237 : vector<8x1xf32>
    %239 = vector.broadcast %231 : vector<8x1xf32> to vector<8x32xf32>
    %240 = arith.subf %225, %239 : vector<8x32xf32>
    %cst_148 = arith.constant 9.99999974E-6 : f32
    %241 = vector.broadcast %cst_148 : f32 to vector<8x1xf32>
    %242 = arith.addf %238, %241 : vector<8x1xf32>
    %243 = math.rsqrt %242 : vector<8x1xf32>
    %244 = vector.broadcast %243 : vector<8x1xf32> to vector<8x32xf32>
    %245 = arith.mulf %240, %244 : vector<8x32xf32>
    %246 = vector.broadcast %226 : vector<1x32xf32> to vector<8x32xf32>
    %247 = arith.mulf %245, %246 : vector<8x32xf32>
    %248 = vector.broadcast %227 : vector<1x32xf32> to vector<8x32xf32>
    %249 = arith.addf %247, %248 : vector<8x32xf32>
    %c0_149 = arith.constant 0 : index
    %c0_150 = arith.constant 0 : index
    %c0_151 = arith.constant 0 : index
    %250 = vector.load %arg19[%c0_149, %c0_150, %c0_151] : memref<1x8x32xf32, #tpu.memory_space<vmem>>, vector<1x8x32xf32>
    %251 = vector.shape_cast %250 : vector<1x8x32xf32> to vector<8x32xf32>
    %252 = vector.shape_cast %249 : vector<8x32xf32> to vector<1x8x32xf32>
    tpu.vector_store %arg19[%c0_149, %c0_150, %c0_151], %252 {strides = array<i32>} : memref<1x8x32xf32, #tpu.memory_space<vmem>>, vector<1x8x32xf32>,
    return
  }
  func.func @transform_0(%arg0: i32) -> (i32, i32, i32) {
    %c0_i32 = arith.constant 0 : i32
    %c0_i32_0 = arith.constant 0 : i32
    %c0_i32_1 = arith.constant 0 : i32
    return %arg0, %c0_i32, %c0_i32_0 : i32, i32, i32
  }
  func.func @transform_1(%arg0: i32) -> (i32, i32, i32) {
    %c0_i32 = arith.constant 0 : i32
    %c0_i32_0 = arith.constant 0 : i32
    %c0_i32_1 = arith.constant 0 : i32
    return %arg0, %c0_i32, %c0_i32_0 : i32, i32, i32
  }
  func.func @transform_2(%arg0: i32) -> (i32, i32, i32) {
    %c0_i32 = arith.constant 0 : i32
    %c0_i32_0 = arith.constant 0 : i32
    %c0_i32_1 = arith.constant 0 : i32
    %c0_i32_2 = arith.constant 0 : i32
    return %c0_i32, %c0_i32_0, %c0_i32_1 : i32, i32, i32
  }
  func.func @transform_3(%arg0: i32) -> (i32, i32, i32) {
    %c0_i32 = arith.constant 0 : i32
    %c0_i32_0 = arith.constant 0 : i32
    %c0_i32_1 = arith.constant 0 : i32
    %c0_i32_2 = arith.constant 0 : i32
    return %c0_i32, %c0_i32_0, %c0_i32_1 : i32, i32, i32
  }
  func.func @transform_4(%arg0: i32) -> (i32, i32, i32) {
    %c0_i32 = arith.constant 0 : i32
    %c0_i32_0 = arith.constant 0 : i32
    %c0_i32_1 = arith.constant 0 : i32
    %c0_i32_2 = arith.constant 0 : i32
    return %c0_i32, %c0_i32_0, %c0_i32_1 : i32, i32, i32
  }
  func.func @transform_5(%arg0: i32) -> (i32, i32, i32) {
    %c0_i32 = arith.constant 0 : i32
    %c0_i32_0 = arith.constant 0 : i32
    %c0_i32_1 = arith.constant 0 : i32
    %c0_i32_2 = arith.constant 0 : i32
    return %c0_i32, %c0_i32_0, %c0_i32_1 : i32, i32, i32
  }
  func.func @transform_6(%arg0: i32) -> (i32, i32, i32) {
    %c0_i32 = arith.constant 0 : i32
    %c0_i32_0 = arith.constant 0 : i32
    %c0_i32_1 = arith.constant 0 : i32
    %c0_i32_2 = arith.constant 0 : i32
    return %c0_i32, %c0_i32_0, %c0_i32_1 : i32, i32, i32
  }
  func.func @transform_7(%arg0: i32) -> (i32, i32, i32) {
    %c0_i32 = arith.constant 0 : i32
    %c0_i32_0 = arith.constant 0 : i32
    %c0_i32_1 = arith.constant 0 : i32
    %c0_i32_2 = arith.constant 0 : i32
    return %c0_i32, %c0_i32_0, %c0_i32_1 : i32, i32, i32
  }
  func.func @transform_8(%arg0: i32) -> (i32, i32, i32) {
    %c0_i32 = arith.constant 0 : i32
    %c0_i32_0 = arith.constant 0 : i32
    %c0_i32_1 = arith.constant 0 : i32
    %c0_i32_2 = arith.constant 0 : i32
    return %c0_i32, %c0_i32_0, %c0_i32_1 : i32, i32, i32
  }
  func.func @transform_9(%arg0: i32) -> (i32, i32) {
    %c0_i32 = arith.constant 0 : i32
    %c0_i32_0 = arith.constant 0 : i32
    %c0_i32_1 = arith.constant 0 : i32
    return %c0_i32, %c0_i32_0 : i32, i32
  }
  func.func @transform_10(%arg0: i32) -> (i32, i32) {
    %c0_i32 = arith.constant 0 : i32
    %c0_i32_0 = arith.constant 0 : i32
    %c0_i32_1 = arith.constant 0 : i32
    return %c0_i32, %c0_i32_0 : i32, i32
  }
  func.func @transform_11(%arg0: i32) -> (i32, i32) {
    %c0_i32 = arith.constant 0 : i32
    %c0_i32_0 = arith.constant 0 : i32
    %c0_i32_1 = arith.constant 0 : i32
    return %c0_i32, %c0_i32_0 : i32, i32
  }
  func.func @transform_12(%arg0: i32) -> (i32, i32) {
    %c0_i32 = arith.constant 0 : i32
    %c0_i32_0 = arith.constant 0 : i32
    %c0_i32_1 = arith.constant 0 : i32
    return %c0_i32, %c0_i32_0 : i32, i32
  }
  func.func @transform_13(%arg0: i32) -> (i32, i32) {
    %c0_i32 = arith.constant 0 : i32
    %c0_i32_0 = arith.constant 0 : i32
    %c0_i32_1 = arith.constant 0 : i32
    return %c0_i32, %c0_i32_0 : i32, i32
  }
  func.func @transform_14(%arg0: i32) -> (i32, i32) {
    %c0_i32 = arith.constant 0 : i32
    %c0_i32_0 = arith.constant 0 : i32
    %c0_i32_1 = arith.constant 0 : i32
    return %c0_i32, %c0_i32_0 : i32, i32
  }
  func.func @transform_15(%arg0: i32) -> (i32, i32) {
    %c0_i32 = arith.constant 0 : i32
    %c0_i32_0 = arith.constant 0 : i32
    %c0_i32_1 = arith.constant 0 : i32
    return %c0_i32, %c0_i32_0 : i32, i32
  }
  func.func @transform_16(%arg0: i32) -> (i32, i32) {
    %c0_i32 = arith.constant 0 : i32
    %c0_i32_0 = arith.constant 0 : i32
    %c0_i32_1 = arith.constant 0 : i32
    return %c0_i32, %c0_i32_0 : i32, i32
  }
  func.func @transform_17(%arg0: i32) -> (i32, i32) {
    %c0_i32 = arith.constant 0 : i32
    %c0_i32_0 = arith.constant 0 : i32
    %c0_i32_1 = arith.constant 0 : i32
    return %c0_i32, %c0_i32_0 : i32, i32
  }
  func.func @transform_18(%arg0: i32) -> (i32, i32, i32) {
    %c0_i32 = arith.constant 0 : i32
    %c0_i32_0 = arith.constant 0 : i32
    %c0_i32_1 = arith.constant 0 : i32
    return %arg0, %c0_i32, %c0_i32_0 : i32, i32, i32
  }
}

module attributes {stable_mosaic.version = 11 : i64} {
  func.func @_dec_layer_kernel(%arg0: i32, %arg1: memref<1x8x32xf32, #tpu.memory_space<vmem>>, %arg2: memref<1x8x32xf32, #tpu.memory_space<vmem>>, %arg3: memref<4x32x8xbf16, #tpu.memory_space<vmem>>, %arg4: memref<4x1x8xf32, #tpu.memory_space<vmem>>, %arg5: memref<4x32x8xbf16, #tpu.memory_space<vmem>>, %arg6: memref<4x1x8xf32, #tpu.memory_space<vmem>>, %arg7: memref<4x32x8xbf16, #tpu.memory_space<vmem>>, %arg8: memref<4x1x8xf32, #tpu.memory_space<vmem>>, %arg9: memref<4x8x32xbf16, #tpu.memory_space<vmem>>, %arg10: memref<1x32xf32, #tpu.memory_space<vmem>>, %arg11: memref<1x32xf32, #tpu.memory_space<vmem>>, %arg12: memref<1x32xf32, #tpu.memory_space<vmem>>, %arg13: memref<4x32x8xbf16, #tpu.memory_space<vmem>>, %arg14: memref<4x1x8xf32, #tpu.memory_space<vmem>>, %arg15: memref<4x32x8xbf16, #tpu.memory_space<vmem>>, %arg16: memref<4x1x8xf32, #tpu.memory_space<vmem>>, %arg17: memref<4x32x8xbf16, #tpu.memory_space<vmem>>, %arg18: memref<4x1x8xf32, #tpu.memory_space<vmem>>, %arg19: memref<4x8x32xbf16, #tpu.memory_space<vmem>>, %arg20: memref<1x32xf32, #tpu.memory_space<vmem>>, %arg21: memref<1x32xf32, #tpu.memory_space<vmem>>, %arg22: memref<1x32xf32, #tpu.memory_space<vmem>>, %arg23: memref<32x64xbf16, #tpu.memory_space<vmem>>, %arg24: memref<1x64xf32, #tpu.memory_space<vmem>>, %arg25: memref<64x32xbf16, #tpu.memory_space<vmem>>, %arg26: memref<1x32xf32, #tpu.memory_space<vmem>>, %arg27: memref<1x32xf32, #tpu.memory_space<vmem>>, %arg28: memref<1x32xf32, #tpu.memory_space<vmem>>, %arg29: memref<1x8x32xf32, #tpu.memory_space<vmem>>) attributes {dimension_semantics = [#tpu.dimension_semantics<parallel>], iteration_bounds = array<i64: 2>, scalar_prefetch = 0 : i64, scratch_operands = 0 : i64, tpu.core_type = #tpu.core_type<tc>, window_params = [{transform_indices = @transform_0, window_bounds = array<i64: 1, 8, 32>}, {transform_indices = @transform_1, window_bounds = array<i64: 1, 8, 32>}, {pipeline_mode = #tpu.pipeline_mode<synchronous>, transform_indices = @transform_2, window_bounds = array<i64: 4, 32, 8>}, {pipeline_mode = #tpu.pipeline_mode<synchronous>, transform_indices = @transform_3, window_bounds = array<i64: 4, 1, 8>}, {pipeline_mode = #tpu.pipeline_mode<synchronous>, transform_indices = @transform_4, window_bounds = array<i64: 4, 32, 8>}, {pipeline_mode = #tpu.pipeline_mode<synchronous>, transform_indices = @transform_5, window_bounds = array<i64: 4, 1, 8>}, {pipeline_mode = #tpu.pipeline_mode<synchronous>, transform_indices = @transform_6, window_bounds = array<i64: 4, 32, 8>}, {pipeline_mode = #tpu.pipeline_mode<synchronous>, transform_indices = @transform_7, window_bounds = array<i64: 4, 1, 8>}, {pipeline_mode = #tpu.pipeline_mode<synchronous>, transform_indices = @transform_8, window_bounds = array<i64: 4, 8, 32>}, {pipeline_mode = #tpu.pipeline_mode<synchronous>, transform_indices = @transform_9, window_bounds = array<i64: 1, 32>}, {pipeline_mode = #tpu.pipeline_mode<synchronous>, transform_indices = @transform_10, window_bounds = array<i64: 1, 32>}, {pipeline_mode = #tpu.pipeline_mode<synchronous>, transform_indices = @transform_11, window_bounds = array<i64: 1, 32>}, {pipeline_mode = #tpu.pipeline_mode<synchronous>, transform_indices = @transform_12, window_bounds = array<i64: 4, 32, 8>}, {pipeline_mode = #tpu.pipeline_mode<synchronous>, transform_indices = @transform_13, window_bounds = array<i64: 4, 1, 8>}, {pipeline_mode = #tpu.pipeline_mode<synchronous>, transform_indices = @transform_14, window_bounds = array<i64: 4, 32, 8>}, {pipeline_mode = #tpu.pipeline_mode<synchronous>, transform_indices = @transform_15, window_bounds = array<i64: 4, 1, 8>}, {pipeline_mode = #tpu.pipeline_mode<synchronous>, transform_indices = @transform_16, window_bounds = array<i64: 4, 32, 8>}, {pipeline_mode = #tpu.pipeline_mode<synchronous>, transform_indices = @transform_17, window_bounds = array<i64: 4, 1, 8>}, {pipeline_mode = #tpu.pipeline_mode<synchronous>, transform_indices = @transform_18, window_bounds = array<i64: 4, 8, 32>}, {pipeline_mode = #tpu.pipeline_mode<synchronous>, transform_indices = @transform_19, window_bounds = array<i64: 1, 32>}, {pipeline_mode = #tpu.pipeline_mode<synchronous>, transform_indices = @transform_20, window_bounds = array<i64: 1, 32>}, {pipeline_mode = #tpu.pipeline_mode<synchronous>, transform_indices = @transform_21, window_bounds = array<i64: 1, 32>}, {pipeline_mode = #tpu.pipeline_mode<synchronous>, transform_indices = @transform_22, window_bounds = array<i64: 32, 64>}, {pipeline_mode = #tpu.pipeline_mode<synchronous>, transform_indices = @transform_23, window_bounds = array<i64: 1, 64>}, {pipeline_mode = #tpu.pipeline_mode<synchronous>, transform_indices = @transform_24, window_bounds = array<i64: 64, 32>}, {pipeline_mode = #tpu.pipeline_mode<synchronous>, transform_indices = @transform_25, window_bounds = array<i64: 1, 32>}, {pipeline_mode = #tpu.pipeline_mode<synchronous>, transform_indices = @transform_26, window_bounds = array<i64: 1, 32>}, {pipeline_mode = #tpu.pipeline_mode<synchronous>, transform_indices = @transform_27, window_bounds = array<i64: 1, 32>}, {transform_indices = @transform_28, window_bounds = array<i64: 1, 8, 32>}]} {
    %c0 = arith.constant 0 : index
    %c0_0 = arith.constant 0 : index
    %c0_1 = arith.constant 0 : index
    %0 = vector.load %arg1[%c0, %c0_0, %c0_1] : memref<1x8x32xf32, #tpu.memory_space<vmem>>, vector<1x8x32xf32>
    %1 = vector.shape_cast %0 : vector<1x8x32xf32> to vector<8x32xf32>
    %c0_2 = arith.constant 0 : index
    %c0_3 = arith.constant 0 : index
    %c0_4 = arith.constant 0 : index
    %2 = vector.load %arg2[%c0_2, %c0_3, %c0_4] : memref<1x8x32xf32, #tpu.memory_space<vmem>>, vector<1x8x32xf32>
    %3 = vector.shape_cast %2 : vector<1x8x32xf32> to vector<8x32xf32>
    %4 = arith.truncf %1 : vector<8x32xf32> to vector<8x32xbf16>
    %5 = arith.truncf %1 : vector<8x32xf32> to vector<8x32xbf16>
    %cst = arith.constant 0.000000e+00 : f32
    %6 = vector.broadcast %cst : f32 to vector<8x32xf32>
    %c0_5 = arith.constant 0 : index
    %c0_6 = arith.constant 0 : index
    %c0_7 = arith.constant 0 : index
    %7 = vector.load %arg3[%c0_5, %c0_6, %c0_7] : memref<4x32x8xbf16, #tpu.memory_space<vmem>>, vector<1x32x8xbf16>
    %8 = vector.shape_cast %7 : vector<1x32x8xbf16> to vector<32x8xbf16>
    %cst_8 = arith.constant dense<0.000000e+00> : vector<8x8xf32>
    %9 = tpu.matmul %4, %8, %cst_8 {dimension_numbers = #tpu.dot_dimension_numbers<[1], [0], [0], [1], [0, 0, 1, 1], [], []>} : vector<8x32xbf16>, vector<32x8xbf16>, vector<8x8xf32> -> vector<8x8xf32>
    %c0_9 = arith.constant 0 : index
    %c0_10 = arith.constant 0 : index
    %c0_11 = arith.constant 0 : index
    %10 = vector.load %arg4[%c0_9, %c0_10, %c0_11] : memref<4x1x8xf32, #tpu.memory_space<vmem>>, vector<1x1x8xf32>
    %11 = vector.shape_cast %10 : vector<1x1x8xf32> to vector<1x8xf32>
    %12 = vector.broadcast %11 : vector<1x8xf32> to vector<8x8xf32>
    %13 = arith.addf %9, %12 : vector<8x8xf32>
    %c0_12 = arith.constant 0 : index
    %c0_13 = arith.constant 0 : index
    %c0_14 = arith.constant 0 : index
    %14 = vector.load %arg5[%c0_12, %c0_13, %c0_14] : memref<4x32x8xbf16, #tpu.memory_space<vmem>>, vector<1x32x8xbf16>
    %15 = vector.shape_cast %14 : vector<1x32x8xbf16> to vector<32x8xbf16>
    %cst_15 = arith.constant dense<0.000000e+00> : vector<8x8xf32>
    %16 = tpu.matmul %5, %15, %cst_15 {dimension_numbers = #tpu.dot_dimension_numbers<[1], [0], [0], [1], [0, 0, 1, 1], [], []>} : vector<8x32xbf16>, vector<32x8xbf16>, vector<8x8xf32> -> vector<8x8xf32>
    %c0_16 = arith.constant 0 : index
    %c0_17 = arith.constant 0 : index
    %c0_18 = arith.constant 0 : index
    %17 = vector.load %arg6[%c0_16, %c0_17, %c0_18] : memref<4x1x8xf32, #tpu.memory_space<vmem>>, vector<1x1x8xf32>
    %18 = vector.shape_cast %17 : vector<1x1x8xf32> to vector<1x8xf32>
    %19 = vector.broadcast %18 : vector<1x8xf32> to vector<8x8xf32>
    %20 = arith.addf %16, %19 : vector<8x8xf32>
    %c0_19 = arith.constant 0 : index
    %c0_20 = arith.constant 0 : index
    %c0_21 = arith.constant 0 : index
    %21 = vector.load %arg7[%c0_19, %c0_20, %c0_21] : memref<4x32x8xbf16, #tpu.memory_space<vmem>>, vector<1x32x8xbf16>
    %22 = vector.shape_cast %21 : vector<1x32x8xbf16> to vector<32x8xbf16>
    %cst_22 = arith.constant dense<0.000000e+00> : vector<8x8xf32>
    %23 = tpu.matmul %5, %22, %cst_22 {dimension_numbers = #tpu.dot_dimension_numbers<[1], [0], [0], [1], [0, 0, 1, 1], [], []>} : vector<8x32xbf16>, vector<32x8xbf16>, vector<8x8xf32> -> vector<8x8xf32>
    %c0_23 = arith.constant 0 : index
    %c0_24 = arith.constant 0 : index
    %c0_25 = arith.constant 0 : index
    %24 = vector.load %arg8[%c0_23, %c0_24, %c0_25] : memref<4x1x8xf32, #tpu.memory_space<vmem>>, vector<1x1x8xf32>
    %25 = vector.shape_cast %24 : vector<1x1x8xf32> to vector<1x8xf32>
    %26 = vector.broadcast %25 : vector<1x8xf32> to vector<8x8xf32>
    %27 = arith.addf %23, %26 : vector<8x8xf32>
    %28 = arith.truncf %13 : vector<8x8xf32> to vector<8x8xbf16>
    %29 = arith.truncf %20 : vector<8x8xf32> to vector<8x8xbf16>
    %cst_26 = arith.constant dense<0.000000e+00> : vector<8x8xf32>
    %30 = tpu.matmul %28, %29, %cst_26 {dimension_numbers = #tpu.dot_dimension_numbers<[1], [1], [0], [0], [0, 0, 1, 0], [], []>} : vector<8x8xbf16>, vector<8x8xbf16>, vector<8x8xf32> -> vector<8x8xf32>
    %cst_27 = arith.constant dense<0xFF800000> : vector<8xf32>
    %31 = vector.multi_reduction <maximumf>, %30, %cst_27 [1] : vector<8x8xf32> to vector<8xf32>
    %32 = vector.shape_cast %31 : vector<8xf32> to vector<8x1xf32>
    %33 = vector.broadcast %32 : vector<8x1xf32> to vector<8x8xf32>
    %34 = arith.subf %30, %33 : vector<8x8xf32>
    %35 = math.exp %34 : vector<8x8xf32>
    %cst_28 = arith.constant dense<0.000000e+00> : vector<8xf32>
    %36 = vector.multi_reduction <add>, %35, %cst_28 [1] : vector<8x8xf32> to vector<8xf32>
    %37 = vector.shape_cast %36 : vector<8xf32> to vector<8x1xf32>
    %38 = tpu.reciprocal %37 {approx = true} : vector<8x1xf32> -> vector<8x1xf32>
    %39 = vector.broadcast %38 : vector<8x1xf32> to vector<8x8xf32>
    %40 = arith.mulf %35, %39 : vector<8x8xf32>
    %41 = arith.truncf %40 : vector<8x8xf32> to vector<8x8xbf16>
    %42 = arith.truncf %27 : vector<8x8xf32> to vector<8x8xbf16>
    %cst_29 = arith.constant dense<0.000000e+00> : vector<8x8xf32>
    %43 = tpu.matmul %41, %42, %cst_29 {dimension_numbers = #tpu.dot_dimension_numbers<[1], [0], [0], [1], [0, 0, 1, 1], [], []>} : vector<8x8xbf16>, vector<8x8xbf16>, vector<8x8xf32> -> vector<8x8xf32>
    %44 = arith.truncf %43 : vector<8x8xf32> to vector<8x8xbf16>
    %c0_30 = arith.constant 0 : index
    %c0_31 = arith.constant 0 : index
    %c0_32 = arith.constant 0 : index
    %45 = vector.load %arg9[%c0_30, %c0_31, %c0_32] : memref<4x8x32xbf16, #tpu.memory_space<vmem>>, vector<1x8x32xbf16>
    %46 = vector.shape_cast %45 : vector<1x8x32xbf16> to vector<8x32xbf16>
    %cst_33 = arith.constant dense<0.000000e+00> : vector<8x32xf32>
    %47 = tpu.matmul %44, %46, %cst_33 {dimension_numbers = #tpu.dot_dimension_numbers<[1], [0], [0], [1], [0, 0, 1, 1], [], []>} : vector<8x8xbf16>, vector<8x32xbf16>, vector<8x32xf32> -> vector<8x32xf32>
    %48 = arith.addf %6, %47 : vector<8x32xf32>
    %c1 = arith.constant 1 : index
    %c0_34 = arith.constant 0 : index
    %c0_35 = arith.constant 0 : index
    %49 = vector.load %arg3[%c1, %c0_34, %c0_35] : memref<4x32x8xbf16, #tpu.memory_space<vmem>>, vector<1x32x8xbf16>
    %50 = vector.shape_cast %49 : vector<1x32x8xbf16> to vector<32x8xbf16>
    %cst_36 = arith.constant dense<0.000000e+00> : vector<8x8xf32>
    %51 = tpu.matmul %4, %50, %cst_36 {dimension_numbers = #tpu.dot_dimension_numbers<[1], [0], [0], [1], [0, 0, 1, 1], [], []>} : vector<8x32xbf16>, vector<32x8xbf16>, vector<8x8xf32> -> vector<8x8xf32>
    %c1_37 = arith.constant 1 : index
    %c0_38 = arith.constant 0 : index
    %c0_39 = arith.constant 0 : index
    %52 = vector.load %arg4[%c1_37, %c0_38, %c0_39] : memref<4x1x8xf32, #tpu.memory_space<vmem>>, vector<1x1x8xf32>
    %53 = vector.shape_cast %52 : vector<1x1x8xf32> to vector<1x8xf32>
    %54 = vector.broadcast %53 : vector<1x8xf32> to vector<8x8xf32>
    %55 = arith.addf %51, %54 : vector<8x8xf32>
    %c1_40 = arith.constant 1 : index
    %c0_41 = arith.constant 0 : index
    %c0_42 = arith.constant 0 : index
    %56 = vector.load %arg5[%c1_40, %c0_41, %c0_42] : memref<4x32x8xbf16, #tpu.memory_space<vmem>>, vector<1x32x8xbf16>
    %57 = vector.shape_cast %56 : vector<1x32x8xbf16> to vector<32x8xbf16>
    %cst_43 = arith.constant dense<0.000000e+00> : vector<8x8xf32>
    %58 = tpu.matmul %5, %57, %cst_43 {dimension_numbers = #tpu.dot_dimension_numbers<[1], [0], [0], [1], [0, 0, 1, 1], [], []>} : vector<8x32xbf16>, vector<32x8xbf16>, vector<8x8xf32> -> vector<8x8xf32>
    %c1_44 = arith.constant 1 : index
    %c0_45 = arith.constant 0 : index
    %c0_46 = arith.constant 0 : index
    %59 = vector.load %arg6[%c1_44, %c0_45, %c0_46] : memref<4x1x8xf32, #tpu.memory_space<vmem>>, vector<1x1x8xf32>
    %60 = vector.shape_cast %59 : vector<1x1x8xf32> to vector<1x8xf32>
    %61 = vector.broadcast %60 : vector<1x8xf32> to vector<8x8xf32>
    %62 = arith.addf %58, %61 : vector<8x8xf32>
    %c1_47 = arith.constant 1 : index
    %c0_48 = arith.constant 0 : index
    %c0_49 = arith.constant 0 : index
    %63 = vector.load %arg7[%c1_47, %c0_48, %c0_49] : memref<4x32x8xbf16, #tpu.memory_space<vmem>>, vector<1x32x8xbf16>
    %64 = vector.shape_cast %63 : vector<1x32x8xbf16> to vector<32x8xbf16>
    %cst_50 = arith.constant dense<0.000000e+00> : vector<8x8xf32>
    %65 = tpu.matmul %5, %64, %cst_50 {dimension_numbers = #tpu.dot_dimension_numbers<[1], [0], [0], [1], [0, 0, 1, 1], [], []>} : vector<8x32xbf16>, vector<32x8xbf16>, vector<8x8xf32> -> vector<8x8xf32>
    %c1_51 = arith.constant 1 : index
    %c0_52 = arith.constant 0 : index
    %c0_53 = arith.constant 0 : index
    %66 = vector.load %arg8[%c1_51, %c0_52, %c0_53] : memref<4x1x8xf32, #tpu.memory_space<vmem>>, vector<1x1x8xf32>
    %67 = vector.shape_cast %66 : vector<1x1x8xf32> to vector<1x8xf32>
    %68 = vector.broadcast %67 : vector<1x8xf32> to vector<8x8xf32>
    %69 = arith.addf %65, %68 : vector<8x8xf32>
    %70 = arith.truncf %55 : vector<8x8xf32> to vector<8x8xbf16>
    %71 = arith.truncf %62 : vector<8x8xf32> to vector<8x8xbf16>
    %cst_54 = arith.constant dense<0.000000e+00> : vector<8x8xf32>
    %72 = tpu.matmul %70, %71, %cst_54 {dimension_numbers = #tpu.dot_dimension_numbers<[1], [1], [0], [0], [0, 0, 1, 0], [], []>} : vector<8x8xbf16>, vector<8x8xbf16>, vector<8x8xf32> -> vector<8x8xf32>
    %cst_55 = arith.constant dense<0xFF800000> : vector<8xf32>
    %73 = vector.multi_reduction <maximumf>, %72, %cst_55 [1] : vector<8x8xf32> to vector<8xf32>
    %74 = vector.shape_cast %73 : vector<8xf32> to vector<8x1xf32>
    %75 = vector.broadcast %74 : vector<8x1xf32> to vector<8x8xf32>
    %76 = arith.subf %72, %75 : vector<8x8xf32>
    %77 = math.exp %76 : vector<8x8xf32>
    %cst_56 = arith.constant dense<0.000000e+00> : vector<8xf32>
    %78 = vector.multi_reduction <add>, %77, %cst_56 [1] : vector<8x8xf32> to vector<8xf32>
    %79 = vector.shape_cast %78 : vector<8xf32> to vector<8x1xf32>
    %80 = tpu.reciprocal %79 {approx = true} : vector<8x1xf32> -> vector<8x1xf32>
    %81 = vector.broadcast %80 : vector<8x1xf32> to vector<8x8xf32>
    %82 = arith.mulf %77, %81 : vector<8x8xf32>
    %83 = arith.truncf %82 : vector<8x8xf32> to vector<8x8xbf16>
    %84 = arith.truncf %69 : vector<8x8xf32> to vector<8x8xbf16>
    %cst_57 = arith.constant dense<0.000000e+00> : vector<8x8xf32>
    %85 = tpu.matmul %83, %84, %cst_57 {dimension_numbers = #tpu.dot_dimension_numbers<[1], [0], [0], [1], [0, 0, 1, 1], [], []>} : vector<8x8xbf16>, vector<8x8xbf16>, vector<8x8xf32> -> vector<8x8xf32>
    %86 = arith.truncf %85 : vector<8x8xf32> to vector<8x8xbf16>
    %c1_58 = arith.constant 1 : index
    %c0_59 = arith.constant 0 : index
    %c0_60 = arith.constant 0 : index
    %87 = vector.load %arg9[%c1_58, %c0_59, %c0_60] : memref<4x8x32xbf16, #tpu.memory_space<vmem>>, vector<1x8x32xbf16>
    %88 = vector.shape_cast %87 : vector<1x8x32xbf16> to vector<8x32xbf16>
    %cst_61 = arith.constant dense<0.000000e+00> : vector<8x32xf32>
    %89 = tpu.matmul %86, %88, %cst_61 {dimension_numbers = #tpu.dot_dimension_numbers<[1], [0], [0], [1], [0, 0, 1, 1], [], []>} : vector<8x8xbf16>, vector<8x32xbf16>, vector<8x32xf32> -> vector<8x32xf32>
    %90 = arith.addf %48, %89 : vector<8x32xf32>
    %c2 = arith.constant 2 : index
    %c0_62 = arith.constant 0 : index
    %c0_63 = arith.constant 0 : index
    %91 = vector.load %arg3[%c2, %c0_62, %c0_63] : memref<4x32x8xbf16, #tpu.memory_space<vmem>>, vector<1x32x8xbf16>
    %92 = vector.shape_cast %91 : vector<1x32x8xbf16> to vector<32x8xbf16>
    %cst_64 = arith.constant dense<0.000000e+00> : vector<8x8xf32>
    %93 = tpu.matmul %4, %92, %cst_64 {dimension_numbers = #tpu.dot_dimension_numbers<[1], [0], [0], [1], [0, 0, 1, 1], [], []>} : vector<8x32xbf16>, vector<32x8xbf16>, vector<8x8xf32> -> vector<8x8xf32>
    %c2_65 = arith.constant 2 : index
    %c0_66 = arith.constant 0 : index
    %c0_67 = arith.constant 0 : index
    %94 = vector.load %arg4[%c2_65, %c0_66, %c0_67] : memref<4x1x8xf32, #tpu.memory_space<vmem>>, vector<1x1x8xf32>
    %95 = vector.shape_cast %94 : vector<1x1x8xf32> to vector<1x8xf32>
    %96 = vector.broadcast %95 : vector<1x8xf32> to vector<8x8xf32>
    %97 = arith.addf %93, %96 : vector<8x8xf32>
    %c2_68 = arith.constant 2 : index
    %c0_69 = arith.constant 0 : index
    %c0_70 = arith.constant 0 : index
    %98 = vector.load %arg5[%c2_68, %c0_69, %c0_70] : memref<4x32x8xbf16, #tpu.memory_space<vmem>>, vector<1x32x8xbf16>
    %99 = vector.shape_cast %98 : vector<1x32x8xbf16> to vector<32x8xbf16>
    %cst_71 = arith.constant dense<0.000000e+00> : vector<8x8xf32>
    %100 = tpu.matmul %5, %99, %cst_71 {dimension_numbers = #tpu.dot_dimension_numbers<[1], [0], [0], [1], [0, 0, 1, 1], [], []>} : vector<8x32xbf16>, vector<32x8xbf16>, vector<8x8xf32> -> vector<8x8xf32>
    %c2_72 = arith.constant 2 : index
    %c0_73 = arith.constant 0 : index
    %c0_74 = arith.constant 0 : index
    %101 = vector.load %arg6[%c2_72, %c0_73, %c0_74] : memref<4x1x8xf32, #tpu.memory_space<vmem>>, vector<1x1x8xf32>
    %102 = vector.shape_cast %101 : vector<1x1x8xf32> to vector<1x8xf32>
    %103 = vector.broadcast %102 : vector<1x8xf32> to vector<8x8xf32>
    %104 = arith.addf %100, %103 : vector<8x8xf32>
    %c2_75 = arith.constant 2 : index
    %c0_76 = arith.constant 0 : index
    %c0_77 = arith.constant 0 : index
    %105 = vector.load %arg7[%c2_75, %c0_76, %c0_77] : memref<4x32x8xbf16, #tpu.memory_space<vmem>>, vector<1x32x8xbf16>
    %106 = vector.shape_cast %105 : vector<1x32x8xbf16> to vector<32x8xbf16>
    %cst_78 = arith.constant dense<0.000000e+00> : vector<8x8xf32>
    %107 = tpu.matmul %5, %106, %cst_78 {dimension_numbers = #tpu.dot_dimension_numbers<[1], [0], [0], [1], [0, 0, 1, 1], [], []>} : vector<8x32xbf16>, vector<32x8xbf16>, vector<8x8xf32> -> vector<8x8xf32>
    %c2_79 = arith.constant 2 : index
    %c0_80 = arith.constant 0 : index
    %c0_81 = arith.constant 0 : index
    %108 = vector.load %arg8[%c2_79, %c0_80, %c0_81] : memref<4x1x8xf32, #tpu.memory_space<vmem>>, vector<1x1x8xf32>
    %109 = vector.shape_cast %108 : vector<1x1x8xf32> to vector<1x8xf32>
    %110 = vector.broadcast %109 : vector<1x8xf32> to vector<8x8xf32>
    %111 = arith.addf %107, %110 : vector<8x8xf32>
    %112 = arith.truncf %97 : vector<8x8xf32> to vector<8x8xbf16>
    %113 = arith.truncf %104 : vector<8x8xf32> to vector<8x8xbf16>
    %cst_82 = arith.constant dense<0.000000e+00> : vector<8x8xf32>
    %114 = tpu.matmul %112, %113, %cst_82 {dimension_numbers = #tpu.dot_dimension_numbers<[1], [1], [0], [0], [0, 0, 1, 0], [], []>} : vector<8x8xbf16>, vector<8x8xbf16>, vector<8x8xf32> -> vector<8x8xf32>
    %cst_83 = arith.constant dense<0xFF800000> : vector<8xf32>
    %115 = vector.multi_reduction <maximumf>, %114, %cst_83 [1] : vector<8x8xf32> to vector<8xf32>
    %116 = vector.shape_cast %115 : vector<8xf32> to vector<8x1xf32>
    %117 = vector.broadcast %116 : vector<8x1xf32> to vector<8x8xf32>
    %118 = arith.subf %114, %117 : vector<8x8xf32>
    %119 = math.exp %118 : vector<8x8xf32>
    %cst_84 = arith.constant dense<0.000000e+00> : vector<8xf32>
    %120 = vector.multi_reduction <add>, %119, %cst_84 [1] : vector<8x8xf32> to vector<8xf32>
    %121 = vector.shape_cast %120 : vector<8xf32> to vector<8x1xf32>
    %122 = tpu.reciprocal %121 {approx = true} : vector<8x1xf32> -> vector<8x1xf32>
    %123 = vector.broadcast %122 : vector<8x1xf32> to vector<8x8xf32>
    %124 = arith.mulf %119, %123 : vector<8x8xf32>
    %125 = arith.truncf %124 : vector<8x8xf32> to vector<8x8xbf16>
    %126 = arith.truncf %111 : vector<8x8xf32> to vector<8x8xbf16>
    %cst_85 = arith.constant dense<0.000000e+00> : vector<8x8xf32>
    %127 = tpu.matmul %125, %126, %cst_85 {dimension_numbers = #tpu.dot_dimension_numbers<[1], [0], [0], [1], [0, 0, 1, 1], [], []>} : vector<8x8xbf16>, vector<8x8xbf16>, vector<8x8xf32> -> vector<8x8xf32>
    %128 = arith.truncf %127 : vector<8x8xf32> to vector<8x8xbf16>
    %c2_86 = arith.constant 2 : index
    %c0_87 = arith.constant 0 : index
    %c0_88 = arith.constant 0 : index
    %129 = vector.load %arg9[%c2_86, %c0_87, %c0_88] : memref<4x8x32xbf16, #tpu.memory_space<vmem>>, vector<1x8x32xbf16>
    %130 = vector.shape_cast %129 : vector<1x8x32xbf16> to vector<8x32xbf16>
    %cst_89 = arith.constant dense<0.000000e+00> : vector<8x32xf32>
    %131 = tpu.matmul %128, %130, %cst_89 {dimension_numbers = #tpu.dot_dimension_numbers<[1], [0], [0], [1], [0, 0, 1, 1], [], []>} : vector<8x8xbf16>, vector<8x32xbf16>, vector<8x32xf32> -> vector<8x32xf32>
    %132 = arith.addf %90, %131 : vector<8x32xf32>
    %c3 = arith.constant 3 : index
    %c0_90 = arith.constant 0 : index
    %c0_91 = arith.constant 0 : index
    %133 = vector.load %arg3[%c3, %c0_90, %c0_91] : memref<4x32x8xbf16, #tpu.memory_space<vmem>>, vector<1x32x8xbf16>
    %134 = vector.shape_cast %133 : vector<1x32x8xbf16> to vector<32x8xbf16>
    %cst_92 = arith.constant dense<0.000000e+00> : vector<8x8xf32>
    %135 = tpu.matmul %4, %134, %cst_92 {dimension_numbers = #tpu.dot_dimension_numbers<[1], [0], [0], [1], [0, 0, 1, 1], [], []>} : vector<8x32xbf16>, vector<32x8xbf16>, vector<8x8xf32> -> vector<8x8xf32>
    %c3_93 = arith.constant 3 : index
    %c0_94 = arith.constant 0 : index
    %c0_95 = arith.constant 0 : index
    %136 = vector.load %arg4[%c3_93, %c0_94, %c0_95] : memref<4x1x8xf32, #tpu.memory_space<vmem>>, vector<1x1x8xf32>
    %137 = vector.shape_cast %136 : vector<1x1x8xf32> to vector<1x8xf32>
    %138 = vector.broadcast %137 : vector<1x8xf32> to vector<8x8xf32>
    %139 = arith.addf %135, %138 : vector<8x8xf32>
    %c3_96 = arith.constant 3 : index
    %c0_97 = arith.constant 0 : index
    %c0_98 = arith.constant 0 : index
    %140 = vector.load %arg5[%c3_96, %c0_97, %c0_98] : memref<4x32x8xbf16, #tpu.memory_space<vmem>>, vector<1x32x8xbf16>
    %141 = vector.shape_cast %140 : vector<1x32x8xbf16> to vector<32x8xbf16>
    %cst_99 = arith.constant dense<0.000000e+00> : vector<8x8xf32>
    %142 = tpu.matmul %5, %141, %cst_99 {dimension_numbers = #tpu.dot_dimension_numbers<[1], [0], [0], [1], [0, 0, 1, 1], [], []>} : vector<8x32xbf16>, vector<32x8xbf16>, vector<8x8xf32> -> vector<8x8xf32>
    %c3_100 = arith.constant 3 : index
    %c0_101 = arith.constant 0 : index
    %c0_102 = arith.constant 0 : index
    %143 = vector.load %arg6[%c3_100, %c0_101, %c0_102] : memref<4x1x8xf32, #tpu.memory_space<vmem>>, vector<1x1x8xf32>
    %144 = vector.shape_cast %143 : vector<1x1x8xf32> to vector<1x8xf32>
    %145 = vector.broadcast %144 : vector<1x8xf32> to vector<8x8xf32>
    %146 = arith.addf %142, %145 : vector<8x8xf32>
    %c3_103 = arith.constant 3 : index
    %c0_104 = arith.constant 0 : index
    %c0_105 = arith.constant 0 : index
    %147 = vector.load %arg7[%c3_103, %c0_104, %c0_105] : memref<4x32x8xbf16, #tpu.memory_space<vmem>>, vector<1x32x8xbf16>
    %148 = vector.shape_cast %147 : vector<1x32x8xbf16> to vector<32x8xbf16>
    %cst_106 = arith.constant dense<0.000000e+00> : vector<8x8xf32>
    %149 = tpu.matmul %5, %148, %cst_106 {dimension_numbers = #tpu.dot_dimension_numbers<[1], [0], [0], [1], [0, 0, 1, 1], [], []>} : vector<8x32xbf16>, vector<32x8xbf16>, vector<8x8xf32> -> vector<8x8xf32>
    %c3_107 = arith.constant 3 : index
    %c0_108 = arith.constant 0 : index
    %c0_109 = arith.constant 0 : index
    %150 = vector.load %arg8[%c3_107, %c0_108, %c0_109] : memref<4x1x8xf32, #tpu.memory_space<vmem>>, vector<1x1x8xf32>
    %151 = vector.shape_cast %150 : vector<1x1x8xf32> to vector<1x8xf32>
    %152 = vector.broadcast %151 : vector<1x8xf32> to vector<8x8xf32>
    %153 = arith.addf %149, %152 : vector<8x8xf32>
    %154 = arith.truncf %139 : vector<8x8xf32> to vector<8x8xbf16>
    %155 = arith.truncf %146 : vector<8x8xf32> to vector<8x8xbf16>
    %cst_110 = arith.constant dense<0.000000e+00> : vector<8x8xf32>
    %156 = tpu.matmul %154, %155, %cst_110 {dimension_numbers = #tpu.dot_dimension_numbers<[1], [1], [0], [0], [0, 0, 1, 0], [], []>} : vector<8x8xbf16>, vector<8x8xbf16>, vector<8x8xf32> -> vector<8x8xf32>
    %cst_111 = arith.constant dense<0xFF800000> : vector<8xf32>
    %157 = vector.multi_reduction <maximumf>, %156, %cst_111 [1] : vector<8x8xf32> to vector<8xf32>
    %158 = vector.shape_cast %157 : vector<8xf32> to vector<8x1xf32>
    %159 = vector.broadcast %158 : vector<8x1xf32> to vector<8x8xf32>
    %160 = arith.subf %156, %159 : vector<8x8xf32>
    %161 = math.exp %160 : vector<8x8xf32>
    %cst_112 = arith.constant dense<0.000000e+00> : vector<8xf32>
    %162 = vector.multi_reduction <add>, %161, %cst_112 [1] : vector<8x8xf32> to vector<8xf32>
    %163 = vector.shape_cast %162 : vector<8xf32> to vector<8x1xf32>
    %164 = tpu.reciprocal %163 {approx = true} : vector<8x1xf32> -> vector<8x1xf32>
    %165 = vector.broadcast %164 : vector<8x1xf32> to vector<8x8xf32>
    %166 = arith.mulf %161, %165 : vector<8x8xf32>
    %167 = arith.truncf %166 : vector<8x8xf32> to vector<8x8xbf16>
    %168 = arith.truncf %153 : vector<8x8xf32> to vector<8x8xbf16>
    %cst_113 = arith.constant dense<0.000000e+00> : vector<8x8xf32>
    %169 = tpu.matmul %167, %168, %cst_113 {dimension_numbers = #tpu.dot_dimension_numbers<[1], [0], [0], [1], [0, 0, 1, 1], [], []>} : vector<8x8xbf16>, vector<8x8xbf16>, vector<8x8xf32> -> vector<8x8xf32>
    %170 = arith.truncf %169 : vector<8x8xf32> to vector<8x8xbf16>
    %c3_114 = arith.constant 3 : index
    %c0_115 = arith.constant 0 : index
    %c0_116 = arith.constant 0 : index
    %171 = vector.load %arg9[%c3_114, %c0_115, %c0_116] : memref<4x8x32xbf16, #tpu.memory_space<vmem>>, vector<1x8x32xbf16>
    %172 = vector.shape_cast %171 : vector<1x8x32xbf16> to vector<8x32xbf16>
    %cst_117 = arith.constant dense<0.000000e+00> : vector<8x32xf32>
    %173 = tpu.matmul %170, %172, %cst_117 {dimension_numbers = #tpu.dot_dimension_numbers<[1], [0], [0], [1], [0, 0, 1, 1], [], []>} : vector<8x8xbf16>, vector<8x32xbf16>, vector<8x32xf32> -> vector<8x32xf32>
    %174 = arith.addf %132, %173 : vector<8x32xf32>
    %c0_118 = arith.constant 0 : index
    %c0_119 = arith.constant 0 : index
    %175 = vector.load %arg10[%c0_118, %c0_119] : memref<1x32xf32, #tpu.memory_space<vmem>>, vector<1x32xf32>
    %176 = vector.broadcast %175 : vector<1x32xf32> to vector<8x32xf32>
    %177 = arith.addf %174, %176 : vector<8x32xf32>
    %178 = arith.addf %1, %177 : vector<8x32xf32>
    %c0_120 = arith.constant 0 : index
    %c0_121 = arith.constant 0 : index
    %179 = vector.load %arg11[%c0_120, %c0_121] : memref<1x32xf32, #tpu.memory_space<vmem>>, vector<1x32xf32>
    %c0_122 = arith.constant 0 : index
    %c0_123 = arith.constant 0 : index
    %180 = vector.load %arg12[%c0_122, %c0_123] : memref<1x32xf32, #tpu.memory_space<vmem>>, vector<1x32xf32>
    %cst_124 = arith.constant dense<0.000000e+00> : vector<8xf32>
    %181 = vector.multi_reduction <add>, %178, %cst_124 [1] : vector<8x32xf32> to vector<8xf32>
    %182 = vector.shape_cast %181 : vector<8xf32> to vector<8x1xf32>
    %cst_125 = arith.constant 3.200000e+01 : f32
    %183 = vector.broadcast %cst_125 : f32 to vector<8x1xf32>
    %184 = arith.divf %182, %183 : vector<8x1xf32>
    %185 = vector.broadcast %184 : vector<8x1xf32> to vector<8x32xf32>
    %186 = arith.subf %178, %185 : vector<8x32xf32>
    %187 = arith.mulf %186, %186 : vector<8x32xf32>
    %cst_126 = arith.constant dense<0.000000e+00> : vector<8xf32>
    %188 = vector.multi_reduction <add>, %187, %cst_126 [1] : vector<8x32xf32> to vector<8xf32>
    %189 = vector.shape_cast %188 : vector<8xf32> to vector<8x1xf32>
    %cst_127 = arith.constant 3.200000e+01 : f32
    %190 = vector.broadcast %cst_127 : f32 to vector<8x1xf32>
    %191 = arith.divf %189, %190 : vector<8x1xf32>
    %192 = vector.broadcast %184 : vector<8x1xf32> to vector<8x32xf32>
    %193 = arith.subf %178, %192 : vector<8x32xf32>
    %cst_128 = arith.constant 9.99999974E-6 : f32
    %194 = vector.broadcast %cst_128 : f32 to vector<8x1xf32>
    %195 = arith.addf %191, %194 : vector<8x1xf32>
    %196 = math.rsqrt %195 : vector<8x1xf32>
    %197 = vector.broadcast %196 : vector<8x1xf32> to vector<8x32xf32>
    %198 = arith.mulf %193, %197 : vector<8x32xf32>
    %199 = vector.broadcast %179 : vector<1x32xf32> to vector<8x32xf32>
    %200 = arith.mulf %198, %199 : vector<8x32xf32>
    %201 = vector.broadcast %180 : vector<1x32xf32> to vector<8x32xf32>
    %202 = arith.addf %200, %201 : vector<8x32xf32>
    %203 = arith.truncf %202 : vector<8x32xf32> to vector<8x32xbf16>
    %204 = arith.truncf %3 : vector<8x32xf32> to vector<8x32xbf16>
    %cst_129 = arith.constant 0.000000e+00 : f32
    %205 = vector.broadcast %cst_129 : f32 to vector<8x32xf32>
    %c0_130 = arith.constant 0 : index
    %c0_131 = arith.constant 0 : index
    %c0_132 = arith.constant 0 : index
    %206 = vector.load %arg13[%c0_130, %c0_131, %c0_132] : memref<4x32x8xbf16, #tpu.memory_space<vmem>>, vector<1x32x8xbf16>
    %207 = vector.shape_cast %206 : vector<1x32x8xbf16> to vector<32x8xbf16>
    %cst_133 = arith.constant dense<0.000000e+00> : vector<8x8xf32>
    %208 = tpu.matmul %203, %207, %cst_133 {dimension_numbers = #tpu.dot_dimension_numbers<[1], [0], [0], [1], [0, 0, 1, 1], [], []>} : vector<8x32xbf16>, vector<32x8xbf16>, vector<8x8xf32> -> vector<8x8xf32>
    %c0_134 = arith.constant 0 : index
    %c0_135 = arith.constant 0 : index
    %c0_136 = arith.constant 0 : index
    %209 = vector.load %arg14[%c0_134, %c0_135, %c0_136] : memref<4x1x8xf32, #tpu.memory_space<vmem>>, vector<1x1x8xf32>
    %210 = vector.shape_cast %209 : vector<1x1x8xf32> to vector<1x8xf32>
    %211 = vector.broadcast %210 : vector<1x8xf32> to vector<8x8xf32>
    %212 = arith.addf %208, %211 : vector<8x8xf32>
    %c0_137 = arith.constant 0 : index
    %c0_138 = arith.constant 0 : index
    %c0_139 = arith.constant 0 : index
    %213 = vector.load %arg15[%c0_137, %c0_138, %c0_139] : memref<4x32x8xbf16, #tpu.memory_space<vmem>>, vector<1x32x8xbf16>
    %214 = vector.shape_cast %213 : vector<1x32x8xbf16> to vector<32x8xbf16>
    %cst_140 = arith.constant dense<0.000000e+00> : vector<8x8xf32>
    %215 = tpu.matmul %204, %214, %cst_140 {dimension_numbers = #tpu.dot_dimension_numbers<[1], [0], [0], [1], [0, 0, 1, 1], [], []>} : vector<8x32xbf16>, vector<32x8xbf16>, vector<8x8xf32> -> vector<8x8xf32>
    %c0_141 = arith.constant 0 : index
    %c0_142 = arith.constant 0 : index
    %c0_143 = arith.constant 0 : index
    %216 = vector.load %arg16[%c0_141, %c0_142, %c0_143] : memref<4x1x8xf32, #tpu.memory_space<vmem>>, vector<1x1x8xf32>
    %217 = vector.shape_cast %216 : vector<1x1x8xf32> to vector<1x8xf32>
    %218 = vector.broadcast %217 : vector<1x8xf32> to vector<8x8xf32>
    %219 = arith.addf %215, %218 : vector<8x8xf32>
    %c0_144 = arith.constant 0 : index
    %c0_145 = arith.constant 0 : index
    %c0_146 = arith.constant 0 : index
    %220 = vector.load %arg17[%c0_144, %c0_145, %c0_146] : memref<4x32x8xbf16, #tpu.memory_space<vmem>>, vector<1x32x8xbf16>
    %221 = vector.shape_cast %220 : vector<1x32x8xbf16> to vector<32x8xbf16>
    %cst_147 = arith.constant dense<0.000000e+00> : vector<8x8xf32>
    %222 = tpu.matmul %204, %221, %cst_147 {dimension_numbers = #tpu.dot_dimension_numbers<[1], [0], [0], [1], [0, 0, 1, 1], [], []>} : vector<8x32xbf16>, vector<32x8xbf16>, vector<8x8xf32> -> vector<8x8xf32>
    %c0_148 = arith.constant 0 : index
    %c0_149 = arith.constant 0 : index
    %c0_150 = arith.constant 0 : index
    %223 = vector.load %arg18[%c0_148, %c0_149, %c0_150] : memref<4x1x8xf32, #tpu.memory_space<vmem>>, vector<1x1x8xf32>
    %224 = vector.shape_cast %223 : vector<1x1x8xf32> to vector<1x8xf32>
    %225 = vector.broadcast %224 : vector<1x8xf32> to vector<8x8xf32>
    %226 = arith.addf %222, %225 : vector<8x8xf32>
    %227 = arith.truncf %212 : vector<8x8xf32> to vector<8x8xbf16>
    %228 = arith.truncf %219 : vector<8x8xf32> to vector<8x8xbf16>
    %cst_151 = arith.constant dense<0.000000e+00> : vector<8x8xf32>
    %229 = tpu.matmul %227, %228, %cst_151 {dimension_numbers = #tpu.dot_dimension_numbers<[1], [1], [0], [0], [0, 0, 1, 0], [], []>} : vector<8x8xbf16>, vector<8x8xbf16>, vector<8x8xf32> -> vector<8x8xf32>
    %cst_152 = arith.constant dense<0xFF800000> : vector<8xf32>
    %230 = vector.multi_reduction <maximumf>, %229, %cst_152 [1] : vector<8x8xf32> to vector<8xf32>
    %231 = vector.shape_cast %230 : vector<8xf32> to vector<8x1xf32>
    %232 = vector.broadcast %231 : vector<8x1xf32> to vector<8x8xf32>
    %233 = arith.subf %229, %232 : vector<8x8xf32>
    %234 = math.exp %233 : vector<8x8xf32>
    %cst_153 = arith.constant dense<0.000000e+00> : vector<8xf32>
    %235 = vector.multi_reduction <add>, %234, %cst_153 [1] : vector<8x8xf32> to vector<8xf32>
    %236 = vector.shape_cast %235 : vector<8xf32> to vector<8x1xf32>
    %237 = tpu.reciprocal %236 {approx = true} : vector<8x1xf32> -> vector<8x1xf32>
    %238 = vector.broadcast %237 : vector<8x1xf32> to vector<8x8xf32>
    %239 = arith.mulf %234, %238 : vector<8x8xf32>
    %240 = arith.truncf %239 : vector<8x8xf32> to vector<8x8xbf16>
    %241 = arith.truncf %226 : vector<8x8xf32> to vector<8x8xbf16>
    %cst_154 = arith.constant dense<0.000000e+00> : vector<8x8xf32>
    %242 = tpu.matmul %240, %241, %cst_154 {dimension_numbers = #tpu.dot_dimension_numbers<[1], [0], [0], [1], [0, 0, 1, 1], [], []>} : vector<8x8xbf16>, vector<8x8xbf16>, vector<8x8xf32> -> vector<8x8xf32>
    %243 = arith.truncf %242 : vector<8x8xf32> to vector<8x8xbf16>
    %c0_155 = arith.constant 0 : index
    %c0_156 = arith.constant 0 : index
    %c0_157 = arith.constant 0 : index
    %244 = vector.load %arg19[%c0_155, %c0_156, %c0_157] : memref<4x8x32xbf16, #tpu.memory_space<vmem>>, vector<1x8x32xbf16>
    %245 = vector.shape_cast %244 : vector<1x8x32xbf16> to vector<8x32xbf16>
    %cst_158 = arith.constant dense<0.000000e+00> : vector<8x32xf32>
    %246 = tpu.matmul %243, %245, %cst_158 {dimension_numbers = #tpu.dot_dimension_numbers<[1], [0], [0], [1], [0, 0, 1, 1], [], []>} : vector<8x8xbf16>, vector<8x32xbf16>, vector<8x32xf32> -> vector<8x32xf32>
    %247 = arith.addf %205, %246 : vector<8x32xf32>
    %c1_159 = arith.constant 1 : index
    %c0_160 = arith.constant 0 : index
    %c0_161 = arith.constant 0 : index
    %248 = vector.load %arg13[%c1_159, %c0_160, %c0_161] : memref<4x32x8xbf16, #tpu.memory_space<vmem>>, vector<1x32x8xbf16>
    %249 = vector.shape_cast %248 : vector<1x32x8xbf16> to vector<32x8xbf16>
    %cst_162 = arith.constant dense<0.000000e+00> : vector<8x8xf32>
    %250 = tpu.matmul %203, %249, %cst_162 {dimension_numbers = #tpu.dot_dimension_numbers<[1], [0], [0], [1], [0, 0, 1, 1], [], []>} : vector<8x32xbf16>, vector<32x8xbf16>, vector<8x8xf32> -> vector<8x8xf32>
    %c1_163 = arith.constant 1 : index
    %c0_164 = arith.constant 0 : index
    %c0_165 = arith.constant 0 : index
    %251 = vector.load %arg14[%c1_163, %c0_164, %c0_165] : memref<4x1x8xf32, #tpu.memory_space<vmem>>, vector<1x1x8xf32>
    %252 = vector.shape_cast %251 : vector<1x1x8xf32> to vector<1x8xf32>
    %253 = vector.broadcast %252 : vector<1x8xf32> to vector<8x8xf32>
    %254 = arith.addf %250, %253 : vector<8x8xf32>
    %c1_166 = arith.constant 1 : index
    %c0_167 = arith.constant 0 : index
    %c0_168 = arith.constant 0 : index
    %255 = vector.load %arg15[%c1_166, %c0_167, %c0_168] : memref<4x32x8xbf16, #tpu.memory_space<vmem>>, vector<1x32x8xbf16>
    %256 = vector.shape_cast %255 : vector<1x32x8xbf16> to vector<32x8xbf16>
    %cst_169 = arith.constant dense<0.000000e+00> : vector<8x8xf32>
    %257 = tpu.matmul %204, %256, %cst_169 {dimension_numbers = #tpu.dot_dimension_numbers<[1], [0], [0], [1], [0, 0, 1, 1], [], []>} : vector<8x32xbf16>, vector<32x8xbf16>, vector<8x8xf32> -> vector<8x8xf32>
    %c1_170 = arith.constant 1 : index
    %c0_171 = arith.constant 0 : index
    %c0_172 = arith.constant 0 : index
    %258 = vector.load %arg16[%c1_170, %c0_171, %c0_172] : memref<4x1x8xf32, #tpu.memory_space<vmem>>, vector<1x1x8xf32>
    %259 = vector.shape_cast %258 : vector<1x1x8xf32> to vector<1x8xf32>
    %260 = vector.broadcast %259 : vector<1x8xf32> to vector<8x8xf32>
    %261 = arith.addf %257, %260 : vector<8x8xf32>
    %c1_173 = arith.constant 1 : index
    %c0_174 = arith.constant 0 : index
    %c0_175 = arith.constant 0 : index
    %262 = vector.load %arg17[%c1_173, %c0_174, %c0_175] : memref<4x32x8xbf16, #tpu.memory_space<vmem>>, vector<1x32x8xbf16>
    %263 = vector.shape_cast %262 : vector<1x32x8xbf16> to vector<32x8xbf16>
    %cst_176 = arith.constant dense<0.000000e+00> : vector<8x8xf32>
    %264 = tpu.matmul %204, %263, %cst_176 {dimension_numbers = #tpu.dot_dimension_numbers<[1], [0], [0], [1], [0, 0, 1, 1], [], []>} : vector<8x32xbf16>, vector<32x8xbf16>, vector<8x8xf32> -> vector<8x8xf32>
    %c1_177 = arith.constant 1 : index
    %c0_178 = arith.constant 0 : index
    %c0_179 = arith.constant 0 : index
    %265 = vector.load %arg18[%c1_177, %c0_178, %c0_179] : memref<4x1x8xf32, #tpu.memory_space<vmem>>, vector<1x1x8xf32>
    %266 = vector.shape_cast %265 : vector<1x1x8xf32> to vector<1x8xf32>
    %267 = vector.broadcast %266 : vector<1x8xf32> to vector<8x8xf32>
    %268 = arith.addf %264, %267 : vector<8x8xf32>
    %269 = arith.truncf %254 : vector<8x8xf32> to vector<8x8xbf16>
    %270 = arith.truncf %261 : vector<8x8xf32> to vector<8x8xbf16>
    %cst_180 = arith.constant dense<0.000000e+00> : vector<8x8xf32>
    %271 = tpu.matmul %269, %270, %cst_180 {dimension_numbers = #tpu.dot_dimension_numbers<[1], [1], [0], [0], [0, 0, 1, 0], [], []>} : vector<8x8xbf16>, vector<8x8xbf16>, vector<8x8xf32> -> vector<8x8xf32>
    %cst_181 = arith.constant dense<0xFF800000> : vector<8xf32>
    %272 = vector.multi_reduction <maximumf>, %271, %cst_181 [1] : vector<8x8xf32> to vector<8xf32>
    %273 = vector.shape_cast %272 : vector<8xf32> to vector<8x1xf32>
    %274 = vector.broadcast %273 : vector<8x1xf32> to vector<8x8xf32>
    %275 = arith.subf %271, %274 : vector<8x8xf32>
    %276 = math.exp %275 : vector<8x8xf32>
    %cst_182 = arith.constant dense<0.000000e+00> : vector<8xf32>
    %277 = vector.multi_reduction <add>, %276, %cst_182 [1] : vector<8x8xf32> to vector<8xf32>
    %278 = vector.shape_cast %277 : vector<8xf32> to vector<8x1xf32>
    %279 = tpu.reciprocal %278 {approx = true} : vector<8x1xf32> -> vector<8x1xf32>
    %280 = vector.broadcast %279 : vector<8x1xf32> to vector<8x8xf32>
    %281 = arith.mulf %276, %280 : vector<8x8xf32>
    %282 = arith.truncf %281 : vector<8x8xf32> to vector<8x8xbf16>
    %283 = arith.truncf %268 : vector<8x8xf32> to vector<8x8xbf16>
    %cst_183 = arith.constant dense<0.000000e+00> : vector<8x8xf32>
    %284 = tpu.matmul %282, %283, %cst_183 {dimension_numbers = #tpu.dot_dimension_numbers<[1], [0], [0], [1], [0, 0, 1, 1], [], []>} : vector<8x8xbf16>, vector<8x8xbf16>, vector<8x8xf32> -> vector<8x8xf32>
    %285 = arith.truncf %284 : vector<8x8xf32> to vector<8x8xbf16>
    %c1_184 = arith.constant 1 : index
    %c0_185 = arith.constant 0 : index
    %c0_186 = arith.constant 0 : index
    %286 = vector.load %arg19[%c1_184, %c0_185, %c0_186] : memref<4x8x32xbf16, #tpu.memory_space<vmem>>, vector<1x8x32xbf16>
    %287 = vector.shape_cast %286 : vector<1x8x32xbf16> to vector<8x32xbf16>
    %cst_187 = arith.constant dense<0.000000e+00> : vector<8x32xf32>
    %288 = tpu.matmul %285, %287, %cst_187 {dimension_numbers = #tpu.dot_dimension_numbers<[1], [0], [0], [1], [0, 0, 1, 1], [], []>} : vector<8x8xbf16>, vector<8x32xbf16>, vector<8x32xf32> -> vector<8x32xf32>
    %289 = arith.addf %247, %288 : vector<8x32xf32>
    %c2_188 = arith.constant 2 : index
    %c0_189 = arith.constant 0 : index
    %c0_190 = arith.constant 0 : index
    %290 = vector.load %arg13[%c2_188, %c0_189, %c0_190] : memref<4x32x8xbf16, #tpu.memory_space<vmem>>, vector<1x32x8xbf16>
    %291 = vector.shape_cast %290 : vector<1x32x8xbf16> to vector<32x8xbf16>
    %cst_191 = arith.constant dense<0.000000e+00> : vector<8x8xf32>
    %292 = tpu.matmul %203, %291, %cst_191 {dimension_numbers = #tpu.dot_dimension_numbers<[1], [0], [0], [1], [0, 0, 1, 1], [], []>} : vector<8x32xbf16>, vector<32x8xbf16>, vector<8x8xf32> -> vector<8x8xf32>
    %c2_192 = arith.constant 2 : index
    %c0_193 = arith.constant 0 : index
    %c0_194 = arith.constant 0 : index
    %293 = vector.load %arg14[%c2_192, %c0_193, %c0_194] : memref<4x1x8xf32, #tpu.memory_space<vmem>>, vector<1x1x8xf32>
    %294 = vector.shape_cast %293 : vector<1x1x8xf32> to vector<1x8xf32>
    %295 = vector.broadcast %294 : vector<1x8xf32> to vector<8x8xf32>
    %296 = arith.addf %292, %295 : vector<8x8xf32>
    %c2_195 = arith.constant 2 : index
    %c0_196 = arith.constant 0 : index
    %c0_197 = arith.constant 0 : index
    %297 = vector.load %arg15[%c2_195, %c0_196, %c0_197] : memref<4x32x8xbf16, #tpu.memory_space<vmem>>, vector<1x32x8xbf16>
    %298 = vector.shape_cast %297 : vector<1x32x8xbf16> to vector<32x8xbf16>
    %cst_198 = arith.constant dense<0.000000e+00> : vector<8x8xf32>
    %299 = tpu.matmul %204, %298, %cst_198 {dimension_numbers = #tpu.dot_dimension_numbers<[1], [0], [0], [1], [0, 0, 1, 1], [], []>} : vector<8x32xbf16>, vector<32x8xbf16>, vector<8x8xf32> -> vector<8x8xf32>
    %c2_199 = arith.constant 2 : index
    %c0_200 = arith.constant 0 : index
    %c0_201 = arith.constant 0 : index
    %300 = vector.load %arg16[%c2_199, %c0_200, %c0_201] : memref<4x1x8xf32, #tpu.memory_space<vmem>>, vector<1x1x8xf32>
    %301 = vector.shape_cast %300 : vector<1x1x8xf32> to vector<1x8xf32>
    %302 = vector.broadcast %301 : vector<1x8xf32> to vector<8x8xf32>
    %303 = arith.addf %299, %302 : vector<8x8xf32>
    %c2_202 = arith.constant 2 : index
    %c0_203 = arith.constant 0 : index
    %c0_204 = arith.constant 0 : index
    %304 = vector.load %arg17[%c2_202, %c0_203, %c0_204] : memref<4x32x8xbf16, #tpu.memory_space<vmem>>, vector<1x32x8xbf16>
    %305 = vector.shape_cast %304 : vector<1x32x8xbf16> to vector<32x8xbf16>
    %cst_205 = arith.constant dense<0.000000e+00> : vector<8x8xf32>
    %306 = tpu.matmul %204, %305, %cst_205 {dimension_numbers = #tpu.dot_dimension_numbers<[1], [0], [0], [1], [0, 0, 1, 1], [], []>} : vector<8x32xbf16>, vector<32x8xbf16>, vector<8x8xf32> -> vector<8x8xf32>
    %c2_206 = arith.constant 2 : index
    %c0_207 = arith.constant 0 : index
    %c0_208 = arith.constant 0 : index
    %307 = vector.load %arg18[%c2_206, %c0_207, %c0_208] : memref<4x1x8xf32, #tpu.memory_space<vmem>>, vector<1x1x8xf32>
    %308 = vector.shape_cast %307 : vector<1x1x8xf32> to vector<1x8xf32>
    %309 = vector.broadcast %308 : vector<1x8xf32> to vector<8x8xf32>
    %310 = arith.addf %306, %309 : vector<8x8xf32>
    %311 = arith.truncf %296 : vector<8x8xf32> to vector<8x8xbf16>
    %312 = arith.truncf %303 : vector<8x8xf32> to vector<8x8xbf16>
    %cst_209 = arith.constant dense<0.000000e+00> : vector<8x8xf32>
    %313 = tpu.matmul %311, %312, %cst_209 {dimension_numbers = #tpu.dot_dimension_numbers<[1], [1], [0], [0], [0, 0, 1, 0], [], []>} : vector<8x8xbf16>, vector<8x8xbf16>, vector<8x8xf32> -> vector<8x8xf32>
    %cst_210 = arith.constant dense<0xFF800000> : vector<8xf32>
    %314 = vector.multi_reduction <maximumf>, %313, %cst_210 [1] : vector<8x8xf32> to vector<8xf32>
    %315 = vector.shape_cast %314 : vector<8xf32> to vector<8x1xf32>
    %316 = vector.broadcast %315 : vector<8x1xf32> to vector<8x8xf32>
    %317 = arith.subf %313, %316 : vector<8x8xf32>
    %318 = math.exp %317 : vector<8x8xf32>
    %cst_211 = arith.constant dense<0.000000e+00> : vector<8xf32>
    %319 = vector.multi_reduction <add>, %318, %cst_211 [1] : vector<8x8xf32> to vector<8xf32>
    %320 = vector.shape_cast %319 : vector<8xf32> to vector<8x1xf32>
    %321 = tpu.reciprocal %320 {approx = true} : vector<8x1xf32> -> vector<8x1xf32>
    %322 = vector.broadcast %321 : vector<8x1xf32> to vector<8x8xf32>
    %323 = arith.mulf %318, %322 : vector<8x8xf32>
    %324 = arith.truncf %323 : vector<8x8xf32> to vector<8x8xbf16>
    %325 = arith.truncf %310 : vector<8x8xf32> to vector<8x8xbf16>
    %cst_212 = arith.constant dense<0.000000e+00> : vector<8x8xf32>
    %326 = tpu.matmul %324, %325, %cst_212 {dimension_numbers = #tpu.dot_dimension_numbers<[1], [0], [0], [1], [0, 0, 1, 1], [], []>} : vector<8x8xbf16>, vector<8x8xbf16>, vector<8x8xf32> -> vector<8x8xf32>
    %327 = arith.truncf %326 : vector<8x8xf32> to vector<8x8xbf16>
    %c2_213 = arith.constant 2 : index
    %c0_214 = arith.constant 0 : index
    %c0_215 = arith.constant 0 : index
    %328 = vector.load %arg19[%c2_213, %c0_214, %c0_215] : memref<4x8x32xbf16, #tpu.memory_space<vmem>>, vector<1x8x32xbf16>
    %329 = vector.shape_cast %328 : vector<1x8x32xbf16> to vector<8x32xbf16>
    %cst_216 = arith.constant dense<0.000000e+00> : vector<8x32xf32>
    %330 = tpu.matmul %327, %329, %cst_216 {dimension_numbers = #tpu.dot_dimension_numbers<[1], [0], [0], [1], [0, 0, 1, 1], [], []>} : vector<8x8xbf16>, vector<8x32xbf16>, vector<8x32xf32> -> vector<8x32xf32>
    %331 = arith.addf %289, %330 : vector<8x32xf32>
    %c3_217 = arith.constant 3 : index
    %c0_218 = arith.constant 0 : index
    %c0_219 = arith.constant 0 : index
    %332 = vector.load %arg13[%c3_217, %c0_218, %c0_219] : memref<4x32x8xbf16, #tpu.memory_space<vmem>>, vector<1x32x8xbf16>
    %333 = vector.shape_cast %332 : vector<1x32x8xbf16> to vector<32x8xbf16>
    %cst_220 = arith.constant dense<0.000000e+00> : vector<8x8xf32>
    %334 = tpu.matmul %203, %333, %cst_220 {dimension_numbers = #tpu.dot_dimension_numbers<[1], [0], [0], [1], [0, 0, 1, 1], [], []>} : vector<8x32xbf16>, vector<32x8xbf16>, vector<8x8xf32> -> vector<8x8xf32>
    %c3_221 = arith.constant 3 : index
    %c0_222 = arith.constant 0 : index
    %c0_223 = arith.constant 0 : index
    %335 = vector.load %arg14[%c3_221, %c0_222, %c0_223] : memref<4x1x8xf32, #tpu.memory_space<vmem>>, vector<1x1x8xf32>
    %336 = vector.shape_cast %335 : vector<1x1x8xf32> to vector<1x8xf32>
    %337 = vector.broadcast %336 : vector<1x8xf32> to vector<8x8xf32>
    %338 = arith.addf %334, %337 : vector<8x8xf32>
    %c3_224 = arith.constant 3 : index
    %c0_225 = arith.constant 0 : index
    %c0_226 = arith.constant 0 : index
    %339 = vector.load %arg15[%c3_224, %c0_225, %c0_226] : memref<4x32x8xbf16, #tpu.memory_space<vmem>>, vector<1x32x8xbf16>
    %340 = vector.shape_cast %339 : vector<1x32x8xbf16> to vector<32x8xbf16>
    %cst_227 = arith.constant dense<0.000000e+00> : vector<8x8xf32>
    %341 = tpu.matmul %204, %340, %cst_227 {dimension_numbers = #tpu.dot_dimension_numbers<[1], [0], [0], [1], [0, 0, 1, 1], [], []>} : vector<8x32xbf16>, vector<32x8xbf16>, vector<8x8xf32> -> vector<8x8xf32>
    %c3_228 = arith.constant 3 : index
    %c0_229 = arith.constant 0 : index
    %c0_230 = arith.constant 0 : index
    %342 = vector.load %arg16[%c3_228, %c0_229, %c0_230] : memref<4x1x8xf32, #tpu.memory_space<vmem>>, vector<1x1x8xf32>
    %343 = vector.shape_cast %342 : vector<1x1x8xf32> to vector<1x8xf32>
    %344 = vector.broadcast %343 : vector<1x8xf32> to vector<8x8xf32>
    %345 = arith.addf %341, %344 : vector<8x8xf32>
    %c3_231 = arith.constant 3 : index
    %c0_232 = arith.constant 0 : index
    %c0_233 = arith.constant 0 : index
    %346 = vector.load %arg17[%c3_231, %c0_232, %c0_233] : memref<4x32x8xbf16, #tpu.memory_space<vmem>>, vector<1x32x8xbf16>
    %347 = vector.shape_cast %346 : vector<1x32x8xbf16> to vector<32x8xbf16>
    %cst_234 = arith.constant dense<0.000000e+00> : vector<8x8xf32>
    %348 = tpu.matmul %204, %347, %cst_234 {dimension_numbers = #tpu.dot_dimension_numbers<[1], [0], [0], [1], [0, 0, 1, 1], [], []>} : vector<8x32xbf16>, vector<32x8xbf16>, vector<8x8xf32> -> vector<8x8xf32>
    %c3_235 = arith.constant 3 : index
    %c0_236 = arith.constant 0 : index
    %c0_237 = arith.constant 0 : index
    %349 = vector.load %arg18[%c3_235, %c0_236, %c0_237] : memref<4x1x8xf32, #tpu.memory_space<vmem>>, vector<1x1x8xf32>
    %350 = vector.shape_cast %349 : vector<1x1x8xf32> to vector<1x8xf32>
    %351 = vector.broadcast %350 : vector<1x8xf32> to vector<8x8xf32>
    %352 = arith.addf %348, %351 : vector<8x8xf32>
    %353 = arith.truncf %338 : vector<8x8xf32> to vector<8x8xbf16>
    %354 = arith.truncf %345 : vector<8x8xf32> to vector<8x8xbf16>
    %cst_238 = arith.constant dense<0.000000e+00> : vector<8x8xf32>
    %355 = tpu.matmul %353, %354, %cst_238 {dimension_numbers = #tpu.dot_dimension_numbers<[1], [1], [0], [0], [0, 0, 1, 0], [], []>} : vector<8x8xbf16>, vector<8x8xbf16>, vector<8x8xf32> -> vector<8x8xf32>
    %cst_239 = arith.constant dense<0xFF800000> : vector<8xf32>
    %356 = vector.multi_reduction <maximumf>, %355, %cst_239 [1] : vector<8x8xf32> to vector<8xf32>
    %357 = vector.shape_cast %356 : vector<8xf32> to vector<8x1xf32>
    %358 = vector.broadcast %357 : vector<8x1xf32> to vector<8x8xf32>
    %359 = arith.subf %355, %358 : vector<8x8xf32>
    %360 = math.exp %359 : vector<8x8xf32>
    %cst_240 = arith.constant dense<0.000000e+00> : vector<8xf32>
    %361 = vector.multi_reduction <add>, %360, %cst_240 [1] : vector<8x8xf32> to vector<8xf32>
    %362 = vector.shape_cast %361 : vector<8xf32> to vector<8x1xf32>
    %363 = tpu.reciprocal %362 {approx = true} : vector<8x1xf32> -> vector<8x1xf32>
    %364 = vector.broadcast %363 : vector<8x1xf32> to vector<8x8xf32>
    %365 = arith.mulf %360, %364 : vector<8x8xf32>
    %366 = arith.truncf %365 : vector<8x8xf32> to vector<8x8xbf16>
    %367 = arith.truncf %352 : vector<8x8xf32> to vector<8x8xbf16>
    %cst_241 = arith.constant dense<0.000000e+00> : vector<8x8xf32>
    %368 = tpu.matmul %366, %367, %cst_241 {dimension_numbers = #tpu.dot_dimension_numbers<[1], [0], [0], [1], [0, 0, 1, 1], [], []>} : vector<8x8xbf16>, vector<8x8xbf16>, vector<8x8xf32> -> vector<8x8xf32>
    %369 = arith.truncf %368 : vector<8x8xf32> to vector<8x8xbf16>
    %c3_242 = arith.constant 3 : index
    %c0_243 = arith.constant 0 : index
    %c0_244 = arith.constant 0 : index
    %370 = vector.load %arg19[%c3_242, %c0_243, %c0_244] : memref<4x8x32xbf16, #tpu.memory_space<vmem>>, vector<1x8x32xbf16>
    %371 = vector.shape_cast %370 : vector<1x8x32xbf16> to vector<8x32xbf16>
    %cst_245 = arith.constant dense<0.000000e+00> : vector<8x32xf32>
    %372 = tpu.matmul %369, %371, %cst_245 {dimension_numbers = #tpu.dot_dimension_numbers<[1], [0], [0], [1], [0, 0, 1, 1], [], []>} : vector<8x8xbf16>, vector<8x32xbf16>, vector<8x32xf32> -> vector<8x32xf32>
    %373 = arith.addf %331, %372 : vector<8x32xf32>
    %c0_246 = arith.constant 0 : index
    %c0_247 = arith.constant 0 : index
    %374 = vector.load %arg20[%c0_246, %c0_247] : memref<1x32xf32, #tpu.memory_space<vmem>>, vector<1x32xf32>
    %375 = vector.broadcast %374 : vector<1x32xf32> to vector<8x32xf32>
    %376 = arith.addf %373, %375 : vector<8x32xf32>
    %377 = arith.addf %202, %376 : vector<8x32xf32>
    %c0_248 = arith.constant 0 : index
    %c0_249 = arith.constant 0 : index
    %378 = vector.load %arg21[%c0_248, %c0_249] : memref<1x32xf32, #tpu.memory_space<vmem>>, vector<1x32xf32>
    %c0_250 = arith.constant 0 : index
    %c0_251 = arith.constant 0 : index
    %379 = vector.load %arg22[%c0_250, %c0_251] : memref<1x32xf32, #tpu.memory_space<vmem>>, vector<1x32xf32>
    %cst_252 = arith.constant dense<0.000000e+00> : vector<8xf32>
    %380 = vector.multi_reduction <add>, %377, %cst_252 [1] : vector<8x32xf32> to vector<8xf32>
    %381 = vector.shape_cast %380 : vector<8xf32> to vector<8x1xf32>
    %cst_253 = arith.constant 3.200000e+01 : f32
    %382 = vector.broadcast %cst_253 : f32 to vector<8x1xf32>
    %383 = arith.divf %381, %382 : vector<8x1xf32>
    %384 = vector.broadcast %383 : vector<8x1xf32> to vector<8x32xf32>
    %385 = arith.subf %377, %384 : vector<8x32xf32>
    %386 = arith.mulf %385, %385 : vector<8x32xf32>
    %cst_254 = arith.constant dense<0.000000e+00> : vector<8xf32>
    %387 = vector.multi_reduction <add>, %386, %cst_254 [1] : vector<8x32xf32> to vector<8xf32>
    %388 = vector.shape_cast %387 : vector<8xf32> to vector<8x1xf32>
    %cst_255 = arith.constant 3.200000e+01 : f32
    %389 = vector.broadcast %cst_255 : f32 to vector<8x1xf32>
    %390 = arith.divf %388, %389 : vector<8x1xf32>
    %391 = vector.broadcast %383 : vector<8x1xf32> to vector<8x32xf32>
    %392 = arith.subf %377, %391 : vector<8x32xf32>
    %cst_256 = arith.constant 9.99999974E-6 : f32
    %393 = vector.broadcast %cst_256 : f32 to vector<8x1xf32>
    %394 = arith.addf %390, %393 : vector<8x1xf32>
    %395 = math.rsqrt %394 : vector<8x1xf32>
    %396 = vector.broadcast %395 : vector<8x1xf32> to vector<8x32xf32>
    %397 = arith.mulf %392, %396 : vector<8x32xf32>
    %398 = vector.broadcast %378 : vector<1x32xf32> to vector<8x32xf32>
    %399 = arith.mulf %397, %398 : vector<8x32xf32>
    %400 = vector.broadcast %379 : vector<1x32xf32> to vector<8x32xf32>
    %401 = arith.addf %399, %400 : vector<8x32xf32>
    %402 = arith.truncf %401 : vector<8x32xf32> to vector<8x32xbf16>
    %c0_257 = arith.constant 0 : index
    %c0_258 = arith.constant 0 : index
    %403 = vector.load %arg23[%c0_257, %c0_258] : memref<32x64xbf16, #tpu.memory_space<vmem>>, vector<32x64xbf16>
    %cst_259 = arith.constant dense<0.000000e+00> : vector<8x64xf32>
    %404 = tpu.matmul %402, %403, %cst_259 {dimension_numbers = #tpu.dot_dimension_numbers<[1], [0], [0], [1], [0, 0, 1, 1], [], []>} : vector<8x32xbf16>, vector<32x64xbf16>, vector<8x64xf32> -> vector<8x64xf32>
    %c0_260 = arith.constant 0 : index
    %c0_261 = arith.constant 0 : index
    %405 = vector.load %arg24[%c0_260, %c0_261] : memref<1x64xf32, #tpu.memory_space<vmem>>, vector<1x64xf32>
    %406 = vector.broadcast %405 : vector<1x64xf32> to vector<8x64xf32>
    %407 = arith.addf %404, %406 : vector<8x64xf32>
    %cst_262 = arith.constant 0.000000e+00 : f32
    %408 = vector.broadcast %cst_262 : f32 to vector<8x64xf32>
    %409 = arith.maximumf %407, %408 : vector<8x64xf32>
    %410 = arith.truncf %409 : vector<8x64xf32> to vector<8x64xbf16>
    %c0_263 = arith.constant 0 : index
    %c0_264 = arith.constant 0 : index
    %411 = vector.load %arg25[%c0_263, %c0_264] : memref<64x32xbf16, #tpu.memory_space<vmem>>, vector<64x32xbf16>
    %cst_265 = arith.constant dense<0.000000e+00> : vector<8x32xf32>
    %412 = tpu.matmul %410, %411, %cst_265 {dimension_numbers = #tpu.dot_dimension_numbers<[1], [0], [0], [1], [0, 0, 1, 1], [], []>} : vector<8x64xbf16>, vector<64x32xbf16>, vector<8x32xf32> -> vector<8x32xf32>
    %c0_266 = arith.constant 0 : index
    %c0_267 = arith.constant 0 : index
    %413 = vector.load %arg26[%c0_266, %c0_267] : memref<1x32xf32, #tpu.memory_space<vmem>>, vector<1x32xf32>
    %414 = vector.broadcast %413 : vector<1x32xf32> to vector<8x32xf32>
    %415 = arith.addf %412, %414 : vector<8x32xf32>
    %416 = arith.addf %401, %415 : vector<8x32xf32>
    %c0_268 = arith.constant 0 : index
    %c0_269 = arith.constant 0 : index
    %417 = vector.load %arg27[%c0_268, %c0_269] : memref<1x32xf32, #tpu.memory_space<vmem>>, vector<1x32xf32>
    %c0_270 = arith.constant 0 : index
    %c0_271 = arith.constant 0 : index
    %418 = vector.load %arg28[%c0_270, %c0_271] : memref<1x32xf32, #tpu.memory_space<vmem>>, vector<1x32xf32>
    %cst_272 = arith.constant dense<0.000000e+00> : vector<8xf32>
    %419 = vector.multi_reduction <add>, %416, %cst_272 [1] : vector<8x32xf32> to vector<8xf32>
    %420 = vector.shape_cast %419 : vector<8xf32> to vector<8x1xf32>
    %cst_273 = arith.constant 3.200000e+01 : f32
    %421 = vector.broadcast %cst_273 : f32 to vector<8x1xf32>
    %422 = arith.divf %420, %421 : vector<8x1xf32>
    %423 = vector.broadcast %422 : vector<8x1xf32> to vector<8x32xf32>
    %424 = arith.subf %416, %423 : vector<8x32xf32>
    %425 = arith.mulf %424, %424 : vector<8x32xf32>
    %cst_274 = arith.constant dense<0.000000e+00> : vector<8xf32>
    %426 = vector.multi_reduction <add>, %425, %cst_274 [1] : vector<8x32xf32> to vector<8xf32>
    %427 = vector.shape_cast %426 : vector<8xf32> to vector<8x1xf32>
    %cst_275 = arith.constant 3.200000e+01 : f32
    %428 = vector.broadcast %cst_275 : f32 to vector<8x1xf32>
    %429 = arith.divf %427, %428 : vector<8x1xf32>
    %430 = vector.broadcast %422 : vector<8x1xf32> to vector<8x32xf32>
    %431 = arith.subf %416, %430 : vector<8x32xf32>
    %cst_276 = arith.constant 9.99999974E-6 : f32
    %432 = vector.broadcast %cst_276 : f32 to vector<8x1xf32>
    %433 = arith.addf %429, %432 : vector<8x1xf32>
    %434 = math.rsqrt %433 : vector<8x1xf32>
    %435 = vector.broadcast %434 : vector<8x1xf32> to vector<8x32xf32>
    %436 = arith.mulf %431, %435 : vector<8x32xf32>
    %437 = vector.broadcast %417 : vector<1x32xf32> to vector<8x32xf32>
    %438 = arith.mulf %436, %437 : vector<8x32xf32>
    %439 = vector.broadcast %418 : vector<1x32xf32> to vector<8x32xf32>
    %440 = arith.addf %438, %439 : vector<8x32xf32>
    %c0_277 = arith.constant 0 : index
    %c0_278 = arith.constant 0 : index
    %c0_279 = arith.constant 0 : index
    %441 = vector.load %arg29[%c0_277, %c0_278, %c0_279] : memref<1x8x32xf32, #tpu.memory_space<vmem>>, vector<1x8x32xf32>
    %442 = vector.shape_cast %441 : vector<1x8x32xf32> to vector<8x32xf32>
    %443 = vector.shape_cast %440 : vector<8x32xf32> to vector<1x8x32xf32>
    tpu.vector_store %arg29[%c0_277, %c0_278, %c0_279], %443 {strides = array<i32>} : memref<1x8x32xf32, #tpu.memory_space<vmem>>, vector<1x8x32xf32>,
    return
  }
  func.func @transform_0(%arg0: i32) -> (i32, i32, i32) {
    %c0_i32 = arith.constant 0 : i32
    %c0_i32_0 = arith.constant 0 : i32
    %c0_i32_1 = arith.constant 0 : i32
    return %arg0, %c0_i32, %c0_i32_0 : i32, i32, i32
  }
  func.func @transform_1(%arg0: i32) -> (i32, i32, i32) {
    %c0_i32 = arith.constant 0 : i32
    %c0_i32_0 = arith.constant 0 : i32
    %c0_i32_1 = arith.constant 0 : i32
    return %arg0, %c0_i32, %c0_i32_0 : i32, i32, i32
  }
  func.func @transform_2(%arg0: i32) -> (i32, i32, i32) {
    %c0_i32 = arith.constant 0 : i32
    %c0_i32_0 = arith.constant 0 : i32
    %c0_i32_1 = arith.constant 0 : i32
    %c0_i32_2 = arith.constant 0 : i32
    return %c0_i32, %c0_i32_0, %c0_i32_1 : i32, i32, i32
  }
  func.func @transform_3(%arg0: i32) -> (i32, i32, i32) {
    %c0_i32 = arith.constant 0 : i32
    %c0_i32_0 = arith.constant 0 : i32
    %c0_i32_1 = arith.constant 0 : i32
    %c0_i32_2 = arith.constant 0 : i32
    return %c0_i32, %c0_i32_0, %c0_i32_1 : i32, i32, i32
  }
  func.func @transform_4(%arg0: i32) -> (i32, i32, i32) {
    %c0_i32 = arith.constant 0 : i32
    %c0_i32_0 = arith.constant 0 : i32
    %c0_i32_1 = arith.constant 0 : i32
    %c0_i32_2 = arith.constant 0 : i32
    return %c0_i32, %c0_i32_0, %c0_i32_1 : i32, i32, i32
  }
  func.func @transform_5(%arg0: i32) -> (i32, i32, i32) {
    %c0_i32 = arith.constant 0 : i32
    %c0_i32_0 = arith.constant 0 : i32
    %c0_i32_1 = arith.constant 0 : i32
    %c0_i32_2 = arith.constant 0 : i32
    return %c0_i32, %c0_i32_0, %c0_i32_1 : i32, i32, i32
  }
  func.func @transform_6(%arg0: i32) -> (i32, i32, i32) {
    %c0_i32 = arith.constant 0 : i32
    %c0_i32_0 = arith.constant 0 : i32
    %c0_i32_1 = arith.constant 0 : i32
    %c0_i32_2 = arith.constant 0 : i32
    return %c0_i32, %c0_i32_0, %c0_i32_1 : i32, i32, i32
  }
  func.func @transform_7(%arg0: i32) -> (i32, i32, i32) {
    %c0_i32 = arith.constant 0 : i32
    %c0_i32_0 = arith.constant 0 : i32
    %c0_i32_1 = arith.constant 0 : i32
    %c0_i32_2 = arith.constant 0 : i32
    return %c0_i32, %c0_i32_0, %c0_i32_1 : i32, i32, i32
  }
  func.func @transform_8(%arg0: i32) -> (i32, i32, i32) {
    %c0_i32 = arith.constant 0 : i32
    %c0_i32_0 = arith.constant 0 : i32
    %c0_i32_1 = arith.constant 0 : i32
    %c0_i32_2 = arith.constant 0 : i32
    return %c0_i32, %c0_i32_0, %c0_i32_1 : i32, i32, i32
  }
  func.func @transform_9(%arg0: i32) -> (i32, i32) {
    %c0_i32 = arith.constant 0 : i32
    %c0_i32_0 = arith.constant 0 : i32
    %c0_i32_1 = arith.constant 0 : i32
    return %c0_i32, %c0_i32_0 : i32, i32
  }
  func.func @transform_10(%arg0: i32) -> (i32, i32) {
    %c0_i32 = arith.constant 0 : i32
    %c0_i32_0 = arith.constant 0 : i32
    %c0_i32_1 = arith.constant 0 : i32
    return %c0_i32, %c0_i32_0 : i32, i32
  }
  func.func @transform_11(%arg0: i32) -> (i32, i32) {
    %c0_i32 = arith.constant 0 : i32
    %c0_i32_0 = arith.constant 0 : i32
    %c0_i32_1 = arith.constant 0 : i32
    return %c0_i32, %c0_i32_0 : i32, i32
  }
  func.func @transform_12(%arg0: i32) -> (i32, i32, i32) {
    %c0_i32 = arith.constant 0 : i32
    %c0_i32_0 = arith.constant 0 : i32
    %c0_i32_1 = arith.constant 0 : i32
    %c0_i32_2 = arith.constant 0 : i32
    return %c0_i32, %c0_i32_0, %c0_i32_1 : i32, i32, i32
  }
  func.func @transform_13(%arg0: i32) -> (i32, i32, i32) {
    %c0_i32 = arith.constant 0 : i32
    %c0_i32_0 = arith.constant 0 : i32
    %c0_i32_1 = arith.constant 0 : i32
    %c0_i32_2 = arith.constant 0 : i32
    return %c0_i32, %c0_i32_0, %c0_i32_1 : i32, i32, i32
  }
  func.func @transform_14(%arg0: i32) -> (i32, i32, i32) {
    %c0_i32 = arith.constant 0 : i32
    %c0_i32_0 = arith.constant 0 : i32
    %c0_i32_1 = arith.constant 0 : i32
    %c0_i32_2 = arith.constant 0 : i32
    return %c0_i32, %c0_i32_0, %c0_i32_1 : i32, i32, i32
  }
  func.func @transform_15(%arg0: i32) -> (i32, i32, i32) {
    %c0_i32 = arith.constant 0 : i32
    %c0_i32_0 = arith.constant 0 : i32
    %c0_i32_1 = arith.constant 0 : i32
    %c0_i32_2 = arith.constant 0 : i32
    return %c0_i32, %c0_i32_0, %c0_i32_1 : i32, i32, i32
  }
  func.func @transform_16(%arg0: i32) -> (i32, i32, i32) {
    %c0_i32 = arith.constant 0 : i32
    %c0_i32_0 = arith.constant 0 : i32
    %c0_i32_1 = arith.constant 0 : i32
    %c0_i32_2 = arith.constant 0 : i32
    return %c0_i32, %c0_i32_0, %c0_i32_1 : i32, i32, i32
  }
  func.func @transform_17(%arg0: i32) -> (i32, i32, i32) {
    %c0_i32 = arith.constant 0 : i32
    %c0_i32_0 = arith.constant 0 : i32
    %c0_i32_1 = arith.constant 0 : i32
    %c0_i32_2 = arith.constant 0 : i32
    return %c0_i32, %c0_i32_0, %c0_i32_1 : i32, i32, i32
  }
  func.func @transform_18(%arg0: i32) -> (i32, i32, i32) {
    %c0_i32 = arith.constant 0 : i32
    %c0_i32_0 = arith.constant 0 : i32
    %c0_i32_1 = arith.constant 0 : i32
    %c0_i32_2 = arith.constant 0 : i32
    return %c0_i32, %c0_i32_0, %c0_i32_1 : i32, i32, i32
  }
  func.func @transform_19(%arg0: i32) -> (i32, i32) {
    %c0_i32 = arith.constant 0 : i32
    %c0_i32_0 = arith.constant 0 : i32
    %c0_i32_1 = arith.constant 0 : i32
    return %c0_i32, %c0_i32_0 : i32, i32
  }
  func.func @transform_20(%arg0: i32) -> (i32, i32) {
    %c0_i32 = arith.constant 0 : i32
    %c0_i32_0 = arith.constant 0 : i32
    %c0_i32_1 = arith.constant 0 : i32
    return %c0_i32, %c0_i32_0 : i32, i32
  }
  func.func @transform_21(%arg0: i32) -> (i32, i32) {
    %c0_i32 = arith.constant 0 : i32
    %c0_i32_0 = arith.constant 0 : i32
    %c0_i32_1 = arith.constant 0 : i32
    return %c0_i32, %c0_i32_0 : i32, i32
  }
  func.func @transform_22(%arg0: i32) -> (i32, i32) {
    %c0_i32 = arith.constant 0 : i32
    %c0_i32_0 = arith.constant 0 : i32
    %c0_i32_1 = arith.constant 0 : i32
    return %c0_i32, %c0_i32_0 : i32, i32
  }
  func.func @transform_23(%arg0: i32) -> (i32, i32) {
    %c0_i32 = arith.constant 0 : i32
    %c0_i32_0 = arith.constant 0 : i32
    %c0_i32_1 = arith.constant 0 : i32
    return %c0_i32, %c0_i32_0 : i32, i32
  }
  func.func @transform_24(%arg0: i32) -> (i32, i32) {
    %c0_i32 = arith.constant 0 : i32
    %c0_i32_0 = arith.constant 0 : i32
    %c0_i32_1 = arith.constant 0 : i32
    return %c0_i32, %c0_i32_0 : i32, i32
  }
  func.func @transform_25(%arg0: i32) -> (i32, i32) {
    %c0_i32 = arith.constant 0 : i32
    %c0_i32_0 = arith.constant 0 : i32
    %c0_i32_1 = arith.constant 0 : i32
    return %c0_i32, %c0_i32_0 : i32, i32
  }
  func.func @transform_26(%arg0: i32) -> (i32, i32) {
    %c0_i32 = arith.constant 0 : i32
    %c0_i32_0 = arith.constant 0 : i32
    %c0_i32_1 = arith.constant 0 : i32
    return %c0_i32, %c0_i32_0 : i32, i32
  }
  func.func @transform_27(%arg0: i32) -> (i32, i32) {
    %c0_i32 = arith.constant 0 : i32
    %c0_i32_0 = arith.constant 0 : i32
    %c0_i32_1 = arith.constant 0 : i32
    return %c0_i32, %c0_i32_0 : i32, i32
  }
  func.func @transform_28(%arg0: i32) -> (i32, i32, i32) {
    %c0_i32 = arith.constant 0 : i32
    %c0_i32_0 = arith.constant 0 : i32
    %c0_i32_1 = arith.constant 0 : i32
    return %arg0, %c0_i32, %c0_i32_0 : i32, i32, i32
  }
}

module attributes {stable_mosaic.version = 11 : i64} {
  func.func @_dec_layer_kernel(%arg0: i32, %arg1: memref<1x8x32xf32, #tpu.memory_space<vmem>>, %arg2: memref<1x8x32xf32, #tpu.memory_space<vmem>>, %arg3: memref<4x32x8xbf16, #tpu.memory_space<vmem>>, %arg4: memref<4x1x8xf32, #tpu.memory_space<vmem>>, %arg5: memref<4x32x8xbf16, #tpu.memory_space<vmem>>, %arg6: memref<4x1x8xf32, #tpu.memory_space<vmem>>, %arg7: memref<4x32x8xbf16, #tpu.memory_space<vmem>>, %arg8: memref<4x1x8xf32, #tpu.memory_space<vmem>>, %arg9: memref<4x8x32xbf16, #tpu.memory_space<vmem>>, %arg10: memref<1x32xf32, #tpu.memory_space<vmem>>, %arg11: memref<1x32xf32, #tpu.memory_space<vmem>>, %arg12: memref<1x32xf32, #tpu.memory_space<vmem>>, %arg13: memref<4x32x8xbf16, #tpu.memory_space<vmem>>, %arg14: memref<4x1x8xf32, #tpu.memory_space<vmem>>, %arg15: memref<4x32x8xbf16, #tpu.memory_space<vmem>>, %arg16: memref<4x1x8xf32, #tpu.memory_space<vmem>>, %arg17: memref<4x32x8xbf16, #tpu.memory_space<vmem>>, %arg18: memref<4x1x8xf32, #tpu.memory_space<vmem>>, %arg19: memref<4x8x32xbf16, #tpu.memory_space<vmem>>, %arg20: memref<1x32xf32, #tpu.memory_space<vmem>>, %arg21: memref<1x32xf32, #tpu.memory_space<vmem>>, %arg22: memref<1x32xf32, #tpu.memory_space<vmem>>, %arg23: memref<32x64xbf16, #tpu.memory_space<vmem>>, %arg24: memref<1x64xf32, #tpu.memory_space<vmem>>, %arg25: memref<64x32xbf16, #tpu.memory_space<vmem>>, %arg26: memref<1x32xf32, #tpu.memory_space<vmem>>, %arg27: memref<1x32xf32, #tpu.memory_space<vmem>>, %arg28: memref<1x32xf32, #tpu.memory_space<vmem>>, %arg29: memref<1x8x32xf32, #tpu.memory_space<vmem>>) attributes {dimension_semantics = [#tpu.dimension_semantics<parallel>], iteration_bounds = array<i64: 2>, scalar_prefetch = 0 : i64, scratch_operands = 0 : i64, tpu.core_type = #tpu.core_type<tc>, window_params = [{transform_indices = @transform_0, window_bounds = array<i64: 1, 8, 32>}, {transform_indices = @transform_1, window_bounds = array<i64: 1, 8, 32>}, {pipeline_mode = #tpu.pipeline_mode<synchronous>, transform_indices = @transform_2, window_bounds = array<i64: 4, 32, 8>}, {pipeline_mode = #tpu.pipeline_mode<synchronous>, transform_indices = @transform_3, window_bounds = array<i64: 4, 1, 8>}, {pipeline_mode = #tpu.pipeline_mode<synchronous>, transform_indices = @transform_4, window_bounds = array<i64: 4, 32, 8>}, {pipeline_mode = #tpu.pipeline_mode<synchronous>, transform_indices = @transform_5, window_bounds = array<i64: 4, 1, 8>}, {pipeline_mode = #tpu.pipeline_mode<synchronous>, transform_indices = @transform_6, window_bounds = array<i64: 4, 32, 8>}, {pipeline_mode = #tpu.pipeline_mode<synchronous>, transform_indices = @transform_7, window_bounds = array<i64: 4, 1, 8>}, {pipeline_mode = #tpu.pipeline_mode<synchronous>, transform_indices = @transform_8, window_bounds = array<i64: 4, 8, 32>}, {pipeline_mode = #tpu.pipeline_mode<synchronous>, transform_indices = @transform_9, window_bounds = array<i64: 1, 32>}, {pipeline_mode = #tpu.pipeline_mode<synchronous>, transform_indices = @transform_10, window_bounds = array<i64: 1, 32>}, {pipeline_mode = #tpu.pipeline_mode<synchronous>, transform_indices = @transform_11, window_bounds = array<i64: 1, 32>}, {pipeline_mode = #tpu.pipeline_mode<synchronous>, transform_indices = @transform_12, window_bounds = array<i64: 4, 32, 8>}, {pipeline_mode = #tpu.pipeline_mode<synchronous>, transform_indices = @transform_13, window_bounds = array<i64: 4, 1, 8>}, {pipeline_mode = #tpu.pipeline_mode<synchronous>, transform_indices = @transform_14, window_bounds = array<i64: 4, 32, 8>}, {pipeline_mode = #tpu.pipeline_mode<synchronous>, transform_indices = @transform_15, window_bounds = array<i64: 4, 1, 8>}, {pipeline_mode = #tpu.pipeline_mode<synchronous>, transform_indices = @transform_16, window_bounds = array<i64: 4, 32, 8>}, {pipeline_mode = #tpu.pipeline_mode<synchronous>, transform_indices = @transform_17, window_bounds = array<i64: 4, 1, 8>}, {pipeline_mode = #tpu.pipeline_mode<synchronous>, transform_indices = @transform_18, window_bounds = array<i64: 4, 8, 32>}, {pipeline_mode = #tpu.pipeline_mode<synchronous>, transform_indices = @transform_19, window_bounds = array<i64: 1, 32>}, {pipeline_mode = #tpu.pipeline_mode<synchronous>, transform_indices = @transform_20, window_bounds = array<i64: 1, 32>}, {pipeline_mode = #tpu.pipeline_mode<synchronous>, transform_indices = @transform_21, window_bounds = array<i64: 1, 32>}, {pipeline_mode = #tpu.pipeline_mode<synchronous>, transform_indices = @transform_22, window_bounds = array<i64: 32, 64>}, {pipeline_mode = #tpu.pipeline_mode<synchronous>, transform_indices = @transform_23, window_bounds = array<i64: 1, 64>}, {pipeline_mode = #tpu.pipeline_mode<synchronous>, transform_indices = @transform_24, window_bounds = array<i64: 64, 32>}, {pipeline_mode = #tpu.pipeline_mode<synchronous>, transform_indices = @transform_25, window_bounds = array<i64: 1, 32>}, {pipeline_mode = #tpu.pipeline_mode<synchronous>, transform_indices = @transform_26, window_bounds = array<i64: 1, 32>}, {pipeline_mode = #tpu.pipeline_mode<synchronous>, transform_indices = @transform_27, window_bounds = array<i64: 1, 32>}, {transform_indices = @transform_28, window_bounds = array<i64: 1, 8, 32>}]} {
    %c0 = arith.constant 0 : index
    %c0_0 = arith.constant 0 : index
    %c0_1 = arith.constant 0 : index
    %0 = vector.load %arg1[%c0, %c0_0, %c0_1] : memref<1x8x32xf32, #tpu.memory_space<vmem>>, vector<1x8x32xf32>
    %1 = vector.shape_cast %0 : vector<1x8x32xf32> to vector<8x32xf32>
    %c0_2 = arith.constant 0 : index
    %c0_3 = arith.constant 0 : index
    %c0_4 = arith.constant 0 : index
    %2 = vector.load %arg2[%c0_2, %c0_3, %c0_4] : memref<1x8x32xf32, #tpu.memory_space<vmem>>, vector<1x8x32xf32>
    %3 = vector.shape_cast %2 : vector<1x8x32xf32> to vector<8x32xf32>
    %4 = arith.truncf %1 : vector<8x32xf32> to vector<8x32xbf16>
    %5 = arith.truncf %1 : vector<8x32xf32> to vector<8x32xbf16>
    %cst = arith.constant 0.000000e+00 : f32
    %6 = vector.broadcast %cst : f32 to vector<8x32xf32>
    %c0_5 = arith.constant 0 : index
    %c0_6 = arith.constant 0 : index
    %c0_7 = arith.constant 0 : index
    %7 = vector.load %arg3[%c0_5, %c0_6, %c0_7] : memref<4x32x8xbf16, #tpu.memory_space<vmem>>, vector<1x32x8xbf16>
    %8 = vector.shape_cast %7 : vector<1x32x8xbf16> to vector<32x8xbf16>
    %cst_8 = arith.constant dense<0.000000e+00> : vector<8x8xf32>
    %9 = tpu.matmul %4, %8, %cst_8 {dimension_numbers = #tpu.dot_dimension_numbers<[1], [0], [0], [1], [0, 0, 1, 1], [], []>} : vector<8x32xbf16>, vector<32x8xbf16>, vector<8x8xf32> -> vector<8x8xf32>
    %c0_9 = arith.constant 0 : index
    %c0_10 = arith.constant 0 : index
    %c0_11 = arith.constant 0 : index
    %10 = vector.load %arg4[%c0_9, %c0_10, %c0_11] : memref<4x1x8xf32, #tpu.memory_space<vmem>>, vector<1x1x8xf32>
    %11 = vector.shape_cast %10 : vector<1x1x8xf32> to vector<1x8xf32>
    %12 = vector.broadcast %11 : vector<1x8xf32> to vector<8x8xf32>
    %13 = arith.addf %9, %12 : vector<8x8xf32>
    %c0_12 = arith.constant 0 : index
    %c0_13 = arith.constant 0 : index
    %c0_14 = arith.constant 0 : index
    %14 = vector.load %arg5[%c0_12, %c0_13, %c0_14] : memref<4x32x8xbf16, #tpu.memory_space<vmem>>, vector<1x32x8xbf16>
    %15 = vector.shape_cast %14 : vector<1x32x8xbf16> to vector<32x8xbf16>
    %cst_15 = arith.constant dense<0.000000e+00> : vector<8x8xf32>
    %16 = tpu.matmul %5, %15, %cst_15 {dimension_numbers = #tpu.dot_dimension_numbers<[1], [0], [0], [1], [0, 0, 1, 1], [], []>} : vector<8x32xbf16>, vector<32x8xbf16>, vector<8x8xf32> -> vector<8x8xf32>
    %c0_16 = arith.constant 0 : index
    %c0_17 = arith.constant 0 : index
    %c0_18 = arith.constant 0 : index
    %17 = vector.load %arg6[%c0_16, %c0_17, %c0_18] : memref<4x1x8xf32, #tpu.memory_space<vmem>>, vector<1x1x8xf32>
    %18 = vector.shape_cast %17 : vector<1x1x8xf32> to vector<1x8xf32>
    %19 = vector.broadcast %18 : vector<1x8xf32> to vector<8x8xf32>
    %20 = arith.addf %16, %19 : vector<8x8xf32>
    %c0_19 = arith.constant 0 : index
    %c0_20 = arith.constant 0 : index
    %c0_21 = arith.constant 0 : index
    %21 = vector.load %arg7[%c0_19, %c0_20, %c0_21] : memref<4x32x8xbf16, #tpu.memory_space<vmem>>, vector<1x32x8xbf16>
    %22 = vector.shape_cast %21 : vector<1x32x8xbf16> to vector<32x8xbf16>
    %cst_22 = arith.constant dense<0.000000e+00> : vector<8x8xf32>
    %23 = tpu.matmul %5, %22, %cst_22 {dimension_numbers = #tpu.dot_dimension_numbers<[1], [0], [0], [1], [0, 0, 1, 1], [], []>} : vector<8x32xbf16>, vector<32x8xbf16>, vector<8x8xf32> -> vector<8x8xf32>
    %c0_23 = arith.constant 0 : index
    %c0_24 = arith.constant 0 : index
    %c0_25 = arith.constant 0 : index
    %24 = vector.load %arg8[%c0_23, %c0_24, %c0_25] : memref<4x1x8xf32, #tpu.memory_space<vmem>>, vector<1x1x8xf32>
    %25 = vector.shape_cast %24 : vector<1x1x8xf32> to vector<1x8xf32>
    %26 = vector.broadcast %25 : vector<1x8xf32> to vector<8x8xf32>
    %27 = arith.addf %23, %26 : vector<8x8xf32>
    %28 = arith.truncf %13 : vector<8x8xf32> to vector<8x8xbf16>
    %29 = arith.truncf %20 : vector<8x8xf32> to vector<8x8xbf16>
    %cst_26 = arith.constant dense<0.000000e+00> : vector<8x8xf32>
    %30 = tpu.matmul %28, %29, %cst_26 {dimension_numbers = #tpu.dot_dimension_numbers<[1], [1], [0], [0], [0, 0, 1, 0], [], []>} : vector<8x8xbf16>, vector<8x8xbf16>, vector<8x8xf32> -> vector<8x8xf32>
    %cst_27 = arith.constant dense<0xFF800000> : vector<8xf32>
    %31 = vector.multi_reduction <maximumf>, %30, %cst_27 [1] : vector<8x8xf32> to vector<8xf32>
    %32 = vector.shape_cast %31 : vector<8xf32> to vector<8x1xf32>
    %33 = vector.broadcast %32 : vector<8x1xf32> to vector<8x8xf32>
    %34 = arith.subf %30, %33 : vector<8x8xf32>
    %35 = math.exp %34 : vector<8x8xf32>
    %cst_28 = arith.constant dense<0.000000e+00> : vector<8xf32>
    %36 = vector.multi_reduction <add>, %35, %cst_28 [1] : vector<8x8xf32> to vector<8xf32>
    %37 = vector.shape_cast %36 : vector<8xf32> to vector<8x1xf32>
    %38 = tpu.reciprocal %37 {approx = true} : vector<8x1xf32> -> vector<8x1xf32>
    %39 = vector.broadcast %38 : vector<8x1xf32> to vector<8x8xf32>
    %40 = arith.mulf %35, %39 : vector<8x8xf32>
    %41 = arith.truncf %40 : vector<8x8xf32> to vector<8x8xbf16>
    %42 = arith.truncf %27 : vector<8x8xf32> to vector<8x8xbf16>
    %cst_29 = arith.constant dense<0.000000e+00> : vector<8x8xf32>
    %43 = tpu.matmul %41, %42, %cst_29 {dimension_numbers = #tpu.dot_dimension_numbers<[1], [0], [0], [1], [0, 0, 1, 1], [], []>} : vector<8x8xbf16>, vector<8x8xbf16>, vector<8x8xf32> -> vector<8x8xf32>
    %44 = arith.truncf %43 : vector<8x8xf32> to vector<8x8xbf16>
    %c0_30 = arith.constant 0 : index
    %c0_31 = arith.constant 0 : index
    %c0_32 = arith.constant 0 : index
    %45 = vector.load %arg9[%c0_30, %c0_31, %c0_32] : memref<4x8x32xbf16, #tpu.memory_space<vmem>>, vector<1x8x32xbf16>
    %46 = vector.shape_cast %45 : vector<1x8x32xbf16> to vector<8x32xbf16>
    %cst_33 = arith.constant dense<0.000000e+00> : vector<8x32xf32>
    %47 = tpu.matmul %44, %46, %cst_33 {dimension_numbers = #tpu.dot_dimension_numbers<[1], [0], [0], [1], [0, 0, 1, 1], [], []>} : vector<8x8xbf16>, vector<8x32xbf16>, vector<8x32xf32> -> vector<8x32xf32>
    %48 = arith.addf %6, %47 : vector<8x32xf32>
    %c1 = arith.constant 1 : index
    %c0_34 = arith.constant 0 : index
    %c0_35 = arith.constant 0 : index
    %49 = vector.load %arg3[%c1, %c0_34, %c0_35] : memref<4x32x8xbf16, #tpu.memory_space<vmem>>, vector<1x32x8xbf16>
    %50 = vector.shape_cast %49 : vector<1x32x8xbf16> to vector<32x8xbf16>
    %cst_36 = arith.constant dense<0.000000e+00> : vector<8x8xf32>
    %51 = tpu.matmul %4, %50, %cst_36 {dimension_numbers = #tpu.dot_dimension_numbers<[1], [0], [0], [1], [0, 0, 1, 1], [], []>} : vector<8x32xbf16>, vector<32x8xbf16>, vector<8x8xf32> -> vector<8x8xf32>
    %c1_37 = arith.constant 1 : index
    %c0_38 = arith.constant 0 : index
    %c0_39 = arith.constant 0 : index
    %52 = vector.load %arg4[%c1_37, %c0_38, %c0_39] : memref<4x1x8xf32, #tpu.memory_space<vmem>>, vector<1x1x8xf32>
    %53 = vector.shape_cast %52 : vector<1x1x8xf32> to vector<1x8xf32>
    %54 = vector.broadcast %53 : vector<1x8xf32> to vector<8x8xf32>
    %55 = arith.addf %51, %54 : vector<8x8xf32>
    %c1_40 = arith.constant 1 : index
    %c0_41 = arith.constant 0 : index
    %c0_42 = arith.constant 0 : index
    %56 = vector.load %arg5[%c1_40, %c0_41, %c0_42] : memref<4x32x8xbf16, #tpu.memory_space<vmem>>, vector<1x32x8xbf16>
    %57 = vector.shape_cast %56 : vector<1x32x8xbf16> to vector<32x8xbf16>
    %cst_43 = arith.constant dense<0.000000e+00> : vector<8x8xf32>
    %58 = tpu.matmul %5, %57, %cst_43 {dimension_numbers = #tpu.dot_dimension_numbers<[1], [0], [0], [1], [0, 0, 1, 1], [], []>} : vector<8x32xbf16>, vector<32x8xbf16>, vector<8x8xf32> -> vector<8x8xf32>
    %c1_44 = arith.constant 1 : index
    %c0_45 = arith.constant 0 : index
    %c0_46 = arith.constant 0 : index
    %59 = vector.load %arg6[%c1_44, %c0_45, %c0_46] : memref<4x1x8xf32, #tpu.memory_space<vmem>>, vector<1x1x8xf32>
    %60 = vector.shape_cast %59 : vector<1x1x8xf32> to vector<1x8xf32>
    %61 = vector.broadcast %60 : vector<1x8xf32> to vector<8x8xf32>
    %62 = arith.addf %58, %61 : vector<8x8xf32>
    %c1_47 = arith.constant 1 : index
    %c0_48 = arith.constant 0 : index
    %c0_49 = arith.constant 0 : index
    %63 = vector.load %arg7[%c1_47, %c0_48, %c0_49] : memref<4x32x8xbf16, #tpu.memory_space<vmem>>, vector<1x32x8xbf16>
    %64 = vector.shape_cast %63 : vector<1x32x8xbf16> to vector<32x8xbf16>
    %cst_50 = arith.constant dense<0.000000e+00> : vector<8x8xf32>
    %65 = tpu.matmul %5, %64, %cst_50 {dimension_numbers = #tpu.dot_dimension_numbers<[1], [0], [0], [1], [0, 0, 1, 1], [], []>} : vector<8x32xbf16>, vector<32x8xbf16>, vector<8x8xf32> -> vector<8x8xf32>
    %c1_51 = arith.constant 1 : index
    %c0_52 = arith.constant 0 : index
    %c0_53 = arith.constant 0 : index
    %66 = vector.load %arg8[%c1_51, %c0_52, %c0_53] : memref<4x1x8xf32, #tpu.memory_space<vmem>>, vector<1x1x8xf32>
    %67 = vector.shape_cast %66 : vector<1x1x8xf32> to vector<1x8xf32>
    %68 = vector.broadcast %67 : vector<1x8xf32> to vector<8x8xf32>
    %69 = arith.addf %65, %68 : vector<8x8xf32>
    %70 = arith.truncf %55 : vector<8x8xf32> to vector<8x8xbf16>
    %71 = arith.truncf %62 : vector<8x8xf32> to vector<8x8xbf16>
    %cst_54 = arith.constant dense<0.000000e+00> : vector<8x8xf32>
    %72 = tpu.matmul %70, %71, %cst_54 {dimension_numbers = #tpu.dot_dimension_numbers<[1], [1], [0], [0], [0, 0, 1, 0], [], []>} : vector<8x8xbf16>, vector<8x8xbf16>, vector<8x8xf32> -> vector<8x8xf32>
    %cst_55 = arith.constant dense<0xFF800000> : vector<8xf32>
    %73 = vector.multi_reduction <maximumf>, %72, %cst_55 [1] : vector<8x8xf32> to vector<8xf32>
    %74 = vector.shape_cast %73 : vector<8xf32> to vector<8x1xf32>
    %75 = vector.broadcast %74 : vector<8x1xf32> to vector<8x8xf32>
    %76 = arith.subf %72, %75 : vector<8x8xf32>
    %77 = math.exp %76 : vector<8x8xf32>
    %cst_56 = arith.constant dense<0.000000e+00> : vector<8xf32>
    %78 = vector.multi_reduction <add>, %77, %cst_56 [1] : vector<8x8xf32> to vector<8xf32>
    %79 = vector.shape_cast %78 : vector<8xf32> to vector<8x1xf32>
    %80 = tpu.reciprocal %79 {approx = true} : vector<8x1xf32> -> vector<8x1xf32>
    %81 = vector.broadcast %80 : vector<8x1xf32> to vector<8x8xf32>
    %82 = arith.mulf %77, %81 : vector<8x8xf32>
    %83 = arith.truncf %82 : vector<8x8xf32> to vector<8x8xbf16>
    %84 = arith.truncf %69 : vector<8x8xf32> to vector<8x8xbf16>
    %cst_57 = arith.constant dense<0.000000e+00> : vector<8x8xf32>
    %85 = tpu.matmul %83, %84, %cst_57 {dimension_numbers = #tpu.dot_dimension_numbers<[1], [0], [0], [1], [0, 0, 1, 1], [], []>} : vector<8x8xbf16>, vector<8x8xbf16>, vector<8x8xf32> -> vector<8x8xf32>
    %86 = arith.truncf %85 : vector<8x8xf32> to vector<8x8xbf16>
    %c1_58 = arith.constant 1 : index
    %c0_59 = arith.constant 0 : index
    %c0_60 = arith.constant 0 : index
    %87 = vector.load %arg9[%c1_58, %c0_59, %c0_60] : memref<4x8x32xbf16, #tpu.memory_space<vmem>>, vector<1x8x32xbf16>
    %88 = vector.shape_cast %87 : vector<1x8x32xbf16> to vector<8x32xbf16>
    %cst_61 = arith.constant dense<0.000000e+00> : vector<8x32xf32>
    %89 = tpu.matmul %86, %88, %cst_61 {dimension_numbers = #tpu.dot_dimension_numbers<[1], [0], [0], [1], [0, 0, 1, 1], [], []>} : vector<8x8xbf16>, vector<8x32xbf16>, vector<8x32xf32> -> vector<8x32xf32>
    %90 = arith.addf %48, %89 : vector<8x32xf32>
    %c2 = arith.constant 2 : index
    %c0_62 = arith.constant 0 : index
    %c0_63 = arith.constant 0 : index
    %91 = vector.load %arg3[%c2, %c0_62, %c0_63] : memref<4x32x8xbf16, #tpu.memory_space<vmem>>, vector<1x32x8xbf16>
    %92 = vector.shape_cast %91 : vector<1x32x8xbf16> to vector<32x8xbf16>
    %cst_64 = arith.constant dense<0.000000e+00> : vector<8x8xf32>
    %93 = tpu.matmul %4, %92, %cst_64 {dimension_numbers = #tpu.dot_dimension_numbers<[1], [0], [0], [1], [0, 0, 1, 1], [], []>} : vector<8x32xbf16>, vector<32x8xbf16>, vector<8x8xf32> -> vector<8x8xf32>
    %c2_65 = arith.constant 2 : index
    %c0_66 = arith.constant 0 : index
    %c0_67 = arith.constant 0 : index
    %94 = vector.load %arg4[%c2_65, %c0_66, %c0_67] : memref<4x1x8xf32, #tpu.memory_space<vmem>>, vector<1x1x8xf32>
    %95 = vector.shape_cast %94 : vector<1x1x8xf32> to vector<1x8xf32>
    %96 = vector.broadcast %95 : vector<1x8xf32> to vector<8x8xf32>
    %97 = arith.addf %93, %96 : vector<8x8xf32>
    %c2_68 = arith.constant 2 : index
    %c0_69 = arith.constant 0 : index
    %c0_70 = arith.constant 0 : index
    %98 = vector.load %arg5[%c2_68, %c0_69, %c0_70] : memref<4x32x8xbf16, #tpu.memory_space<vmem>>, vector<1x32x8xbf16>
    %99 = vector.shape_cast %98 : vector<1x32x8xbf16> to vector<32x8xbf16>
    %cst_71 = arith.constant dense<0.000000e+00> : vector<8x8xf32>
    %100 = tpu.matmul %5, %99, %cst_71 {dimension_numbers = #tpu.dot_dimension_numbers<[1], [0], [0], [1], [0, 0, 1, 1], [], []>} : vector<8x32xbf16>, vector<32x8xbf16>, vector<8x8xf32> -> vector<8x8xf32>
    %c2_72 = arith.constant 2 : index
    %c0_73 = arith.constant 0 : index
    %c0_74 = arith.constant 0 : index
    %101 = vector.load %arg6[%c2_72, %c0_73, %c0_74] : memref<4x1x8xf32, #tpu.memory_space<vmem>>, vector<1x1x8xf32>
    %102 = vector.shape_cast %101 : vector<1x1x8xf32> to vector<1x8xf32>
    %103 = vector.broadcast %102 : vector<1x8xf32> to vector<8x8xf32>
    %104 = arith.addf %100, %103 : vector<8x8xf32>
    %c2_75 = arith.constant 2 : index
    %c0_76 = arith.constant 0 : index
    %c0_77 = arith.constant 0 : index
    %105 = vector.load %arg7[%c2_75, %c0_76, %c0_77] : memref<4x32x8xbf16, #tpu.memory_space<vmem>>, vector<1x32x8xbf16>
    %106 = vector.shape_cast %105 : vector<1x32x8xbf16> to vector<32x8xbf16>
    %cst_78 = arith.constant dense<0.000000e+00> : vector<8x8xf32>
    %107 = tpu.matmul %5, %106, %cst_78 {dimension_numbers = #tpu.dot_dimension_numbers<[1], [0], [0], [1], [0, 0, 1, 1], [], []>} : vector<8x32xbf16>, vector<32x8xbf16>, vector<8x8xf32> -> vector<8x8xf32>
    %c2_79 = arith.constant 2 : index
    %c0_80 = arith.constant 0 : index
    %c0_81 = arith.constant 0 : index
    %108 = vector.load %arg8[%c2_79, %c0_80, %c0_81] : memref<4x1x8xf32, #tpu.memory_space<vmem>>, vector<1x1x8xf32>
    %109 = vector.shape_cast %108 : vector<1x1x8xf32> to vector<1x8xf32>
    %110 = vector.broadcast %109 : vector<1x8xf32> to vector<8x8xf32>
    %111 = arith.addf %107, %110 : vector<8x8xf32>
    %112 = arith.truncf %97 : vector<8x8xf32> to vector<8x8xbf16>
    %113 = arith.truncf %104 : vector<8x8xf32> to vector<8x8xbf16>
    %cst_82 = arith.constant dense<0.000000e+00> : vector<8x8xf32>
    %114 = tpu.matmul %112, %113, %cst_82 {dimension_numbers = #tpu.dot_dimension_numbers<[1], [1], [0], [0], [0, 0, 1, 0], [], []>} : vector<8x8xbf16>, vector<8x8xbf16>, vector<8x8xf32> -> vector<8x8xf32>
    %cst_83 = arith.constant dense<0xFF800000> : vector<8xf32>
    %115 = vector.multi_reduction <maximumf>, %114, %cst_83 [1] : vector<8x8xf32> to vector<8xf32>
    %116 = vector.shape_cast %115 : vector<8xf32> to vector<8x1xf32>
    %117 = vector.broadcast %116 : vector<8x1xf32> to vector<8x8xf32>
    %118 = arith.subf %114, %117 : vector<8x8xf32>
    %119 = math.exp %118 : vector<8x8xf32>
    %cst_84 = arith.constant dense<0.000000e+00> : vector<8xf32>
    %120 = vector.multi_reduction <add>, %119, %cst_84 [1] : vector<8x8xf32> to vector<8xf32>
    %121 = vector.shape_cast %120 : vector<8xf32> to vector<8x1xf32>
    %122 = tpu.reciprocal %121 {approx = true} : vector<8x1xf32> -> vector<8x1xf32>
    %123 = vector.broadcast %122 : vector<8x1xf32> to vector<8x8xf32>
    %124 = arith.mulf %119, %123 : vector<8x8xf32>
    %125 = arith.truncf %124 : vector<8x8xf32> to vector<8x8xbf16>
    %126 = arith.truncf %111 : vector<8x8xf32> to vector<8x8xbf16>
    %cst_85 = arith.constant dense<0.000000e+00> : vector<8x8xf32>
    %127 = tpu.matmul %125, %126, %cst_85 {dimension_numbers = #tpu.dot_dimension_numbers<[1], [0], [0], [1], [0, 0, 1, 1], [], []>} : vector<8x8xbf16>, vector<8x8xbf16>, vector<8x8xf32> -> vector<8x8xf32>
    %128 = arith.truncf %127 : vector<8x8xf32> to vector<8x8xbf16>
    %c2_86 = arith.constant 2 : index
    %c0_87 = arith.constant 0 : index
    %c0_88 = arith.constant 0 : index
    %129 = vector.load %arg9[%c2_86, %c0_87, %c0_88] : memref<4x8x32xbf16, #tpu.memory_space<vmem>>, vector<1x8x32xbf16>
    %130 = vector.shape_cast %129 : vector<1x8x32xbf16> to vector<8x32xbf16>
    %cst_89 = arith.constant dense<0.000000e+00> : vector<8x32xf32>
    %131 = tpu.matmul %128, %130, %cst_89 {dimension_numbers = #tpu.dot_dimension_numbers<[1], [0], [0], [1], [0, 0, 1, 1], [], []>} : vector<8x8xbf16>, vector<8x32xbf16>, vector<8x32xf32> -> vector<8x32xf32>
    %132 = arith.addf %90, %131 : vector<8x32xf32>
    %c3 = arith.constant 3 : index
    %c0_90 = arith.constant 0 : index
    %c0_91 = arith.constant 0 : index
    %133 = vector.load %arg3[%c3, %c0_90, %c0_91] : memref<4x32x8xbf16, #tpu.memory_space<vmem>>, vector<1x32x8xbf16>
    %134 = vector.shape_cast %133 : vector<1x32x8xbf16> to vector<32x8xbf16>
    %cst_92 = arith.constant dense<0.000000e+00> : vector<8x8xf32>
    %135 = tpu.matmul %4, %134, %cst_92 {dimension_numbers = #tpu.dot_dimension_numbers<[1], [0], [0], [1], [0, 0, 1, 1], [], []>} : vector<8x32xbf16>, vector<32x8xbf16>, vector<8x8xf32> -> vector<8x8xf32>
    %c3_93 = arith.constant 3 : index
    %c0_94 = arith.constant 0 : index
    %c0_95 = arith.constant 0 : index
    %136 = vector.load %arg4[%c3_93, %c0_94, %c0_95] : memref<4x1x8xf32, #tpu.memory_space<vmem>>, vector<1x1x8xf32>
    %137 = vector.shape_cast %136 : vector<1x1x8xf32> to vector<1x8xf32>
    %138 = vector.broadcast %137 : vector<1x8xf32> to vector<8x8xf32>
    %139 = arith.addf %135, %138 : vector<8x8xf32>
    %c3_96 = arith.constant 3 : index
    %c0_97 = arith.constant 0 : index
    %c0_98 = arith.constant 0 : index
    %140 = vector.load %arg5[%c3_96, %c0_97, %c0_98] : memref<4x32x8xbf16, #tpu.memory_space<vmem>>, vector<1x32x8xbf16>
    %141 = vector.shape_cast %140 : vector<1x32x8xbf16> to vector<32x8xbf16>
    %cst_99 = arith.constant dense<0.000000e+00> : vector<8x8xf32>
    %142 = tpu.matmul %5, %141, %cst_99 {dimension_numbers = #tpu.dot_dimension_numbers<[1], [0], [0], [1], [0, 0, 1, 1], [], []>} : vector<8x32xbf16>, vector<32x8xbf16>, vector<8x8xf32> -> vector<8x8xf32>
    %c3_100 = arith.constant 3 : index
    %c0_101 = arith.constant 0 : index
    %c0_102 = arith.constant 0 : index
    %143 = vector.load %arg6[%c3_100, %c0_101, %c0_102] : memref<4x1x8xf32, #tpu.memory_space<vmem>>, vector<1x1x8xf32>
    %144 = vector.shape_cast %143 : vector<1x1x8xf32> to vector<1x8xf32>
    %145 = vector.broadcast %144 : vector<1x8xf32> to vector<8x8xf32>
    %146 = arith.addf %142, %145 : vector<8x8xf32>
    %c3_103 = arith.constant 3 : index
    %c0_104 = arith.constant 0 : index
    %c0_105 = arith.constant 0 : index
    %147 = vector.load %arg7[%c3_103, %c0_104, %c0_105] : memref<4x32x8xbf16, #tpu.memory_space<vmem>>, vector<1x32x8xbf16>
    %148 = vector.shape_cast %147 : vector<1x32x8xbf16> to vector<32x8xbf16>
    %cst_106 = arith.constant dense<0.000000e+00> : vector<8x8xf32>
    %149 = tpu.matmul %5, %148, %cst_106 {dimension_numbers = #tpu.dot_dimension_numbers<[1], [0], [0], [1], [0, 0, 1, 1], [], []>} : vector<8x32xbf16>, vector<32x8xbf16>, vector<8x8xf32> -> vector<8x8xf32>
    %c3_107 = arith.constant 3 : index
    %c0_108 = arith.constant 0 : index
    %c0_109 = arith.constant 0 : index
    %150 = vector.load %arg8[%c3_107, %c0_108, %c0_109] : memref<4x1x8xf32, #tpu.memory_space<vmem>>, vector<1x1x8xf32>
    %151 = vector.shape_cast %150 : vector<1x1x8xf32> to vector<1x8xf32>
    %152 = vector.broadcast %151 : vector<1x8xf32> to vector<8x8xf32>
    %153 = arith.addf %149, %152 : vector<8x8xf32>
    %154 = arith.truncf %139 : vector<8x8xf32> to vector<8x8xbf16>
    %155 = arith.truncf %146 : vector<8x8xf32> to vector<8x8xbf16>
    %cst_110 = arith.constant dense<0.000000e+00> : vector<8x8xf32>
    %156 = tpu.matmul %154, %155, %cst_110 {dimension_numbers = #tpu.dot_dimension_numbers<[1], [1], [0], [0], [0, 0, 1, 0], [], []>} : vector<8x8xbf16>, vector<8x8xbf16>, vector<8x8xf32> -> vector<8x8xf32>
    %cst_111 = arith.constant dense<0xFF800000> : vector<8xf32>
    %157 = vector.multi_reduction <maximumf>, %156, %cst_111 [1] : vector<8x8xf32> to vector<8xf32>
    %158 = vector.shape_cast %157 : vector<8xf32> to vector<8x1xf32>
    %159 = vector.broadcast %158 : vector<8x1xf32> to vector<8x8xf32>
    %160 = arith.subf %156, %159 : vector<8x8xf32>
    %161 = math.exp %160 : vector<8x8xf32>
    %cst_112 = arith.constant dense<0.000000e+00> : vector<8xf32>
    %162 = vector.multi_reduction <add>, %161, %cst_112 [1] : vector<8x8xf32> to vector<8xf32>
    %163 = vector.shape_cast %162 : vector<8xf32> to vector<8x1xf32>
    %164 = tpu.reciprocal %163 {approx = true} : vector<8x1xf32> -> vector<8x1xf32>
    %165 = vector.broadcast %164 : vector<8x1xf32> to vector<8x8xf32>
    %166 = arith.mulf %161, %165 : vector<8x8xf32>
    %167 = arith.truncf %166 : vector<8x8xf32> to vector<8x8xbf16>
    %168 = arith.truncf %153 : vector<8x8xf32> to vector<8x8xbf16>
    %cst_113 = arith.constant dense<0.000000e+00> : vector<8x8xf32>
    %169 = tpu.matmul %167, %168, %cst_113 {dimension_numbers = #tpu.dot_dimension_numbers<[1], [0], [0], [1], [0, 0, 1, 1], [], []>} : vector<8x8xbf16>, vector<8x8xbf16>, vector<8x8xf32> -> vector<8x8xf32>
    %170 = arith.truncf %169 : vector<8x8xf32> to vector<8x8xbf16>
    %c3_114 = arith.constant 3 : index
    %c0_115 = arith.constant 0 : index
    %c0_116 = arith.constant 0 : index
    %171 = vector.load %arg9[%c3_114, %c0_115, %c0_116] : memref<4x8x32xbf16, #tpu.memory_space<vmem>>, vector<1x8x32xbf16>
    %172 = vector.shape_cast %171 : vector<1x8x32xbf16> to vector<8x32xbf16>
    %cst_117 = arith.constant dense<0.000000e+00> : vector<8x32xf32>
    %173 = tpu.matmul %170, %172, %cst_117 {dimension_numbers = #tpu.dot_dimension_numbers<[1], [0], [0], [1], [0, 0, 1, 1], [], []>} : vector<8x8xbf16>, vector<8x32xbf16>, vector<8x32xf32> -> vector<8x32xf32>
    %174 = arith.addf %132, %173 : vector<8x32xf32>
    %c0_118 = arith.constant 0 : index
    %c0_119 = arith.constant 0 : index
    %175 = vector.load %arg10[%c0_118, %c0_119] : memref<1x32xf32, #tpu.memory_space<vmem>>, vector<1x32xf32>
    %176 = vector.broadcast %175 : vector<1x32xf32> to vector<8x32xf32>
    %177 = arith.addf %174, %176 : vector<8x32xf32>
    %178 = arith.addf %1, %177 : vector<8x32xf32>
    %c0_120 = arith.constant 0 : index
    %c0_121 = arith.constant 0 : index
    %179 = vector.load %arg11[%c0_120, %c0_121] : memref<1x32xf32, #tpu.memory_space<vmem>>, vector<1x32xf32>
    %c0_122 = arith.constant 0 : index
    %c0_123 = arith.constant 0 : index
    %180 = vector.load %arg12[%c0_122, %c0_123] : memref<1x32xf32, #tpu.memory_space<vmem>>, vector<1x32xf32>
    %cst_124 = arith.constant dense<0.000000e+00> : vector<8xf32>
    %181 = vector.multi_reduction <add>, %178, %cst_124 [1] : vector<8x32xf32> to vector<8xf32>
    %182 = vector.shape_cast %181 : vector<8xf32> to vector<8x1xf32>
    %cst_125 = arith.constant 3.200000e+01 : f32
    %183 = vector.broadcast %cst_125 : f32 to vector<8x1xf32>
    %184 = arith.divf %182, %183 : vector<8x1xf32>
    %185 = vector.broadcast %184 : vector<8x1xf32> to vector<8x32xf32>
    %186 = arith.subf %178, %185 : vector<8x32xf32>
    %187 = arith.mulf %186, %186 : vector<8x32xf32>
    %cst_126 = arith.constant dense<0.000000e+00> : vector<8xf32>
    %188 = vector.multi_reduction <add>, %187, %cst_126 [1] : vector<8x32xf32> to vector<8xf32>
    %189 = vector.shape_cast %188 : vector<8xf32> to vector<8x1xf32>
    %cst_127 = arith.constant 3.200000e+01 : f32
    %190 = vector.broadcast %cst_127 : f32 to vector<8x1xf32>
    %191 = arith.divf %189, %190 : vector<8x1xf32>
    %192 = vector.broadcast %184 : vector<8x1xf32> to vector<8x32xf32>
    %193 = arith.subf %178, %192 : vector<8x32xf32>
    %cst_128 = arith.constant 9.99999974E-6 : f32
    %194 = vector.broadcast %cst_128 : f32 to vector<8x1xf32>
    %195 = arith.addf %191, %194 : vector<8x1xf32>
    %196 = math.rsqrt %195 : vector<8x1xf32>
    %197 = vector.broadcast %196 : vector<8x1xf32> to vector<8x32xf32>
    %198 = arith.mulf %193, %197 : vector<8x32xf32>
    %199 = vector.broadcast %179 : vector<1x32xf32> to vector<8x32xf32>
    %200 = arith.mulf %198, %199 : vector<8x32xf32>
    %201 = vector.broadcast %180 : vector<1x32xf32> to vector<8x32xf32>
    %202 = arith.addf %200, %201 : vector<8x32xf32>
    %203 = arith.truncf %202 : vector<8x32xf32> to vector<8x32xbf16>
    %204 = arith.truncf %3 : vector<8x32xf32> to vector<8x32xbf16>
    %cst_129 = arith.constant 0.000000e+00 : f32
    %205 = vector.broadcast %cst_129 : f32 to vector<8x32xf32>
    %c0_130 = arith.constant 0 : index
    %c0_131 = arith.constant 0 : index
    %c0_132 = arith.constant 0 : index
    %206 = vector.load %arg13[%c0_130, %c0_131, %c0_132] : memref<4x32x8xbf16, #tpu.memory_space<vmem>>, vector<1x32x8xbf16>
    %207 = vector.shape_cast %206 : vector<1x32x8xbf16> to vector<32x8xbf16>
    %cst_133 = arith.constant dense<0.000000e+00> : vector<8x8xf32>
    %208 = tpu.matmul %203, %207, %cst_133 {dimension_numbers = #tpu.dot_dimension_numbers<[1], [0], [0], [1], [0, 0, 1, 1], [], []>} : vector<8x32xbf16>, vector<32x8xbf16>, vector<8x8xf32> -> vector<8x8xf32>
    %c0_134 = arith.constant 0 : index
    %c0_135 = arith.constant 0 : index
    %c0_136 = arith.constant 0 : index
    %209 = vector.load %arg14[%c0_134, %c0_135, %c0_136] : memref<4x1x8xf32, #tpu.memory_space<vmem>>, vector<1x1x8xf32>
    %210 = vector.shape_cast %209 : vector<1x1x8xf32> to vector<1x8xf32>
    %211 = vector.broadcast %210 : vector<1x8xf32> to vector<8x8xf32>
    %212 = arith.addf %208, %211 : vector<8x8xf32>
    %c0_137 = arith.constant 0 : index
    %c0_138 = arith.constant 0 : index
    %c0_139 = arith.constant 0 : index
    %213 = vector.load %arg15[%c0_137, %c0_138, %c0_139] : memref<4x32x8xbf16, #tpu.memory_space<vmem>>, vector<1x32x8xbf16>
    %214 = vector.shape_cast %213 : vector<1x32x8xbf16> to vector<32x8xbf16>
    %cst_140 = arith.constant dense<0.000000e+00> : vector<8x8xf32>
    %215 = tpu.matmul %204, %214, %cst_140 {dimension_numbers = #tpu.dot_dimension_numbers<[1], [0], [0], [1], [0, 0, 1, 1], [], []>} : vector<8x32xbf16>, vector<32x8xbf16>, vector<8x8xf32> -> vector<8x8xf32>
    %c0_141 = arith.constant 0 : index
    %c0_142 = arith.constant 0 : index
    %c0_143 = arith.constant 0 : index
    %216 = vector.load %arg16[%c0_141, %c0_142, %c0_143] : memref<4x1x8xf32, #tpu.memory_space<vmem>>, vector<1x1x8xf32>
    %217 = vector.shape_cast %216 : vector<1x1x8xf32> to vector<1x8xf32>
    %218 = vector.broadcast %217 : vector<1x8xf32> to vector<8x8xf32>
    %219 = arith.addf %215, %218 : vector<8x8xf32>
    %c0_144 = arith.constant 0 : index
    %c0_145 = arith.constant 0 : index
    %c0_146 = arith.constant 0 : index
    %220 = vector.load %arg17[%c0_144, %c0_145, %c0_146] : memref<4x32x8xbf16, #tpu.memory_space<vmem>>, vector<1x32x8xbf16>
    %221 = vector.shape_cast %220 : vector<1x32x8xbf16> to vector<32x8xbf16>
    %cst_147 = arith.constant dense<0.000000e+00> : vector<8x8xf32>
    %222 = tpu.matmul %204, %221, %cst_147 {dimension_numbers = #tpu.dot_dimension_numbers<[1], [0], [0], [1], [0, 0, 1, 1], [], []>} : vector<8x32xbf16>, vector<32x8xbf16>, vector<8x8xf32> -> vector<8x8xf32>
    %c0_148 = arith.constant 0 : index
    %c0_149 = arith.constant 0 : index
    %c0_150 = arith.constant 0 : index
    %223 = vector.load %arg18[%c0_148, %c0_149, %c0_150] : memref<4x1x8xf32, #tpu.memory_space<vmem>>, vector<1x1x8xf32>
    %224 = vector.shape_cast %223 : vector<1x1x8xf32> to vector<1x8xf32>
    %225 = vector.broadcast %224 : vector<1x8xf32> to vector<8x8xf32>
    %226 = arith.addf %222, %225 : vector<8x8xf32>
    %227 = arith.truncf %212 : vector<8x8xf32> to vector<8x8xbf16>
    %228 = arith.truncf %219 : vector<8x8xf32> to vector<8x8xbf16>
    %cst_151 = arith.constant dense<0.000000e+00> : vector<8x8xf32>
    %229 = tpu.matmul %227, %228, %cst_151 {dimension_numbers = #tpu.dot_dimension_numbers<[1], [1], [0], [0], [0, 0, 1, 0], [], []>} : vector<8x8xbf16>, vector<8x8xbf16>, vector<8x8xf32> -> vector<8x8xf32>
    %cst_152 = arith.constant dense<0xFF800000> : vector<8xf32>
    %230 = vector.multi_reduction <maximumf>, %229, %cst_152 [1] : vector<8x8xf32> to vector<8xf32>
    %231 = vector.shape_cast %230 : vector<8xf32> to vector<8x1xf32>
    %232 = vector.broadcast %231 : vector<8x1xf32> to vector<8x8xf32>
    %233 = arith.subf %229, %232 : vector<8x8xf32>
    %234 = math.exp %233 : vector<8x8xf32>
    %cst_153 = arith.constant dense<0.000000e+00> : vector<8xf32>
    %235 = vector.multi_reduction <add>, %234, %cst_153 [1] : vector<8x8xf32> to vector<8xf32>
    %236 = vector.shape_cast %235 : vector<8xf32> to vector<8x1xf32>
    %237 = tpu.reciprocal %236 {approx = true} : vector<8x1xf32> -> vector<8x1xf32>
    %238 = vector.broadcast %237 : vector<8x1xf32> to vector<8x8xf32>
    %239 = arith.mulf %234, %238 : vector<8x8xf32>
    %240 = arith.truncf %239 : vector<8x8xf32> to vector<8x8xbf16>
    %241 = arith.truncf %226 : vector<8x8xf32> to vector<8x8xbf16>
    %cst_154 = arith.constant dense<0.000000e+00> : vector<8x8xf32>
    %242 = tpu.matmul %240, %241, %cst_154 {dimension_numbers = #tpu.dot_dimension_numbers<[1], [0], [0], [1], [0, 0, 1, 1], [], []>} : vector<8x8xbf16>, vector<8x8xbf16>, vector<8x8xf32> -> vector<8x8xf32>
    %243 = arith.truncf %242 : vector<8x8xf32> to vector<8x8xbf16>
    %c0_155 = arith.constant 0 : index
    %c0_156 = arith.constant 0 : index
    %c0_157 = arith.constant 0 : index
    %244 = vector.load %arg19[%c0_155, %c0_156, %c0_157] : memref<4x8x32xbf16, #tpu.memory_space<vmem>>, vector<1x8x32xbf16>
    %245 = vector.shape_cast %244 : vector<1x8x32xbf16> to vector<8x32xbf16>
    %cst_158 = arith.constant dense<0.000000e+00> : vector<8x32xf32>
    %246 = tpu.matmul %243, %245, %cst_158 {dimension_numbers = #tpu.dot_dimension_numbers<[1], [0], [0], [1], [0, 0, 1, 1], [], []>} : vector<8x8xbf16>, vector<8x32xbf16>, vector<8x32xf32> -> vector<8x32xf32>
    %247 = arith.addf %205, %246 : vector<8x32xf32>
    %c1_159 = arith.constant 1 : index
    %c0_160 = arith.constant 0 : index
    %c0_161 = arith.constant 0 : index
    %248 = vector.load %arg13[%c1_159, %c0_160, %c0_161] : memref<4x32x8xbf16, #tpu.memory_space<vmem>>, vector<1x32x8xbf16>
    %249 = vector.shape_cast %248 : vector<1x32x8xbf16> to vector<32x8xbf16>
    %cst_162 = arith.constant dense<0.000000e+00> : vector<8x8xf32>
    %250 = tpu.matmul %203, %249, %cst_162 {dimension_numbers = #tpu.dot_dimension_numbers<[1], [0], [0], [1], [0, 0, 1, 1], [], []>} : vector<8x32xbf16>, vector<32x8xbf16>, vector<8x8xf32> -> vector<8x8xf32>
    %c1_163 = arith.constant 1 : index
    %c0_164 = arith.constant 0 : index
    %c0_165 = arith.constant 0 : index
    %251 = vector.load %arg14[%c1_163, %c0_164, %c0_165] : memref<4x1x8xf32, #tpu.memory_space<vmem>>, vector<1x1x8xf32>
    %252 = vector.shape_cast %251 : vector<1x1x8xf32> to vector<1x8xf32>
    %253 = vector.broadcast %252 : vector<1x8xf32> to vector<8x8xf32>
    %254 = arith.addf %250, %253 : vector<8x8xf32>
    %c1_166 = arith.constant 1 : index
    %c0_167 = arith.constant 0 : index
    %c0_168 = arith.constant 0 : index
    %255 = vector.load %arg15[%c1_166, %c0_167, %c0_168] : memref<4x32x8xbf16, #tpu.memory_space<vmem>>, vector<1x32x8xbf16>
    %256 = vector.shape_cast %255 : vector<1x32x8xbf16> to vector<32x8xbf16>
    %cst_169 = arith.constant dense<0.000000e+00> : vector<8x8xf32>
    %257 = tpu.matmul %204, %256, %cst_169 {dimension_numbers = #tpu.dot_dimension_numbers<[1], [0], [0], [1], [0, 0, 1, 1], [], []>} : vector<8x32xbf16>, vector<32x8xbf16>, vector<8x8xf32> -> vector<8x8xf32>
    %c1_170 = arith.constant 1 : index
    %c0_171 = arith.constant 0 : index
    %c0_172 = arith.constant 0 : index
    %258 = vector.load %arg16[%c1_170, %c0_171, %c0_172] : memref<4x1x8xf32, #tpu.memory_space<vmem>>, vector<1x1x8xf32>
    %259 = vector.shape_cast %258 : vector<1x1x8xf32> to vector<1x8xf32>
    %260 = vector.broadcast %259 : vector<1x8xf32> to vector<8x8xf32>
    %261 = arith.addf %257, %260 : vector<8x8xf32>
    %c1_173 = arith.constant 1 : index
    %c0_174 = arith.constant 0 : index
    %c0_175 = arith.constant 0 : index
    %262 = vector.load %arg17[%c1_173, %c0_174, %c0_175] : memref<4x32x8xbf16, #tpu.memory_space<vmem>>, vector<1x32x8xbf16>
    %263 = vector.shape_cast %262 : vector<1x32x8xbf16> to vector<32x8xbf16>
    %cst_176 = arith.constant dense<0.000000e+00> : vector<8x8xf32>
    %264 = tpu.matmul %204, %263, %cst_176 {dimension_numbers = #tpu.dot_dimension_numbers<[1], [0], [0], [1], [0, 0, 1, 1], [], []>} : vector<8x32xbf16>, vector<32x8xbf16>, vector<8x8xf32> -> vector<8x8xf32>
    %c1_177 = arith.constant 1 : index
    %c0_178 = arith.constant 0 : index
    %c0_179 = arith.constant 0 : index
    %265 = vector.load %arg18[%c1_177, %c0_178, %c0_179] : memref<4x1x8xf32, #tpu.memory_space<vmem>>, vector<1x1x8xf32>
    %266 = vector.shape_cast %265 : vector<1x1x8xf32> to vector<1x8xf32>
    %267 = vector.broadcast %266 : vector<1x8xf32> to vector<8x8xf32>
    %268 = arith.addf %264, %267 : vector<8x8xf32>
    %269 = arith.truncf %254 : vector<8x8xf32> to vector<8x8xbf16>
    %270 = arith.truncf %261 : vector<8x8xf32> to vector<8x8xbf16>
    %cst_180 = arith.constant dense<0.000000e+00> : vector<8x8xf32>
    %271 = tpu.matmul %269, %270, %cst_180 {dimension_numbers = #tpu.dot_dimension_numbers<[1], [1], [0], [0], [0, 0, 1, 0], [], []>} : vector<8x8xbf16>, vector<8x8xbf16>, vector<8x8xf32> -> vector<8x8xf32>
    %cst_181 = arith.constant dense<0xFF800000> : vector<8xf32>
    %272 = vector.multi_reduction <maximumf>, %271, %cst_181 [1] : vector<8x8xf32> to vector<8xf32>
    %273 = vector.shape_cast %272 : vector<8xf32> to vector<8x1xf32>
    %274 = vector.broadcast %273 : vector<8x1xf32> to vector<8x8xf32>
    %275 = arith.subf %271, %274 : vector<8x8xf32>
    %276 = math.exp %275 : vector<8x8xf32>
    %cst_182 = arith.constant dense<0.000000e+00> : vector<8xf32>
    %277 = vector.multi_reduction <add>, %276, %cst_182 [1] : vector<8x8xf32> to vector<8xf32>
    %278 = vector.shape_cast %277 : vector<8xf32> to vector<8x1xf32>
    %279 = tpu.reciprocal %278 {approx = true} : vector<8x1xf32> -> vector<8x1xf32>
    %280 = vector.broadcast %279 : vector<8x1xf32> to vector<8x8xf32>
    %281 = arith.mulf %276, %280 : vector<8x8xf32>
    %282 = arith.truncf %281 : vector<8x8xf32> to vector<8x8xbf16>
    %283 = arith.truncf %268 : vector<8x8xf32> to vector<8x8xbf16>
    %cst_183 = arith.constant dense<0.000000e+00> : vector<8x8xf32>
    %284 = tpu.matmul %282, %283, %cst_183 {dimension_numbers = #tpu.dot_dimension_numbers<[1], [0], [0], [1], [0, 0, 1, 1], [], []>} : vector<8x8xbf16>, vector<8x8xbf16>, vector<8x8xf32> -> vector<8x8xf32>
    %285 = arith.truncf %284 : vector<8x8xf32> to vector<8x8xbf16>
    %c1_184 = arith.constant 1 : index
    %c0_185 = arith.constant 0 : index
    %c0_186 = arith.constant 0 : index
    %286 = vector.load %arg19[%c1_184, %c0_185, %c0_186] : memref<4x8x32xbf16, #tpu.memory_space<vmem>>, vector<1x8x32xbf16>
    %287 = vector.shape_cast %286 : vector<1x8x32xbf16> to vector<8x32xbf16>
    %cst_187 = arith.constant dense<0.000000e+00> : vector<8x32xf32>
    %288 = tpu.matmul %285, %287, %cst_187 {dimension_numbers = #tpu.dot_dimension_numbers<[1], [0], [0], [1], [0, 0, 1, 1], [], []>} : vector<8x8xbf16>, vector<8x32xbf16>, vector<8x32xf32> -> vector<8x32xf32>
    %289 = arith.addf %247, %288 : vector<8x32xf32>
    %c2_188 = arith.constant 2 : index
    %c0_189 = arith.constant 0 : index
    %c0_190 = arith.constant 0 : index
    %290 = vector.load %arg13[%c2_188, %c0_189, %c0_190] : memref<4x32x8xbf16, #tpu.memory_space<vmem>>, vector<1x32x8xbf16>
    %291 = vector.shape_cast %290 : vector<1x32x8xbf16> to vector<32x8xbf16>
    %cst_191 = arith.constant dense<0.000000e+00> : vector<8x8xf32>
    %292 = tpu.matmul %203, %291, %cst_191 {dimension_numbers = #tpu.dot_dimension_numbers<[1], [0], [0], [1], [0, 0, 1, 1], [], []>} : vector<8x32xbf16>, vector<32x8xbf16>, vector<8x8xf32> -> vector<8x8xf32>
    %c2_192 = arith.constant 2 : index
    %c0_193 = arith.constant 0 : index
    %c0_194 = arith.constant 0 : index
    %293 = vector.load %arg14[%c2_192, %c0_193, %c0_194] : memref<4x1x8xf32, #tpu.memory_space<vmem>>, vector<1x1x8xf32>
    %294 = vector.shape_cast %293 : vector<1x1x8xf32> to vector<1x8xf32>
    %295 = vector.broadcast %294 : vector<1x8xf32> to vector<8x8xf32>
    %296 = arith.addf %292, %295 : vector<8x8xf32>
    %c2_195 = arith.constant 2 : index
    %c0_196 = arith.constant 0 : index
    %c0_197 = arith.constant 0 : index
    %297 = vector.load %arg15[%c2_195, %c0_196, %c0_197] : memref<4x32x8xbf16, #tpu.memory_space<vmem>>, vector<1x32x8xbf16>
    %298 = vector.shape_cast %297 : vector<1x32x8xbf16> to vector<32x8xbf16>
    %cst_198 = arith.constant dense<0.000000e+00> : vector<8x8xf32>
    %299 = tpu.matmul %204, %298, %cst_198 {dimension_numbers = #tpu.dot_dimension_numbers<[1], [0], [0], [1], [0, 0, 1, 1], [], []>} : vector<8x32xbf16>, vector<32x8xbf16>, vector<8x8xf32> -> vector<8x8xf32>
    %c2_199 = arith.constant 2 : index
    %c0_200 = arith.constant 0 : index
    %c0_201 = arith.constant 0 : index
    %300 = vector.load %arg16[%c2_199, %c0_200, %c0_201] : memref<4x1x8xf32, #tpu.memory_space<vmem>>, vector<1x1x8xf32>
    %301 = vector.shape_cast %300 : vector<1x1x8xf32> to vector<1x8xf32>
    %302 = vector.broadcast %301 : vector<1x8xf32> to vector<8x8xf32>
    %303 = arith.addf %299, %302 : vector<8x8xf32>
    %c2_202 = arith.constant 2 : index
    %c0_203 = arith.constant 0 : index
    %c0_204 = arith.constant 0 : index
    %304 = vector.load %arg17[%c2_202, %c0_203, %c0_204] : memref<4x32x8xbf16, #tpu.memory_space<vmem>>, vector<1x32x8xbf16>
    %305 = vector.shape_cast %304 : vector<1x32x8xbf16> to vector<32x8xbf16>
    %cst_205 = arith.constant dense<0.000000e+00> : vector<8x8xf32>
    %306 = tpu.matmul %204, %305, %cst_205 {dimension_numbers = #tpu.dot_dimension_numbers<[1], [0], [0], [1], [0, 0, 1, 1], [], []>} : vector<8x32xbf16>, vector<32x8xbf16>, vector<8x8xf32> -> vector<8x8xf32>
    %c2_206 = arith.constant 2 : index
    %c0_207 = arith.constant 0 : index
    %c0_208 = arith.constant 0 : index
    %307 = vector.load %arg18[%c2_206, %c0_207, %c0_208] : memref<4x1x8xf32, #tpu.memory_space<vmem>>, vector<1x1x8xf32>
    %308 = vector.shape_cast %307 : vector<1x1x8xf32> to vector<1x8xf32>
    %309 = vector.broadcast %308 : vector<1x8xf32> to vector<8x8xf32>
    %310 = arith.addf %306, %309 : vector<8x8xf32>
    %311 = arith.truncf %296 : vector<8x8xf32> to vector<8x8xbf16>
    %312 = arith.truncf %303 : vector<8x8xf32> to vector<8x8xbf16>
    %cst_209 = arith.constant dense<0.000000e+00> : vector<8x8xf32>
    %313 = tpu.matmul %311, %312, %cst_209 {dimension_numbers = #tpu.dot_dimension_numbers<[1], [1], [0], [0], [0, 0, 1, 0], [], []>} : vector<8x8xbf16>, vector<8x8xbf16>, vector<8x8xf32> -> vector<8x8xf32>
    %cst_210 = arith.constant dense<0xFF800000> : vector<8xf32>
    %314 = vector.multi_reduction <maximumf>, %313, %cst_210 [1] : vector<8x8xf32> to vector<8xf32>
    %315 = vector.shape_cast %314 : vector<8xf32> to vector<8x1xf32>
    %316 = vector.broadcast %315 : vector<8x1xf32> to vector<8x8xf32>
    %317 = arith.subf %313, %316 : vector<8x8xf32>
    %318 = math.exp %317 : vector<8x8xf32>
    %cst_211 = arith.constant dense<0.000000e+00> : vector<8xf32>
    %319 = vector.multi_reduction <add>, %318, %cst_211 [1] : vector<8x8xf32> to vector<8xf32>
    %320 = vector.shape_cast %319 : vector<8xf32> to vector<8x1xf32>
    %321 = tpu.reciprocal %320 {approx = true} : vector<8x1xf32> -> vector<8x1xf32>
    %322 = vector.broadcast %321 : vector<8x1xf32> to vector<8x8xf32>
    %323 = arith.mulf %318, %322 : vector<8x8xf32>
    %324 = arith.truncf %323 : vector<8x8xf32> to vector<8x8xbf16>
    %325 = arith.truncf %310 : vector<8x8xf32> to vector<8x8xbf16>
    %cst_212 = arith.constant dense<0.000000e+00> : vector<8x8xf32>
    %326 = tpu.matmul %324, %325, %cst_212 {dimension_numbers = #tpu.dot_dimension_numbers<[1], [0], [0], [1], [0, 0, 1, 1], [], []>} : vector<8x8xbf16>, vector<8x8xbf16>, vector<8x8xf32> -> vector<8x8xf32>
    %327 = arith.truncf %326 : vector<8x8xf32> to vector<8x8xbf16>
    %c2_213 = arith.constant 2 : index
    %c0_214 = arith.constant 0 : index
    %c0_215 = arith.constant 0 : index
    %328 = vector.load %arg19[%c2_213, %c0_214, %c0_215] : memref<4x8x32xbf16, #tpu.memory_space<vmem>>, vector<1x8x32xbf16>
    %329 = vector.shape_cast %328 : vector<1x8x32xbf16> to vector<8x32xbf16>
    %cst_216 = arith.constant dense<0.000000e+00> : vector<8x32xf32>
    %330 = tpu.matmul %327, %329, %cst_216 {dimension_numbers = #tpu.dot_dimension_numbers<[1], [0], [0], [1], [0, 0, 1, 1], [], []>} : vector<8x8xbf16>, vector<8x32xbf16>, vector<8x32xf32> -> vector<8x32xf32>
    %331 = arith.addf %289, %330 : vector<8x32xf32>
    %c3_217 = arith.constant 3 : index
    %c0_218 = arith.constant 0 : index
    %c0_219 = arith.constant 0 : index
    %332 = vector.load %arg13[%c3_217, %c0_218, %c0_219] : memref<4x32x8xbf16, #tpu.memory_space<vmem>>, vector<1x32x8xbf16>
    %333 = vector.shape_cast %332 : vector<1x32x8xbf16> to vector<32x8xbf16>
    %cst_220 = arith.constant dense<0.000000e+00> : vector<8x8xf32>
    %334 = tpu.matmul %203, %333, %cst_220 {dimension_numbers = #tpu.dot_dimension_numbers<[1], [0], [0], [1], [0, 0, 1, 1], [], []>} : vector<8x32xbf16>, vector<32x8xbf16>, vector<8x8xf32> -> vector<8x8xf32>
    %c3_221 = arith.constant 3 : index
    %c0_222 = arith.constant 0 : index
    %c0_223 = arith.constant 0 : index
    %335 = vector.load %arg14[%c3_221, %c0_222, %c0_223] : memref<4x1x8xf32, #tpu.memory_space<vmem>>, vector<1x1x8xf32>
    %336 = vector.shape_cast %335 : vector<1x1x8xf32> to vector<1x8xf32>
    %337 = vector.broadcast %336 : vector<1x8xf32> to vector<8x8xf32>
    %338 = arith.addf %334, %337 : vector<8x8xf32>
    %c3_224 = arith.constant 3 : index
    %c0_225 = arith.constant 0 : index
    %c0_226 = arith.constant 0 : index
    %339 = vector.load %arg15[%c3_224, %c0_225, %c0_226] : memref<4x32x8xbf16, #tpu.memory_space<vmem>>, vector<1x32x8xbf16>
    %340 = vector.shape_cast %339 : vector<1x32x8xbf16> to vector<32x8xbf16>
    %cst_227 = arith.constant dense<0.000000e+00> : vector<8x8xf32>
    %341 = tpu.matmul %204, %340, %cst_227 {dimension_numbers = #tpu.dot_dimension_numbers<[1], [0], [0], [1], [0, 0, 1, 1], [], []>} : vector<8x32xbf16>, vector<32x8xbf16>, vector<8x8xf32> -> vector<8x8xf32>
    %c3_228 = arith.constant 3 : index
    %c0_229 = arith.constant 0 : index
    %c0_230 = arith.constant 0 : index
    %342 = vector.load %arg16[%c3_228, %c0_229, %c0_230] : memref<4x1x8xf32, #tpu.memory_space<vmem>>, vector<1x1x8xf32>
    %343 = vector.shape_cast %342 : vector<1x1x8xf32> to vector<1x8xf32>
    %344 = vector.broadcast %343 : vector<1x8xf32> to vector<8x8xf32>
    %345 = arith.addf %341, %344 : vector<8x8xf32>
    %c3_231 = arith.constant 3 : index
    %c0_232 = arith.constant 0 : index
    %c0_233 = arith.constant 0 : index
    %346 = vector.load %arg17[%c3_231, %c0_232, %c0_233] : memref<4x32x8xbf16, #tpu.memory_space<vmem>>, vector<1x32x8xbf16>
    %347 = vector.shape_cast %346 : vector<1x32x8xbf16> to vector<32x8xbf16>
    %cst_234 = arith.constant dense<0.000000e+00> : vector<8x8xf32>
    %348 = tpu.matmul %204, %347, %cst_234 {dimension_numbers = #tpu.dot_dimension_numbers<[1], [0], [0], [1], [0, 0, 1, 1], [], []>} : vector<8x32xbf16>, vector<32x8xbf16>, vector<8x8xf32> -> vector<8x8xf32>
    %c3_235 = arith.constant 3 : index
    %c0_236 = arith.constant 0 : index
    %c0_237 = arith.constant 0 : index
    %349 = vector.load %arg18[%c3_235, %c0_236, %c0_237] : memref<4x1x8xf32, #tpu.memory_space<vmem>>, vector<1x1x8xf32>
    %350 = vector.shape_cast %349 : vector<1x1x8xf32> to vector<1x8xf32>
    %351 = vector.broadcast %350 : vector<1x8xf32> to vector<8x8xf32>
    %352 = arith.addf %348, %351 : vector<8x8xf32>
    %353 = arith.truncf %338 : vector<8x8xf32> to vector<8x8xbf16>
    %354 = arith.truncf %345 : vector<8x8xf32> to vector<8x8xbf16>
    %cst_238 = arith.constant dense<0.000000e+00> : vector<8x8xf32>
    %355 = tpu.matmul %353, %354, %cst_238 {dimension_numbers = #tpu.dot_dimension_numbers<[1], [1], [0], [0], [0, 0, 1, 0], [], []>} : vector<8x8xbf16>, vector<8x8xbf16>, vector<8x8xf32> -> vector<8x8xf32>
    %cst_239 = arith.constant dense<0xFF800000> : vector<8xf32>
    %356 = vector.multi_reduction <maximumf>, %355, %cst_239 [1] : vector<8x8xf32> to vector<8xf32>
    %357 = vector.shape_cast %356 : vector<8xf32> to vector<8x1xf32>
    %358 = vector.broadcast %357 : vector<8x1xf32> to vector<8x8xf32>
    %359 = arith.subf %355, %358 : vector<8x8xf32>
    %360 = math.exp %359 : vector<8x8xf32>
    %cst_240 = arith.constant dense<0.000000e+00> : vector<8xf32>
    %361 = vector.multi_reduction <add>, %360, %cst_240 [1] : vector<8x8xf32> to vector<8xf32>
    %362 = vector.shape_cast %361 : vector<8xf32> to vector<8x1xf32>
    %363 = tpu.reciprocal %362 {approx = true} : vector<8x1xf32> -> vector<8x1xf32>
    %364 = vector.broadcast %363 : vector<8x1xf32> to vector<8x8xf32>
    %365 = arith.mulf %360, %364 : vector<8x8xf32>
    %366 = arith.truncf %365 : vector<8x8xf32> to vector<8x8xbf16>
    %367 = arith.truncf %352 : vector<8x8xf32> to vector<8x8xbf16>
    %cst_241 = arith.constant dense<0.000000e+00> : vector<8x8xf32>
    %368 = tpu.matmul %366, %367, %cst_241 {dimension_numbers = #tpu.dot_dimension_numbers<[1], [0], [0], [1], [0, 0, 1, 1], [], []>} : vector<8x8xbf16>, vector<8x8xbf16>, vector<8x8xf32> -> vector<8x8xf32>
    %369 = arith.truncf %368 : vector<8x8xf32> to vector<8x8xbf16>
    %c3_242 = arith.constant 3 : index
    %c0_243 = arith.constant 0 : index
    %c0_244 = arith.constant 0 : index
    %370 = vector.load %arg19[%c3_242, %c0_243, %c0_244] : memref<4x8x32xbf16, #tpu.memory_space<vmem>>, vector<1x8x32xbf16>
    %371 = vector.shape_cast %370 : vector<1x8x32xbf16> to vector<8x32xbf16>
    %cst_245 = arith.constant dense<0.000000e+00> : vector<8x32xf32>
    %372 = tpu.matmul %369, %371, %cst_245 {dimension_numbers = #tpu.dot_dimension_numbers<[1], [0], [0], [1], [0, 0, 1, 1], [], []>} : vector<8x8xbf16>, vector<8x32xbf16>, vector<8x32xf32> -> vector<8x32xf32>
    %373 = arith.addf %331, %372 : vector<8x32xf32>
    %c0_246 = arith.constant 0 : index
    %c0_247 = arith.constant 0 : index
    %374 = vector.load %arg20[%c0_246, %c0_247] : memref<1x32xf32, #tpu.memory_space<vmem>>, vector<1x32xf32>
    %375 = vector.broadcast %374 : vector<1x32xf32> to vector<8x32xf32>
    %376 = arith.addf %373, %375 : vector<8x32xf32>
    %377 = arith.addf %202, %376 : vector<8x32xf32>
    %c0_248 = arith.constant 0 : index
    %c0_249 = arith.constant 0 : index
    %378 = vector.load %arg21[%c0_248, %c0_249] : memref<1x32xf32, #tpu.memory_space<vmem>>, vector<1x32xf32>
    %c0_250 = arith.constant 0 : index
    %c0_251 = arith.constant 0 : index
    %379 = vector.load %arg22[%c0_250, %c0_251] : memref<1x32xf32, #tpu.memory_space<vmem>>, vector<1x32xf32>
    %cst_252 = arith.constant dense<0.000000e+00> : vector<8xf32>
    %380 = vector.multi_reduction <add>, %377, %cst_252 [1] : vector<8x32xf32> to vector<8xf32>
    %381 = vector.shape_cast %380 : vector<8xf32> to vector<8x1xf32>
    %cst_253 = arith.constant 3.200000e+01 : f32
    %382 = vector.broadcast %cst_253 : f32 to vector<8x1xf32>
    %383 = arith.divf %381, %382 : vector<8x1xf32>
    %384 = vector.broadcast %383 : vector<8x1xf32> to vector<8x32xf32>
    %385 = arith.subf %377, %384 : vector<8x32xf32>
    %386 = arith.mulf %385, %385 : vector<8x32xf32>
    %cst_254 = arith.constant dense<0.000000e+00> : vector<8xf32>
    %387 = vector.multi_reduction <add>, %386, %cst_254 [1] : vector<8x32xf32> to vector<8xf32>
    %388 = vector.shape_cast %387 : vector<8xf32> to vector<8x1xf32>
    %cst_255 = arith.constant 3.200000e+01 : f32
    %389 = vector.broadcast %cst_255 : f32 to vector<8x1xf32>
    %390 = arith.divf %388, %389 : vector<8x1xf32>
    %391 = vector.broadcast %383 : vector<8x1xf32> to vector<8x32xf32>
    %392 = arith.subf %377, %391 : vector<8x32xf32>
    %cst_256 = arith.constant 9.99999974E-6 : f32
    %393 = vector.broadcast %cst_256 : f32 to vector<8x1xf32>
    %394 = arith.addf %390, %393 : vector<8x1xf32>
    %395 = math.rsqrt %394 : vector<8x1xf32>
    %396 = vector.broadcast %395 : vector<8x1xf32> to vector<8x32xf32>
    %397 = arith.mulf %392, %396 : vector<8x32xf32>
    %398 = vector.broadcast %378 : vector<1x32xf32> to vector<8x32xf32>
    %399 = arith.mulf %397, %398 : vector<8x32xf32>
    %400 = vector.broadcast %379 : vector<1x32xf32> to vector<8x32xf32>
    %401 = arith.addf %399, %400 : vector<8x32xf32>
    %402 = arith.truncf %401 : vector<8x32xf32> to vector<8x32xbf16>
    %c0_257 = arith.constant 0 : index
    %c0_258 = arith.constant 0 : index
    %403 = vector.load %arg23[%c0_257, %c0_258] : memref<32x64xbf16, #tpu.memory_space<vmem>>, vector<32x64xbf16>
    %cst_259 = arith.constant dense<0.000000e+00> : vector<8x64xf32>
    %404 = tpu.matmul %402, %403, %cst_259 {dimension_numbers = #tpu.dot_dimension_numbers<[1], [0], [0], [1], [0, 0, 1, 1], [], []>} : vector<8x32xbf16>, vector<32x64xbf16>, vector<8x64xf32> -> vector<8x64xf32>
    %c0_260 = arith.constant 0 : index
    %c0_261 = arith.constant 0 : index
    %405 = vector.load %arg24[%c0_260, %c0_261] : memref<1x64xf32, #tpu.memory_space<vmem>>, vector<1x64xf32>
    %406 = vector.broadcast %405 : vector<1x64xf32> to vector<8x64xf32>
    %407 = arith.addf %404, %406 : vector<8x64xf32>
    %cst_262 = arith.constant 0.000000e+00 : f32
    %408 = vector.broadcast %cst_262 : f32 to vector<8x64xf32>
    %409 = arith.maximumf %407, %408 : vector<8x64xf32>
    %410 = arith.truncf %409 : vector<8x64xf32> to vector<8x64xbf16>
    %c0_263 = arith.constant 0 : index
    %c0_264 = arith.constant 0 : index
    %411 = vector.load %arg25[%c0_263, %c0_264] : memref<64x32xbf16, #tpu.memory_space<vmem>>, vector<64x32xbf16>
    %cst_265 = arith.constant dense<0.000000e+00> : vector<8x32xf32>
    %412 = tpu.matmul %410, %411, %cst_265 {dimension_numbers = #tpu.dot_dimension_numbers<[1], [0], [0], [1], [0, 0, 1, 1], [], []>} : vector<8x64xbf16>, vector<64x32xbf16>, vector<8x32xf32> -> vector<8x32xf32>
    %c0_266 = arith.constant 0 : index
    %c0_267 = arith.constant 0 : index
    %413 = vector.load %arg26[%c0_266, %c0_267] : memref<1x32xf32, #tpu.memory_space<vmem>>, vector<1x32xf32>
    %414 = vector.broadcast %413 : vector<1x32xf32> to vector<8x32xf32>
    %415 = arith.addf %412, %414 : vector<8x32xf32>
    %416 = arith.addf %401, %415 : vector<8x32xf32>
    %c0_268 = arith.constant 0 : index
    %c0_269 = arith.constant 0 : index
    %417 = vector.load %arg27[%c0_268, %c0_269] : memref<1x32xf32, #tpu.memory_space<vmem>>, vector<1x32xf32>
    %c0_270 = arith.constant 0 : index
    %c0_271 = arith.constant 0 : index
    %418 = vector.load %arg28[%c0_270, %c0_271] : memref<1x32xf32, #tpu.memory_space<vmem>>, vector<1x32xf32>
    %cst_272 = arith.constant dense<0.000000e+00> : vector<8xf32>
    %419 = vector.multi_reduction <add>, %416, %cst_272 [1] : vector<8x32xf32> to vector<8xf32>
    %420 = vector.shape_cast %419 : vector<8xf32> to vector<8x1xf32>
    %cst_273 = arith.constant 3.200000e+01 : f32
    %421 = vector.broadcast %cst_273 : f32 to vector<8x1xf32>
    %422 = arith.divf %420, %421 : vector<8x1xf32>
    %423 = vector.broadcast %422 : vector<8x1xf32> to vector<8x32xf32>
    %424 = arith.subf %416, %423 : vector<8x32xf32>
    %425 = arith.mulf %424, %424 : vector<8x32xf32>
    %cst_274 = arith.constant dense<0.000000e+00> : vector<8xf32>
    %426 = vector.multi_reduction <add>, %425, %cst_274 [1] : vector<8x32xf32> to vector<8xf32>
    %427 = vector.shape_cast %426 : vector<8xf32> to vector<8x1xf32>
    %cst_275 = arith.constant 3.200000e+01 : f32
    %428 = vector.broadcast %cst_275 : f32 to vector<8x1xf32>
    %429 = arith.divf %427, %428 : vector<8x1xf32>
    %430 = vector.broadcast %422 : vector<8x1xf32> to vector<8x32xf32>
    %431 = arith.subf %416, %430 : vector<8x32xf32>
    %cst_276 = arith.constant 9.99999974E-6 : f32
    %432 = vector.broadcast %cst_276 : f32 to vector<8x1xf32>
    %433 = arith.addf %429, %432 : vector<8x1xf32>
    %434 = math.rsqrt %433 : vector<8x1xf32>
    %435 = vector.broadcast %434 : vector<8x1xf32> to vector<8x32xf32>
    %436 = arith.mulf %431, %435 : vector<8x32xf32>
    %437 = vector.broadcast %417 : vector<1x32xf32> to vector<8x32xf32>
    %438 = arith.mulf %436, %437 : vector<8x32xf32>
    %439 = vector.broadcast %418 : vector<1x32xf32> to vector<8x32xf32>
    %440 = arith.addf %438, %439 : vector<8x32xf32>
    %c0_277 = arith.constant 0 : index
    %c0_278 = arith.constant 0 : index
    %c0_279 = arith.constant 0 : index
    %441 = vector.load %arg29[%c0_277, %c0_278, %c0_279] : memref<1x8x32xf32, #tpu.memory_space<vmem>>, vector<1x8x32xf32>
    %442 = vector.shape_cast %441 : vector<1x8x32xf32> to vector<8x32xf32>
    %443 = vector.shape_cast %440 : vector<8x32xf32> to vector<1x8x32xf32>
    tpu.vector_store %arg29[%c0_277, %c0_278, %c0_279], %443 {strides = array<i32>} : memref<1x8x32xf32, #tpu.memory_space<vmem>>, vector<1x8x32xf32>,
    return
  }
  func.func @transform_0(%arg0: i32) -> (i32, i32, i32) {
    %c0_i32 = arith.constant 0 : i32
    %c0_i32_0 = arith.constant 0 : i32
    %c0_i32_1 = arith.constant 0 : i32
    return %arg0, %c0_i32, %c0_i32_0 : i32, i32, i32
  }
  func.func @transform_1(%arg0: i32) -> (i32, i32, i32) {
    %c0_i32 = arith.constant 0 : i32
    %c0_i32_0 = arith.constant 0 : i32
    %c0_i32_1 = arith.constant 0 : i32
    return %arg0, %c0_i32, %c0_i32_0 : i32, i32, i32
  }
  func.func @transform_2(%arg0: i32) -> (i32, i32, i32) {
    %c0_i32 = arith.constant 0 : i32
    %c0_i32_0 = arith.constant 0 : i32
    %c0_i32_1 = arith.constant 0 : i32
    %c0_i32_2 = arith.constant 0 : i32
    return %c0_i32, %c0_i32_0, %c0_i32_1 : i32, i32, i32
  }
  func.func @transform_3(%arg0: i32) -> (i32, i32, i32) {
    %c0_i32 = arith.constant 0 : i32
    %c0_i32_0 = arith.constant 0 : i32
    %c0_i32_1 = arith.constant 0 : i32
    %c0_i32_2 = arith.constant 0 : i32
    return %c0_i32, %c0_i32_0, %c0_i32_1 : i32, i32, i32
  }
  func.func @transform_4(%arg0: i32) -> (i32, i32, i32) {
    %c0_i32 = arith.constant 0 : i32
    %c0_i32_0 = arith.constant 0 : i32
    %c0_i32_1 = arith.constant 0 : i32
    %c0_i32_2 = arith.constant 0 : i32
    return %c0_i32, %c0_i32_0, %c0_i32_1 : i32, i32, i32
  }
  func.func @transform_5(%arg0: i32) -> (i32, i32, i32) {
    %c0_i32 = arith.constant 0 : i32
    %c0_i32_0 = arith.constant 0 : i32
    %c0_i32_1 = arith.constant 0 : i32
    %c0_i32_2 = arith.constant 0 : i32
    return %c0_i32, %c0_i32_0, %c0_i32_1 : i32, i32, i32
  }
  func.func @transform_6(%arg0: i32) -> (i32, i32, i32) {
    %c0_i32 = arith.constant 0 : i32
    %c0_i32_0 = arith.constant 0 : i32
    %c0_i32_1 = arith.constant 0 : i32
    %c0_i32_2 = arith.constant 0 : i32
    return %c0_i32, %c0_i32_0, %c0_i32_1 : i32, i32, i32
  }
  func.func @transform_7(%arg0: i32) -> (i32, i32, i32) {
    %c0_i32 = arith.constant 0 : i32
    %c0_i32_0 = arith.constant 0 : i32
    %c0_i32_1 = arith.constant 0 : i32
    %c0_i32_2 = arith.constant 0 : i32
    return %c0_i32, %c0_i32_0, %c0_i32_1 : i32, i32, i32
  }
  func.func @transform_8(%arg0: i32) -> (i32, i32, i32) {
    %c0_i32 = arith.constant 0 : i32
    %c0_i32_0 = arith.constant 0 : i32
    %c0_i32_1 = arith.constant 0 : i32
    %c0_i32_2 = arith.constant 0 : i32
    return %c0_i32, %c0_i32_0, %c0_i32_1 : i32, i32, i32
  }
  func.func @transform_9(%arg0: i32) -> (i32, i32) {
    %c0_i32 = arith.constant 0 : i32
    %c0_i32_0 = arith.constant 0 : i32
    %c0_i32_1 = arith.constant 0 : i32
    return %c0_i32, %c0_i32_0 : i32, i32
  }
  func.func @transform_10(%arg0: i32) -> (i32, i32) {
    %c0_i32 = arith.constant 0 : i32
    %c0_i32_0 = arith.constant 0 : i32
    %c0_i32_1 = arith.constant 0 : i32
    return %c0_i32, %c0_i32_0 : i32, i32
  }
  func.func @transform_11(%arg0: i32) -> (i32, i32) {
    %c0_i32 = arith.constant 0 : i32
    %c0_i32_0 = arith.constant 0 : i32
    %c0_i32_1 = arith.constant 0 : i32
    return %c0_i32, %c0_i32_0 : i32, i32
  }
  func.func @transform_12(%arg0: i32) -> (i32, i32, i32) {
    %c0_i32 = arith.constant 0 : i32
    %c0_i32_0 = arith.constant 0 : i32
    %c0_i32_1 = arith.constant 0 : i32
    %c0_i32_2 = arith.constant 0 : i32
    return %c0_i32, %c0_i32_0, %c0_i32_1 : i32, i32, i32
  }
  func.func @transform_13(%arg0: i32) -> (i32, i32, i32) {
    %c0_i32 = arith.constant 0 : i32
    %c0_i32_0 = arith.constant 0 : i32
    %c0_i32_1 = arith.constant 0 : i32
    %c0_i32_2 = arith.constant 0 : i32
    return %c0_i32, %c0_i32_0, %c0_i32_1 : i32, i32, i32
  }
  func.func @transform_14(%arg0: i32) -> (i32, i32, i32) {
    %c0_i32 = arith.constant 0 : i32
    %c0_i32_0 = arith.constant 0 : i32
    %c0_i32_1 = arith.constant 0 : i32
    %c0_i32_2 = arith.constant 0 : i32
    return %c0_i32, %c0_i32_0, %c0_i32_1 : i32, i32, i32
  }
  func.func @transform_15(%arg0: i32) -> (i32, i32, i32) {
    %c0_i32 = arith.constant 0 : i32
    %c0_i32_0 = arith.constant 0 : i32
    %c0_i32_1 = arith.constant 0 : i32
    %c0_i32_2 = arith.constant 0 : i32
    return %c0_i32, %c0_i32_0, %c0_i32_1 : i32, i32, i32
  }
  func.func @transform_16(%arg0: i32) -> (i32, i32, i32) {
    %c0_i32 = arith.constant 0 : i32
    %c0_i32_0 = arith.constant 0 : i32
    %c0_i32_1 = arith.constant 0 : i32
    %c0_i32_2 = arith.constant 0 : i32
    return %c0_i32, %c0_i32_0, %c0_i32_1 : i32, i32, i32
  }
  func.func @transform_17(%arg0: i32) -> (i32, i32, i32) {
    %c0_i32 = arith.constant 0 : i32
    %c0_i32_0 = arith.constant 0 : i32
    %c0_i32_1 = arith.constant 0 : i32
    %c0_i32_2 = arith.constant 0 : i32
    return %c0_i32, %c0_i32_0, %c0_i32_1 : i32, i32, i32
  }
  func.func @transform_18(%arg0: i32) -> (i32, i32, i32) {
    %c0_i32 = arith.constant 0 : i32
    %c0_i32_0 = arith.constant 0 : i32
    %c0_i32_1 = arith.constant 0 : i32
    %c0_i32_2 = arith.constant 0 : i32
    return %c0_i32, %c0_i32_0, %c0_i32_1 : i32, i32, i32
  }
  func.func @transform_19(%arg0: i32) -> (i32, i32) {
    %c0_i32 = arith.constant 0 : i32
    %c0_i32_0 = arith.constant 0 : i32
    %c0_i32_1 = arith.constant 0 : i32
    return %c0_i32, %c0_i32_0 : i32, i32
  }
  func.func @transform_20(%arg0: i32) -> (i32, i32) {
    %c0_i32 = arith.constant 0 : i32
    %c0_i32_0 = arith.constant 0 : i32
    %c0_i32_1 = arith.constant 0 : i32
    return %c0_i32, %c0_i32_0 : i32, i32
  }
  func.func @transform_21(%arg0: i32) -> (i32, i32) {
    %c0_i32 = arith.constant 0 : i32
    %c0_i32_0 = arith.constant 0 : i32
    %c0_i32_1 = arith.constant 0 : i32
    return %c0_i32, %c0_i32_0 : i32, i32
  }
  func.func @transform_22(%arg0: i32) -> (i32, i32) {
    %c0_i32 = arith.constant 0 : i32
    %c0_i32_0 = arith.constant 0 : i32
    %c0_i32_1 = arith.constant 0 : i32
    return %c0_i32, %c0_i32_0 : i32, i32
  }
  func.func @transform_23(%arg0: i32) -> (i32, i32) {
    %c0_i32 = arith.constant 0 : i32
    %c0_i32_0 = arith.constant 0 : i32
    %c0_i32_1 = arith.constant 0 : i32
    return %c0_i32, %c0_i32_0 : i32, i32
  }
  func.func @transform_24(%arg0: i32) -> (i32, i32) {
    %c0_i32 = arith.constant 0 : i32
    %c0_i32_0 = arith.constant 0 : i32
    %c0_i32_1 = arith.constant 0 : i32
    return %c0_i32, %c0_i32_0 : i32, i32
  }
  func.func @transform_25(%arg0: i32) -> (i32, i32) {
    %c0_i32 = arith.constant 0 : i32
    %c0_i32_0 = arith.constant 0 : i32
    %c0_i32_1 = arith.constant 0 : i32
    return %c0_i32, %c0_i32_0 : i32, i32
  }
  func.func @transform_26(%arg0: i32) -> (i32, i32) {
    %c0_i32 = arith.constant 0 : i32
    %c0_i32_0 = arith.constant 0 : i32
    %c0_i32_1 = arith.constant 0 : i32
    return %c0_i32, %c0_i32_0 : i32, i32
  }
  func.func @transform_27(%arg0: i32) -> (i32, i32) {
    %c0_i32 = arith.constant 0 : i32
    %c0_i32_0 = arith.constant 0 : i32
    %c0_i32_1 = arith.constant 0 : i32
    return %c0_i32, %c0_i32_0 : i32, i32
  }
  func.func @transform_28(%arg0: i32) -> (i32, i32, i32) {
    %c0_i32 = arith.constant 0 : i32
    %c0_i32_0 = arith.constant 0 : i32
    %c0_i32_1 = arith.constant 0 : i32
    return %arg0, %c0_i32, %c0_i32_0 : i32, i32, i32
  }
}

</mosaic_0001>

<bundles_post_ra>
// kernel: transformer_forward.4
= control target key start
LH: loop header
LB: loop body
LE: loop exit
PB: predicated region body
PF: predicated region fallthrough
CT: control target
= control target key end

     0   :  { %s2838_s27 = smov 0   ;;  %s3207_s0 = inlined_call_operand.vmem [shape: f32[2,8,32], index: 0, kind: input, shape index: {}]   ;;  %s3208_s1 = inlined_call_operand.vmem [shape: f32[2,1,8], index: 1, kind: input, shape index: {}]   ;;  %s3209_s2 = inlined_call_operand.vmem [shape: bf16[4,32,8], index: 2, kind: input, shape index: {}]   ;;  %s3210_s3 = inlined_call_operand.vmem [shape: f32[4,1,8], index: 3, kind: input, shape index: {}]   ;;  %s3211_s4 = inlined_call_operand.vmem [shape: bf16[4,32,8], index: 4, kind: input, shape index: {}]   ;;  %s3212_s5 = inlined_call_operand.vmem [shape: f32[4,1,8], index: 5, kind: input, shape index: {}]   ;;  %s3213_s6 = inlined_call_operand.vmem [shape: bf16[4,32,8], index: 6, kind: input, shape index: {}]   ;;  %s3214_s7 = inlined_call_operand.vmem [shape: f32[4,1,8], index: 7, kind: input, shape index: {}]   ;;  %s3215_s8 = inlined_call_operand.vmem [shape: bf16[4,8,32], index: 8, kind: input, shape index: {}]   ;;  %s3216_s9 = inlined_call_operand.vmem [shape: f32[1,32], index: 9, kind: input, shape index: {}]   ;;  %s3217_s10 = inlined_call_operand.vmem [shape: f32[1,32], index: 10, kind: input, shape index: {}]   ;;  %s3218_s11 = inlined_call_operand.vmem [shape: f32[1,32], index: 11, kind: input, shape index: {}]   ;;  %s3219_s12 = inlined_call_operand.vmem [shape: bf16[32,64], index: 12, kind: input, shape index: {}]   ;;  %s3220_s13 = inlined_call_operand.vmem [shape: f32[1,64], index: 13, kind: input, shape index: {}]   ;;  %s3221_s14 = inlined_call_operand.vmem [shape: bf16[64,32], index: 14, kind: input, shape index: {}]   ;;  %s3222_s15 = inlined_call_operand.vmem [shape: f32[1,32], index: 15, kind: input, shape index: {}]   ;;  %s3223_s16 = inlined_call_operand.vmem [shape: f32[1,32], index: 16, kind: input, shape index: {}]   ;;  %s3224_s17 = inlined_call_operand.vmem [shape: f32[1,32], index: 17, kind: input, shape index: {}]   ;;  %s3225_s18 = inlined_call_operand.vmem [shape: f32[2,8,32], index: 18, kind: output, shape index: {}]  }
   0x1   :  { %3227 = sst [smem:[#allocation2_spill]] %s3207_s0 }
   0x2   :  { %3228 = sst [smem:[#allocation3_spill]] %s3208_s1 }
   0x3   :  { %3229 = sst [smem:[#allocation4_spill]] %s3209_s2 }
   0x4 LB: > { %s2284_s28 = sadd.s32 4294967295, %s2739_s27   ;;  %p2288_p0 = scmp.ge.s32.totalorder %s2739_s27, 1  ;;  %s2739_s27 = sphi %s2838_s27, %s28_s27  }
   0x5   : > { %p519_p1 = scmp.lt.s32.totalorder %s2739_s27, 3 }
   0x7   : > { %p520_p2 = pnand %p2288_p0, %p519_p1 }
   0x8   : > { %s3230_s1 = sld [smem:[#allocation4_spill]] (!%p520_p2)  ;;  %p574_p3 = scmp.lt.s32.totalorder (!%p520_p2), %s2284_s28, 1 }
   0x9   : > { %523 = sbr.rel (%p520_p2) target bundleno = 4694 (0x1256), region = 92  ;;  %s3231_s26 = sld [smem:[#allocation2_spill]] (!%p520_p2) }
   0xe   : > { %v2683_v0 = vld [vmem:[%s3211_s4 + $0x8] sm:$0xff]   ;;  %v2741_v1 = vmov 0.0   ;;  %v2685_v3 = vld [vmem:[%s3211_s4] sm:$0xff]   ;;  %vm2742_vm0 = vmmov 0   ;;  %s3234_s28 = smov (!%p574_p3, %s2284_s28), 1  ;;  %vm612_vm1 = vcmask 261120  }
   0xf   : > { %2493 = vmatprep.subr.bf16.mxu1 %v2741_v1  ;;  %2485 = vmatprep.subr.bf16.mxu0 %v2741_v1  ;;  %v2684_v2 = vld [vmem:[%s3230_s1 + $0x8] sm:$0xff]   ;;  %v2686_v4 = vld [vmem:[%s3230_s1] sm:$0xff]   ;;  %s2289_s23 = sshll.u32 %s3234_s28, 3  ;;  %vm790_vm2 = vcmask 64512   ;;  %vm853_vm3 = vcmask 1043456   ;;  %v2690_v44 = vld [vmem:[%s3230_s1 + $0x18] sm:$0xff]  }
  0x10   : > { %2494 = vmatpush3.bf16.msra.mxu1 %v2683_v0  ;;  %2497 = vmatprep.mubr.msk.bf16.mxu1 %vm2742_vm0, %v2741_v1  ;;  %s577_s29 = scalar_lea.vmem %s3231_s26, %s2289_s23  ;;  %v2295_v7 = vld [vmem:[%s3212_s5] ss:$0 sm:$0xff]  ;;  %v2687_v22 = vld [vmem:[%s3213_s6 + $0x8] sm:$0xff]   ;;  %v2692_v45 = vld [vmem:[%s3230_s1 + $0x10] sm:$0xff]   ;;  %vm2147_vm4 = vcmask 523264   ;;  %s584_s22 = scalar_lea.vmem %s3225_s18, %s2289_s23 }
  0x11   : > { %2486 = vmatpush3.bf16.msra.mxu0 %v2684_v2  ;;  %2495 = vmatprep.subr.bf16.mxu1 %v2741_v1  ;;  %v2875_v5 = vld [vmem:[%s577_s29] sm:$0xff]  ;;  %s3232_s29 = sld [smem:[#allocation3_spill]]  ;;  %v2689_v49 = vld [vmem:[%s3211_s4 + $0x18] sm:$0xff]   ;;  %v2691_v51 = vld [vmem:[%s3211_s4 + $0x10] sm:$0xff]  }
  0x12   : > { %2487 = vmatprep.subr.bf16.mxu0 %v2741_v1  ;;  %2489 = vmatprep.mubr.msk.bf16.mxu0 %vm2742_vm0, %v2741_v1  ;;  %v2880_v6 = vpack.c.bf16 %v2875_v5, %v2875_v5  ;;  %v2291_v11 = vld [vmem:[%s3210_s3] ss:$0 sm:$0xff]  ;;  %v2320_v60 = vld [vmem:[%s3212_s5 + $0x1] ss:$0 sm:$0xff] }
  0x13   : > { %v2688_v23 = vld [vmem:[%s3213_s6] sm:$0xff]  }
  0x14   : > { %2496 = vmatpush3.bf16.msra.mxu1 %v2685_v3  ;;  %v2299_v36 = vld [vmem:[%s3214_s7] ss:$0 sm:$0xff]  ;;  %v2311_v63 = vld [vmem:[%s3210_s3 + $0x1] ss:$0 sm:$0xff] }
  0x15   : > { %2488 = vmatpush3.bf16.msra.mxu0 %v2686_v4  ;;  %2509 = vmatprep.subr.bf16.mxu1 %v2741_v1 }
  0x16   : > { %2501 = vmatprep.subr.bf16.mxu0 %v2741_v1 }
  0x17   : > { %2498 = vmatmul.mubr.msk.bf16.vlgmr.msra.gmra.mxu1 %vm612_vm1, %v2880_v6  ;;  %s580_s30 = scalar_lea.vmem %s3232_s29, %s3234_s28 }
  0x18   : > { %2490 = vmatmul.mubr.msk.bf16.vlgmr.msra.gmra.mxu0 %vm612_vm1, %v2880_v6  ;;  %2511 = vmatprep.mubr.msk.bf16.mxu1 %vm2742_vm0, %v2741_v1  ;;  %v2917_v24 = vld [vmem:[%s580_s30] ss:$0 sm:$0xff] }
  0x19   : > { %2505 = vmatprep.mubr.msk.bf16.mxu0 %vm2742_vm0, %v2741_v1  ;;  %2502 = vmatpush3.bf16.msra.mxu0 %v2687_v22 }
  0x1a   : > { %2503 = vmatprep.subr.bf16.mxu0 %v2741_v1 }
  0x1d   : > { %2504 = vmatpush3.bf16.msra.mxu0 %v2688_v23 }
  0x1e   : > { %2515 = vmatprep.subr.bf16.mxu0 %v2741_v1 }
  0x20   : > { %2506 = vmatmul.mubr.msk.bf16.vlgmr.msra.gmra.mxu0 %vm612_vm1, %v2880_v6 }
  0x21   : > { %2517 = vmatprep.mubr.msk.bf16.mxu0 %vm2742_vm0, %v2741_v1 }
  0xd7   : > { %v713_v8 = vpop.f32.mrf.mxu1 }
  0xd8   : > { %v650_v9 = vpop.f32.mrf.mxu0  ;;  %v714_v10 = vadd.f32 %v2295_v7, %v713_v8 }
  0xd9   : > { %v2499_v12 = vpop.f32.mrf.mxu1  ;;  %v651_v18 = vadd.f32 %v2291_v11, %v650_v9  ;;  %v2694_v11 = vld [vmem:[%s3213_s6 + $0x10] sm:$0xff]  }
  0xda   : > { %v2491_v13 = vpop.f32.mrf.mxu0  ;;  %v783_v14 = vpack.c.bf16 %v714_v10, %v714_v10  ;;  %v2693_v10 = vld [vmem:[%s3213_s6 + $0x18] sm:$0xff]  }
  0xdb   : > { %v716_v15 = vpop.f32.mrf.mxu1  ;;  %v782_v21 = vpack.c.bf16 %v651_v18, %v651_v18  ;;  %v2329_v18 = vld [vmem:[%s3214_s7 + $0x1] ss:$0 sm:$0xff] }
  0xdc   : > { %v653_v16 = vpop.f32.mrf.mxu0  ;;  %v795_v17 = vsel %vm790_vm2, %v783_v14, 0 }
  0xdd   : > { %v2500_v19 = vpop.f32.mrf.mxu1  ;;  %2510 = vmatpush3.bf16.xpose.msra.mxu1 %v795_v17 }
  0xde   : > { %v2492_v20 = vpop.f32.mrf.mxu0  ;;  %2521 = vmatprep.subr.bf16.mxu1 %v2741_v1 }
  0xe0   : > { %v776_v37 = vpop.f32.mrf.mxu0 }
  0xe1   : > { %v777_v38 = vadd.f32 %v2299_v36, %v776_v37  ;;  %v898_v36 = vld [vmem:[%s3215_s8] sm:$0xf] }
  0xe2   : > { %v2507_v39 = vpop.f32.mrf.mxu0 }
  0xe3   : > { %v849_v40 = vpack.c.bf16 %v777_v38, %v777_v38  ;;  %v1254_v39 = vsel %vm853_vm3, %v898_v36, 0 }
  0xe4   : > { %2512 = vmatmul.mubr.msk.bf16.vlgmr.msra.gmra.mxu1 %vm790_vm2, %v782_v21  ;;  %v779_v41 = vpop.f32.mrf.mxu0 }
  0xe5   : > { %2525 = vmatprep.mubr.msk.bf16.mxu1 %vm2742_vm0, %v2741_v1  ;;  %v855_v42 = vsel %vm853_vm3, %v849_v40, 0  ;;  %2522 = vmatpush3.bf16.msra.mxu1 %v2690_v44  ;;  %v2695_v40 = vld [vmem:[%s3211_s4 + $0x28] sm:$0xff]  }
  0xe6   : > { %v2508_v43 = vpop.f32.mrf.mxu0  ;;  %2516 = vmatpush3.bf16.msra.mxu0 %v855_v42  ;;  %2523 = vmatprep.subr.bf16.mxu1 %v2741_v1  ;;  %v2696_v42 = vld [vmem:[%s3211_s4 + $0x20] sm:$0xff]   ;;  %v2697_v44 = vld [vmem:[%s3230_s1 + $0x28] sm:$0xff]  }
  0xe7   : > { %2529 = vmatprep.subr.bf16.mxu0 %v2741_v1 }
  0xe9   : > { %2524 = vmatpush3.bf16.msra.mxu1 %v2692_v45 }
  0xea   : > { %2537 = vmatprep.subr.bf16.mxu1 %v2741_v1 }
  0xec   : > { %2526 = vmatmul.mubr.msk.bf16.vlgmr.msra.gmra.mxu1 %vm612_vm1, %v2880_v6 }
  0xed   : > { %2541 = vmatprep.mubr.msk.bf16.mxu1 %vm2742_vm0, %v2741_v1  ;;  %2538 = vmatpush3.bf16.msra.mxu1 %v2693_v10 }
  0xee   : > { %2539 = vmatprep.subr.bf16.mxu1 %v2741_v1 }
  0xf1   : > { %2540 = vmatpush3.bf16.msra.mxu1 %v2694_v11 }
  0xf2   : > { %2551 = vmatprep.subr.bf16.mxu1 %v2741_v1 }
  0xf4   : > { %2542 = vmatmul.mubr.msk.bf16.vlgmr.msra.gmra.mxu1 %vm612_vm1, %v2880_v6 }
  0xf5   : > { %2553 = vmatprep.mubr.msk.bf16.mxu1 %vm2742_vm0, %v2741_v1 }
 0x1a4   : > { %v831_v25 = vpop.f32.mrf.mxu1 }
 0x1a5   : > { %v832_v26 = vadd.f32 %v2917_v24, %v831_v25 }
 0x1a6   : > { %v2513_v27 = vpop.f32.mrf.mxu1 }
 0x1a7   : > { %v837_v28 = vsel %vm790_vm2, %v832_v26, -inf }
 0x1a8   : > { %838 = vmax.xlane.f32.xlu0 %v837_v28  ;;  %v834_v29 = vpop.f32.mrf.mxu1 }
 0x1aa   : > { %v2514_v30 = vpop.f32.mrf.mxu1 }
 0x1ac   : > { %v958_v52 = vpop.f32.mrf.mxu1 }
 0x1ad   : > { %v959_v7 = vadd.f32 %v2311_v63, %v958_v52 }
 0x1ae   : > { %v2527_v53 = vpop.f32.mrf.mxu1 }
 0x1af   : > { %v1094_v9 = vpack.c.bf16 %v959_v7, %v959_v7 }
 0x1b0   : > { %v961_v54 = vpop.f32.mrf.mxu1 }
 0x1b1   : > { %v2352_v54 = vld [vmem:[%s3212_s5 + $0x2] ss:$0 sm:$0xff] }
 0x1b2   : > { %v2528_v55 = vpop.f32.mrf.mxu1 }
 0x1b4   : > { %v1088_v19 = vpop.f32.mrf.mxu1 }
 0x1b5   : > { %v1089_v20 = vadd.f32 %v2329_v18, %v1088_v19 }
 0x1b6   : > { %v2543_v21 = vpop.f32.mrf.mxu1 }
 0x1b7   : > { %v1154_v22 = vpack.c.bf16 %v1089_v20, %v1089_v20 }
 0x1b8   : > { %v1091_v23 = vpop.f32.mrf.mxu1 }
 0x1b9   : > { %v1159_v25 = vsel %vm853_vm3, %v1154_v22, 0 }
 0x1ba   : > { %2552 = vmatpush3.bf16.msra.mxu1 %v1159_v25 }
 0x1bb   : > { %2563 = vmatprep.subr.bf16.mxu1 %v2741_v1 }
 0x231   : > { %v839_v31 = vpop.xlane.xlu0 %838 }
 0x232   : > { %v840_v32 = vsub.f32 %v832_v26, %v839_v31  ;;  %v2544_v26 = vpop.f32.mrf.mxu1 }
 0x233   : > { %v2361_v26 = vld [vmem:[%s3214_s7 + $0x2] ss:$0 sm:$0xff] }
 0x234   : > { %v841_v33 = vmul.f32 1.442695, %v840_v32  ;;  %v2335_v32 = vld [vmem:[%s3215_s8 + $0x4] sm:$0xf] }
 0x236   : > { %2713 = vpow2.f32 %v841_v33  ;;  %v1208_v33 = vsel %vm853_vm3, %v2335_v32, 0 }
 0x243   : > { %v2714_v34 = vpop.eup %2713 }
 0x244   : > { %v843_v35 = vsel %vm790_vm2, %v2714_v34, 0.0 }
 0x245   : > { %844 = vadd.xlane.f32.xlu0 %v843_v35 }
 0x2ce   : > { %v845_v46 = vpop.xlane.xlu0 %844 }
 0x2cf   : > { %2715 = vrcp.f32 %v845_v46 }
 0x2dc   : > { %v2716_v47 = vpop.eup %2715 }
 0x2dd   : > { %v847_v48 = vmul.f32 %v2716_v47, %v2714_v34 }
 0x2df   : > { %v848_v50 = vpack.c.bf16 %v847_v48, %v847_v48  ;;  %v2698_v48 = vld [vmem:[%s3230_s1 + $0x20] sm:$0xff]  }
 0x2e1   : > { %2518 = vmatmul.mubr.msk.bf16.vlgmr.msra.gmra.mxu0 %vm790_vm2, %v848_v50 }
 0x2e2   : > { %2530 = vmatpush3.bf16.msra.mxu0 %v2689_v49  ;;  %2533 = vmatprep.mubr.msk.bf16.mxu0 %vm2742_vm0, %v2741_v1 }
 0x2e3   : > { %2531 = vmatprep.subr.bf16.mxu0 %v2741_v1 }
 0x2e6   : > { %2532 = vmatpush3.bf16.msra.mxu0 %v2691_v51 }
 0x2e7   : > { %2545 = vmatprep.subr.bf16.mxu0 %v2741_v1 }
 0x2e9   : > { %2534 = vmatmul.mubr.msk.bf16.vlgmr.msra.gmra.mxu0 %vm612_vm1, %v2880_v6 }
 0x2ea   : > { %2547 = vmatprep.mubr.msk.bf16.mxu0 %vm2742_vm0, %v2741_v1 }
 0x3a1   : > { %v2954_v56 = vpop.f32.mrf.mxu0 }
 0x3a2   : > { %v897_v41 = vpack.c.bf16 %v2954_v56, %v2954_v56 }
 0x3a3   : > { %v2519_v57 = vpop.f32.mrf.mxu0 }
 0x3a5   : > { %v894_v58 = vpop.f32.mrf.mxu0 }
 0x3a7   : > { %v2520_v59 = vpop.f32.mrf.mxu0 }
 0x3a9   : > { %v1023_v61 = vpop.f32.mrf.mxu0 }
 0x3aa   : > { %v1024_v62 = vadd.f32 %v2320_v60, %v1023_v61 }
 0x3ab   : > { %v2535_v0 = vpop.f32.mrf.mxu0 }
 0x3ac   : > { %v1095_v2 = vpack.c.bf16 %v1024_v62, %v1024_v62 }
 0x3ad   : > { %v1026_v3 = vpop.f32.mrf.mxu0 }
 0x3ae   : > { %v1100_v4 = vsel %vm790_vm2, %v1095_v2, 0  ;;  %v2343_v3 = vld [vmem:[%s3210_s3 + $0x2] ss:$0 sm:$0xff] }
 0x3af   : > { %v2536_v8 = vpop.f32.mrf.mxu0  ;;  %2546 = vmatpush3.bf16.xpose.msra.mxu0 %v1100_v4 }
 0x3b0   : > { %2557 = vmatprep.subr.bf16.mxu0 %v2741_v1 }
 0x3b6   : > { %2548 = vmatmul.mubr.msk.bf16.vlgmr.msra.gmra.mxu0 %vm790_vm2, %v1094_v9 }
 0x3b7   : > { %2559 = vmatprep.mubr.msk.bf16.mxu0 %vm2742_vm0, %v2741_v1  ;;  %2558 = vmatpush3.bf16.msra.mxu0 %v1208_v33 }
 0x3b8   : > { %2569 = vmatprep.subr.bf16.mxu0 %v2741_v1 }
 0x476   : > { %v1136_v12 = vpop.f32.mrf.mxu0 }
 0x477   : > { %v1137_v13 = vadd.f32 %v2917_v24, %v1136_v12  ;;  %v2699_v12 = vld [vmem:[%s3213_s6 + $0x28] sm:$0xff]  }
 0x478   : > { %v2549_v14 = vpop.f32.mrf.mxu0 }
 0x479   : > { %v1142_v15 = vsel %vm790_vm2, %v1137_v13, -inf }
 0x47a   : > { %1143 = vmax.xlane.f32.xlu1 %v1142_v15  ;;  %v1139_v16 = vpop.f32.mrf.mxu0 }
 0x47c   : > { %v2550_v17 = vpop.f32.mrf.mxu0 }
 0x503   : > { %v1144_v27 = vpop.xlane.xlu1 %1143 }
 0x504   : > { %v1145_v28 = vsub.f32 %v1137_v13, %v1144_v27  ;;  %v2700_v13 = vld [vmem:[%s3213_s6 + $0x20] sm:$0xff]  }
 0x506   : > { %v1146_v29 = vmul.f32 1.442695, %v1145_v28 }
 0x508   : > { %2717 = vpow2.f32 %v1146_v29 }
 0x515   : > { %v2718_v30 = vpop.eup %2717 }
 0x516   : > { %v1148_v31 = vsel %vm790_vm2, %v2718_v30, 0.0 }
 0x517   : > { %1149 = vadd.xlane.f32.xlu1 %v1148_v31 }
 0x5a0   : > { %v1150_v34 = vpop.xlane.xlu1 %1149 }
 0x5a1   : > { %2719 = vrcp.f32 %v1150_v34  ;;  %v2367_v34 = vld [vmem:[%s3215_s8 + $0x8] sm:$0xf] }
 0x5ae   : > { %v2720_v35 = vpop.eup %2719 }
 0x5af   : > { %v1152_v37 = vmul.f32 %v2720_v35, %v2718_v30  ;;  %v1605_v35 = vsel %vm853_vm3, %v2367_v34, 0 }
 0x5b1   : > { %v1153_v38 = vpack.c.bf16 %v1152_v37, %v1152_v37 }
 0x5b3   : > { %2554 = vmatmul.mubr.msk.bf16.vlgmr.msra.gmra.mxu1 %vm790_vm2, %v1153_v38 }
 0x5b4   : > { %2564 = vmatpush3.bf16.msra.mxu1 %v1254_v39  ;;  %2565 = vmatprep.mubr.msk.bf16.mxu1 %vm2742_vm0, %v2741_v1 }
 0x5b5   : > { %2577 = vmatprep.subr.bf16.mxu1 %v2741_v1 }
 0x5bb   : > { %2566 = vmatmul.mubr.msk.bf16.vlgmr.msra.gmra.mxu1 %vm790_vm2, %v897_v41  ;;  %v2704_v41 = vld [vmem:[%s3230_s1 + $0x30] sm:$0xff]  }
 0x5bc   : > { %2578 = vmatpush3.bf16.msra.mxu1 %v2695_v40  ;;  %2581 = vmatprep.mubr.msk.bf16.mxu1 %vm2742_vm0, %v2741_v1  ;;  %v2702_v40 = vld [vmem:[%s3230_s1 + $0x38] sm:$0xff]  }
 0x5bd   : > { %2579 = vmatprep.subr.bf16.mxu1 %v2741_v1 }
 0x5c0   : > { %2580 = vmatpush3.bf16.msra.mxu1 %v2696_v42 }
 0x5c1   : > { %2593 = vmatprep.subr.bf16.mxu1 %v2741_v1 }
 0x5c3   : > { %2582 = vmatmul.mubr.msk.bf16.vlgmr.msra.gmra.mxu1 %vm612_vm1, %v2880_v6 }
 0x5c4   : > { %2595 = vmatprep.mubr.msk.bf16.mxu1 %vm2742_vm0, %v2741_v1 }
 0x673   : > { %v1195_v43 = vpop.f32.mrf.mxu1 }
 0x674   : > { %v1201_v45 = vpack.c.bf16 %v1195_v43, %v1195_v43  ;;  %v2701_v43 = vld [vmem:[%s3211_s4 + $0x38] sm:$0xff]  }
 0x675   : > { %v2555_v46 = vpop.f32.mrf.mxu1 }
 0x676   : > { %2560 = vmatmul.mubr.msk.bf16.vlgmr.msra.gmra.mxu0 %vm790_vm2, %v1201_v45 }
 0x677   : > { %v1198_v47 = vpop.f32.mrf.mxu1  ;;  %2570 = vmatpush3.bf16.msra.mxu0 %v2697_v44  ;;  %2573 = vmatprep.mubr.msk.bf16.mxu0 %vm2742_vm0, %v2741_v1 }
 0x678   : > { %2571 = vmatprep.subr.bf16.mxu0 %v2741_v1  ;;  %v2703_v47 = vld [vmem:[%s3211_s4 + $0x30] sm:$0xff]  }
 0x679   : > { %v2556_v49 = vpop.f32.mrf.mxu1 }
 0x67b   : > { %v3027_v50 = vpop.f32.mrf.mxu1  ;;  %2572 = vmatpush3.bf16.msra.mxu0 %v2698_v48 }
 0x67c   : > { %2585 = vmatprep.subr.bf16.mxu0 %v2741_v1 }
 0x67d   : > { %v2567_v51 = vpop.f32.mrf.mxu1 }
 0x67e   : > { %2574 = vmatmul.mubr.msk.bf16.vlgmr.msra.gmra.mxu0 %vm612_vm1, %v2880_v6 }
 0x67f   : > { %v1293_v52 = vpop.f32.mrf.mxu1  ;;  %2589 = vmatprep.mubr.msk.bf16.mxu0 %vm2742_vm0, %v2741_v1  ;;  %2586 = vmatpush3.bf16.msra.mxu0 %v2699_v12 }
 0x680   : > { %2587 = vmatprep.subr.bf16.mxu0 %v2741_v1 }
 0x681   : > { %v2568_v53 = vpop.f32.mrf.mxu1 }
 0x683   : > { %v1420_v55 = vpop.f32.mrf.mxu1  ;;  %2588 = vmatpush3.bf16.msra.mxu0 %v2700_v13 }
 0x684   : > { %v1421_v56 = vadd.f32 %v2352_v54, %v1420_v55  ;;  %2599 = vmatprep.subr.bf16.mxu0 %v2741_v1 }
 0x685   : > { %v2583_v57 = vpop.f32.mrf.mxu1 }
 0x686   : > { %v1492_v58 = vpack.c.bf16 %v1421_v56, %v1421_v56  ;;  %2590 = vmatmul.mubr.msk.bf16.vlgmr.msra.gmra.mxu0 %vm612_vm1, %v2880_v6 }
 0x687   : > { %v1423_v59 = vpop.f32.mrf.mxu1  ;;  %2601 = vmatprep.mubr.msk.bf16.mxu0 %vm2742_vm0, %v2741_v1 }
 0x688   : > { %v1497_v60 = vsel %vm790_vm2, %v1492_v58, 0 }
 0x689   : > { %v2584_v61 = vpop.f32.mrf.mxu1  ;;  %2594 = vmatpush3.bf16.xpose.msra.mxu1 %v1497_v60  ;;  %v2383_v60 = vld [vmem:[%s3212_s5 + $0x3] ss:$0 sm:$0xff] }
 0x68a   : > { %2605 = vmatprep.subr.bf16.mxu1 %v2741_v1 }
 0x736   : > { %v3039_v62 = vpop.f32.mrf.mxu0 }
 0x737   : > { %v1291_v54 = vadd.f32 %v3027_v50, %v3039_v62 }
 0x738   : > { %v2561_v63 = vpop.f32.mrf.mxu0 }
 0x73a   : > { %v1247_v0 = vpop.f32.mrf.mxu0 }
 0x73c   : > { %v2562_v2 = vpop.f32.mrf.mxu0 }
 0x73d   : > { %v2374_v2 = vld [vmem:[%s3210_s3 + $0x3] ss:$0 sm:$0xff] }
 0x73e   : > { %v1355_v4 = vpop.f32.mrf.mxu0 }
 0x73f   : > { %v1356_v7 = vadd.f32 %v2343_v3, %v1355_v4 }
 0x740   : > { %v2575_v8 = vpop.f32.mrf.mxu0 }
 0x741   : > { %v1491_v9 = vpack.c.bf16 %v1356_v7, %v1356_v7 }
 0x742   : > { %v1358_v10 = vpop.f32.mrf.mxu0 }
 0x743   : > { %2596 = vmatmul.mubr.msk.bf16.vlgmr.msra.gmra.mxu1 %vm790_vm2, %v1491_v9  ;;  %v2705_v9 = vld [vmem:[%s3213_s6 + $0x38] sm:$0xff]   ;;  %v2706_v10 = vld [vmem:[%s3213_s6 + $0x30] sm:$0xff]  }
 0x744   : > { %v2576_v11 = vpop.f32.mrf.mxu0  ;;  %2607 = vmatprep.mubr.msk.bf16.mxu1 %vm2742_vm0, %v2741_v1  ;;  %2606 = vmatpush3.bf16.msra.mxu1 %v1605_v35 }
 0x745   : > { %2619 = vmatprep.subr.bf16.mxu1 %v2741_v1 }
 0x746   : > { %v1485_v27 = vpop.f32.mrf.mxu0 }
 0x747   : > { %v1486_v28 = vadd.f32 %v2361_v26, %v1485_v27 }
 0x748   : > { %v2591_v29 = vpop.f32.mrf.mxu0 }
 0x749   : > { %v1551_v30 = vpack.c.bf16 %v1486_v28, %v1486_v28  ;;  %v2398_v29 = vld [vmem:[%s3215_s8 + $0xc] sm:$0xf] }
 0x74a   : > { %v1488_v31 = vpop.f32.mrf.mxu0 }
 0x74b   : > { %v1556_v32 = vsel %vm853_vm3, %v1551_v30, 0  ;;  %v1957_v30 = vsel %vm853_vm3, %v2398_v29, 0 }
 0x74c   : > { %v2592_v33 = vpop.f32.mrf.mxu0  ;;  %2600 = vmatpush3.bf16.msra.mxu0 %v1556_v32 }
 0x74d   : > { %2611 = vmatprep.subr.bf16.mxu0 %v2741_v1 }
 0x803   : > { %v1533_v14 = vpop.f32.mrf.mxu1 }
 0x804   : > { %v1534_v15 = vadd.f32 %v2917_v24, %v1533_v14 }
 0x805   : > { %v2597_v16 = vpop.f32.mrf.mxu1 }
 0x806   : > { %v1539_v17 = vsel %vm790_vm2, %v1534_v15, -inf }
 0x807   : > { %1540 = vmax.xlane.f32.xlu0 %v1539_v17  ;;  %v1536_v18 = vpop.f32.mrf.mxu1 }
 0x809   : > { %v2598_v19 = vpop.f32.mrf.mxu1 }
 0x890   : > { %v1541_v20 = vpop.xlane.xlu0 %1540 }
 0x891   : > { %v1542_v21 = vsub.f32 %v1534_v15, %v1541_v20 }
 0x893   : > { %v1543_v22 = vmul.f32 1.442695, %v1542_v21 }
 0x895   : > { %2721 = vpow2.f32 %v1543_v22 }
 0x8a2   : > { %v2722_v23 = vpop.eup %2721 }
 0x8a3   : > { %v1545_v25 = vsel %vm790_vm2, %v2722_v23, 0.0 }
 0x8a4   : > { %1546 = vadd.xlane.f32.xlu1 %v1545_v25 }
 0x92d   : > { %v1547_v36 = vpop.xlane.xlu1 %1546 }
 0x92e   : > { %2723 = vrcp.f32 %v1547_v36 }
 0x93b   : > { %v2724_v37 = vpop.eup %2723 }
 0x93c   : > { %v1549_v38 = vmul.f32 %v2724_v37, %v2722_v23 }
 0x93e   : > { %v1550_v39 = vpack.c.bf16 %v1549_v38, %v1549_v38 }
 0x940   : > { %2602 = vmatmul.mubr.msk.bf16.vlgmr.msra.gmra.mxu0 %vm790_vm2, %v1550_v39 }
 0x941   : > { %2615 = vmatprep.mubr.msk.bf16.mxu0 %vm2742_vm0, %v2741_v1  ;;  %2612 = vmatpush3.bf16.msra.mxu0 %v2702_v40 }
 0x942   : > { %2613 = vmatprep.subr.bf16.mxu0 %v2741_v1 }
 0x945   : > { %2614 = vmatpush3.bf16.msra.mxu0 %v2704_v41  ;;  %v2400_v41 = vld [vmem:[%s3216_s9] ss:$0 sm:$0xff] }
 0x946   : > { %2627 = vmatprep.subr.bf16.mxu0 %v2741_v1 }
 0x948   : > { %2616 = vmatmul.mubr.msk.bf16.vlgmr.msra.gmra.mxu0 %vm612_vm1, %v2880_v6 }
 0x949   : > { %2631 = vmatprep.mubr.msk.bf16.mxu0 %vm2742_vm0, %v2741_v1  ;;  %2628 = vmatpush3.bf16.msra.mxu0 %v2705_v9 }
 0x94a   : > { %2629 = vmatprep.subr.bf16.mxu0 %v2741_v1 }
 0x94d   : > { %2630 = vmatpush3.bf16.msra.mxu0 %v2706_v10 }
 0x94e   : > { %2641 = vmatprep.subr.bf16.mxu0 %v2741_v1 }
 0x950   : > { %2632 = vmatmul.mubr.msk.bf16.vlgmr.msra.gmra.mxu0 %vm612_vm1, %v2880_v6 }
 0x951   : > { %2643 = vmatprep.mubr.msk.bf16.mxu0 %vm2742_vm0, %v2741_v1 }
 0xa00   : > { %v1592_v42 = vpop.f32.mrf.mxu0 }
 0xa01   : > { %v1598_v44 = vpack.c.bf16 %v1592_v42, %v1592_v42 }
 0xa02   : > { %v2603_v45 = vpop.f32.mrf.mxu0 }
 0xa03   : > { %2608 = vmatmul.mubr.msk.bf16.vlgmr.msra.gmra.mxu1 %vm790_vm2, %v1598_v44 }
 0xa04   : > { %v1595_v46 = vpop.f32.mrf.mxu0  ;;  %2620 = vmatpush3.bf16.msra.mxu1 %v2701_v43  ;;  %2623 = vmatprep.mubr.msk.bf16.mxu1 %vm2742_vm0, %v2741_v1 }
 0xa05   : > { %2621 = vmatprep.subr.bf16.mxu1 %v2741_v1 }
 0xa06   : > { %v2604_v48 = vpop.f32.mrf.mxu0 }
 0xa08   : > { %2622 = vmatpush3.bf16.msra.mxu1 %v2703_v47  ;;  %v1707_v49 = vpop.f32.mrf.mxu0 }
 0xa09   : > { %2635 = vmatprep.subr.bf16.mxu1 %v2741_v1  ;;  %v1708_v62 = vadd.f32 %v2374_v2, %v1707_v49  ;;  %v2402_v2 = vld [vmem:[%s3218_s11] ss:$0 sm:$0xff] }
 0xa0a   : > { %v2617_v51 = vpop.f32.mrf.mxu0 }
 0xa0b   : > { %2624 = vmatmul.mubr.msk.bf16.vlgmr.msra.gmra.mxu1 %vm612_vm1, %v2880_v6  ;;  %v1843_v8 = vpack.c.bf16 %v1708_v62, %v1708_v62  ;;  %v2392_v6 = vld [vmem:[%s3214_s7 + $0x3] ss:$0 sm:$0xff]  ;;  %v2711_v62 = vld [vmem:[%s3221_s14 + $0x8] sm:$0xff]  }
 0xa0c   : > { %2637 = vmatprep.mubr.msk.bf16.mxu1 %vm2742_vm0, %v2741_v1  ;;  %v1710_v52 = vpop.f32.mrf.mxu0 }
 0xa0e   : > { %v2618_v53 = vpop.f32.mrf.mxu0 }
 0xa10   : > { %v1837_v22 = vpop.f32.mrf.mxu0 }
 0xa12   : > { %v2633_v23 = vpop.f32.mrf.mxu0 }
 0xa14   : > { %v1840_v26 = vpop.f32.mrf.mxu0 }
 0xa16   : > { %v2634_v28 = vpop.f32.mrf.mxu0 }
 0xac3   : > { %v1641_v55 = vpop.f32.mrf.mxu1 }
 0xac4   : > { %v3104_v56 = vadd.f32 %v1641_v55, %v1291_v54  ;;  %v2707_v55 = vld [vmem:[%s3219_s12 + $0x8] sm:$0xff]  }
 0xac5   : > { %v2609_v57 = vpop.f32.mrf.mxu1 }
 0xac6   : > { %v2710_v57 = vld [vmem:[%s3221_s14 + $0x10] sm:$0xff]  }
 0xac7   : > { %v1644_v58 = vpop.f32.mrf.mxu1 }
 0xac9   : > { %v2610_v59 = vpop.f32.mrf.mxu1 }
 0xacb   : > { %v1772_v61 = vpop.f32.mrf.mxu1 }
 0xacc   : > { %v1773_v63 = vadd.f32 %v2383_v60, %v1772_v61 }
 0xacd   : > { %v2625_v0 = vpop.f32.mrf.mxu1 }
 0xace   : > { %v1844_v3 = vpack.c.bf16 %v1773_v63, %v1773_v63  ;;  %v2401_v63 = vld [vmem:[%s3217_s10] ss:$0 sm:$0xff] }
 0xacf   : > { %v1775_v4 = vpop.f32.mrf.mxu1 }
 0xad0   : > { %v1849_v50 = vsel %vm790_vm2, %v1844_v3, 0 }
 0xad1   : > { %v2626_v7 = vpop.f32.mrf.mxu1  ;;  %2636 = vmatpush3.bf16.xpose.msra.mxu1 %v1849_v50 }
 0xad2   : > { %2647 = vmatprep.subr.bf16.mxu1 %v2741_v1  ;;  %v2712_v7 = vld [vmem:[%s3221_s14] sm:$0xff]  }
 0xad8   : > { %2638 = vmatmul.mubr.msk.bf16.vlgmr.msra.gmra.mxu1 %vm790_vm2, %v1843_v8  ;;  %v2403_v8 = vld [vmem:[%s3220_s13] ss:$0 sm:$0xff] }
 0xad9   : > { %2649 = vmatprep.mubr.msk.bf16.mxu1 %vm2742_vm0, %v2741_v1  ;;  %2648 = vmatpush3.bf16.msra.mxu1 %v1957_v30 }
 0xada   : > { %2661 = vmatprep.subr.bf16.mxu1 %v2741_v1 }
 0xb98   : > { %v1885_v11 = vpop.f32.mrf.mxu1 }
 0xb99   : > { %v1886_v12 = vadd.f32 %v2917_v24, %v1885_v11  ;;  %v1838_v24 = vadd.f32 %v2392_v6, %v1837_v22 }
 0xb9a   : > { %v2639_v13 = vpop.f32.mrf.mxu1 }
 0xb9b   : > { %v1891_v14 = vsel %vm790_vm2, %v1886_v12, -inf  ;;  %v1903_v25 = vpack.c.bf16 %v1838_v24, %v1838_v24 }
 0xb9c   : > { %1892 = vmax.xlane.f32.xlu0 %v1891_v14  ;;  %v1888_v15 = vpop.f32.mrf.mxu1 }
 0xb9d   : > { %v1908_v27 = vsel %vm853_vm3, %v1903_v25, 0 }
 0xb9e   : > { %v2640_v16 = vpop.f32.mrf.mxu1  ;;  %2642 = vmatpush3.bf16.msra.mxu0 %v1908_v27 }
 0xb9f   : > { %2653 = vmatprep.subr.bf16.mxu0 %v2741_v1 }
 0xc25   : > { %v1893_v17 = vpop.xlane.xlu0 %1892 }
 0xc26   : > { %v1894_v18 = vsub.f32 %v1886_v12, %v1893_v17 }
 0xc28   : > { %v1895_v19 = vmul.f32 1.442695, %v1894_v18 }
 0xc2a   : > { %2725 = vpow2.f32 %v1895_v19 }
 0xc37   : > { %v2726_v20 = vpop.eup %2725 }
 0xc38   : > { %v1897_v21 = vsel %vm790_vm2, %v2726_v20, 0.0 }
 0xc39   : > { %1898 = vadd.xlane.f32.xlu1 %v1897_v21 }
 0xcc2   : > { %v1899_v31 = vpop.xlane.xlu1 %1898 }
 0xcc3   : > { %2727 = vrcp.f32 %v1899_v31  ;;  %v2413_v31 = vld [vmem:[%s3223_s16] ss:$0 sm:$0xff] }
 0xcd0   : > { %v2728_v32 = vpop.eup %2727 }
 0xcd1   : > { %v1901_v33 = vmul.f32 %v2728_v32, %v2726_v20 }
 0xcd3   : > { %v1902_v34 = vpack.c.bf16 %v1901_v33, %v1901_v33  ;;  %v2414_v33 = vld [vmem:[%s3224_s17] ss:$0 sm:$0xff] }
 0xcd5   : > { %2644 = vmatmul.mubr.msk.bf16.vlgmr.msra.gmra.mxu0 %vm790_vm2, %v1902_v34 }
 0xcd6   : > { %2657 = vmatprep.mubr.msk.bf16.mxu0 %vm2742_vm0, %v2741_v1  ;;  %2654 = vmatpush3.bf16.msra.mxu0 %v2707_v55 }
 0xcd7   : > { %2655 = vmatprep.subr.bf16.mxu0 %v2741_v1 }
 0xd95   : > { %v1944_v35 = vpop.f32.mrf.mxu0 }
 0xd96   : > { %v1950_v36 = vpack.c.bf16 %v1944_v35, %v1944_v35 }
 0xd97   : > { %v2645_v37 = vpop.f32.mrf.mxu0 }
 0xd98   : > { %2650 = vmatmul.mubr.msk.bf16.vlgmr.msra.gmra.mxu1 %vm790_vm2, %v1950_v36 }
 0xd99   : > { %v1947_v38 = vpop.f32.mrf.mxu0  ;;  %2669 = vmatprep.mubr.msk.bf16.mxu1 %vm2742_vm0, %v2741_v1 }
 0xd9b   : > { %v2646_v39 = vpop.f32.mrf.mxu0 }
 0xe58   : > { %v1993_v40 = vpop.f32.mrf.mxu1 }
 0xe59   : > { %v1999_v42 = vadd.f32 %v1993_v40, %v3104_v56  ;;  %v2709_v56 = vld [vmem:[%s3221_s14 + $0x18] sm:$0xff]  }
 0xe5a   : > { %v2651_v43 = vpop.f32.mrf.mxu1  ;;  %2662 = vmatpush3.bf16.msra.mxu1 %v2709_v56 }
 0xe5b   : > { %v2007_v44 = vadd.f32 %v2400_v41, %v1999_v42  ;;  %2663 = vmatprep.subr.bf16.mxu1 %v2741_v1 }
 0xe5c   : > { %v1996_v45 = vpop.f32.mrf.mxu1 }
 0xe5d   : > { %v2008_v46 = vadd.f32 %v2007_v44, %v2875_v5  ;;  %v2708_v5 = vld [vmem:[%s3219_s12] sm:$0xff]  }
 0xe5e   : > { %v2652_v47 = vpop.f32.mrf.mxu1  ;;  %2656 = vmatpush3.bf16.msra.mxu0 %v2708_v5  ;;  %2664 = vmatpush3.bf16.msra.mxu1 %v2710_v57 }
 0xe5f   : > { %v2011_v48 = vsel %vm612_vm1, %v2008_v46, 0.0  ;;  %2665 = vmatprep.subr.bf16.mxu1 %v2741_v1 }
 0xe60   : > { %2012 = vadd.xlane.f32.xlu0 %v2011_v48 }
 0xe62   : > { %2666 = vmatpush3.bf16.msra.mxu1 %v2711_v62 }
 0xe63   : > { %2667 = vmatprep.subr.bf16.mxu1 %v2741_v1  ;;  %v2407_v1 = vld [vmem:[%s3222_s15] ss:$0 sm:$0xff] }
 0xe66   : > { %2668 = vmatpush3.bf16.msra.mxu1 %v2712_v7 }
 0xee9   : > { %v2013_v49 = vpop.xlane.xlu0 %2012 }
 0xeea   : > { %v2015_v51 = vmul.f32 0.03125, %v2013_v49 }
 0xeec   : > { %v2016_v52 = vsub.f32 %v2008_v46, %v2015_v51 }
 0xeee   : > { %v2017_v53 = vmul.f32 %v2016_v52, %v2016_v52 }
 0xef0   : > { %v2018_v54 = vsel %vm612_vm1, %v2017_v53, 0.0 }
 0xef1   : > { %2019 = vadd.xlane.f32.xlu1 %v2018_v54 }
 0xf7a   : > { %v2020_v58 = vpop.xlane.xlu1 %2019 }
 0xf7b   : > { %v2021_v59 = vmul.f32 0.03125, %v2020_v58 }
 0xf7d   : > { %v2022_v60 = vadd.f32 1e-05, %v2021_v59 }
 0xf7f   : > { %2729 = vrsqrt.f32 %v2022_v60 }
 0xf8c   : > { %v2730_v61 = vpop.eup %2729 }
 0xf8d   : > { %v2024_v0 = vmul.f32 %v2730_v61, %v2016_v52 }
 0xf8f   : > { %v2031_v3 = vmul.f32 %v2401_v63, %v2024_v0 }
 0xf91   : > { %v2038_v4 = vadd.f32 %v2402_v2, %v2031_v3 }
 0xf93   : > { %v2039_v50 = vpack.c.bf16 %v2038_v4, %v2038_v4 }
 0xf95   : > { %2658 = vmatmul.mubr.msk.bf16.vlgmr.msra.gmra.mxu0 %vm612_vm1, %v2039_v50 }
0x1055   : > { %v2100_v9 = vpop.f32.mrf.mxu0 }
0x1056   : > { %v2101_v10 = vadd.f32 %v2403_v8, %v2100_v9 }
0x1057   : > { %v2659_v11 = vpop.f32.mrf.mxu0 }
0x1058   : > { %v2106_v12 = vmax.f32 %v2101_v10, 0.0 }
0x1059   : > { %v2103_v13 = vpop.f32.mrf.mxu0 }
0x105a   : > { %v2107_v14 = vpack.c.bf16 %v2106_v12, %v2106_v12 }
0x105b   : > { %v2660_v15 = vpop.f32.mrf.mxu0 }
0x105c   : > { %2670 = vmatmul.mubr.msk.bf16.vlgmr.msra.gmra.mxu1 %vm2147_vm4, %v2107_v14 }
0x111c   : > { %v2185_v16 = vpop.f32.mrf.mxu1 }
0x111d   : > { %v2186_v17 = vadd.f32 %v2407_v1, %v2185_v16 }
0x111e   : > { %v2671_v18 = vpop.f32.mrf.mxu1 }
0x111f   : > { %v2191_v19 = vadd.f32 %v2186_v17, %v2038_v4 }
0x1120   : > { %v2188_v20 = vpop.f32.mrf.mxu1 }
0x1121   : > { %v2194_v21 = vsel %vm612_vm1, %v2191_v19, 0.0 }
0x1122   : > { %2195 = vadd.xlane.f32.xlu0 %v2194_v21  ;;  %v2672_v6 = vpop.f32.mrf.mxu1 }
0x11ab   : > { %v2196_v22 = vpop.xlane.xlu0 %2195 }
0x11ac   : > { %v2197_v24 = vmul.f32 0.03125, %v2196_v22 }
0x11ae   : > { %v2198_v23 = vsub.f32 %v2191_v19, %v2197_v24 }
0x11b0   : > { %v2199_v25 = vmul.f32 %v2198_v23, %v2198_v23 }
0x11b2   : > { %v2200_v26 = vsel %vm612_vm1, %v2199_v25, 0.0 }
0x11b3   : > { %2201 = vadd.xlane.f32.xlu1 %v2200_v26 }
0x123c   : > { %v2202_v27 = vpop.xlane.xlu1 %2201 }
0x123d   : > { %v2203_v28 = vmul.f32 0.03125, %v2202_v27 }
0x123f   : > { %v2204_v29 = vadd.f32 1e-05, %v2203_v28 }
0x1241   : > { %2731 = vrsqrt.f32 %v2204_v29 }
0x124e   : > { %v2732_v30 = vpop.eup %2731 }
0x124f   : > { %v2206_v32 = vmul.f32 %v2732_v30, %v2198_v23 }
0x1251   : > { %v2213_v34 = vmul.f32 %v2413_v31, %v2206_v32 }
0x1253   : > { %v2220_v35 = vadd.f32 %v2414_v33, %v2213_v34 }
0x1255   : > { %2221 = vst.msk [vmem:[%s584_s22] sm:$0xff] %vm612_vm1, %v2220_v35 }
0x1256 PF: > { %s28_s27 = sadd.s32 1, %s2739_s27  }
0x1257   : > { %p25_p4 = scmp.ge.s32.totalorder %s28_s27, 4  }
0x1259   :  { %27 = sbr.rel (!%p25_p4) target bundleno = 4 (0x4), region = 146 }

// kernel: transformer_forward.7
= control target key start
LH: loop header
LB: loop body
LE: loop exit
PB: predicated region body
PF: predicated region fallthrough
CT: control target
= control target key end

     0   :  { %s5816_s0 = inlined_call_operand.vmem [shape: f32[2,8,32], index: 0, kind: input, shape index: {}]   ;;  %s5817_s1 = inlined_call_operand.vmem [shape: f32[2,8,32], index: 1, kind: input, shape index: {}]   ;;  %s5818_s2 = inlined_call_operand.vmem [shape: bf16[4,32,8], index: 2, kind: input, shape index: {}]   ;;  %s5819_s3 = inlined_call_operand.vmem [shape: f32[4,1,8], index: 3, kind: input, shape index: {}]   ;;  %s5820_s4 = inlined_call_operand.vmem [shape: bf16[4,32,8], index: 4, kind: input, shape index: {}]   ;;  %s5821_s5 = inlined_call_operand.vmem [shape: f32[4,1,8], index: 5, kind: input, shape index: {}]   ;;  %s5822_s6 = inlined_call_operand.vmem [shape: bf16[4,32,8], index: 6, kind: input, shape index: {}]   ;;  %s5823_s7 = inlined_call_operand.vmem [shape: f32[4,1,8], index: 7, kind: input, shape index: {}]   ;;  %s5824_s8 = inlined_call_operand.vmem [shape: bf16[4,8,32], index: 8, kind: input, shape index: {}]   ;;  %s5825_s9 = inlined_call_operand.vmem [shape: f32[1,32], index: 9, kind: input, shape index: {}]   ;;  %s5826_s10 = inlined_call_operand.vmem [shape: f32[1,32], index: 10, kind: input, shape index: {}]   ;;  %s5827_s11 = inlined_call_operand.vmem [shape: f32[1,32], index: 11, kind: input, shape index: {}]   ;;  %s5828_s12 = inlined_call_operand.vmem [shape: bf16[4,32,8], index: 12, kind: input, shape index: {}]   ;;  %s5829_s13 = inlined_call_operand.vmem [shape: f32[4,1,8], index: 13, kind: input, shape index: {}]   ;;  %s5830_s14 = inlined_call_operand.vmem [shape: bf16[4,32,8], index: 14, kind: input, shape index: {}]   ;;  %s5831_s15 = inlined_call_operand.vmem [shape: f32[4,1,8], index: 15, kind: input, shape index: {}]   ;;  %s5832_s16 = inlined_call_operand.vmem [shape: bf16[4,32,8], index: 16, kind: input, shape index: {}]   ;;  %s5833_s17 = inlined_call_operand.vmem [shape: f32[4,1,8], index: 17, kind: input, shape index: {}]   ;;  %s5834_s18 = inlined_call_operand.vmem [shape: bf16[4,8,32], index: 18, kind: input, shape index: {}]   ;;  %s5835_s19 = inlined_call_operand.vmem [shape: f32[1,32], index: 19, kind: input, shape index: {}]   ;;  %s5836_s20 = inlined_call_operand.vmem [shape: f32[1,32], index: 20, kind: input, shape index: {}]   ;;  %s5837_s21 = inlined_call_operand.vmem [shape: f32[1,32], index: 21, kind: input, shape index: {}]   ;;  %s5838_s22 = inlined_call_operand.vmem [shape: bf16[32,64], index: 22, kind: input, shape index: {}]   ;;  %s5839_s23 = inlined_call_operand.vmem [shape: f32[1,64], index: 23, kind: input, shape index: {}]   ;;  %s5840_s24 = inlined_call_operand.vmem [shape: bf16[64,32], index: 24, kind: input, shape index: {}]   ;;  %s5841_s25 = inlined_call_operand.vmem [shape: f32[1,32], index: 25, kind: input, shape index: {}]   ;;  %s5842_s26 = inlined_call_operand.vmem [shape: f32[1,32], index: 26, kind: input, shape index: {}]   ;;  %s5843_s27 = inlined_call_operand.vmem [shape: f32[1,32], index: 27, kind: input, shape index: {}]   ;;  %s5844_s28 = inlined_call_operand.hbm [shape: f32[2,8,32], index: 28, kind: output, shape index: {}]  }
   0x1   :  { %5867 = sst [smem:[#allocation11_spill]] %s5816_s0 }
   0x2   :  { %5868 = sst [smem:[#allocation12_spill]] %s5817_s1 }
   0x3   :  { %5869 = sst [smem:[#allocation13_spill]] %s5818_s2 }
   0x4   :  { %5870 = sst [smem:[#allocation14_spill]] %s5819_s3 }
   0x5   :  { %5871 = sst [smem:[#allocation15_spill]] %s5820_s4 }
   0x6   :  { %5872 = sst [smem:[#allocation16_spill]] %s5821_s5 }
   0x7   :  { %5873 = sst [smem:[#allocation17_spill]] %s5822_s6 }
   0x8   :  { %5874 = sst [smem:[#allocation18_spill]] %s5823_s7 }
   0x9   :  { %5875 = sst [smem:[#allocation19_spill]] %s5824_s8 }
   0xa   :  { %5876 = sst [smem:[#allocation20_spill]] %s5825_s9 }
   0xb   :  { %5877 = sst [smem:[#allocation21_spill]] %s5826_s10 }
   0xc   :  { %5878 = sst [smem:[#allocation22_spill]] %s5827_s11 }
   0xd   :  { %5879 = sst [smem:[#allocation23_spill]] %s5828_s12 }
   0xe   :  { %5880 = sst [smem:[#allocation24_spill]] %s5829_s13 }
   0xf   :  { %5881 = sst [smem:[#allocation25_spill]] %s5830_s14 }
  0x10   :  { %5882 = sst [smem:[#allocation26_spill]] %s5831_s15 }
  0x11   :  { %5883 = sst [smem:[#allocation27_spill]] %s5843_s27 }
  0x12   :  { %5884 = sst [smem:[#allocation28_spill]] %s5844_s28 }
  0x13   :  { %33 = vsyncpa [#allocation3], 0 }
  0x14   :  { %35 = vsyncpa [#allocation3 + $0x1], 0  ;;  %s5091_s8 = smov 0   ;;  %s5093_s5 = smov 0  }
  0x15   :  { %s5095_s9 = smov 0   ;;  %s5097_s30 = smov 0  }
  0x16 LB: > { %5885 = sst [smem:[#allocation5_spill]] %s4929_s8  ;;  %s5112_s3 = sadd.s32 4294967295, %s4941_s30   ;;  %s4941_s30 = sphi %s5097_s30, %s5917_s30   ;;  %s4937_s9 = sphi %s5095_s9, %s5919_s9   ;;  %s4933_s5 = sphi %s5093_s5, %s5921_s5   ;;  %s4929_s8 = sphi %s5091_s8, %s5920_s8  }
  0x17   : > { %5886 = sst [smem:[#allocation6_spill]] %s4937_s9  ;;  %s4019_s6 = sadd.s32 4294967294, %s4941_s30  }
  0x18   : > { %5887 = sst [smem:[#allocation7_spill]] %s4941_s30  ;;  %s5116_s10 = sadd.s32 1, %s4941_s30  }
  0x19   : > { %5888 = sst [smem:[#allocation8_spill]] %s5116_s10  ;;  %s646_s0 = sadd.s32 1, %s4937_s9 }
  0x1a   : > { %s643_s11 = ssub.s32 %s4941_s30, %s5116_s10  ;;  %p656_p0 = scmp.ne.s32.totalorder %s4937_s9, %s4933_s5 }
  0x1b   : > { %p644_p1 = scmp.eq.s32.totalorder %s643_s11, 0  ;;  %p657_p2 = scmp.eq.s32.totalorder %s5112_s3, 1 }
  0x1c   : > { %p662_p3 = scmp.ne.s32.totalorder %s4933_s5, %s4929_s8  ;;  %p663_p4 = scmp.eq.s32.totalorder %s4019_s6, 1 }
  0x1d   : > { %s5127_s29 = scalar_select %p644_p1, %s4937_s9, %s646_s0  }
  0x1e   : > { %p5129_p5 = por %p657_p2, %p656_p0  ;;  %p5133_p6 = por %p663_p4, %p662_p3 }
  0x1f   : > { %5889 = sst [smem:[#allocation9_spill]] %s5127_s29  ;;  %p4022_p7 = scmp.ge.s32.totalorder %s4941_s30, 1 }
  0x20   : > { %s5891_s7 = scalar_select %p5133_p6, 1, 0 }
  0x21   : > { %p773_p8 = scmp.lt.s32.totalorder %s4941_s30, 3 }
  0x22   : > { %5892 = sst [smem:[#allocation10_spill]] %s5891_s7 }
  0x23   : > { %p774_p9 = pnand %p4022_p7, %p773_p8 }
  0x24   : > { %s5893_s4 = sld [smem:[#allocation15_spill]] (!%p774_p9)  ;;  %p850_p10 = scmp.lt.s32.totalorder (!%p774_p9), %s5112_s3, 1 }
  0x25   : > { %777 = sbr.rel (%p774_p9) target bundleno = 8676 (0x21e4), region = 132  ;;  %s5894_s11 = sld [smem:[#allocation13_spill]] (!%p774_p9) }
  0x26   : > { %s5895_s10 = sld [smem:[#allocation11_spill]] (!%p774_p9)  ;;  %s4945_s28 = smov (!%p774_p9), [#allocation2]  }
  0x27   : > { %s5896_s12 = sld [smem:[#allocation16_spill]] (!%p774_p9) }
  0x28   : > { %s5897_s0 = sld [smem:[#allocation14_spill]] (!%p774_p9) }
  0x29   : > { %s5898_s1 = sld [smem:[#allocation17_spill]] (!%p774_p9) }
  0x2a   : > { %v4789_v0 = vld [vmem:[%s5893_s4 + $0x8] sm:$0xff]   ;;  %v4943_v1 = vmov 0.0   ;;  %v4791_v3 = vld [vmem:[%s5893_s4] sm:$0xff]   ;;  %vm4944_vm0 = vmmov 0   ;;  %s5159_s6 = scalar_select %p850_p10, %s5112_s3, 1  ;;  %vm885_vm1 = vcmask 261120  }
  0x2b   : > { %4400 = vmatprep.subr.bf16.mxu1 %v4943_v1  ;;  %4392 = vmatprep.subr.bf16.mxu0 %v4943_v1  ;;  %v4790_v2 = vld [vmem:[%s5894_s11 + $0x8] sm:$0xff]   ;;  %v4792_v4 = vld [vmem:[%s5894_s11] sm:$0xff]   ;;  %vm1057_vm2 = vcmask 64512   ;;  %vm1120_vm3 = vcmask 1043456   ;;  %v4796_v42 = vld [vmem:[%s5894_s11 + $0x18] sm:$0xff]   ;;  %s5900_s8 = sld [smem:[#allocation19_spill]] }
  0x2c   : > { %4401 = vmatpush3.bf16.msra.mxu1 %v4789_v0  ;;  %4404 = vmatprep.mubr.msk.bf16.mxu1 %vm4944_vm0, %v4943_v1  ;;  %s5857_s9 = sshll.u32 %s5159_s6, 3  ;;  %v4798_v43 = vld [vmem:[%s5894_s11 + $0x10] sm:$0xff]   ;;  %v4795_v47 = vld [vmem:[%s5893_s4 + $0x18] sm:$0xff]   ;;  %s5903_s14 = sld [smem:[#allocation25_spill]]  ;;  %vm3859_vm4 = vcmask 523264  }
  0x2d   : > { %4393 = vmatpush3.bf16.msra.mxu0 %v4790_v2  ;;  %4402 = vmatprep.subr.bf16.mxu1 %v4943_v1  ;;  %s853_s7 = scalar_lea.vmem %s5895_s10, %s5857_s9  ;;  %v4030_v7 = vld [vmem:[%s5896_s12] ss:$0 sm:$0xff]  ;;  %v4797_v49 = vld [vmem:[%s5893_s4 + $0x10] sm:$0xff]   ;;  %v4054_v58 = vld [vmem:[%s5896_s12 + $0x1] ss:$0 sm:$0xff]  ;;  %s5902_s10 = sld [smem:[#allocation20_spill]] }
  0x2e   : > { %4394 = vmatprep.subr.bf16.mxu0 %v4943_v1  ;;  %4396 = vmatprep.mubr.msk.bf16.mxu0 %vm4944_vm0, %v4943_v1  ;;  %v5170_v5 = vld [vmem:[%s853_s7] sm:$0xff]  ;;  %s5899_s7 = sld [smem:[#allocation18_spill]]  ;;  %s5904_s9 = sshll.u32 %s5159_s6, 3 }
  0x2f   : > { %v5175_v6 = vpack.c.bf16 %v5170_v5, %v5170_v5  ;;  %v4026_v11 = vld [vmem:[%s5897_s0] ss:$0 sm:$0xff]  ;;  %v4793_v22 = vld [vmem:[%s5898_s1 + $0x8] sm:$0xff]   ;;  %v4045_v61 = vld [vmem:[%s5897_s0 + $0x1] ss:$0 sm:$0xff]  ;;  %s5909_s30 = sld [smem:[#allocation22_spill]] }
  0x30   : > { %4403 = vmatpush3.bf16.msra.mxu1 %v4791_v3  ;;  %v4794_v23 = vld [vmem:[%s5898_s1] sm:$0xff]   ;;  %s5910_s15 = sld [smem:[#allocation26_spill]] }
  0x31   : > { %4395 = vmatpush3.bf16.msra.mxu0 %v4792_v4  ;;  %4416 = vmatprep.subr.bf16.mxu1 %v4943_v1  ;;  %s5901_s29 = smov %s5900_s8  ;;  %s5911_s13 = sld [smem:[#allocation24_spill]] }
  0x32   : > { %4408 = vmatprep.subr.bf16.mxu0 %v4943_v1  ;;  %s5912_s6 = sld [smem:[#allocation27_spill]] }
  0x33   : > { %4405 = vmatmul.mubr.msk.bf16.vlgmr.msra.gmra.mxu1 %vm885_vm1, %v5175_v6 }
  0x34   : > { %4397 = vmatmul.mubr.msk.bf16.vlgmr.msra.gmra.mxu0 %vm885_vm1, %v5175_v6  ;;  %4418 = vmatprep.mubr.msk.bf16.mxu1 %vm4944_vm0, %v4943_v1  ;;  %v4034_v34 = vld [vmem:[%s5899_s7] ss:$0 sm:$0xff] }
  0x35   : > { %4412 = vmatprep.mubr.msk.bf16.mxu0 %vm4944_vm0, %v4943_v1  ;;  %4409 = vmatpush3.bf16.msra.mxu0 %v4793_v22 }
  0x36   : > { %4410 = vmatprep.subr.bf16.mxu0 %v4943_v1 }
  0x39   : > { %4411 = vmatpush3.bf16.msra.mxu0 %v4794_v23 }
  0x3a   : > { %4422 = vmatprep.subr.bf16.mxu0 %v4943_v1 }
  0x3c   : > { %4413 = vmatmul.mubr.msk.bf16.vlgmr.msra.gmra.mxu0 %vm885_vm1, %v5175_v6 }
  0x3d   : > { %4424 = vmatprep.mubr.msk.bf16.mxu0 %vm4944_vm0, %v4943_v1 }
  0xf3   : > { %v986_v8 = vpop.f32.mrf.mxu1 }
  0xf4   : > { %v923_v9 = vpop.f32.mrf.mxu0  ;;  %v987_v10 = vadd.f32 %v4030_v7, %v986_v8  ;;  %v4799_v8 = vld [vmem:[%s5898_s1 + $0x18] sm:$0xff]  }
  0xf5   : > { %v4406_v12 = vpop.f32.mrf.mxu1  ;;  %v924_v18 = vadd.f32 %v4026_v11, %v923_v9  ;;  %v4800_v9 = vld [vmem:[%s5898_s1 + $0x10] sm:$0xff]  }
  0xf6   : > { %v4398_v13 = vpop.f32.mrf.mxu0  ;;  %v1056_v14 = vpack.c.bf16 %v987_v10, %v987_v10 }
  0xf7   : > { %v989_v15 = vpop.f32.mrf.mxu1  ;;  %v1055_v21 = vpack.c.bf16 %v924_v18, %v924_v18 }
  0xf8   : > { %v926_v16 = vpop.f32.mrf.mxu0  ;;  %v1062_v17 = vsel %vm1057_vm2, %v1056_v14, 0  ;;  %v4063_v15 = vld [vmem:[%s5899_s7 + $0x1] ss:$0 sm:$0xff] }
  0xf9   : > { %v4407_v19 = vpop.f32.mrf.mxu1  ;;  %4417 = vmatpush3.bf16.xpose.msra.mxu1 %v1062_v17 }
  0xfa   : > { %v4399_v20 = vpop.f32.mrf.mxu0  ;;  %4428 = vmatprep.subr.bf16.mxu1 %v4943_v1 }
  0xfc   : > { %v1049_v35 = vpop.f32.mrf.mxu0 }
  0xfd   : > { %v1050_v36 = vadd.f32 %v4034_v34, %v1049_v35 }
  0xfe   : > { %v4414_v37 = vpop.f32.mrf.mxu0 }
  0xff   : > { %v1116_v38 = vpack.c.bf16 %v1050_v36, %v1050_v36  ;;  %v4801_v36 = vld [vmem:[%s5893_s4 + $0x28] sm:$0xff]  }
 0x100   : > { %4419 = vmatmul.mubr.msk.bf16.vlgmr.msra.gmra.mxu1 %vm1057_vm2, %v1055_v21  ;;  %v1052_v39 = vpop.f32.mrf.mxu0 }
 0x101   : > { %4432 = vmatprep.mubr.msk.bf16.mxu1 %vm4944_vm0, %v4943_v1  ;;  %v1122_v40 = vsel %vm1120_vm3, %v1116_v38, 0  ;;  %4429 = vmatpush3.bf16.msra.mxu1 %v4796_v42  ;;  %v4802_v38 = vld [vmem:[%s5893_s4 + $0x20] sm:$0xff]  }
 0x102   : > { %v4415_v41 = vpop.f32.mrf.mxu0  ;;  %4423 = vmatpush3.bf16.msra.mxu0 %v1122_v40  ;;  %4430 = vmatprep.subr.bf16.mxu1 %v4943_v1  ;;  %v4803_v40 = vld [vmem:[%s5894_s11 + $0x28] sm:$0xff]  }
 0x103   : > { %4436 = vmatprep.subr.bf16.mxu0 %v4943_v1 }
 0x105   : > { %4431 = vmatpush3.bf16.msra.mxu1 %v4798_v43 }
 0x106   : > { %4444 = vmatprep.subr.bf16.mxu1 %v4943_v1 }
 0x108   : > { %4433 = vmatmul.mubr.msk.bf16.vlgmr.msra.gmra.mxu1 %vm885_vm1, %v5175_v6 }
 0x109   : > { %4448 = vmatprep.mubr.msk.bf16.mxu1 %vm4944_vm0, %v4943_v1  ;;  %4445 = vmatpush3.bf16.msra.mxu1 %v4799_v8  ;;  %v4805_v8 = vld [vmem:[%s5898_s1 + $0x28] sm:$0xff]  }
 0x10a   : > { %4446 = vmatprep.subr.bf16.mxu1 %v4943_v1 }
 0x10d   : > { %4447 = vmatpush3.bf16.msra.mxu1 %v4800_v9  ;;  %v4806_v9 = vld [vmem:[%s5898_s1 + $0x20] sm:$0xff]  }
 0x10e   : > { %4458 = vmatprep.subr.bf16.mxu1 %v4943_v1 }
 0x110   : > { %4449 = vmatmul.mubr.msk.bf16.vlgmr.msra.gmra.mxu1 %vm885_vm1, %v5175_v6 }
 0x111   : > { %4460 = vmatprep.mubr.msk.bf16.mxu1 %vm4944_vm0, %v4943_v1 }
 0x1c0   : > { %v1098_v24 = vpop.f32.mrf.mxu1 }
 0x1c1   : > { %v1104_v25 = vsel %vm1057_vm2, %v1098_v24, -inf }
 0x1c2   : > { %1105 = vmax.xlane.f32.xlu0 %v1104_v25  ;;  %v4420_v26 = vpop.f32.mrf.mxu1 }
 0x1c4   : > { %v1101_v27 = vpop.f32.mrf.mxu1 }
 0x1c6   : > { %v4421_v28 = vpop.f32.mrf.mxu1 }
 0x1c7   : > { %v4069_v28 = vld [vmem:[%s5900_s8 + $0x4] sm:$0xf]  ;;  %s5906_s8 = sld [smem:[#allocation23_spill]] }
 0x1c8   : > { %v1225_v50 = vpop.f32.mrf.mxu1 }
 0x1c9   : > { %v1226_v3 = vadd.f32 %v4045_v61, %v1225_v50  ;;  %v4086_v50 = vld [vmem:[%s5896_s12 + $0x2] ss:$0 sm:$0xff] }
 0x1ca   : > { %v4434_v51 = vpop.f32.mrf.mxu1 }
 0x1cb   : > { %v1361_v7 = vpack.c.bf16 %v1226_v3, %v1226_v3 }
 0x1cc   : > { %v1228_v52 = vpop.f32.mrf.mxu1 }
 0x1cd   : > { %s5907_s27 = smov %s5906_s8 }
 0x1ce   : > { %v4435_v53 = vpop.f32.mrf.mxu1 }
 0x1d0   : > { %v1355_v16 = vpop.f32.mrf.mxu1 }
 0x1d1   : > { %v1356_v17 = vadd.f32 %v4063_v15, %v1355_v16 }
 0x1d2   : > { %v4450_v18 = vpop.f32.mrf.mxu1 }
 0x1d3   : > { %v1421_v19 = vpack.c.bf16 %v1356_v17, %v1356_v17 }
 0x1d4   : > { %v1358_v20 = vpop.f32.mrf.mxu1 }
 0x1d5   : > { %v1426_v21 = vsel %vm1120_vm3, %v1421_v19, 0  ;;  %v4095_v20 = vld [vmem:[%s5899_s7 + $0x2] ss:$0 sm:$0xff] }
 0x1d6   : > { %v4451_v22 = vpop.f32.mrf.mxu1  ;;  %4459 = vmatpush3.bf16.msra.mxu1 %v1426_v21 }
 0x1d7   : > { %4470 = vmatprep.subr.bf16.mxu1 %v4943_v1 }
 0x24b   : > { %v1106_v29 = vpop.xlane.xlu0 %1105 }
 0x24c   : > { %v1107_v30 = vsub.f32 %v1098_v24, %v1106_v29  ;;  %v1475_v29 = vsel %vm1120_vm3, %v4069_v28, 0  ;;  %v4101_v28 = vld [vmem:[%s5901_s29 + $0x8] sm:$0xf] }
 0x24e   : > { %v1108_v31 = vmul.f32 1.442695, %v1107_v30 }
 0x250   : > { %4843 = vpow2.f32 %v1108_v31 }
 0x25d   : > { %v4844_v32 = vpop.eup %4843 }
 0x25e   : > { %v1110_v33 = vsel %vm1057_vm2, %v4844_v32, 0.0 }
 0x25f   : > { %1111 = vadd.xlane.f32.xlu0 %v1110_v33 }
 0x2e8   : > { %v1112_v44 = vpop.xlane.xlu0 %1111 }
 0x2e9   : > { %4845 = vrcp.f32 %v1112_v44  ;;  %v4804_v44 = vld [vmem:[%s5894_s11 + $0x20] sm:$0xff]  }
 0x2f6   : > { %v4846_v45 = vpop.eup %4845 }
 0x2f7   : > { %v1114_v46 = vmul.f32 %v4846_v45, %v4844_v32  ;;  %v1165_v32 = vld [vmem:[%s5901_s29] sm:$0xf] }
 0x2f8   : > { %v1521_v35 = vsel %vm1120_vm3, %v1165_v32, 0 }
 0x2f9   : > { %v1115_v48 = vpack.c.bf16 %v1114_v46, %v1114_v46 }
 0x2fb   : > { %4425 = vmatmul.mubr.msk.bf16.vlgmr.msra.gmra.mxu0 %vm1057_vm2, %v1115_v48 }
 0x2fc   : > { %4437 = vmatpush3.bf16.msra.mxu0 %v4795_v47  ;;  %4440 = vmatprep.mubr.msk.bf16.mxu0 %vm4944_vm0, %v4943_v1 }
 0x2fd   : > { %4438 = vmatprep.subr.bf16.mxu0 %v4943_v1 }
 0x300   : > { %4439 = vmatpush3.bf16.msra.mxu0 %v4797_v49 }
 0x301   : > { %4452 = vmatprep.subr.bf16.mxu0 %v4943_v1 }
 0x303   : > { %4441 = vmatmul.mubr.msk.bf16.vlgmr.msra.gmra.mxu0 %vm885_vm1, %v5175_v6 }
 0x304   : > { %4454 = vmatprep.mubr.msk.bf16.mxu0 %vm4944_vm0, %v4943_v1 }
 0x3bb   : > { %v5242_v54 = vpop.f32.mrf.mxu0 }
 0x3bc   : > { %v1164_v37 = vpack.c.bf16 %v5242_v54, %v5242_v54 }
 0x3bd   : > { %v4426_v55 = vpop.f32.mrf.mxu0 }
 0x3bf   : > { %v1161_v56 = vpop.f32.mrf.mxu0 }
 0x3c1   : > { %v4427_v57 = vpop.f32.mrf.mxu0 }
 0x3c3   : > { %v1290_v59 = vpop.f32.mrf.mxu0 }
 0x3c4   : > { %v1291_v60 = vadd.f32 %v4054_v58, %v1290_v59 }
 0x3c5   : > { %v4442_v62 = vpop.f32.mrf.mxu0 }
 0x3c6   : > { %v1362_v63 = vpack.c.bf16 %v1291_v60, %v1291_v60  ;;  %v4077_v62 = vld [vmem:[%s5897_s0 + $0x2] ss:$0 sm:$0xff] }
 0x3c7   : > { %v1293_v0 = vpop.f32.mrf.mxu0 }
 0x3c8   : > { %v1367_v2 = vsel %vm1057_vm2, %v1362_v63, 0 }
 0x3c9   : > { %v4443_v4 = vpop.f32.mrf.mxu0  ;;  %4453 = vmatpush3.bf16.xpose.msra.mxu0 %v1367_v2 }
 0x3ca   : > { %4464 = vmatprep.subr.bf16.mxu0 %v4943_v1 }
 0x3d0   : > { %4455 = vmatmul.mubr.msk.bf16.vlgmr.msra.gmra.mxu0 %vm1057_vm2, %v1361_v7 }
 0x3d1   : > { %4466 = vmatprep.mubr.msk.bf16.mxu0 %vm4944_vm0, %v4943_v1  ;;  %4465 = vmatpush3.bf16.msra.mxu0 %v1475_v29  ;;  %v1872_v29 = vsel %vm1120_vm3, %v4101_v28, 0 }
 0x3d2   : > { %4476 = vmatprep.subr.bf16.mxu0 %v4943_v1 }
 0x490   : > { %v1403_v10 = vpop.f32.mrf.mxu0 }
 0x491   : > { %v1409_v11 = vsel %vm1057_vm2, %v1403_v10, -inf }
 0x492   : > { %1410 = vmax.xlane.f32.xlu1 %v1409_v11  ;;  %v4456_v12 = vpop.f32.mrf.mxu0 }
 0x494   : > { %v1406_v13 = vpop.f32.mrf.mxu0 }
 0x496   : > { %v4457_v14 = vpop.f32.mrf.mxu0 }
 0x51b   : > { %v1411_v23 = vpop.xlane.xlu1 %1410 }
 0x51c   : > { %v1412_v24 = vsub.f32 %v1403_v10, %v1411_v23 }
 0x51e   : > { %v1413_v25 = vmul.f32 1.442695, %v1412_v24 }
 0x520   : > { %4847 = vpow2.f32 %v1413_v25 }
 0x52d   : > { %v4848_v26 = vpop.eup %4847 }
 0x52e   : > { %v1415_v27 = vsel %vm1057_vm2, %v4848_v26, 0.0 }
 0x52f   : > { %1416 = vadd.xlane.f32.xlu1 %v1415_v27 }
 0x5b8   : > { %v1417_v30 = vpop.xlane.xlu1 %1416 }
 0x5b9   : > { %4849 = vrcp.f32 %v1417_v30 }
 0x5c6   : > { %v4850_v31 = vpop.eup %4849 }
 0x5c7   : > { %v1419_v33 = vmul.f32 %v4850_v31, %v4848_v26 }
 0x5c9   : > { %v1420_v34 = vpack.c.bf16 %v1419_v33, %v1419_v33 }
 0x5cb   : > { %4461 = vmatmul.mubr.msk.bf16.vlgmr.msra.gmra.mxu1 %vm1057_vm2, %v1420_v34  ;;  %v4808_v34 = vld [vmem:[%s5894_s11 + $0x38] sm:$0xff]  }
 0x5cc   : > { %4471 = vmatpush3.bf16.msra.mxu1 %v1521_v35  ;;  %4472 = vmatprep.mubr.msk.bf16.mxu1 %vm4944_vm0, %v4943_v1  ;;  %v4810_v35 = vld [vmem:[%s5894_s11 + $0x30] sm:$0xff]  }
 0x5cd   : > { %4484 = vmatprep.subr.bf16.mxu1 %v4943_v1 }
 0x5d3   : > { %4473 = vmatmul.mubr.msk.bf16.vlgmr.msra.gmra.mxu1 %vm1057_vm2, %v1164_v37  ;;  %v4807_v37 = vld [vmem:[%s5893_s4 + $0x38] sm:$0xff]  }
 0x5d4   : > { %4485 = vmatpush3.bf16.msra.mxu1 %v4801_v36  ;;  %4488 = vmatprep.mubr.msk.bf16.mxu1 %vm4944_vm0, %v4943_v1 }
 0x5d5   : > { %4486 = vmatprep.subr.bf16.mxu1 %v4943_v1 }
 0x5d8   : > { %4487 = vmatpush3.bf16.msra.mxu1 %v4802_v38 }
 0x5d9   : > { %4500 = vmatprep.subr.bf16.mxu1 %v4943_v1 }
 0x5db   : > { %4489 = vmatmul.mubr.msk.bf16.vlgmr.msra.gmra.mxu1 %vm885_vm1, %v5175_v6 }
 0x5dc   : > { %4502 = vmatprep.mubr.msk.bf16.mxu1 %vm4944_vm0, %v4943_v1 }
 0x68b   : > { %v1462_v39 = vpop.f32.mrf.mxu1 }
 0x68c   : > { %v1468_v41 = vpack.c.bf16 %v1462_v39, %v1462_v39 }
 0x68d   : > { %v4462_v42 = vpop.f32.mrf.mxu1 }
 0x68e   : > { %4467 = vmatmul.mubr.msk.bf16.vlgmr.msra.gmra.mxu0 %vm1057_vm2, %v1468_v41  ;;  %v4809_v41 = vld [vmem:[%s5893_s4 + $0x30] sm:$0xff]  }
 0x68f   : > { %v1465_v43 = vpop.f32.mrf.mxu1  ;;  %4477 = vmatpush3.bf16.msra.mxu0 %v4803_v40  ;;  %4480 = vmatprep.mubr.msk.bf16.mxu0 %vm4944_vm0, %v4943_v1 }
 0x690   : > { %4478 = vmatprep.subr.bf16.mxu0 %v4943_v1 }
 0x691   : > { %v4463_v45 = vpop.f32.mrf.mxu1 }
 0x693   : > { %v5314_v46 = vpop.f32.mrf.mxu1  ;;  %4479 = vmatpush3.bf16.msra.mxu0 %v4804_v44 }
 0x694   : > { %4492 = vmatprep.subr.bf16.mxu0 %v4943_v1 }
 0x695   : > { %v4474_v47 = vpop.f32.mrf.mxu1 }
 0x696   : > { %4481 = vmatmul.mubr.msk.bf16.vlgmr.msra.gmra.mxu0 %vm885_vm1, %v5175_v6 }
 0x697   : > { %v1560_v48 = vpop.f32.mrf.mxu1  ;;  %4496 = vmatprep.mubr.msk.bf16.mxu0 %vm4944_vm0, %v4943_v1  ;;  %4493 = vmatpush3.bf16.msra.mxu0 %v4805_v8 }
 0x698   : > { %4494 = vmatprep.subr.bf16.mxu0 %v4943_v1 }
 0x699   : > { %v4475_v49 = vpop.f32.mrf.mxu1 }
 0x69b   : > { %v1687_v51 = vpop.f32.mrf.mxu1  ;;  %4495 = vmatpush3.bf16.msra.mxu0 %v4806_v9 }
 0x69c   : > { %v1688_v52 = vadd.f32 %v4086_v50, %v1687_v51  ;;  %4506 = vmatprep.subr.bf16.mxu0 %v4943_v1 }
 0x69d   : > { %v4490_v53 = vpop.f32.mrf.mxu1 }
 0x69e   : > { %v1759_v54 = vpack.c.bf16 %v1688_v52, %v1688_v52  ;;  %4497 = vmatmul.mubr.msk.bf16.vlgmr.msra.gmra.mxu0 %vm885_vm1, %v5175_v6 }
 0x69f   : > { %v1690_v55 = vpop.f32.mrf.mxu1  ;;  %4508 = vmatprep.mubr.msk.bf16.mxu0 %vm4944_vm0, %v4943_v1 }
 0x6a0   : > { %v1764_v56 = vsel %vm1057_vm2, %v1759_v54, 0  ;;  %v4117_v54 = vld [vmem:[%s5896_s12 + $0x3] ss:$0 sm:$0xff] }
 0x6a1   : > { %v4491_v57 = vpop.f32.mrf.mxu1  ;;  %4501 = vmatpush3.bf16.xpose.msra.mxu1 %v1764_v56 }
 0x6a2   : > { %4512 = vmatprep.subr.bf16.mxu1 %v4943_v1  ;;  %v4108_v57 = vld [vmem:[%s5897_s0 + $0x3] ss:$0 sm:$0xff]  ;;  %s4261_s0 = sshll.u32 %s5112_s3, 7 }
 0x74e   : > { %v5326_v58 = vpop.f32.mrf.mxu0 }
 0x74f   : > { %v1558_v48 = vadd.f32 %v5314_v46, %v5326_v58 }
 0x750   : > { %v4468_v59 = vpop.f32.mrf.mxu0 }
 0x752   : > { %v1514_v60 = vpop.f32.mrf.mxu0 }
 0x754   : > { %v4469_v61 = vpop.f32.mrf.mxu0 }
 0x756   : > { %v1622_v63 = vpop.f32.mrf.mxu0 }
 0x757   : > { %v1623_v0 = vadd.f32 %v4077_v62, %v1622_v63 }
 0x758   : > { %v4482_v2 = vpop.f32.mrf.mxu0 }
 0x759   : > { %v1758_v3 = vpack.c.bf16 %v1623_v0, %v1623_v0  ;;  %v4811_v0 = vld [vmem:[%s5898_s1 + $0x38] sm:$0xff]   ;;  %v4812_v2 = vld [vmem:[%s5898_s1 + $0x30] sm:$0xff]   ;;  %s5905_s1 = sld [smem:[#allocation12_spill]] }
 0x75a   : > { %v1625_v4 = vpop.f32.mrf.mxu0 }
 0x75b   : > { %4503 = vmatmul.mubr.msk.bf16.vlgmr.msra.gmra.mxu1 %vm1057_vm2, %v1758_v3 }
 0x75c   : > { %v4483_v7 = vpop.f32.mrf.mxu0  ;;  %4514 = vmatprep.mubr.msk.bf16.mxu1 %vm4944_vm0, %v4943_v1  ;;  %4513 = vmatpush3.bf16.msra.mxu1 %v1872_v29 }
 0x75d   : > { %4526 = vmatprep.subr.bf16.mxu1 %v4943_v1 }
 0x75e   : > { %v1752_v21 = vpop.f32.mrf.mxu0 }
 0x75f   : > { %v1753_v22 = vadd.f32 %v4095_v20, %v1752_v21  ;;  %s857_s4 = scalar_lea.vmem %s5905_s1, %s5904_s9  ;;  %s5908_s9 = sld [smem:[#allocation21_spill]] }
 0x760   : > { %v4498_v23 = vpop.f32.mrf.mxu0  ;;  %s847_s1 = sand.u32 1, %s4933_s5  }
 0x761   : > { %v1818_v24 = vpack.c.bf16 %v1753_v22, %v1753_v22  ;;  %v4132_v22 = vld [vmem:[%s5901_s29 + $0xc] sm:$0xf] }
 0x762   : > { %v1755_v25 = vpop.f32.mrf.mxu0  ;;  %v2224_v23 = vsel %vm1120_vm3, %v4132_v22, 0 }
 0x763   : > { %v1823_v26 = vsel %vm1120_vm3, %v1818_v24, 0 }
 0x764   : > { %v4499_v27 = vpop.f32.mrf.mxu0  ;;  %4507 = vmatpush3.bf16.msra.mxu0 %v1823_v26 }
 0x765   : > { %4518 = vmatprep.subr.bf16.mxu0 %v4943_v1 }
 0x81b   : > { %v1800_v10 = vpop.f32.mrf.mxu1 }
 0x81c   : > { %v1806_v11 = vsel %vm1057_vm2, %v1800_v10, -inf }
 0x81d   : > { %1807 = vmax.xlane.f32.xlu0 %v1806_v11  ;;  %v4504_v12 = vpop.f32.mrf.mxu1 }
 0x81f   : > { %v1803_v13 = vpop.f32.mrf.mxu1 }
 0x821   : > { %v4505_v14 = vpop.f32.mrf.mxu1 }
 0x8a6   : > { %v1808_v15 = vpop.xlane.xlu0 %1807 }
 0x8a7   : > { %v1809_v16 = vsub.f32 %v1800_v10, %v1808_v15 }
 0x8a9   : > { %v1810_v17 = vmul.f32 1.442695, %v1809_v16 }
 0x8ab   : > { %4851 = vpow2.f32 %v1810_v17 }
 0x8b8   : > { %v4852_v18 = vpop.eup %4851 }
 0x8b9   : > { %v1812_v19 = vsel %vm1057_vm2, %v4852_v18, 0.0 }
 0x8ba   : > { %1813 = vadd.xlane.f32.xlu1 %v1812_v19 }
 0x943   : > { %v1814_v30 = vpop.xlane.xlu1 %1813 }
 0x944   : > { %4853 = vrcp.f32 %v1814_v30 }
 0x951   : > { %v4854_v31 = vpop.eup %4853 }
 0x952   : > { %v1816_v32 = vmul.f32 %v4854_v31, %v4852_v18 }
 0x954   : > { %v1817_v33 = vpack.c.bf16 %v1816_v32, %v1816_v32 }
 0x956   : > { %4509 = vmatmul.mubr.msk.bf16.vlgmr.msra.gmra.mxu0 %vm1057_vm2, %v1817_v33 }
 0x957   : > { %4522 = vmatprep.mubr.msk.bf16.mxu0 %vm4944_vm0, %v4943_v1  ;;  %4519 = vmatpush3.bf16.msra.mxu0 %v4808_v34  ;;  %v4134_v34 = vld [vmem:[%s5902_s10] ss:$0 sm:$0xff] }
 0x958   : > { %4520 = vmatprep.subr.bf16.mxu0 %v4943_v1 }
 0x95b   : > { %4521 = vmatpush3.bf16.msra.mxu0 %v4810_v35 }
 0x95c   : > { %4534 = vmatprep.subr.bf16.mxu0 %v4943_v1 }
 0x95e   : > { %4523 = vmatmul.mubr.msk.bf16.vlgmr.msra.gmra.mxu0 %vm885_vm1, %v5175_v6 }
 0x95f   : > { %4538 = vmatprep.mubr.msk.bf16.mxu0 %vm4944_vm0, %v4943_v1  ;;  %4535 = vmatpush3.bf16.msra.mxu0 %v4811_v0 }
 0x960   : > { %4536 = vmatprep.subr.bf16.mxu0 %v4943_v1 }
 0x963   : > { %4537 = vmatpush3.bf16.msra.mxu0 %v4812_v2 }
 0x964   : > { %4548 = vmatprep.subr.bf16.mxu0 %v4943_v1 }
 0x966   : > { %4539 = vmatmul.mubr.msk.bf16.vlgmr.msra.gmra.mxu0 %vm885_vm1, %v5175_v6 }
 0x967   : > { %4550 = vmatprep.mubr.msk.bf16.mxu0 %vm4944_vm0, %v4943_v1 }
 0xa16   : > { %v1859_v36 = vpop.f32.mrf.mxu0 }
 0xa17   : > { %v1865_v38 = vpack.c.bf16 %v1859_v36, %v1859_v36 }
 0xa18   : > { %v4510_v39 = vpop.f32.mrf.mxu0 }
 0xa19   : > { %4515 = vmatmul.mubr.msk.bf16.vlgmr.msra.gmra.mxu1 %vm1057_vm2, %v1865_v38 }
 0xa1a   : > { %v1862_v40 = vpop.f32.mrf.mxu0  ;;  %4527 = vmatpush3.bf16.msra.mxu1 %v4807_v37  ;;  %4530 = vmatprep.mubr.msk.bf16.mxu1 %vm4944_vm0, %v4943_v1 }
 0xa1b   : > { %4528 = vmatprep.subr.bf16.mxu1 %v4943_v1 }
 0xa1c   : > { %v4511_v42 = vpop.f32.mrf.mxu0 }
 0xa1e   : > { %4529 = vmatpush3.bf16.msra.mxu1 %v4809_v41  ;;  %v1974_v43 = vpop.f32.mrf.mxu0 }
 0xa1f   : > { %4542 = vmatprep.subr.bf16.mxu1 %v4943_v1  ;;  %v1975_v58 = vadd.f32 %v4108_v57, %v1974_v43  ;;  %v4135_v57 = vld [vmem:[%s5908_s9] ss:$0 sm:$0xff]  ;;  %s4023_s9 = sshll.u32 %s847_s1, 3 }
 0xa20   : > { %v4524_v44 = vpop.f32.mrf.mxu0 }
 0xa21   : > { %4531 = vmatmul.mubr.msk.bf16.vlgmr.msra.gmra.mxu1 %vm885_vm1, %v5175_v6  ;;  %v2110_v63 = vpack.c.bf16 %v1975_v58, %v1975_v58  ;;  %v4126_v6 = vld [vmem:[%s5899_s7 + $0x3] ss:$0 sm:$0xff] }
 0xa22   : > { %4544 = vmatprep.mubr.msk.bf16.mxu1 %vm4944_vm0, %v4943_v1  ;;  %v1977_v45 = vpop.f32.mrf.mxu0 }
 0xa24   : > { %v4525_v47 = vpop.f32.mrf.mxu0 }
 0xa26   : > { %v2104_v15 = vpop.f32.mrf.mxu0 }
 0xa27   : > { %v2105_v16 = vadd.f32 %v4126_v6, %v2104_v15 }
 0xa28   : > { %v4540_v17 = vpop.f32.mrf.mxu0 }
 0xa29   : > { %v2170_v18 = vpack.c.bf16 %v2105_v16, %v2105_v16  ;;  %v4818_v16 = vld [vmem:[%s5907_s27 + $0x10] sm:$0xff]   ;;  %v4819_v17 = vld [vmem:[%s5832_s16 + $0x8] sm:$0xff]  }
 0xa2a   : > { %v2107_v19 = vpop.f32.mrf.mxu0 }
 0xa2b   : > { %v2175_v20 = vsel %vm1120_vm3, %v2170_v18, 0  ;;  %v4820_v18 = vld [vmem:[%s5832_s16] sm:$0xff]  }
 0xa2c   : > { %v4541_v21 = vpop.f32.mrf.mxu0  ;;  %4549 = vmatpush3.bf16.msra.mxu0 %v2175_v20 }
 0xa2d   : > { %4560 = vmatprep.subr.bf16.mxu0 %v4943_v1 }
 0xad9   : > { %v1908_v49 = vpop.f32.mrf.mxu1 }
 0xada   : > { %v5390_v50 = vadd.f32 %v1908_v49, %v1558_v48  ;;  %v4813_v48 = vld [vmem:[%s5903_s14 + $0x8] sm:$0xff]   ;;  %v860_v49 = vld [vmem:[%s857_s4] sm:$0xff]  ;;  %s849_s4 = scalar_lea.vmem [#allocation2], %s4023_s9 }
 0xadb   : > { %v4516_v51 = vpop.f32.mrf.mxu1  ;;  %s3948_s7 = sshll.u32 %s849_s4, 4  ;;  %s3949_s7 = int_to_ptr.vmem [resolvable:$true] %s3948_s7 }
 0xadc   : > { %v4815_v51 = vld [vmem:[%s5906_s8 + $0x8] sm:$0xff]   ;;  %s4881_s10 = scalar_lea.vmem %s3949_s7, 128 }
 0xadd   : > { %v1911_v52 = vpop.f32.mrf.mxu1  ;;  %p4882_p11 = scmp.ne.s32.totalorder %s3949_s7, %s4881_s10 }
 0xade   : > { %v4816_v52 = vld [vmem:[%s5907_s27] sm:$0xff]  }
 0xadf   : > { %v4517_v53 = vpop.f32.mrf.mxu1  ;;  %p4883_p12 = pnand %p4882_p11, %p5129_p5 }
 0xae1   : > { %v2039_v55 = vpop.f32.mrf.mxu1  ;;  %p4884_p13 = pneg %p4883_p12 }
 0xae2   : > { %v2040_v56 = vadd.f32 %v4117_v54, %v2039_v55 }
 0xae3   : > { %v4532_v59 = vpop.f32.mrf.mxu1 }
 0xae4   : > { %v2111_v60 = vpack.c.bf16 %v2040_v56, %v2040_v56 }
 0xae5   : > { %v2042_v61 = vpop.f32.mrf.mxu1 }
 0xae6   : > { %v2116_v46 = vsel %vm1057_vm2, %v2111_v60, 0  ;;  %v4136_v60 = vld [vmem:[%s5909_s30] ss:$0 sm:$0xff]  ;;  %s4885_s30 = sshll.u32 %s4945_s28, 4  ;;  %s4886_s30 = int_to_ptr.vmem [resolvable:$false] %s4885_s30 }
 0xae7   : > { %v4533_v62 = vpop.f32.mrf.mxu1  ;;  %4543 = vmatpush3.bf16.xpose.msra.mxu1 %v2116_v46  ;;  %s4887_s3 = scalar_lea.vmem %s4886_s30, 256  ;;  %p4888_p0 = scmp.lt.s32.totalorder %s3949_s7, %s4886_s30 }
 0xae8   : > { %4554 = vmatprep.subr.bf16.mxu1 %v4943_v1  ;;  %v4141_v62 = vld [vmem:[%s5910_s15] ss:$0 sm:$0xff]  ;;  %p4889_p1 = scmp.lt.s32.totalorder %s4887_s3, %s4881_s10 }
 0xaea   : > { %p4890_p2 = por %p4889_p1, %p4888_p0 }
 0xaec   : > { %p4891_p3 = pnand %p4890_p2, %p4884_p13 }
 0xaee   : > { %4545 = vmatmul.mubr.msk.bf16.vlgmr.msra.gmra.mxu1 %vm1057_vm2, %v2110_v63 }
 0xaef   : > { %4556 = vmatprep.mubr.msk.bf16.mxu1 %vm4944_vm0, %v4943_v1  ;;  %4555 = vmatpush3.bf16.msra.mxu1 %v2224_v23 }
 0xaf0   : > { %4568 = vmatprep.subr.bf16.mxu1 %v4943_v1 }
 0xbae   : > { %v2152_v3 = vpop.f32.mrf.mxu1 }
 0xbaf   : > { %v2158_v4 = vsel %vm1057_vm2, %v2152_v3, -inf }
 0xbb0   : > { %2159 = vmax.xlane.f32.xlu0 %v2158_v4  ;;  %v4546_v7 = vpop.f32.mrf.mxu1 }
 0xbb2   : > { %v2155_v8 = vpop.f32.mrf.mxu1 }
 0xbb4   : > { %v4547_v9 = vpop.f32.mrf.mxu1 }
 0xbb5   : > { %v4137_v9 = vld [vmem:[%s5911_s13] ss:$0 sm:$0xff] }
 0xc39   : > { %v2160_v10 = vpop.xlane.xlu0 %2159 }
 0xc3a   : > { %v2161_v11 = vsub.f32 %v2152_v3, %v2160_v10 }
 0xc3c   : > { %v2162_v12 = vmul.f32 1.442695, %v2161_v11 }
 0xc3e   : > { %4855 = vpow2.f32 %v2162_v12 }
 0xc4b   : > { %v4856_v13 = vpop.eup %4855 }
 0xc4c   : > { %v2164_v14 = vsel %vm1057_vm2, %v4856_v13, 0.0 }
 0xc4d   : > { %2165 = vadd.xlane.f32.xlu1 %v2164_v14 }
 0xcd6   : > { %v2166_v24 = vpop.xlane.xlu1 %2165 }
 0xcd7   : > { %4857 = vrcp.f32 %v2166_v24 }
 0xce4   : > { %v4858_v25 = vpop.eup %4857 }
 0xce5   : > { %v2168_v26 = vmul.f32 %v4858_v25, %v4856_v13  ;;  %v4817_v13 = vld [vmem:[%s5907_s27 + $0x18] sm:$0xff]  }
 0xce7   : > { %v2169_v27 = vpack.c.bf16 %v2168_v26, %v2168_v26 }
 0xce9   : > { %4551 = vmatmul.mubr.msk.bf16.vlgmr.msra.gmra.mxu0 %vm1057_vm2, %v2169_v27 }
 0xcea   : > { %4564 = vmatprep.mubr.msk.bf16.mxu0 %vm4944_vm0, %v4943_v1  ;;  %4561 = vmatpush3.bf16.msra.mxu0 %v4815_v51 }
 0xceb   : > { %4562 = vmatprep.subr.bf16.mxu0 %v4943_v1 }
 0xcee   : > { %4563 = vmatpush3.bf16.msra.mxu0 %v4816_v52  ;;  %v4165_v52 = vld [vmem:[%s5910_s15 + $0x1] ss:$0 sm:$0xff] }
 0xcef   : > { %4576 = vmatprep.subr.bf16.mxu0 %v4943_v1 }
 0xda9   : > { %v2211_v28 = vpop.f32.mrf.mxu0 }
 0xdaa   : > { %v2217_v29 = vpack.c.bf16 %v2211_v28, %v2211_v28 }
 0xdab   : > { %v4552_v30 = vpop.f32.mrf.mxu0 }
 0xdac   : > { %4557 = vmatmul.mubr.msk.bf16.vlgmr.msra.gmra.mxu1 %vm1057_vm2, %v2217_v29 }
 0xdad   : > { %v2214_v31 = vpop.f32.mrf.mxu0  ;;  %4572 = vmatprep.mubr.msk.bf16.mxu1 %vm4944_vm0, %v4943_v1  ;;  %4569 = vmatpush3.bf16.msra.mxu1 %v4813_v48 }
 0xdae   : > { %4570 = vmatprep.subr.bf16.mxu1 %v4943_v1 }
 0xdaf   : > { %v4553_v32 = vpop.f32.mrf.mxu0 }
 0xe6c   : > { %v2260_v33 = vpop.f32.mrf.mxu1 }
 0xe6d   : > { %v2266_v35 = vadd.f32 %v2260_v33, %v5390_v50  ;;  %v5452_v50 = vpack.c.bf16 %v860_v49, %v860_v49  ;;  %v4145_v33 = vld [vmem:[%s5833_s17] ss:$0 sm:$0xff] }
 0xe6e   : > { %v4558_v36 = vpop.f32.mrf.mxu1 }
 0xe6f   : > { %v2274_v37 = vadd.f32 %v4134_v34, %v2266_v35 }
 0xe70   : > { %v2263_v38 = vpop.f32.mrf.mxu1 }
 0xe71   : > { %v2275_v39 = vadd.f32 %v2274_v37, %v5170_v5  ;;  %v4814_v5 = vld [vmem:[%s5903_s14] sm:$0xff]  }
 0xe72   : > { %v4559_v40 = vpop.f32.mrf.mxu1  ;;  %4571 = vmatpush3.bf16.msra.mxu1 %v4814_v5 }
 0xe73   : > { %v2278_v41 = vsel %vm885_vm1, %v2275_v39, 0.0  ;;  %4584 = vmatprep.subr.bf16.mxu1 %v4943_v1 }
 0xe74   : > { %2279 = vadd.xlane.f32.xlu0 %v2278_v41 }
 0xe75   : > { %4573 = vmatmul.mubr.msk.bf16.vlgmr.msra.gmra.mxu1 %vm885_vm1, %v5452_v50 }
 0xe76   : > { %4586 = vmatprep.mubr.msk.bf16.mxu1 %vm4944_vm0, %v4943_v1 }
 0xefd   : > { %v2280_v42 = vpop.xlane.xlu0 %2279 }
 0xefe   : > { %v2282_v43 = vmul.f32 0.03125, %v2280_v42 }
 0xf00   : > { %v2283_v44 = vsub.f32 %v2275_v39, %v2282_v43 }
 0xf02   : > { %v2284_v45 = vmul.f32 %v2283_v44, %v2283_v44 }
 0xf04   : > { %v2285_v47 = vsel %vm885_vm1, %v2284_v45, 0.0 }
 0xf05   : > { %2286 = vadd.xlane.f32.xlu1 %v2285_v47  ;;  %v4822_v47 = vld [vmem:[%s5903_s14 + $0x10] sm:$0xff]  }
 0xf35   : > { %v2434_v63 = vpop.f32.mrf.mxu1 }
 0xf36   : > { %v2435_v0 = vadd.f32 %v4141_v62, %v2434_v63 }
 0xf37   : > { %v4574_v2 = vpop.f32.mrf.mxu1 }
 0xf38   : > { %v2504_v3 = vpack.c.bf16 %v2435_v0, %v2435_v0  ;;  %v4823_v0 = vld [vmem:[%s5832_s16 + $0x18] sm:$0xff]   ;;  %v4824_v2 = vld [vmem:[%s5832_s16 + $0x10] sm:$0xff]  }
 0xf39   : > { %v2437_v4 = vpop.f32.mrf.mxu1 }
 0xf3a   : > { %v2509_v7 = vsel %vm1057_vm2, %v2504_v3, 0 }
 0xf3b   : > { %v4575_v8 = vpop.f32.mrf.mxu1  ;;  %4585 = vmatpush3.bf16.xpose.msra.mxu1 %v2509_v7 }
 0xf3c   : > { %4596 = vmatprep.subr.bf16.mxu1 %v4943_v1 }
 0xf8e   : > { %v2287_v53 = vpop.xlane.xlu1 %2286 }
 0xf8f   : > { %v2288_v54 = vmul.f32 0.03125, %v2287_v53 }
 0xf91   : > { %v2289_v55 = vadd.f32 1e-05, %v2288_v54 }
 0xf93   : > { %4859 = vrsqrt.f32 %v2289_v55 }
 0xfa0   : > { %v4860_v56 = vpop.eup %4859 }
 0xfa1   : > { %v2291_v59 = vmul.f32 %v4860_v56, %v2283_v44  ;;  %v4821_v44 = vld [vmem:[%s5903_s14 + $0x18] sm:$0xff]  }
 0xfa3   : > { %v2298_v61 = vmul.f32 %v4135_v57, %v2291_v59  ;;  %v4156_v57 = vld [vmem:[%s5911_s13 + $0x1] ss:$0 sm:$0xff] }
 0xfa5   : > { %v5473_v46 = vadd.f32 %v4136_v60, %v2298_v61 }
 0xfa7   : > { %v5477_v58 = vpack.c.bf16 %v5473_v46, %v5473_v46 }
 0xfa9   : > { %4565 = vmatmul.mubr.msk.bf16.vlgmr.msra.gmra.mxu0 %vm885_vm1, %v5477_v58 }
 0xfaa   : > { %4580 = vmatprep.mubr.msk.bf16.mxu0 %vm4944_vm0, %v4943_v1  ;;  %4577 = vmatpush3.bf16.msra.mxu0 %v4819_v17 }
 0xfab   : > { %4578 = vmatprep.subr.bf16.mxu0 %v4943_v1 }
 0xfae   : > { %4579 = vmatpush3.bf16.msra.mxu0 %v4820_v18 }
 0xfaf   : > { %4590 = vmatprep.subr.bf16.mxu0 %v4943_v1 }
 0xfb1   : > { %4581 = vmatmul.mubr.msk.bf16.vlgmr.msra.gmra.mxu0 %vm885_vm1, %v5452_v50 }
 0xfb2   : > { %4592 = vmatprep.mubr.msk.bf16.mxu0 %vm4944_vm0, %v4943_v1 }
0x1069   : > { %v2368_v10 = vpop.f32.mrf.mxu0 }
0x106a   : > { %v2369_v11 = vadd.f32 %v4137_v9, %v2368_v10  ;;  %v4174_v10 = vld [vmem:[%s5833_s17 + $0x1] ss:$0 sm:$0xff] }
0x106b   : > { %v4566_v12 = vpop.f32.mrf.mxu0 }
0x106c   : > { %v2503_v14 = vpack.c.bf16 %v2369_v11, %v2369_v11 }
0x106d   : > { %v2371_v6 = vpop.f32.mrf.mxu0 }
0x106e   : > { %4587 = vmatmul.mubr.msk.bf16.vlgmr.msra.gmra.mxu1 %vm1057_vm2, %v2503_v14 }
0x106f   : > { %v4567_v15 = vpop.f32.mrf.mxu0  ;;  %4597 = vmatpush3.bf16.msra.mxu1 %v4817_v13  ;;  %4600 = vmatprep.mubr.msk.bf16.mxu1 %vm4944_vm0, %v4943_v1 }
0x1070   : > { %4598 = vmatprep.subr.bf16.mxu1 %v4943_v1 }
0x1071   : > { %v2497_v34 = vpop.f32.mrf.mxu0 }
0x1072   : > { %v2498_v35 = vadd.f32 %v4145_v33, %v2497_v34  ;;  %v4827_v34 = vld [vmem:[%s5907_s27 + $0x28] sm:$0xff]  }
0x1073   : > { %4599 = vmatpush3.bf16.msra.mxu1 %v4818_v16  ;;  %v4582_v36 = vpop.f32.mrf.mxu0 }
0x1074   : > { %4612 = vmatprep.subr.bf16.mxu1 %v4943_v1  ;;  %v2563_v37 = vpack.c.bf16 %v2498_v35, %v2498_v35 }
0x1075   : > { %v2500_v38 = vpop.f32.mrf.mxu0 }
0x1076   : > { %4601 = vmatmul.mubr.msk.bf16.vlgmr.msra.gmra.mxu1 %vm885_vm1, %v5477_v58  ;;  %v2568_v39 = vsel %vm1120_vm3, %v2563_v37, 0  ;;  %v4828_v38 = vld [vmem:[%s5907_s27 + $0x20] sm:$0xff]  }
0x1077   : > { %4616 = vmatprep.mubr.msk.bf16.mxu1 %vm4944_vm0, %v4943_v1  ;;  %v4583_v40 = vpop.f32.mrf.mxu0  ;;  %4591 = vmatpush3.bf16.msra.mxu0 %v2568_v39 }
0x1078   : > { %4604 = vmatprep.subr.bf16.mxu0 %v4943_v1  ;;  %4613 = vmatpush3.bf16.msra.mxu1 %v4823_v0 }
0x1079   : > { %4614 = vmatprep.subr.bf16.mxu1 %v4943_v1 }
0x107c   : > { %4615 = vmatpush3.bf16.msra.mxu1 %v4824_v2  ;;  %v4829_v2 = vld [vmem:[%s5832_s16 + $0x28] sm:$0xff]  }
0x107d   : > { %4626 = vmatprep.subr.bf16.mxu1 %v4943_v1 }
0x107f   : > { %4617 = vmatmul.mubr.msk.bf16.vlgmr.msra.gmra.mxu1 %vm885_vm1, %v5452_v50 }
0x1080   : > { %4628 = vmatprep.mubr.msk.bf16.mxu1 %vm4944_vm0, %v4943_v1 }
0x112e   : > { %v2545_v19 = vpop.f32.mrf.mxu1 }
0x112f   : > { %v2551_v20 = vsel %vm1057_vm2, %v2545_v19, -inf }
0x1130   : > { %2552 = vmax.xlane.f32.xlu0 %v2551_v20  ;;  %v4588_v21 = vpop.f32.mrf.mxu1 }
0x1132   : > { %v2548_v22 = vpop.f32.mrf.mxu1 }
0x1133   : > { %v4180_v22 = vld [vmem:[%s5834_s18 + $0x4] sm:$0xf] }
0x1134   : > { %v4589_v23 = vpop.f32.mrf.mxu1 }
0x1135   : > { %v2921_v23 = vsel %vm1120_vm3, %v4180_v22, 0 }
0x1136   : > { %v2671_v24 = vpop.f32.mrf.mxu1 }
0x1137   : > { %v2672_v62 = vadd.f32 %v4156_v57, %v2671_v24  ;;  %v4188_v57 = vld [vmem:[%s5911_s13 + $0x2] ss:$0 sm:$0xff] }
0x1138   : > { %v4602_v25 = vpop.f32.mrf.mxu1 }
0x1139   : > { %v2807_v63 = vpack.c.bf16 %v2672_v62, %v2672_v62 }
0x113a   : > { %v2674_v26 = vpop.f32.mrf.mxu1 }
0x113b   : > { %v2611_v26 = vld [vmem:[%s5834_s18] sm:$0xf] }
0x113c   : > { %v4603_v27 = vpop.f32.mrf.mxu1 }
0x113f   : > { %v2801_v11 = vpop.f32.mrf.mxu1 }
0x1140   : > { %v2802_v12 = vadd.f32 %v4174_v10, %v2801_v11 }
0x1141   : > { %v4618_v13 = vpop.f32.mrf.mxu1 }
0x1142   : > { %v2867_v14 = vpack.c.bf16 %v2802_v12, %v2802_v12 }
0x1143   : > { %v2804_v6 = vpop.f32.mrf.mxu1 }
0x1144   : > { %v2872_v15 = vsel %vm1120_vm3, %v2867_v14, 0 }
0x1145   : > { %v4619_v16 = vpop.f32.mrf.mxu1  ;;  %4627 = vmatpush3.bf16.msra.mxu1 %v2872_v15  ;;  %v4206_v15 = vld [vmem:[%s5833_s17 + $0x2] ss:$0 sm:$0xff] }
0x1146   : > { %4638 = vmatprep.subr.bf16.mxu1 %v4943_v1 }
0x11b9   : > { %v2553_v28 = vpop.xlane.xlu0 %2552 }
0x11ba   : > { %v2554_v29 = vsub.f32 %v2545_v19, %v2553_v28 }
0x11bc   : > { %v2555_v30 = vmul.f32 1.442695, %v2554_v29  ;;  %v2967_v29 = vsel %vm1120_vm3, %v2611_v26, 0 }
0x11be   : > { %4861 = vpow2.f32 %v2555_v30  ;;  %v4825_v30 = vld [vmem:[%s5903_s14 + $0x28] sm:$0xff]  }
0x11cb   : > { %v4862_v31 = vpop.eup %4861 }
0x11cc   : > { %v2557_v32 = vsel %vm1057_vm2, %v4862_v31, 0.0 }
0x11cd   : > { %2558 = vadd.xlane.f32.xlu1 %v2557_v32  ;;  %v4826_v32 = vld [vmem:[%s5903_s14 + $0x20] sm:$0xff]  }
0x1256   : > { %v2559_v41 = vpop.xlane.xlu1 %2558 }
0x1257   : > { %4863 = vrcp.f32 %v2559_v41 }
0x1264   : > { %v4864_v42 = vpop.eup %4863 }
0x1265   : > { %v2561_v43 = vmul.f32 %v4864_v42, %v4862_v31 }
0x1267   : > { %v2562_v45 = vpack.c.bf16 %v2561_v43, %v2561_v43 }
0x1269   : > { %4593 = vmatmul.mubr.msk.bf16.vlgmr.msra.gmra.mxu0 %vm1057_vm2, %v2562_v45 }
0x126a   : > { %4605 = vmatpush3.bf16.msra.mxu0 %v4821_v44  ;;  %4608 = vmatprep.mubr.msk.bf16.mxu0 %vm4944_vm0, %v4943_v1  ;;  %v4197_v44 = vld [vmem:[%s5910_s15 + $0x2] ss:$0 sm:$0xff] }
0x126b   : > { %4606 = vmatprep.subr.bf16.mxu0 %v4943_v1 }
0x126e   : > { %4607 = vmatpush3.bf16.msra.mxu0 %v4822_v47 }
0x126f   : > { %4620 = vmatprep.subr.bf16.mxu0 %v4943_v1 }
0x1271   : > { %4609 = vmatmul.mubr.msk.bf16.vlgmr.msra.gmra.mxu0 %vm885_vm1, %v5452_v50 }
0x1272   : > { %4622 = vmatprep.mubr.msk.bf16.mxu0 %vm4944_vm0, %v4943_v1 }
0x1329   : > { %v5540_v48 = vpop.f32.mrf.mxu0 }
0x132a   : > { %v2610_v31 = vpack.c.bf16 %v5540_v48, %v5540_v48 }
0x132b   : > { %v4594_v5 = vpop.f32.mrf.mxu0 }
0x132d   : > { %v2607_v49 = vpop.f32.mrf.mxu0 }
0x132f   : > { %v4595_v51 = vpop.f32.mrf.mxu0 }
0x1331   : > { %v2736_v53 = vpop.f32.mrf.mxu0 }
0x1332   : > { %v2737_v54 = vadd.f32 %v4165_v52, %v2736_v53 }
0x1333   : > { %v4610_v55 = vpop.f32.mrf.mxu0 }
0x1334   : > { %v2808_v56 = vpack.c.bf16 %v2737_v54, %v2737_v54 }
0x1335   : > { %v2739_v59 = vpop.f32.mrf.mxu0 }
0x1336   : > { %v2813_v60 = vsel %vm1057_vm2, %v2808_v56, 0 }
0x1337   : > { %v4611_v61 = vpop.f32.mrf.mxu0  ;;  %4621 = vmatpush3.bf16.xpose.msra.mxu0 %v2813_v60 }
0x1338   : > { %4632 = vmatprep.subr.bf16.mxu0 %v4943_v1 }
0x133e   : > { %4623 = vmatmul.mubr.msk.bf16.vlgmr.msra.gmra.mxu0 %vm1057_vm2, %v2807_v63 }
0x133f   : > { %4634 = vmatprep.mubr.msk.bf16.mxu0 %vm4944_vm0, %v4943_v1  ;;  %4633 = vmatpush3.bf16.msra.mxu0 %v2921_v23  ;;  %v4212_v23 = vld [vmem:[%s5834_s18 + $0x8] sm:$0xf] }
0x1340   : > { %4644 = vmatprep.subr.bf16.mxu0 %v4943_v1 }
0x13fe   : > { %v2849_v3 = vpop.f32.mrf.mxu0 }
0x13ff   : > { %v2855_v4 = vsel %vm1057_vm2, %v2849_v3, -inf }
0x1400   : > { %2856 = vmax.xlane.f32.xlu0 %v2855_v4  ;;  %v4624_v7 = vpop.f32.mrf.mxu0 }
0x1402   : > { %v2852_v8 = vpop.f32.mrf.mxu0 }
0x1404   : > { %v4625_v9 = vpop.f32.mrf.mxu0 }
0x1489   : > { %v2857_v17 = vpop.xlane.xlu0 %2856 }
0x148a   : > { %v2858_v18 = vsub.f32 %v2849_v3, %v2857_v17  ;;  %v4830_v3 = vld [vmem:[%s5832_s16 + $0x20] sm:$0xff]  }
0x148c   : > { %v2859_v19 = vmul.f32 1.442695, %v2858_v18 }
0x148e   : > { %4865 = vpow2.f32 %v2859_v19 }
0x149b   : > { %v4866_v20 = vpop.eup %4865 }
0x149c   : > { %v2861_v21 = vsel %vm1057_vm2, %v4866_v20, 0.0 }
0x149d   : > { %2862 = vadd.xlane.f32.xlu1 %v2861_v21 }
0x1526   : > { %v2863_v24 = vpop.xlane.xlu1 %2862 }
0x1527   : > { %4867 = vrcp.f32 %v2863_v24  ;;  %v3318_v24 = vsel %vm1120_vm3, %v4212_v23, 0 }
0x1534   : > { %v4868_v25 = vpop.eup %4867 }
0x1535   : > { %v2865_v27 = vmul.f32 %v4868_v25, %v4866_v20 }
0x1537   : > { %v2866_v28 = vpack.c.bf16 %v2865_v27, %v2865_v27 }
0x1539   : > { %4629 = vmatmul.mubr.msk.bf16.vlgmr.msra.gmra.mxu1 %vm1057_vm2, %v2866_v28  ;;  %v4831_v28 = vld [vmem:[%s5907_s27 + $0x38] sm:$0xff]  }
0x153a   : > { %4639 = vmatpush3.bf16.msra.mxu1 %v2967_v29  ;;  %4640 = vmatprep.mubr.msk.bf16.mxu1 %vm4944_vm0, %v4943_v1 }
0x153b   : > { %4652 = vmatprep.subr.bf16.mxu1 %v4943_v1 }
0x1541   : > { %4641 = vmatmul.mubr.msk.bf16.vlgmr.msra.gmra.mxu1 %vm1057_vm2, %v2610_v31 }
0x1542   : > { %4653 = vmatpush3.bf16.msra.mxu1 %v4825_v30  ;;  %4656 = vmatprep.mubr.msk.bf16.mxu1 %vm4944_vm0, %v4943_v1  ;;  %v4832_v30 = vld [vmem:[%s5907_s27 + $0x30] sm:$0xff]  }
0x1543   : > { %4654 = vmatprep.subr.bf16.mxu1 %v4943_v1 }
0x1546   : > { %4655 = vmatpush3.bf16.msra.mxu1 %v4826_v32  ;;  %v4833_v32 = vld [vmem:[%s5903_s14 + $0x38] sm:$0xff]  }
0x1547   : > { %4668 = vmatprep.subr.bf16.mxu1 %v4943_v1 }
0x1549   : > { %4657 = vmatmul.mubr.msk.bf16.vlgmr.msra.gmra.mxu1 %vm885_vm1, %v5452_v50 }
0x154a   : > { %4670 = vmatprep.mubr.msk.bf16.mxu1 %vm4944_vm0, %v4943_v1 }
0x15f9   : > { %v2908_v33 = vpop.f32.mrf.mxu1 }
0x15fa   : > { %v2914_v35 = vpack.c.bf16 %v2908_v33, %v2908_v33 }
0x15fb   : > { %v4630_v36 = vpop.f32.mrf.mxu1 }
0x15fc   : > { %4635 = vmatmul.mubr.msk.bf16.vlgmr.msra.gmra.mxu0 %vm1057_vm2, %v2914_v35  ;;  %v4834_v36 = vld [vmem:[%s5903_s14 + $0x30] sm:$0xff]  }
0x15fd   : > { %v2911_v37 = vpop.f32.mrf.mxu1  ;;  %4645 = vmatpush3.bf16.msra.mxu0 %v4827_v34  ;;  %4648 = vmatprep.mubr.msk.bf16.mxu0 %vm4944_vm0, %v4943_v1 }
0x15fe   : > { %4646 = vmatprep.subr.bf16.mxu0 %v4943_v1 }
0x15ff   : > { %v4631_v39 = vpop.f32.mrf.mxu1 }
0x1601   : > { %v5612_v40 = vpop.f32.mrf.mxu1  ;;  %4647 = vmatpush3.bf16.msra.mxu0 %v4828_v38 }
0x1602   : > { %4660 = vmatprep.subr.bf16.mxu0 %v4943_v1 }
0x1603   : > { %v4642_v41 = vpop.f32.mrf.mxu1 }
0x1604   : > { %4649 = vmatmul.mubr.msk.bf16.vlgmr.msra.gmra.mxu0 %vm885_vm1, %v5477_v58 }
0x1605   : > { %v3006_v42 = vpop.f32.mrf.mxu1  ;;  %4664 = vmatprep.mubr.msk.bf16.mxu0 %vm4944_vm0, %v4943_v1  ;;  %4661 = vmatpush3.bf16.msra.mxu0 %v4829_v2 }
0x1606   : > { %4662 = vmatprep.subr.bf16.mxu0 %v4943_v1 }
0x1607   : > { %v4643_v43 = vpop.f32.mrf.mxu1 }
0x1609   : > { %v3133_v45 = vpop.f32.mrf.mxu1  ;;  %4663 = vmatpush3.bf16.msra.mxu0 %v4830_v3 }
0x160a   : > { %v3134_v47 = vadd.f32 %v4197_v44, %v3133_v45  ;;  %4674 = vmatprep.subr.bf16.mxu0 %v4943_v1 }
0x160b   : > { %v4658_v48 = vpop.f32.mrf.mxu1 }
0x160c   : > { %v3205_v5 = vpack.c.bf16 %v3134_v47, %v3134_v47  ;;  %4665 = vmatmul.mubr.msk.bf16.vlgmr.msra.gmra.mxu0 %vm885_vm1, %v5452_v50 }
0x160d   : > { %v3136_v49 = vpop.f32.mrf.mxu1  ;;  %4676 = vmatprep.mubr.msk.bf16.mxu0 %vm4944_vm0, %v4943_v1 }
0x160e   : > { %v3210_v51 = vsel %vm1057_vm2, %v3205_v5, 0  ;;  %v4228_v5 = vld [vmem:[%s5910_s15 + $0x3] ss:$0 sm:$0xff]  ;;  %s3935_s15 = scalar_lea.sflag [#allocation3], %s847_s1 }
0x160f   : > { %v4659_v52 = vpop.f32.mrf.mxu1  ;;  %4669 = vmatpush3.bf16.xpose.msra.mxu1 %v3210_v51 }
0x1610   : > { %4680 = vmatprep.subr.bf16.mxu1 %v4943_v1 }
0x16bc   : > { %v5624_v53 = vpop.f32.mrf.mxu0 }
0x16bd   : > { %v3004_v42 = vadd.f32 %v5612_v40, %v5624_v53 }
0x16be   : > { %v4636_v54 = vpop.f32.mrf.mxu0 }
0x16c0   : > { %v2960_v55 = vpop.f32.mrf.mxu0 }
0x16c1   : > { %v4219_v55 = vld [vmem:[%s5911_s13 + $0x3] ss:$0 sm:$0xff]  ;;  %s5913_s13 = sld [smem:[#allocation28_spill]] }
0x16c2   : > { %v4637_v56 = vpop.f32.mrf.mxu0 }
0x16c4   : > { %v3068_v59 = vpop.f32.mrf.mxu0 }
0x16c5   : > { %v3069_v60 = vadd.f32 %v4188_v57, %v3068_v59 }
0x16c6   : > { %v4650_v61 = vpop.f32.mrf.mxu0 }
0x16c7   : > { %v3204_v62 = vpack.c.bf16 %v3069_v60, %v3069_v60  ;;  %v4835_v60 = vld [vmem:[%s5832_s16 + $0x38] sm:$0xff]   ;;  %v4836_v61 = vld [vmem:[%s5832_s16 + $0x30] sm:$0xff]   ;;  %s3946_s14 = scalar_lea.hbm %s5913_s13, %s4261_s0 }
0x16c8   : > { %v3071_v63 = vpop.f32.mrf.mxu0 }
0x16c9   : > { %4671 = vmatmul.mubr.msk.bf16.vlgmr.msra.gmra.mxu1 %vm1057_vm2, %v3204_v62 }
0x16ca   : > { %v4651_v0 = vpop.f32.mrf.mxu0  ;;  %4682 = vmatprep.mubr.msk.bf16.mxu1 %vm4944_vm0, %v4943_v1  ;;  %4681 = vmatpush3.bf16.msra.mxu1 %v3318_v24 }
0x16cb   : > { %4694 = vmatprep.subr.bf16.mxu1 %v4943_v1 }
0x16cc   : > { %v3198_v16 = vpop.f32.mrf.mxu0 }
0x16cd   : > { %v3199_v17 = vadd.f32 %v4206_v15, %v3198_v16 }
0x16ce   : > { %v4666_v18 = vpop.f32.mrf.mxu0 }
0x16cf   : > { %v3264_v19 = vpack.c.bf16 %v3199_v17, %v3199_v17  ;;  %v4243_v17 = vld [vmem:[%s5834_s18 + $0xc] sm:$0xf] }
0x16d0   : > { %v3201_v20 = vpop.f32.mrf.mxu0  ;;  %v3670_v18 = vsel %vm1120_vm3, %v4243_v17, 0 }
0x16d1   : > { %v3269_v21 = vsel %vm1120_vm3, %v3264_v19, 0 }
0x16d2   : > { %v4667_v22 = vpop.f32.mrf.mxu0  ;;  %4675 = vmatpush3.bf16.msra.mxu0 %v3269_v21 }
0x16d3   : > { %4686 = vmatprep.subr.bf16.mxu0 %v4943_v1 }
0x1789   : > { %v3246_v4 = vpop.f32.mrf.mxu1 }
0x178a   : > { %v3252_v7 = vsel %vm1057_vm2, %v3246_v4, -inf }
0x178b   : > { %3253 = vmax.xlane.f32.xlu0 %v3252_v7  ;;  %v4672_v8 = vpop.f32.mrf.mxu1 }
0x178d   : > { %v3249_v9 = vpop.f32.mrf.mxu1 }
0x178f   : > { %v4673_v10 = vpop.f32.mrf.mxu1 }
0x1814   : > { %v3254_v11 = vpop.xlane.xlu0 %3253 }
0x1815   : > { %v3255_v12 = vsub.f32 %v3246_v4, %v3254_v11 }
0x1817   : > { %v3256_v13 = vmul.f32 1.442695, %v3255_v12 }
0x1819   : > { %4869 = vpow2.f32 %v3256_v13 }
0x1826   : > { %v4870_v14 = vpop.eup %4869 }
0x1827   : > { %v3258_v6 = vsel %vm1057_vm2, %v4870_v14, 0.0 }
0x1828   : > { %3259 = vadd.xlane.f32.xlu1 %v3258_v6 }
0x18b1   : > { %v3260_v25 = vpop.xlane.xlu1 %3259 }
0x18b2   : > { %4871 = vrcp.f32 %v3260_v25 }
0x18bf   : > { %v4872_v26 = vpop.eup %4871 }
0x18c0   : > { %v3262_v27 = vmul.f32 %v4872_v26, %v4870_v14 }
0x18c2   : > { %v3263_v29 = vpack.c.bf16 %v3262_v27, %v3262_v27 }
0x18c4   : > { %4677 = vmatmul.mubr.msk.bf16.vlgmr.msra.gmra.mxu0 %vm1057_vm2, %v3263_v29  ;;  %v4245_v29 = vld [vmem:[%s5835_s19] ss:$0 sm:$0xff] }
0x18c5   : > { %4687 = vmatpush3.bf16.msra.mxu0 %v4831_v28  ;;  %4690 = vmatprep.mubr.msk.bf16.mxu0 %vm4944_vm0, %v4943_v1 }
0x18c6   : > { %4688 = vmatprep.subr.bf16.mxu0 %v4943_v1 }
0x18c9   : > { %4689 = vmatpush3.bf16.msra.mxu0 %v4832_v30 }
0x18ca   : > { %4702 = vmatprep.subr.bf16.mxu0 %v4943_v1 }
0x18cc   : > { %4691 = vmatmul.mubr.msk.bf16.vlgmr.msra.gmra.mxu0 %vm885_vm1, %v5477_v58 }
0x18cd   : > { %4706 = vmatprep.mubr.msk.bf16.mxu0 %vm4944_vm0, %v4943_v1  ;;  %4703 = vmatpush3.bf16.msra.mxu0 %v4835_v60 }
0x18ce   : > { %4704 = vmatprep.subr.bf16.mxu0 %v4943_v1 }
0x18d1   : > { %4705 = vmatpush3.bf16.msra.mxu0 %v4836_v61 }
0x18d2   : > { %4716 = vmatprep.subr.bf16.mxu0 %v4943_v1 }
0x18d4   : > { %4707 = vmatmul.mubr.msk.bf16.vlgmr.msra.gmra.mxu0 %vm885_vm1, %v5452_v50 }
0x18d5   : > { %4718 = vmatprep.mubr.msk.bf16.mxu0 %vm4944_vm0, %v4943_v1 }
0x1984   : > { %v3305_v31 = vpop.f32.mrf.mxu0 }
0x1985   : > { %v3311_v33 = vpack.c.bf16 %v3305_v31, %v3305_v31 }
0x1986   : > { %v4678_v34 = vpop.f32.mrf.mxu0 }
0x1987   : > { %4683 = vmatmul.mubr.msk.bf16.vlgmr.msra.gmra.mxu1 %vm1057_vm2, %v3311_v33 }
0x1988   : > { %v3308_v35 = vpop.f32.mrf.mxu0  ;;  %4695 = vmatpush3.bf16.msra.mxu1 %v4833_v32  ;;  %4698 = vmatprep.mubr.msk.bf16.mxu1 %vm4944_vm0, %v4943_v1 }
0x1989   : > { %4696 = vmatprep.subr.bf16.mxu1 %v4943_v1 }
0x198a   : > { %v4679_v58 = vpop.f32.mrf.mxu0 }
0x198c   : > { %v3420_v37 = vpop.f32.mrf.mxu0  ;;  %4697 = vmatpush3.bf16.msra.mxu1 %v4834_v36 }
0x198d   : > { %4710 = vmatprep.subr.bf16.mxu1 %v4943_v1  ;;  %v3421_v57 = vadd.f32 %v4219_v55, %v3420_v37 }
0x198e   : > { %v4692_v38 = vpop.f32.mrf.mxu0 }
0x198f   : > { %4699 = vmatmul.mubr.msk.bf16.vlgmr.msra.gmra.mxu1 %vm885_vm1, %v5452_v50  ;;  %v3556_v59 = vpack.c.bf16 %v3421_v57, %v3421_v57  ;;  %v4237_v50 = vld [vmem:[%s5833_s17 + $0x3] ss:$0 sm:$0xff]  ;;  %v4248_v57 = vld [vmem:[%s5839_s23] ss:$0 sm:$0xff] }
0x1990   : > { %v3423_v39 = vpop.f32.mrf.mxu0  ;;  %4712 = vmatprep.mubr.msk.bf16.mxu1 %vm4944_vm0, %v4943_v1 }
0x1992   : > { %v4693_v41 = vpop.f32.mrf.mxu0 }
0x1994   : > { %v3550_v11 = vpop.f32.mrf.mxu0 }
0x1995   : > { %v3551_v12 = vadd.f32 %v4237_v50, %v3550_v11 }
0x1996   : > { %v4708_v13 = vpop.f32.mrf.mxu0 }
0x1997   : > { %v3616_v14 = vpack.c.bf16 %v3551_v12, %v3551_v12 }
0x1998   : > { %v3553_v6 = vpop.f32.mrf.mxu0 }
0x1999   : > { %v3621_v15 = vsel %vm1120_vm3, %v3616_v14, 0 }
0x199a   : > { %v4709_v16 = vpop.f32.mrf.mxu0  ;;  %4717 = vmatpush3.bf16.msra.mxu0 %v3621_v15 }
0x199b   : > { %4728 = vmatprep.subr.bf16.mxu0 %v4943_v1 }
0x1a47   : > { %v3354_v43 = vpop.f32.mrf.mxu1 }
0x1a48   : > { %v5688_v44 = vadd.f32 %v3354_v43, %v3004_v42  ;;  %v4837_v42 = vld [vmem:[%s5838_s22 + $0x8] sm:$0xff]   ;;  %v4839_v43 = vld [vmem:[%s5840_s24 + $0x18] sm:$0xff]  }
0x1a49   : > { %v4684_v45 = vpop.f32.mrf.mxu1 }
0x1a4b   : > { %v3357_v47 = vpop.f32.mrf.mxu1 }
0x1a4d   : > { %v4685_v48 = vpop.f32.mrf.mxu1 }
0x1a4f   : > { %v3485_v49 = vpop.f32.mrf.mxu1 }
0x1a50   : > { %v3486_v51 = vadd.f32 %v4228_v5, %v3485_v49  ;;  %v4246_v49 = vld [vmem:[%s5836_s20] ss:$0 sm:$0xff] }
0x1a51   : > { %v4700_v52 = vpop.f32.mrf.mxu1 }
0x1a52   : > { %v3557_v54 = vpack.c.bf16 %v3486_v51, %v3486_v51  ;;  %v4247_v52 = vld [vmem:[%s5837_s21] ss:$0 sm:$0xff] }
0x1a53   : > { %v3488_v56 = vpop.f32.mrf.mxu1 }
0x1a54   : > { %v3562_v40 = vsel %vm1057_vm2, %v3557_v54, 0 }
0x1a55   : > { %v4701_v53 = vpop.f32.mrf.mxu1  ;;  %4711 = vmatpush3.bf16.xpose.msra.mxu1 %v3562_v40  ;;  %v4841_v40 = vld [vmem:[%s5840_s24 + $0x8] sm:$0xff]  }
0x1a56   : > { %4722 = vmatprep.subr.bf16.mxu1 %v4943_v1  ;;  %v4842_v53 = vld [vmem:[%s5840_s24] sm:$0xff]  }
0x1a5c   : > { %4713 = vmatmul.mubr.msk.bf16.vlgmr.msra.gmra.mxu1 %vm1057_vm2, %v3556_v59 }
0x1a5d   : > { %4724 = vmatprep.mubr.msk.bf16.mxu1 %vm4944_vm0, %v4943_v1  ;;  %4723 = vmatpush3.bf16.msra.mxu1 %v3670_v18 }
0x1a5e   : > { %4736 = vmatprep.subr.bf16.mxu1 %v4943_v1 }
0x1b1c   : > { %v3598_v62 = vpop.f32.mrf.mxu1 }
0x1b1d   : > { %v3604_v63 = vsel %vm1057_vm2, %v3598_v62, -inf }
0x1b1e   : > { %3605 = vmax.xlane.f32.xlu0 %v3604_v63  ;;  %v4714_v0 = vpop.f32.mrf.mxu1 }
0x1b20   : > { %v3601_v2 = vpop.f32.mrf.mxu1 }
0x1b22   : > { %v4715_v3 = vpop.f32.mrf.mxu1 }
0x1ba7   : > { %v3606_v4 = vpop.xlane.xlu0 %3605 }
0x1ba8   : > { %v3607_v7 = vsub.f32 %v3598_v62, %v3606_v4 }
0x1baa   : > { %v3608_v8 = vmul.f32 1.442695, %v3607_v7 }
0x1bac   : > { %4873 = vpow2.f32 %v3608_v8 }
0x1bb9   : > { %v4874_v9 = vpop.eup %4873 }
0x1bba   : > { %v3610_v10 = vsel %vm1057_vm2, %v4874_v9, 0.0 }
0x1bbb   : > { %3611 = vadd.xlane.f32.xlu1 %v3610_v10 }
0x1c44   : > { %v3612_v19 = vpop.xlane.xlu1 %3611 }
0x1c45   : > { %4875 = vrcp.f32 %v3612_v19  ;;  %v4258_v19 = vld [vmem:[%s5842_s26] ss:$0 sm:$0xff] }
0x1c52   : > { %v4876_v20 = vpop.eup %4875 }
0x1c53   : > { %v3614_v21 = vmul.f32 %v4876_v20, %v4874_v9 }
0x1c55   : > { %v3615_v22 = vpack.c.bf16 %v3614_v21, %v3614_v21  ;;  %v4259_v21 = vld [vmem:[%s5912_s6] ss:$0 sm:$0xff] }
0x1c57   : > { %4719 = vmatmul.mubr.msk.bf16.vlgmr.msra.gmra.mxu0 %vm1057_vm2, %v3615_v22 }
0x1c58   : > { %4732 = vmatprep.mubr.msk.bf16.mxu0 %vm4944_vm0, %v4943_v1  ;;  %4729 = vmatpush3.bf16.msra.mxu0 %v4837_v42 }
0x1c59   : > { %4730 = vmatprep.subr.bf16.mxu0 %v4943_v1 }
0x1d17   : > { %v3657_v23 = vpop.f32.mrf.mxu0 }
0x1d18   : > { %v3663_v24 = vpack.c.bf16 %v3657_v23, %v3657_v23 }
0x1d19   : > { %v4720_v25 = vpop.f32.mrf.mxu0 }
0x1d1a   : > { %4725 = vmatmul.mubr.msk.bf16.vlgmr.msra.gmra.mxu1 %vm1057_vm2, %v3663_v24 }
0x1d1b   : > { %v3660_v26 = vpop.f32.mrf.mxu0  ;;  %4744 = vmatprep.mubr.msk.bf16.mxu1 %vm4944_vm0, %v4943_v1  ;;  %4737 = vmatpush3.bf16.msra.mxu1 %v4839_v43 }
0x1d1c   : > { %4738 = vmatprep.subr.bf16.mxu1 %v4943_v1 }
0x1d1d   : > { %v4721_v27 = vpop.f32.mrf.mxu0 }
0x1dda   : > { %v3706_v28 = vpop.f32.mrf.mxu1 }
0x1ddb   : > { %v3712_v30 = vadd.f32 %v3706_v28, %v5688_v44  ;;  %v4840_v44 = vld [vmem:[%s5840_s24 + $0x10] sm:$0xff]  }
0x1ddc   : > { %v4726_v31 = vpop.f32.mrf.mxu1  ;;  %4739 = vmatpush3.bf16.msra.mxu1 %v4840_v44 }
0x1ddd   : > { %v3720_v32 = vadd.f32 %v4245_v29, %v3712_v30  ;;  %4740 = vmatprep.subr.bf16.mxu1 %v4943_v1 }
0x1dde   : > { %v3709_v33 = vpop.f32.mrf.mxu1 }
0x1ddf   : > { %v3721_v34 = vadd.f32 %v3720_v32, %v5473_v46  ;;  %v4838_v46 = vld [vmem:[%s5838_s22] sm:$0xff]  }
0x1de0   : > { %v4727_v35 = vpop.f32.mrf.mxu1  ;;  %4731 = vmatpush3.bf16.msra.mxu0 %v4838_v46  ;;  %4741 = vmatpush3.bf16.msra.mxu1 %v4841_v40 }
0x1de1   : > { %v3724_v36 = vsel %vm885_vm1, %v3721_v34, 0.0  ;;  %4742 = vmatprep.subr.bf16.mxu1 %v4943_v1  ;;  %v4252_v1 = vld [vmem:[%s5841_s25] ss:$0 sm:$0xff] }
0x1de2   : > { %3725 = vadd.xlane.f32.xlu0 %v3724_v36 }
0x1de4   : > { %4743 = vmatpush3.bf16.msra.mxu1 %v4842_v53 }
0x1e6b   : > { %v3726_v58 = vpop.xlane.xlu0 %3725 }
0x1e6c   : > { %v3727_v37 = vmul.f32 0.03125, %v3726_v58 }
0x1e6e   : > { %v3728_v38 = vsub.f32 %v3721_v34, %v3727_v37 }
0x1e70   : > { %v3729_v39 = vmul.f32 %v3728_v38, %v3728_v38 }
0x1e72   : > { %v3730_v41 = vsel %vm885_vm1, %v3729_v39, 0.0 }
0x1e73   : > { %3731 = vadd.xlane.f32.xlu1 %v3730_v41 }
0x1efc   : > { %v3732_v45 = vpop.xlane.xlu1 %3731 }
0x1efd   : > { %v3733_v47 = vmul.f32 0.03125, %v3732_v45 }
0x1eff   : > { %v3734_v48 = vadd.f32 1e-05, %v3733_v47 }
0x1f01   : > { %4877 = vrsqrt.f32 %v3734_v48 }
0x1f0e   : > { %v4878_v5 = vpop.eup %4877 }
0x1f0f   : > { %v3736_v51 = vmul.f32 %v4878_v5, %v3728_v38 }
0x1f11   : > { %v3743_v54 = vmul.f32 %v4246_v49, %v3736_v51 }
0x1f13   : > { %v3750_v55 = vadd.f32 %v4247_v52, %v3743_v54 }
0x1f15   : > { %v3751_v56 = vpack.c.bf16 %v3750_v55, %v3750_v55 }
0x1f17   : > { %4733 = vmatmul.mubr.msk.bf16.vlgmr.msra.gmra.mxu0 %vm885_vm1, %v3751_v56 }
0x1fd7   : > { %v3812_v59 = vpop.f32.mrf.mxu0 }
0x1fd8   : > { %v3813_v60 = vadd.f32 %v4248_v57, %v3812_v59 }
0x1fd9   : > { %v4734_v61 = vpop.f32.mrf.mxu0 }
0x1fda   : > { %v3818_v62 = vmax.f32 %v3813_v60, 0.0 }
0x1fdb   : > { %v3815_v63 = vpop.f32.mrf.mxu0 }
0x1fdc   : > { %v3819_v0 = vpack.c.bf16 %v3818_v62, %v3818_v62 }
0x1fdd   : > { %v4735_v2 = vpop.f32.mrf.mxu0 }
0x1fde   : > { %4745 = vmatmul.mubr.msk.bf16.vlgmr.msra.gmra.mxu1 %vm3859_vm4, %v3819_v0 }
0x209e   : > { %v3897_v3 = vpop.f32.mrf.mxu1 }
0x209f   : > { %v3898_v4 = vadd.f32 %v4252_v1, %v3897_v3 }
0x20a0   : > { %v4746_v7 = vpop.f32.mrf.mxu1 }
0x20a1   : > { %v3903_v8 = vadd.f32 %v3898_v4, %v3750_v55 }
0x20a2   : > { %v3900_v9 = vpop.f32.mrf.mxu1 }
0x20a3   : > { %v3906_v10 = vsel %vm885_vm1, %v3903_v8, 0.0 }
0x20a4   : > { %3907 = vadd.xlane.f32.xlu0 %v3906_v10  ;;  %v4747_v50 = vpop.f32.mrf.mxu1 }
0x212d   : > { %v3908_v11 = vpop.xlane.xlu0 %3907 }
0x212e   : > { %v3909_v12 = vmul.f32 0.03125, %v3908_v11 }
0x2130   : > { %v3910_v13 = vsub.f32 %v3903_v8, %v3909_v12 }
0x2132   : > { %v3911_v14 = vmul.f32 %v3910_v13, %v3910_v13 }
0x2134   : > { %v3912_v6 = vsel %vm885_vm1, %v3911_v14, 0.0 }
0x2135   : > { %3913 = vadd.xlane.f32.xlu1 %v3912_v6 }
0x21be   : > { %v3914_v15 = vpop.xlane.xlu1 %3913 }
0x21bf   : > { %v3915_v16 = vmul.f32 0.03125, %v3914_v15 }
0x21c1   : > { %v3916_v17 = vadd.f32 1e-05, %v3915_v16 }
0x21c3   : > { %4879 = vrsqrt.f32 %v3916_v17 }
0x21d0   : > { %v4880_v18 = vpop.eup %4879 }
0x21d1   : > { %v3918_v20 = vmul.f32 %v4880_v18, %v3910_v13 }
0x21d3   : > { %v3925_v22 = vmul.f32 %v4258_v19, %v3918_v20 }
0x21d5   : > { %v3932_v23 = vadd.f32 %v4259_v21, %v3925_v22 }
0x21d7   : > { %3933 = vst.msk [vmem:[%s849_s4] sm:$0xff] %vm885_vm1, %v3932_v23 }
0x21d8   : > { %4894 = shalt.err (!%p4891_p3)
}
0x21d9   : > { %s4895_s11 = scalar_lea.hbm %s3946_s14, 128  ;;  %s4899_s9 = scalar_lea.hbm %s5913_s13, 256 }
0x21da   : > { %p4896_p4 = scmp.ne.s32.totalorder %s3946_s14, %s4895_s11  ;;  %p4900_p9 = scmp.lt.s32.totalorder %s3946_s14, %s5913_s13 }
0x21db   : > { %p4901_p10 = scmp.lt.s32.totalorder %s4899_s9, %s4895_s11 }
0x21dc   : > { %p4897_p7 = pnand %p4896_p4, %p5129_p5 }
0x21dd   : > { %p4902_p11 = por %p4901_p10, %p4900_p9 }
0x21de   : > { %p4898_p8 = pneg %p4897_p7 }
0x21e0   : > { %p4903_p12 = pnand %p4902_p11, %p4898_p8 }
0x21e2   : > { %4906 = shalt.err (!%p4903_p12)
}
0x21e3   : > { %4748 = dma.vmem_to_hbm [thread:$0]  (%p5129_p5), %s3949_s7, 128, %s3946_s14, %s3935_s15  }
0x21e4 PF: > { %s5914_s0 = sld [smem:[#allocation7_spill]] }
0x21e5   : > { %s5915_s4 = sld [smem:[#allocation5_spill]] }
0x21ea   : > { %p4754_p13 = scmp.ge.s32.totalorder %s5914_s0, 2 }
0x21eb   : > { %s3960_s28 = sand.u32 1, %s5915_s4  }
0x21ec   : > { %p4751_p0 = pnand %p4754_p13, %p5133_p6  ;;  %s3961_s30 = scalar_lea.sflag [#allocation3], %s3960_s28 }
0x21ee   : > { %p4752_p1 = pneg %p4751_p0 }
0x21f0   : > { %4924 = dma.done.wait (%p4752_p1), %s3961_s30, 128  }
0x21f1   : > { %4926 = vsyncadd (%p4752_p1), %s3961_s30, 4294967168  ;;  %s5917_s30 = sld [smem:[#allocation8_spill]]  ;;  %s5920_s8 = smov %s4933_s5 }
0x21f2   : > { %s5918_s3 = sld [smem:[#allocation6_spill]] }
0x21f3   : > { %s5919_s9 = sld [smem:[#allocation9_spill]] }
0x21f7   : > { %p38_p2 = scmp.ge.s32.totalorder %s5917_s30, 4  }
0x21f8   : > { %s5921_s5 = smov %s5918_s3 }
0x21f9   :  { %40 = sbr.rel (!%p38_p2) target bundleno = 22 (0x16), region = 212 }
0x21fe   :  { %3966 = vsyncpa [#allocation3], 1 }
0x21ff   :  { %3968 = vsyncpa [#allocation3 + $0x1], 1 }

// kernel: transformer_forward.6
= control target key start
LH: loop header
LB: loop body
LE: loop exit
PB: predicated region body
PF: predicated region fallthrough
CT: control target
= control target key end

     0   :  { %s5637_s0 = inlined_call_operand.vmem [shape: f32[2,8,32], index: 0, kind: input, shape index: {}]   ;;  %s5638_s1 = inlined_call_operand.vmem [shape: f32[2,8,32], index: 1, kind: input, shape index: {}]   ;;  %s5639_s2 = inlined_call_operand.vmem [shape: bf16[4,32,8], index: 2, kind: input, shape index: {}]   ;;  %s5640_s3 = inlined_call_operand.vmem [shape: f32[4,1,8], index: 3, kind: input, shape index: {}]   ;;  %s5641_s4 = inlined_call_operand.vmem [shape: bf16[4,32,8], index: 4, kind: input, shape index: {}]   ;;  %s5642_s5 = inlined_call_operand.vmem [shape: f32[4,1,8], index: 5, kind: input, shape index: {}]   ;;  %s5643_s6 = inlined_call_operand.vmem [shape: bf16[4,32,8], index: 6, kind: input, shape index: {}]   ;;  %s5644_s7 = inlined_call_operand.vmem [shape: f32[4,1,8], index: 7, kind: input, shape index: {}]   ;;  %s5645_s8 = inlined_call_operand.vmem [shape: bf16[4,8,32], index: 8, kind: input, shape index: {}]   ;;  %s5646_s9 = inlined_call_operand.vmem [shape: f32[1,32], index: 9, kind: input, shape index: {}]   ;;  %s5647_s10 = inlined_call_operand.vmem [shape: f32[1,32], index: 10, kind: input, shape index: {}]   ;;  %s5648_s11 = inlined_call_operand.vmem [shape: f32[1,32], index: 11, kind: input, shape index: {}]   ;;  %s5649_s12 = inlined_call_operand.vmem [shape: bf16[4,32,8], index: 12, kind: input, shape index: {}]   ;;  %s5650_s13 = inlined_call_operand.vmem [shape: f32[4,1,8], index: 13, kind: input, shape index: {}]   ;;  %s5651_s14 = inlined_call_operand.vmem [shape: bf16[4,32,8], index: 14, kind: input, shape index: {}]   ;;  %s5652_s15 = inlined_call_operand.vmem [shape: f32[4,1,8], index: 15, kind: input, shape index: {}]   ;;  %s5653_s16 = inlined_call_operand.vmem [shape: bf16[4,32,8], index: 16, kind: input, shape index: {}]   ;;  %s5654_s17 = inlined_call_operand.vmem [shape: f32[4,1,8], index: 17, kind: input, shape index: {}]   ;;  %s5655_s18 = inlined_call_operand.vmem [shape: bf16[4,8,32], index: 18, kind: input, shape index: {}]   ;;  %s5656_s19 = inlined_call_operand.vmem [shape: f32[1,32], index: 19, kind: input, shape index: {}]   ;;  %s5657_s20 = inlined_call_operand.vmem [shape: f32[1,32], index: 20, kind: input, shape index: {}]   ;;  %s5658_s21 = inlined_call_operand.vmem [shape: f32[1,32], index: 21, kind: input, shape index: {}]   ;;  %s5659_s22 = inlined_call_operand.vmem [shape: bf16[32,64], index: 22, kind: input, shape index: {}]   ;;  %s5660_s23 = inlined_call_operand.vmem [shape: f32[1,64], index: 23, kind: input, shape index: {}]   ;;  %s5661_s24 = inlined_call_operand.vmem [shape: bf16[64,32], index: 24, kind: input, shape index: {}]   ;;  %s5662_s25 = inlined_call_operand.vmem [shape: f32[1,32], index: 25, kind: input, shape index: {}]   ;;  %s5663_s26 = inlined_call_operand.vmem [shape: f32[1,32], index: 26, kind: input, shape index: {}]   ;;  %s5664_s27 = inlined_call_operand.vmem [shape: f32[1,32], index: 27, kind: input, shape index: {}]   ;;  %s5665_s28 = inlined_call_operand.vmem [shape: f32[2,8,32], index: 28, kind: output, shape index: {}]  }
   0x1   :  { %5677 = sst [smem:[#allocation2_spill]] %s5637_s0 }
   0x2   :  { %5678 = sst [smem:[#allocation3_spill]] %s5638_s1 }
   0x3   :  { %5679 = sst [smem:[#allocation4_spill]] %s5639_s2 }
   0x4   :  { %5680 = sst [smem:[#allocation5_spill]] %s5640_s3 }
   0x5   :  { %5681 = sst [smem:[#allocation6_spill]] %s5641_s4 }
   0x6   :  { %5682 = sst [smem:[#allocation7_spill]] %s5642_s5 }
   0x7   :  { %5683 = sst [smem:[#allocation8_spill]] %s5643_s6 }
   0x8   :  { %5684 = sst [smem:[#allocation9_spill]] %s5644_s7 }
   0x9   :  { %5685 = sst [smem:[#allocation10_spill]] %s5645_s8  ;;  %s4984_s8 = smov 0  }
   0xa   :  { %5686 = sst [smem:[#allocation11_spill]] %s5646_s9 }
   0xb   :  { %5687 = sst [smem:[#allocation12_spill]] %s5647_s10 }
   0xc   :  { %5688 = sst [smem:[#allocation13_spill]] %s5648_s11 }
   0xd   :  { %5689 = sst [smem:[#allocation14_spill]] %s5649_s12 }
   0xe LB: > { %s3999_s5 = sadd.s32 4294967295, %s4835_s8   ;;  %p4003_p0 = scmp.ge.s32.totalorder %s4835_s8, 1  ;;  %s4835_s8 = sphi %s4984_s8, %s38_s8  }
   0xf   : > { %p770_p1 = scmp.lt.s32.totalorder %s4835_s8, 3 }
  0x11   : > { %p771_p2 = pnand %p4003_p0, %p770_p1 }
  0x12   : > { %s5690_s3 = sld [smem:[#allocation6_spill]] (!%p771_p2)  ;;  %p846_p3 = scmp.lt.s32.totalorder (!%p771_p2), %s3999_s5, 1 }
  0x13   : > { %774 = sbr.rel (%p771_p2) target bundleno = 8646 (0x21c6), region = 132  ;;  %s5691_s0 = sld [smem:[#allocation4_spill]] (!%p771_p2) }
  0x14   : > { %s5692_s9 = sld [smem:[#allocation2_spill]] (!%p771_p2) }
  0x15   : > { %s5693_s10 = sld [smem:[#allocation7_spill]] (!%p771_p2) }
  0x16   : > { %s5694_s2 = sld [smem:[#allocation5_spill]] (!%p771_p2) }
  0x17   : > { %s5695_s4 = sld [smem:[#allocation8_spill]] (!%p771_p2) }
  0x18   : > { %v4737_v0 = vld [vmem:[%s5690_s3 + $0x8] sm:$0xff]   ;;  %v4837_v1 = vmov 0.0   ;;  %v4739_v3 = vld [vmem:[%s5690_s3] sm:$0xff]   ;;  %vm4838_vm0 = vmmov 0   ;;  %s5704_s5 = smov (!%p846_p3, %s3999_s5), 1  ;;  %vm885_vm1 = vcmask 261120  }
  0x19   : > { %4379 = vmatprep.subr.bf16.mxu1 %v4837_v1  ;;  %4371 = vmatprep.subr.bf16.mxu0 %v4837_v1  ;;  %v4738_v2 = vld [vmem:[%s5691_s0 + $0x8] sm:$0xff]   ;;  %v4740_v4 = vld [vmem:[%s5691_s0] sm:$0xff]   ;;  %s5012_s12 = sshll.u32 %s5704_s5, 3  ;;  %vm1057_vm2 = vcmask 64512   ;;  %s5696_s11 = sld [smem:[#allocation9_spill]]  ;;  %vm1120_vm3 = vcmask 1043456  }
  0x1a   : > { %4380 = vmatpush3.bf16.msra.mxu1 %v4737_v0  ;;  %4383 = vmatprep.mubr.msk.bf16.mxu1 %vm4838_vm0, %v4837_v1  ;;  %s849_s30 = scalar_lea.vmem %s5692_s9, %s5012_s12  ;;  %v4744_v42 = vld [vmem:[%s5691_s0 + $0x18] sm:$0xff]   ;;  %v4746_v43 = vld [vmem:[%s5691_s0 + $0x10] sm:$0xff]   ;;  %s5697_s6 = sld [smem:[#allocation10_spill]]  ;;  %vm3859_vm4 = vcmask 523264  }
  0x1b   : > { %4372 = vmatpush3.bf16.msra.mxu0 %v4738_v2  ;;  %4381 = vmatprep.subr.bf16.mxu1 %v4837_v1  ;;  %v5019_v5 = vld [vmem:[%s849_s30] sm:$0xff]  ;;  %v4743_v47 = vld [vmem:[%s5690_s3 + $0x18] sm:$0xff]   ;;  %v4745_v49 = vld [vmem:[%s5690_s3 + $0x10] sm:$0xff]   ;;  %s5698_s1 = sld [smem:[#allocation11_spill]] }
  0x1c   : > { %4373 = vmatprep.subr.bf16.mxu0 %v4837_v1  ;;  %4375 = vmatprep.mubr.msk.bf16.mxu0 %vm4838_vm0, %v4837_v1  ;;  %v5024_v6 = vpack.c.bf16 %v5019_v5, %v5019_v5  ;;  %v4011_v7 = vld [vmem:[%s5693_s10] ss:$0 sm:$0xff]  ;;  %v4035_v58 = vld [vmem:[%s5693_s10 + $0x1] ss:$0 sm:$0xff]  ;;  %s5700_s5 = sld [smem:[#allocation14_spill]] }
  0x1d   : > { %v4007_v11 = vld [vmem:[%s5694_s2] ss:$0 sm:$0xff]  ;;  %v4741_v22 = vld [vmem:[%s5695_s4 + $0x8] sm:$0xff]   ;;  %v4026_v61 = vld [vmem:[%s5694_s2 + $0x1] ss:$0 sm:$0xff] }
  0x1e   : > { %4382 = vmatpush3.bf16.msra.mxu1 %v4739_v3  ;;  %v4742_v23 = vld [vmem:[%s5695_s4] sm:$0xff]  }
  0x1f   : > { %4374 = vmatpush3.bf16.msra.mxu0 %v4740_v4  ;;  %4395 = vmatprep.subr.bf16.mxu1 %v4837_v1  ;;  %v4015_v34 = vld [vmem:[%s5696_s11] ss:$0 sm:$0xff] }
  0x20   : > { %4387 = vmatprep.subr.bf16.mxu0 %v4837_v1 }
  0x21   : > { %4384 = vmatmul.mubr.msk.bf16.vlgmr.msra.gmra.mxu1 %vm885_vm1, %v5024_v6 }
  0x22   : > { %4376 = vmatmul.mubr.msk.bf16.vlgmr.msra.gmra.mxu0 %vm885_vm1, %v5024_v6  ;;  %4397 = vmatprep.mubr.msk.bf16.mxu1 %vm4838_vm0, %v4837_v1 }
  0x23   : > { %4391 = vmatprep.mubr.msk.bf16.mxu0 %vm4838_vm0, %v4837_v1  ;;  %4388 = vmatpush3.bf16.msra.mxu0 %v4741_v22 }
  0x24   : > { %4389 = vmatprep.subr.bf16.mxu0 %v4837_v1 }
  0x27   : > { %4390 = vmatpush3.bf16.msra.mxu0 %v4742_v23 }
  0x28   : > { %4401 = vmatprep.subr.bf16.mxu0 %v4837_v1 }
  0x2a   : > { %4392 = vmatmul.mubr.msk.bf16.vlgmr.msra.gmra.mxu0 %vm885_vm1, %v5024_v6 }
  0x2b   : > { %4403 = vmatprep.mubr.msk.bf16.mxu0 %vm4838_vm0, %v4837_v1 }
  0xe1   : > { %v986_v8 = vpop.f32.mrf.mxu1 }
  0xe2   : > { %v923_v9 = vpop.f32.mrf.mxu0  ;;  %v987_v10 = vadd.f32 %v4011_v7, %v986_v8  ;;  %v4747_v8 = vld [vmem:[%s5695_s4 + $0x18] sm:$0xff]  }
  0xe3   : > { %v4385_v12 = vpop.f32.mrf.mxu1  ;;  %v924_v18 = vadd.f32 %v4007_v11, %v923_v9  ;;  %v4748_v9 = vld [vmem:[%s5695_s4 + $0x10] sm:$0xff]  }
  0xe4   : > { %v4377_v13 = vpop.f32.mrf.mxu0  ;;  %v1056_v14 = vpack.c.bf16 %v987_v10, %v987_v10 }
  0xe5   : > { %v989_v15 = vpop.f32.mrf.mxu1  ;;  %v1055_v21 = vpack.c.bf16 %v924_v18, %v924_v18 }
  0xe6   : > { %v926_v16 = vpop.f32.mrf.mxu0  ;;  %v1062_v17 = vsel %vm1057_vm2, %v1056_v14, 0  ;;  %v4044_v15 = vld [vmem:[%s5696_s11 + $0x1] ss:$0 sm:$0xff] }
  0xe7   : > { %v4386_v19 = vpop.f32.mrf.mxu1  ;;  %4396 = vmatpush3.bf16.xpose.msra.mxu1 %v1062_v17 }
  0xe8   : > { %v4378_v20 = vpop.f32.mrf.mxu0  ;;  %4407 = vmatprep.subr.bf16.mxu1 %v4837_v1 }
  0xea   : > { %v1049_v35 = vpop.f32.mrf.mxu0 }
  0xeb   : > { %v1050_v36 = vadd.f32 %v4015_v34, %v1049_v35 }
  0xec   : > { %v4393_v37 = vpop.f32.mrf.mxu0 }
  0xed   : > { %v1116_v38 = vpack.c.bf16 %v1050_v36, %v1050_v36  ;;  %v4749_v36 = vld [vmem:[%s5690_s3 + $0x28] sm:$0xff]  }
  0xee   : > { %4398 = vmatmul.mubr.msk.bf16.vlgmr.msra.gmra.mxu1 %vm1057_vm2, %v1055_v21  ;;  %v1052_v39 = vpop.f32.mrf.mxu0 }
  0xef   : > { %4411 = vmatprep.mubr.msk.bf16.mxu1 %vm4838_vm0, %v4837_v1  ;;  %v1122_v40 = vsel %vm1120_vm3, %v1116_v38, 0  ;;  %4408 = vmatpush3.bf16.msra.mxu1 %v4744_v42  ;;  %v4750_v38 = vld [vmem:[%s5690_s3 + $0x20] sm:$0xff]  }
  0xf0   : > { %v4394_v41 = vpop.f32.mrf.mxu0  ;;  %4402 = vmatpush3.bf16.msra.mxu0 %v1122_v40  ;;  %4409 = vmatprep.subr.bf16.mxu1 %v4837_v1  ;;  %v4751_v40 = vld [vmem:[%s5691_s0 + $0x28] sm:$0xff]  }
  0xf1   : > { %4415 = vmatprep.subr.bf16.mxu0 %v4837_v1 }
  0xf3   : > { %4410 = vmatpush3.bf16.msra.mxu1 %v4746_v43 }
  0xf4   : > { %4423 = vmatprep.subr.bf16.mxu1 %v4837_v1 }
  0xf6   : > { %4412 = vmatmul.mubr.msk.bf16.vlgmr.msra.gmra.mxu1 %vm885_vm1, %v5024_v6 }
  0xf7   : > { %4427 = vmatprep.mubr.msk.bf16.mxu1 %vm4838_vm0, %v4837_v1  ;;  %4424 = vmatpush3.bf16.msra.mxu1 %v4747_v8  ;;  %v4753_v8 = vld [vmem:[%s5695_s4 + $0x28] sm:$0xff]  }
  0xf8   : > { %4425 = vmatprep.subr.bf16.mxu1 %v4837_v1 }
  0xfb   : > { %4426 = vmatpush3.bf16.msra.mxu1 %v4748_v9  ;;  %v4754_v9 = vld [vmem:[%s5695_s4 + $0x20] sm:$0xff]  }
  0xfc   : > { %4437 = vmatprep.subr.bf16.mxu1 %v4837_v1 }
  0xfe   : > { %4428 = vmatmul.mubr.msk.bf16.vlgmr.msra.gmra.mxu1 %vm885_vm1, %v5024_v6 }
  0xff   : > { %4439 = vmatprep.mubr.msk.bf16.mxu1 %vm4838_vm0, %v4837_v1 }
 0x1ae   : > { %v1098_v24 = vpop.f32.mrf.mxu1 }
 0x1af   : > { %v1104_v25 = vsel %vm1057_vm2, %v1098_v24, -inf }
 0x1b0   : > { %1105 = vmax.xlane.f32.xlu0 %v1104_v25  ;;  %v4399_v26 = vpop.f32.mrf.mxu1 }
 0x1b2   : > { %v1101_v27 = vpop.f32.mrf.mxu1 }
 0x1b4   : > { %v4400_v28 = vpop.f32.mrf.mxu1 }
 0x1b5   : > { %v4050_v28 = vld [vmem:[%s5697_s6 + $0x4] sm:$0xf] }
 0x1b6   : > { %v1225_v50 = vpop.f32.mrf.mxu1 }
 0x1b7   : > { %v1226_v3 = vadd.f32 %v4026_v61, %v1225_v50  ;;  %v4067_v50 = vld [vmem:[%s5693_s10 + $0x2] ss:$0 sm:$0xff] }
 0x1b8   : > { %v4413_v51 = vpop.f32.mrf.mxu1 }
 0x1b9   : > { %v1361_v7 = vpack.c.bf16 %v1226_v3, %v1226_v3 }
 0x1ba   : > { %v1228_v52 = vpop.f32.mrf.mxu1 }
 0x1bc   : > { %v4414_v53 = vpop.f32.mrf.mxu1 }
 0x1be   : > { %v1355_v16 = vpop.f32.mrf.mxu1 }
 0x1bf   : > { %v1356_v17 = vadd.f32 %v4044_v15, %v1355_v16 }
 0x1c0   : > { %v4429_v18 = vpop.f32.mrf.mxu1 }
 0x1c1   : > { %v1421_v19 = vpack.c.bf16 %v1356_v17, %v1356_v17 }
 0x1c2   : > { %v1358_v20 = vpop.f32.mrf.mxu1 }
 0x1c3   : > { %v1426_v21 = vsel %vm1120_vm3, %v1421_v19, 0  ;;  %v4076_v20 = vld [vmem:[%s5696_s11 + $0x2] ss:$0 sm:$0xff] }
 0x1c4   : > { %v4430_v22 = vpop.f32.mrf.mxu1  ;;  %4438 = vmatpush3.bf16.msra.mxu1 %v1426_v21 }
 0x1c5   : > { %4449 = vmatprep.subr.bf16.mxu1 %v4837_v1 }
 0x239   : > { %v1106_v29 = vpop.xlane.xlu0 %1105 }
 0x23a   : > { %v1107_v30 = vsub.f32 %v1098_v24, %v1106_v29  ;;  %v1475_v29 = vsel %vm1120_vm3, %v4050_v28, 0  ;;  %v4082_v28 = vld [vmem:[%s5697_s6 + $0x8] sm:$0xf] }
 0x23c   : > { %v1108_v31 = vmul.f32 1.442695, %v1107_v30 }
 0x23e   : > { %4791 = vpow2.f32 %v1108_v31 }
 0x24b   : > { %v4792_v32 = vpop.eup %4791 }
 0x24c   : > { %v1110_v33 = vsel %vm1057_vm2, %v4792_v32, 0.0 }
 0x24d   : > { %1111 = vadd.xlane.f32.xlu0 %v1110_v33 }
 0x2d6   : > { %v1112_v44 = vpop.xlane.xlu0 %1111 }
 0x2d7   : > { %4793 = vrcp.f32 %v1112_v44  ;;  %v4752_v44 = vld [vmem:[%s5691_s0 + $0x20] sm:$0xff]  }
 0x2e4   : > { %v4794_v45 = vpop.eup %4793 }
 0x2e5   : > { %v1114_v46 = vmul.f32 %v4794_v45, %v4792_v32  ;;  %v1165_v32 = vld [vmem:[%s5697_s6] sm:$0xf] }
 0x2e6   : > { %v1521_v35 = vsel %vm1120_vm3, %v1165_v32, 0 }
 0x2e7   : > { %v1115_v48 = vpack.c.bf16 %v1114_v46, %v1114_v46 }
 0x2e9   : > { %4404 = vmatmul.mubr.msk.bf16.vlgmr.msra.gmra.mxu0 %vm1057_vm2, %v1115_v48 }
 0x2ea   : > { %4416 = vmatpush3.bf16.msra.mxu0 %v4743_v47  ;;  %4419 = vmatprep.mubr.msk.bf16.mxu0 %vm4838_vm0, %v4837_v1 }
 0x2eb   : > { %4417 = vmatprep.subr.bf16.mxu0 %v4837_v1 }
 0x2ee   : > { %4418 = vmatpush3.bf16.msra.mxu0 %v4745_v49 }
 0x2ef   : > { %4431 = vmatprep.subr.bf16.mxu0 %v4837_v1 }
 0x2f1   : > { %4420 = vmatmul.mubr.msk.bf16.vlgmr.msra.gmra.mxu0 %vm885_vm1, %v5024_v6 }
 0x2f2   : > { %4433 = vmatprep.mubr.msk.bf16.mxu0 %vm4838_vm0, %v4837_v1 }
 0x3a9   : > { %v5091_v54 = vpop.f32.mrf.mxu0 }
 0x3aa   : > { %v1164_v37 = vpack.c.bf16 %v5091_v54, %v5091_v54 }
 0x3ab   : > { %v4405_v55 = vpop.f32.mrf.mxu0 }
 0x3ad   : > { %v1161_v56 = vpop.f32.mrf.mxu0 }
 0x3af   : > { %v4406_v57 = vpop.f32.mrf.mxu0 }
 0x3b1   : > { %v1290_v59 = vpop.f32.mrf.mxu0 }
 0x3b2   : > { %v1291_v60 = vadd.f32 %v4035_v58, %v1290_v59 }
 0x3b3   : > { %v4421_v62 = vpop.f32.mrf.mxu0 }
 0x3b4   : > { %v1362_v63 = vpack.c.bf16 %v1291_v60, %v1291_v60  ;;  %v4058_v62 = vld [vmem:[%s5694_s2 + $0x2] ss:$0 sm:$0xff] }
 0x3b5   : > { %v1293_v0 = vpop.f32.mrf.mxu0 }
 0x3b6   : > { %v1367_v2 = vsel %vm1057_vm2, %v1362_v63, 0 }
 0x3b7   : > { %v4422_v4 = vpop.f32.mrf.mxu0  ;;  %4432 = vmatpush3.bf16.xpose.msra.mxu0 %v1367_v2 }
 0x3b8   : > { %4443 = vmatprep.subr.bf16.mxu0 %v4837_v1 }
 0x3be   : > { %4434 = vmatmul.mubr.msk.bf16.vlgmr.msra.gmra.mxu0 %vm1057_vm2, %v1361_v7 }
 0x3bf   : > { %4445 = vmatprep.mubr.msk.bf16.mxu0 %vm4838_vm0, %v4837_v1  ;;  %4444 = vmatpush3.bf16.msra.mxu0 %v1475_v29  ;;  %v1872_v29 = vsel %vm1120_vm3, %v4082_v28, 0 }
 0x3c0   : > { %4455 = vmatprep.subr.bf16.mxu0 %v4837_v1 }
 0x47e   : > { %v1403_v10 = vpop.f32.mrf.mxu0 }
 0x47f   : > { %v1409_v11 = vsel %vm1057_vm2, %v1403_v10, -inf }
 0x480   : > { %1410 = vmax.xlane.f32.xlu1 %v1409_v11  ;;  %v4435_v12 = vpop.f32.mrf.mxu0 }
 0x482   : > { %v1406_v13 = vpop.f32.mrf.mxu0 }
 0x484   : > { %v4436_v14 = vpop.f32.mrf.mxu0 }
 0x509   : > { %v1411_v23 = vpop.xlane.xlu1 %1410 }
 0x50a   : > { %v1412_v24 = vsub.f32 %v1403_v10, %v1411_v23 }
 0x50c   : > { %v1413_v25 = vmul.f32 1.442695, %v1412_v24 }
 0x50e   : > { %4795 = vpow2.f32 %v1413_v25 }
 0x51b   : > { %v4796_v26 = vpop.eup %4795 }
 0x51c   : > { %v1415_v27 = vsel %vm1057_vm2, %v4796_v26, 0.0 }
 0x51d   : > { %1416 = vadd.xlane.f32.xlu1 %v1415_v27 }
 0x5a6   : > { %v1417_v30 = vpop.xlane.xlu1 %1416 }
 0x5a7   : > { %4797 = vrcp.f32 %v1417_v30 }
 0x5b4   : > { %v4798_v31 = vpop.eup %4797 }
 0x5b5   : > { %v1419_v33 = vmul.f32 %v4798_v31, %v4796_v26 }
 0x5b7   : > { %v1420_v34 = vpack.c.bf16 %v1419_v33, %v1419_v33 }
 0x5b9   : > { %4440 = vmatmul.mubr.msk.bf16.vlgmr.msra.gmra.mxu1 %vm1057_vm2, %v1420_v34  ;;  %v4756_v34 = vld [vmem:[%s5691_s0 + $0x38] sm:$0xff]  }
 0x5ba   : > { %4450 = vmatpush3.bf16.msra.mxu1 %v1521_v35  ;;  %4451 = vmatprep.mubr.msk.bf16.mxu1 %vm4838_vm0, %v4837_v1  ;;  %v4758_v35 = vld [vmem:[%s5691_s0 + $0x30] sm:$0xff]   ;;  %s5699_s0 = sld [smem:[#allocation3_spill]] }
 0x5bb   : > { %4463 = vmatprep.subr.bf16.mxu1 %v4837_v1 }
 0x5c1   : > { %4452 = vmatmul.mubr.msk.bf16.vlgmr.msra.gmra.mxu1 %vm1057_vm2, %v1164_v37  ;;  %v4755_v37 = vld [vmem:[%s5690_s3 + $0x38] sm:$0xff]  }
 0x5c2   : > { %4464 = vmatpush3.bf16.msra.mxu1 %v4749_v36  ;;  %4467 = vmatprep.mubr.msk.bf16.mxu1 %vm4838_vm0, %v4837_v1 }
 0x5c3   : > { %4465 = vmatprep.subr.bf16.mxu1 %v4837_v1 }
 0x5c6   : > { %4466 = vmatpush3.bf16.msra.mxu1 %v4750_v38 }
 0x5c7   : > { %4479 = vmatprep.subr.bf16.mxu1 %v4837_v1 }
 0x5c9   : > { %4468 = vmatmul.mubr.msk.bf16.vlgmr.msra.gmra.mxu1 %vm885_vm1, %v5024_v6 }
 0x5ca   : > { %4481 = vmatprep.mubr.msk.bf16.mxu1 %vm4838_vm0, %v4837_v1 }
 0x679   : > { %v1462_v39 = vpop.f32.mrf.mxu1 }
 0x67a   : > { %v1468_v41 = vpack.c.bf16 %v1462_v39, %v1462_v39 }
 0x67b   : > { %v4441_v42 = vpop.f32.mrf.mxu1 }
 0x67c   : > { %4446 = vmatmul.mubr.msk.bf16.vlgmr.msra.gmra.mxu0 %vm1057_vm2, %v1468_v41  ;;  %v4757_v41 = vld [vmem:[%s5690_s3 + $0x30] sm:$0xff]   ;;  %s5702_s3 = sld [smem:[#allocation13_spill]] }
 0x67d   : > { %v1465_v43 = vpop.f32.mrf.mxu1  ;;  %4456 = vmatpush3.bf16.msra.mxu0 %v4751_v40  ;;  %4459 = vmatprep.mubr.msk.bf16.mxu0 %vm4838_vm0, %v4837_v1 }
 0x67e   : > { %4457 = vmatprep.subr.bf16.mxu0 %v4837_v1 }
 0x67f   : > { %v4442_v45 = vpop.f32.mrf.mxu1 }
 0x681   : > { %v5163_v46 = vpop.f32.mrf.mxu1  ;;  %4458 = vmatpush3.bf16.msra.mxu0 %v4752_v44 }
 0x682   : > { %4471 = vmatprep.subr.bf16.mxu0 %v4837_v1 }
 0x683   : > { %v4453_v47 = vpop.f32.mrf.mxu1 }
 0x684   : > { %4460 = vmatmul.mubr.msk.bf16.vlgmr.msra.gmra.mxu0 %vm885_vm1, %v5024_v6 }
 0x685   : > { %v1560_v48 = vpop.f32.mrf.mxu1  ;;  %4475 = vmatprep.mubr.msk.bf16.mxu0 %vm4838_vm0, %v4837_v1  ;;  %4472 = vmatpush3.bf16.msra.mxu0 %v4753_v8 }
 0x686   : > { %4473 = vmatprep.subr.bf16.mxu0 %v4837_v1 }
 0x687   : > { %v4454_v49 = vpop.f32.mrf.mxu1 }
 0x689   : > { %v1687_v51 = vpop.f32.mrf.mxu1  ;;  %4474 = vmatpush3.bf16.msra.mxu0 %v4754_v9 }
 0x68a   : > { %v1688_v52 = vadd.f32 %v4067_v50, %v1687_v51  ;;  %4485 = vmatprep.subr.bf16.mxu0 %v4837_v1 }
 0x68b   : > { %v4469_v53 = vpop.f32.mrf.mxu1 }
 0x68c   : > { %v1759_v54 = vpack.c.bf16 %v1688_v52, %v1688_v52  ;;  %4476 = vmatmul.mubr.msk.bf16.vlgmr.msra.gmra.mxu0 %vm885_vm1, %v5024_v6 }
 0x68d   : > { %v1690_v55 = vpop.f32.mrf.mxu1  ;;  %4487 = vmatprep.mubr.msk.bf16.mxu0 %vm4838_vm0, %v4837_v1 }
 0x68e   : > { %v1764_v56 = vsel %vm1057_vm2, %v1759_v54, 0  ;;  %v4098_v54 = vld [vmem:[%s5693_s10 + $0x3] ss:$0 sm:$0xff] }
 0x68f   : > { %v4470_v57 = vpop.f32.mrf.mxu1  ;;  %4480 = vmatpush3.bf16.xpose.msra.mxu1 %v1764_v56 }
 0x690   : > { %4491 = vmatprep.subr.bf16.mxu1 %v4837_v1  ;;  %v4089_v57 = vld [vmem:[%s5694_s2 + $0x3] ss:$0 sm:$0xff]  ;;  %s853_s2 = scalar_lea.vmem %s5699_s0, %s5012_s12 }
 0x73c   : > { %v5175_v58 = vpop.f32.mrf.mxu0 }
 0x73d   : > { %v1558_v48 = vadd.f32 %v5163_v46, %v5175_v58 }
 0x73e   : > { %v4447_v59 = vpop.f32.mrf.mxu0 }
 0x740   : > { %v1514_v60 = vpop.f32.mrf.mxu0 }
 0x742   : > { %v4448_v61 = vpop.f32.mrf.mxu0 }
 0x744   : > { %v1622_v63 = vpop.f32.mrf.mxu0 }
 0x745   : > { %v1623_v0 = vadd.f32 %v4058_v62, %v1622_v63 }
 0x746   : > { %v4461_v2 = vpop.f32.mrf.mxu0 }
 0x747   : > { %v1758_v3 = vpack.c.bf16 %v1623_v0, %v1623_v0  ;;  %v4759_v0 = vld [vmem:[%s5695_s4 + $0x38] sm:$0xff]   ;;  %v4760_v2 = vld [vmem:[%s5695_s4 + $0x30] sm:$0xff]  }
 0x748   : > { %v1625_v4 = vpop.f32.mrf.mxu0 }
 0x749   : > { %4482 = vmatmul.mubr.msk.bf16.vlgmr.msra.gmra.mxu1 %vm1057_vm2, %v1758_v3 }
 0x74a   : > { %v4462_v7 = vpop.f32.mrf.mxu0  ;;  %4493 = vmatprep.mubr.msk.bf16.mxu1 %vm4838_vm0, %v4837_v1  ;;  %4492 = vmatpush3.bf16.msra.mxu1 %v1872_v29 }
 0x74b   : > { %4505 = vmatprep.subr.bf16.mxu1 %v4837_v1 }
 0x74c   : > { %v1752_v21 = vpop.f32.mrf.mxu0 }
 0x74d   : > { %v1753_v22 = vadd.f32 %v4076_v20, %v1752_v21 }
 0x74e   : > { %v4477_v23 = vpop.f32.mrf.mxu0 }
 0x74f   : > { %v1818_v24 = vpack.c.bf16 %v1753_v22, %v1753_v22  ;;  %v4113_v22 = vld [vmem:[%s5697_s6 + $0xc] sm:$0xf] }
 0x750   : > { %v1755_v25 = vpop.f32.mrf.mxu0  ;;  %v2224_v23 = vsel %vm1120_vm3, %v4113_v22, 0 }
 0x751   : > { %v1823_v26 = vsel %vm1120_vm3, %v1818_v24, 0 }
 0x752   : > { %v4478_v27 = vpop.f32.mrf.mxu0  ;;  %4486 = vmatpush3.bf16.msra.mxu0 %v1823_v26 }
 0x753   : > { %4497 = vmatprep.subr.bf16.mxu0 %v4837_v1 }
 0x809   : > { %v1800_v10 = vpop.f32.mrf.mxu1 }
 0x80a   : > { %v1806_v11 = vsel %vm1057_vm2, %v1800_v10, -inf }
 0x80b   : > { %1807 = vmax.xlane.f32.xlu0 %v1806_v11  ;;  %v4483_v12 = vpop.f32.mrf.mxu1 }
 0x80d   : > { %v1803_v13 = vpop.f32.mrf.mxu1 }
 0x80f   : > { %v4484_v14 = vpop.f32.mrf.mxu1 }
 0x894   : > { %v1808_v15 = vpop.xlane.xlu0 %1807 }
 0x895   : > { %v1809_v16 = vsub.f32 %v1800_v10, %v1808_v15 }
 0x897   : > { %v1810_v17 = vmul.f32 1.442695, %v1809_v16 }
 0x899   : > { %4799 = vpow2.f32 %v1810_v17 }
 0x8a6   : > { %v4800_v18 = vpop.eup %4799 }
 0x8a7   : > { %v1812_v19 = vsel %vm1057_vm2, %v4800_v18, 0.0 }
 0x8a8   : > { %1813 = vadd.xlane.f32.xlu1 %v1812_v19 }
 0x931   : > { %v1814_v30 = vpop.xlane.xlu1 %1813 }
 0x932   : > { %4801 = vrcp.f32 %v1814_v30 }
 0x93f   : > { %v4802_v31 = vpop.eup %4801 }
 0x940   : > { %v1816_v32 = vmul.f32 %v4802_v31, %v4800_v18 }
 0x942   : > { %v1817_v33 = vpack.c.bf16 %v1816_v32, %v1816_v32 }
 0x944   : > { %4488 = vmatmul.mubr.msk.bf16.vlgmr.msra.gmra.mxu0 %vm1057_vm2, %v1817_v33 }
 0x945   : > { %4501 = vmatprep.mubr.msk.bf16.mxu0 %vm4838_vm0, %v4837_v1  ;;  %4498 = vmatpush3.bf16.msra.mxu0 %v4756_v34  ;;  %v4115_v34 = vld [vmem:[%s5698_s1] ss:$0 sm:$0xff]  ;;  %s5701_s1 = sld [smem:[#allocation12_spill]] }
 0x946   : > { %4499 = vmatprep.subr.bf16.mxu0 %v4837_v1 }
 0x949   : > { %4500 = vmatpush3.bf16.msra.mxu0 %v4758_v35 }
 0x94a   : > { %4513 = vmatprep.subr.bf16.mxu0 %v4837_v1 }
 0x94c   : > { %4502 = vmatmul.mubr.msk.bf16.vlgmr.msra.gmra.mxu0 %vm885_vm1, %v5024_v6 }
 0x94d   : > { %4517 = vmatprep.mubr.msk.bf16.mxu0 %vm4838_vm0, %v4837_v1  ;;  %4514 = vmatpush3.bf16.msra.mxu0 %v4759_v0 }
 0x94e   : > { %4515 = vmatprep.subr.bf16.mxu0 %v4837_v1 }
 0x951   : > { %4516 = vmatpush3.bf16.msra.mxu0 %v4760_v2 }
 0x952   : > { %4527 = vmatprep.subr.bf16.mxu0 %v4837_v1 }
 0x954   : > { %4518 = vmatmul.mubr.msk.bf16.vlgmr.msra.gmra.mxu0 %vm885_vm1, %v5024_v6 }
 0x955   : > { %4529 = vmatprep.mubr.msk.bf16.mxu0 %vm4838_vm0, %v4837_v1 }
 0xa04   : > { %v1859_v36 = vpop.f32.mrf.mxu0 }
 0xa05   : > { %v1865_v38 = vpack.c.bf16 %v1859_v36, %v1859_v36 }
 0xa06   : > { %v4489_v39 = vpop.f32.mrf.mxu0 }
 0xa07   : > { %4494 = vmatmul.mubr.msk.bf16.vlgmr.msra.gmra.mxu1 %vm1057_vm2, %v1865_v38 }
 0xa08   : > { %v1862_v40 = vpop.f32.mrf.mxu0  ;;  %4506 = vmatpush3.bf16.msra.mxu1 %v4755_v37  ;;  %4509 = vmatprep.mubr.msk.bf16.mxu1 %vm4838_vm0, %v4837_v1 }
 0xa09   : > { %4507 = vmatprep.subr.bf16.mxu1 %v4837_v1 }
 0xa0a   : > { %v4490_v42 = vpop.f32.mrf.mxu0 }
 0xa0c   : > { %4508 = vmatpush3.bf16.msra.mxu1 %v4757_v41  ;;  %v1974_v43 = vpop.f32.mrf.mxu0 }
 0xa0d   : > { %4521 = vmatprep.subr.bf16.mxu1 %v4837_v1  ;;  %v1975_v58 = vadd.f32 %v4089_v57, %v1974_v43  ;;  %v4116_v57 = vld [vmem:[%s5701_s1] ss:$0 sm:$0xff] }
 0xa0e   : > { %v4503_v44 = vpop.f32.mrf.mxu0 }
 0xa0f   : > { %4510 = vmatmul.mubr.msk.bf16.vlgmr.msra.gmra.mxu1 %vm885_vm1, %v5024_v6  ;;  %v2110_v63 = vpack.c.bf16 %v1975_v58, %v1975_v58  ;;  %v4107_v6 = vld [vmem:[%s5696_s11 + $0x3] ss:$0 sm:$0xff] }
 0xa10   : > { %4523 = vmatprep.mubr.msk.bf16.mxu1 %vm4838_vm0, %v4837_v1  ;;  %v1977_v45 = vpop.f32.mrf.mxu0 }
 0xa12   : > { %v4504_v47 = vpop.f32.mrf.mxu0 }
 0xa14   : > { %v2104_v15 = vpop.f32.mrf.mxu0 }
 0xa15   : > { %v2105_v16 = vadd.f32 %v4107_v6, %v2104_v15 }
 0xa16   : > { %v4519_v17 = vpop.f32.mrf.mxu0 }
 0xa17   : > { %v2170_v18 = vpack.c.bf16 %v2105_v16, %v2105_v16  ;;  %v4766_v16 = vld [vmem:[%s5700_s5 + $0x10] sm:$0xff]   ;;  %v4767_v17 = vld [vmem:[%s5653_s16 + $0x8] sm:$0xff]  }
 0xa18   : > { %v2107_v19 = vpop.f32.mrf.mxu0 }
 0xa19   : > { %v2175_v20 = vsel %vm1120_vm3, %v2170_v18, 0  ;;  %v4768_v18 = vld [vmem:[%s5653_s16] sm:$0xff]  }
 0xa1a   : > { %v4520_v21 = vpop.f32.mrf.mxu0  ;;  %4528 = vmatpush3.bf16.msra.mxu0 %v2175_v20 }
 0xa1b   : > { %4539 = vmatprep.subr.bf16.mxu0 %v4837_v1 }
 0xac7   : > { %v1908_v49 = vpop.f32.mrf.mxu1 }
 0xac8   : > { %v5239_v50 = vadd.f32 %v1908_v49, %v1558_v48  ;;  %v4761_v48 = vld [vmem:[%s5651_s14 + $0x8] sm:$0xff]   ;;  %v860_v49 = vld [vmem:[%s853_s2] sm:$0xff]  ;;  %s857_s2 = scalar_lea.vmem %s5665_s28, %s5012_s12 }
 0xac9   : > { %v4495_v51 = vpop.f32.mrf.mxu1 }
 0xaca   : > { %v4763_v51 = vld [vmem:[%s5700_s5 + $0x8] sm:$0xff]  }
 0xacb   : > { %v1911_v52 = vpop.f32.mrf.mxu1 }
 0xacc   : > { %v4764_v52 = vld [vmem:[%s5700_s5] sm:$0xff]  }
 0xacd   : > { %v4496_v53 = vpop.f32.mrf.mxu1 }
 0xacf   : > { %v2039_v55 = vpop.f32.mrf.mxu1 }
 0xad0   : > { %v2040_v56 = vadd.f32 %v4098_v54, %v2039_v55 }
 0xad1   : > { %v4511_v59 = vpop.f32.mrf.mxu1 }
 0xad2   : > { %v2111_v60 = vpack.c.bf16 %v2040_v56, %v2040_v56 }
 0xad3   : > { %v2042_v61 = vpop.f32.mrf.mxu1 }
 0xad4   : > { %v2116_v46 = vsel %vm1057_vm2, %v2111_v60, 0  ;;  %v4117_v60 = vld [vmem:[%s5702_s3] ss:$0 sm:$0xff] }
 0xad5   : > { %v4512_v62 = vpop.f32.mrf.mxu1  ;;  %4522 = vmatpush3.bf16.xpose.msra.mxu1 %v2116_v46 }
 0xad6   : > { %4533 = vmatprep.subr.bf16.mxu1 %v4837_v1  ;;  %v4122_v62 = vld [vmem:[%s5652_s15] ss:$0 sm:$0xff] }
 0xadc   : > { %4524 = vmatmul.mubr.msk.bf16.vlgmr.msra.gmra.mxu1 %vm1057_vm2, %v2110_v63 }
 0xadd   : > { %4535 = vmatprep.mubr.msk.bf16.mxu1 %vm4838_vm0, %v4837_v1  ;;  %4534 = vmatpush3.bf16.msra.mxu1 %v2224_v23 }
 0xade   : > { %4547 = vmatprep.subr.bf16.mxu1 %v4837_v1 }
 0xb9c   : > { %v2152_v3 = vpop.f32.mrf.mxu1 }
 0xb9d   : > { %v2158_v4 = vsel %vm1057_vm2, %v2152_v3, -inf }
 0xb9e   : > { %2159 = vmax.xlane.f32.xlu0 %v2158_v4  ;;  %v4525_v7 = vpop.f32.mrf.mxu1 }
 0xba0   : > { %v2155_v8 = vpop.f32.mrf.mxu1 }
 0xba2   : > { %v4526_v9 = vpop.f32.mrf.mxu1 }
 0xba3   : > { %v4118_v9 = vld [vmem:[%s5650_s13] ss:$0 sm:$0xff] }
 0xc27   : > { %v2160_v10 = vpop.xlane.xlu0 %2159 }
 0xc28   : > { %v2161_v11 = vsub.f32 %v2152_v3, %v2160_v10 }
 0xc2a   : > { %v2162_v12 = vmul.f32 1.442695, %v2161_v11 }
 0xc2c   : > { %4803 = vpow2.f32 %v2162_v12 }
 0xc39   : > { %v4804_v13 = vpop.eup %4803 }
 0xc3a   : > { %v2164_v14 = vsel %vm1057_vm2, %v4804_v13, 0.0 }
 0xc3b   : > { %2165 = vadd.xlane.f32.xlu1 %v2164_v14 }
 0xcc4   : > { %v2166_v24 = vpop.xlane.xlu1 %2165 }
 0xcc5   : > { %4805 = vrcp.f32 %v2166_v24 }
 0xcd2   : > { %v4806_v25 = vpop.eup %4805 }
 0xcd3   : > { %v2168_v26 = vmul.f32 %v4806_v25, %v4804_v13  ;;  %v4765_v13 = vld [vmem:[%s5700_s5 + $0x18] sm:$0xff]  }
 0xcd5   : > { %v2169_v27 = vpack.c.bf16 %v2168_v26, %v2168_v26 }
 0xcd7   : > { %4530 = vmatmul.mubr.msk.bf16.vlgmr.msra.gmra.mxu0 %vm1057_vm2, %v2169_v27 }
 0xcd8   : > { %4543 = vmatprep.mubr.msk.bf16.mxu0 %vm4838_vm0, %v4837_v1  ;;  %4540 = vmatpush3.bf16.msra.mxu0 %v4763_v51 }
 0xcd9   : > { %4541 = vmatprep.subr.bf16.mxu0 %v4837_v1 }
 0xcdc   : > { %4542 = vmatpush3.bf16.msra.mxu0 %v4764_v52  ;;  %v4146_v52 = vld [vmem:[%s5652_s15 + $0x1] ss:$0 sm:$0xff] }
 0xcdd   : > { %4555 = vmatprep.subr.bf16.mxu0 %v4837_v1 }
 0xd97   : > { %v2211_v28 = vpop.f32.mrf.mxu0 }
 0xd98   : > { %v2217_v29 = vpack.c.bf16 %v2211_v28, %v2211_v28 }
 0xd99   : > { %v4531_v30 = vpop.f32.mrf.mxu0 }
 0xd9a   : > { %4536 = vmatmul.mubr.msk.bf16.vlgmr.msra.gmra.mxu1 %vm1057_vm2, %v2217_v29 }
 0xd9b   : > { %v2214_v31 = vpop.f32.mrf.mxu0  ;;  %4551 = vmatprep.mubr.msk.bf16.mxu1 %vm4838_vm0, %v4837_v1  ;;  %4548 = vmatpush3.bf16.msra.mxu1 %v4761_v48 }
 0xd9c   : > { %4549 = vmatprep.subr.bf16.mxu1 %v4837_v1 }
 0xd9d   : > { %v4532_v32 = vpop.f32.mrf.mxu0 }
 0xe5a   : > { %v2260_v33 = vpop.f32.mrf.mxu1 }
 0xe5b   : > { %v2266_v35 = vadd.f32 %v2260_v33, %v5239_v50  ;;  %v5300_v50 = vpack.c.bf16 %v860_v49, %v860_v49  ;;  %v4126_v33 = vld [vmem:[%s5654_s17] ss:$0 sm:$0xff] }
 0xe5c   : > { %v4537_v36 = vpop.f32.mrf.mxu1 }
 0xe5d   : > { %v2274_v37 = vadd.f32 %v4115_v34, %v2266_v35 }
 0xe5e   : > { %v2263_v38 = vpop.f32.mrf.mxu1 }
 0xe5f   : > { %v2275_v39 = vadd.f32 %v2274_v37, %v5019_v5  ;;  %v4762_v5 = vld [vmem:[%s5651_s14] sm:$0xff]  }
 0xe60   : > { %v4538_v40 = vpop.f32.mrf.mxu1  ;;  %4550 = vmatpush3.bf16.msra.mxu1 %v4762_v5 }
 0xe61   : > { %v2278_v41 = vsel %vm885_vm1, %v2275_v39, 0.0  ;;  %4563 = vmatprep.subr.bf16.mxu1 %v4837_v1 }
 0xe62   : > { %2279 = vadd.xlane.f32.xlu0 %v2278_v41 }
 0xe63   : > { %4552 = vmatmul.mubr.msk.bf16.vlgmr.msra.gmra.mxu1 %vm885_vm1, %v5300_v50 }
 0xe64   : > { %4565 = vmatprep.mubr.msk.bf16.mxu1 %vm4838_vm0, %v4837_v1 }
 0xeeb   : > { %v2280_v42 = vpop.xlane.xlu0 %2279 }
 0xeec   : > { %v2282_v43 = vmul.f32 0.03125, %v2280_v42 }
 0xeee   : > { %v2283_v44 = vsub.f32 %v2275_v39, %v2282_v43 }
 0xef0   : > { %v2284_v45 = vmul.f32 %v2283_v44, %v2283_v44 }
 0xef2   : > { %v2285_v47 = vsel %vm885_vm1, %v2284_v45, 0.0 }
 0xef3   : > { %2286 = vadd.xlane.f32.xlu1 %v2285_v47  ;;  %v4770_v47 = vld [vmem:[%s5651_s14 + $0x10] sm:$0xff]  }
 0xf23   : > { %v2434_v63 = vpop.f32.mrf.mxu1 }
 0xf24   : > { %v2435_v0 = vadd.f32 %v4122_v62, %v2434_v63 }
 0xf25   : > { %v4553_v2 = vpop.f32.mrf.mxu1 }
 0xf26   : > { %v2504_v3 = vpack.c.bf16 %v2435_v0, %v2435_v0  ;;  %v4771_v0 = vld [vmem:[%s5653_s16 + $0x18] sm:$0xff]   ;;  %v4772_v2 = vld [vmem:[%s5653_s16 + $0x10] sm:$0xff]  }
 0xf27   : > { %v2437_v4 = vpop.f32.mrf.mxu1 }
 0xf28   : > { %v2509_v7 = vsel %vm1057_vm2, %v2504_v3, 0 }
 0xf29   : > { %v4554_v8 = vpop.f32.mrf.mxu1  ;;  %4564 = vmatpush3.bf16.xpose.msra.mxu1 %v2509_v7 }
 0xf2a   : > { %4575 = vmatprep.subr.bf16.mxu1 %v4837_v1 }
 0xf7c   : > { %v2287_v53 = vpop.xlane.xlu1 %2286 }
 0xf7d   : > { %v2288_v54 = vmul.f32 0.03125, %v2287_v53 }
 0xf7f   : > { %v2289_v55 = vadd.f32 1e-05, %v2288_v54 }
 0xf81   : > { %4807 = vrsqrt.f32 %v2289_v55 }
 0xf8e   : > { %v4808_v56 = vpop.eup %4807 }
 0xf8f   : > { %v2291_v59 = vmul.f32 %v4808_v56, %v2283_v44  ;;  %v4769_v44 = vld [vmem:[%s5651_s14 + $0x18] sm:$0xff]  }
 0xf91   : > { %v2298_v61 = vmul.f32 %v4116_v57, %v2291_v59  ;;  %v4137_v57 = vld [vmem:[%s5650_s13 + $0x1] ss:$0 sm:$0xff] }
 0xf93   : > { %v5321_v46 = vadd.f32 %v4117_v60, %v2298_v61 }
 0xf95   : > { %v5325_v58 = vpack.c.bf16 %v5321_v46, %v5321_v46 }
 0xf97   : > { %4544 = vmatmul.mubr.msk.bf16.vlgmr.msra.gmra.mxu0 %vm885_vm1, %v5325_v58 }
 0xf98   : > { %4559 = vmatprep.mubr.msk.bf16.mxu0 %vm4838_vm0, %v4837_v1  ;;  %4556 = vmatpush3.bf16.msra.mxu0 %v4767_v17 }
 0xf99   : > { %4557 = vmatprep.subr.bf16.mxu0 %v4837_v1 }
 0xf9c   : > { %4558 = vmatpush3.bf16.msra.mxu0 %v4768_v18 }
 0xf9d   : > { %4569 = vmatprep.subr.bf16.mxu0 %v4837_v1 }
 0xf9f   : > { %4560 = vmatmul.mubr.msk.bf16.vlgmr.msra.gmra.mxu0 %vm885_vm1, %v5300_v50 }
 0xfa0   : > { %4571 = vmatprep.mubr.msk.bf16.mxu0 %vm4838_vm0, %v4837_v1 }
0x1057   : > { %v2368_v10 = vpop.f32.mrf.mxu0 }
0x1058   : > { %v2369_v11 = vadd.f32 %v4118_v9, %v2368_v10  ;;  %v4155_v10 = vld [vmem:[%s5654_s17 + $0x1] ss:$0 sm:$0xff] }
0x1059   : > { %v4545_v12 = vpop.f32.mrf.mxu0 }
0x105a   : > { %v2503_v14 = vpack.c.bf16 %v2369_v11, %v2369_v11 }
0x105b   : > { %v2371_v6 = vpop.f32.mrf.mxu0 }
0x105c   : > { %4566 = vmatmul.mubr.msk.bf16.vlgmr.msra.gmra.mxu1 %vm1057_vm2, %v2503_v14 }
0x105d   : > { %v4546_v15 = vpop.f32.mrf.mxu0  ;;  %4576 = vmatpush3.bf16.msra.mxu1 %v4765_v13  ;;  %4579 = vmatprep.mubr.msk.bf16.mxu1 %vm4838_vm0, %v4837_v1 }
0x105e   : > { %4577 = vmatprep.subr.bf16.mxu1 %v4837_v1 }
0x105f   : > { %v2497_v34 = vpop.f32.mrf.mxu0 }
0x1060   : > { %v2498_v35 = vadd.f32 %v4126_v33, %v2497_v34  ;;  %v4775_v34 = vld [vmem:[%s5700_s5 + $0x28] sm:$0xff]  }
0x1061   : > { %4578 = vmatpush3.bf16.msra.mxu1 %v4766_v16  ;;  %v4561_v36 = vpop.f32.mrf.mxu0 }
0x1062   : > { %4591 = vmatprep.subr.bf16.mxu1 %v4837_v1  ;;  %v2563_v37 = vpack.c.bf16 %v2498_v35, %v2498_v35 }
0x1063   : > { %v2500_v38 = vpop.f32.mrf.mxu0 }
0x1064   : > { %4580 = vmatmul.mubr.msk.bf16.vlgmr.msra.gmra.mxu1 %vm885_vm1, %v5325_v58  ;;  %v2568_v39 = vsel %vm1120_vm3, %v2563_v37, 0  ;;  %v4776_v38 = vld [vmem:[%s5700_s5 + $0x20] sm:$0xff]  }
0x1065   : > { %4595 = vmatprep.mubr.msk.bf16.mxu1 %vm4838_vm0, %v4837_v1  ;;  %v4562_v40 = vpop.f32.mrf.mxu0  ;;  %4570 = vmatpush3.bf16.msra.mxu0 %v2568_v39 }
0x1066   : > { %4583 = vmatprep.subr.bf16.mxu0 %v4837_v1  ;;  %4592 = vmatpush3.bf16.msra.mxu1 %v4771_v0 }
0x1067   : > { %4593 = vmatprep.subr.bf16.mxu1 %v4837_v1 }
0x106a   : > { %4594 = vmatpush3.bf16.msra.mxu1 %v4772_v2  ;;  %v4777_v2 = vld [vmem:[%s5653_s16 + $0x28] sm:$0xff]  }
0x106b   : > { %4605 = vmatprep.subr.bf16.mxu1 %v4837_v1 }
0x106d   : > { %4596 = vmatmul.mubr.msk.bf16.vlgmr.msra.gmra.mxu1 %vm885_vm1, %v5300_v50 }
0x106e   : > { %4607 = vmatprep.mubr.msk.bf16.mxu1 %vm4838_vm0, %v4837_v1 }
0x111c   : > { %v2545_v19 = vpop.f32.mrf.mxu1 }
0x111d   : > { %v2551_v20 = vsel %vm1057_vm2, %v2545_v19, -inf }
0x111e   : > { %2552 = vmax.xlane.f32.xlu0 %v2551_v20  ;;  %v4567_v21 = vpop.f32.mrf.mxu1 }
0x1120   : > { %v2548_v22 = vpop.f32.mrf.mxu1 }
0x1121   : > { %v4161_v22 = vld [vmem:[%s5655_s18 + $0x4] sm:$0xf] }
0x1122   : > { %v4568_v23 = vpop.f32.mrf.mxu1 }
0x1123   : > { %v2921_v23 = vsel %vm1120_vm3, %v4161_v22, 0 }
0x1124   : > { %v2671_v24 = vpop.f32.mrf.mxu1 }
0x1125   : > { %v2672_v62 = vadd.f32 %v4137_v57, %v2671_v24  ;;  %v4169_v57 = vld [vmem:[%s5650_s13 + $0x2] ss:$0 sm:$0xff] }
0x1126   : > { %v4581_v25 = vpop.f32.mrf.mxu1 }
0x1127   : > { %v2807_v63 = vpack.c.bf16 %v2672_v62, %v2672_v62 }
0x1128   : > { %v2674_v26 = vpop.f32.mrf.mxu1 }
0x1129   : > { %v2611_v26 = vld [vmem:[%s5655_s18] sm:$0xf] }
0x112a   : > { %v4582_v27 = vpop.f32.mrf.mxu1 }
0x112d   : > { %v2801_v11 = vpop.f32.mrf.mxu1 }
0x112e   : > { %v2802_v12 = vadd.f32 %v4155_v10, %v2801_v11 }
0x112f   : > { %v4597_v13 = vpop.f32.mrf.mxu1 }
0x1130   : > { %v2867_v14 = vpack.c.bf16 %v2802_v12, %v2802_v12 }
0x1131   : > { %v2804_v6 = vpop.f32.mrf.mxu1 }
0x1132   : > { %v2872_v15 = vsel %vm1120_vm3, %v2867_v14, 0 }
0x1133   : > { %v4598_v16 = vpop.f32.mrf.mxu1  ;;  %4606 = vmatpush3.bf16.msra.mxu1 %v2872_v15  ;;  %v4187_v15 = vld [vmem:[%s5654_s17 + $0x2] ss:$0 sm:$0xff] }
0x1134   : > { %4617 = vmatprep.subr.bf16.mxu1 %v4837_v1 }
0x11a7   : > { %v2553_v28 = vpop.xlane.xlu0 %2552 }
0x11a8   : > { %v2554_v29 = vsub.f32 %v2545_v19, %v2553_v28 }
0x11aa   : > { %v2555_v30 = vmul.f32 1.442695, %v2554_v29  ;;  %v2967_v29 = vsel %vm1120_vm3, %v2611_v26, 0 }
0x11ac   : > { %4809 = vpow2.f32 %v2555_v30  ;;  %v4773_v30 = vld [vmem:[%s5651_s14 + $0x28] sm:$0xff]  }
0x11b9   : > { %v4810_v31 = vpop.eup %4809 }
0x11ba   : > { %v2557_v32 = vsel %vm1057_vm2, %v4810_v31, 0.0 }
0x11bb   : > { %2558 = vadd.xlane.f32.xlu1 %v2557_v32  ;;  %v4774_v32 = vld [vmem:[%s5651_s14 + $0x20] sm:$0xff]  }
0x1244   : > { %v2559_v41 = vpop.xlane.xlu1 %2558 }
0x1245   : > { %4811 = vrcp.f32 %v2559_v41 }
0x1252   : > { %v4812_v42 = vpop.eup %4811 }
0x1253   : > { %v2561_v43 = vmul.f32 %v4812_v42, %v4810_v31 }
0x1255   : > { %v2562_v45 = vpack.c.bf16 %v2561_v43, %v2561_v43 }
0x1257   : > { %4572 = vmatmul.mubr.msk.bf16.vlgmr.msra.gmra.mxu0 %vm1057_vm2, %v2562_v45 }
0x1258   : > { %4584 = vmatpush3.bf16.msra.mxu0 %v4769_v44  ;;  %4587 = vmatprep.mubr.msk.bf16.mxu0 %vm4838_vm0, %v4837_v1  ;;  %v4178_v44 = vld [vmem:[%s5652_s15 + $0x2] ss:$0 sm:$0xff] }
0x1259   : > { %4585 = vmatprep.subr.bf16.mxu0 %v4837_v1 }
0x125c   : > { %4586 = vmatpush3.bf16.msra.mxu0 %v4770_v47 }
0x125d   : > { %4599 = vmatprep.subr.bf16.mxu0 %v4837_v1 }
0x125f   : > { %4588 = vmatmul.mubr.msk.bf16.vlgmr.msra.gmra.mxu0 %vm885_vm1, %v5300_v50 }
0x1260   : > { %4601 = vmatprep.mubr.msk.bf16.mxu0 %vm4838_vm0, %v4837_v1 }
0x1317   : > { %v5388_v48 = vpop.f32.mrf.mxu0 }
0x1318   : > { %v2610_v31 = vpack.c.bf16 %v5388_v48, %v5388_v48 }
0x1319   : > { %v4573_v5 = vpop.f32.mrf.mxu0 }
0x131b   : > { %v2607_v49 = vpop.f32.mrf.mxu0 }
0x131d   : > { %v4574_v51 = vpop.f32.mrf.mxu0 }
0x131f   : > { %v2736_v53 = vpop.f32.mrf.mxu0 }
0x1320   : > { %v2737_v54 = vadd.f32 %v4146_v52, %v2736_v53 }
0x1321   : > { %v4589_v55 = vpop.f32.mrf.mxu0 }
0x1322   : > { %v2808_v56 = vpack.c.bf16 %v2737_v54, %v2737_v54 }
0x1323   : > { %v2739_v59 = vpop.f32.mrf.mxu0 }
0x1324   : > { %v2813_v60 = vsel %vm1057_vm2, %v2808_v56, 0 }
0x1325   : > { %v4590_v61 = vpop.f32.mrf.mxu0  ;;  %4600 = vmatpush3.bf16.xpose.msra.mxu0 %v2813_v60 }
0x1326   : > { %4611 = vmatprep.subr.bf16.mxu0 %v4837_v1 }
0x132c   : > { %4602 = vmatmul.mubr.msk.bf16.vlgmr.msra.gmra.mxu0 %vm1057_vm2, %v2807_v63 }
0x132d   : > { %4613 = vmatprep.mubr.msk.bf16.mxu0 %vm4838_vm0, %v4837_v1  ;;  %4612 = vmatpush3.bf16.msra.mxu0 %v2921_v23  ;;  %v4193_v23 = vld [vmem:[%s5655_s18 + $0x8] sm:$0xf] }
0x132e   : > { %4623 = vmatprep.subr.bf16.mxu0 %v4837_v1 }
0x13ec   : > { %v2849_v3 = vpop.f32.mrf.mxu0 }
0x13ed   : > { %v2855_v4 = vsel %vm1057_vm2, %v2849_v3, -inf }
0x13ee   : > { %2856 = vmax.xlane.f32.xlu0 %v2855_v4  ;;  %v4603_v7 = vpop.f32.mrf.mxu0 }
0x13f0   : > { %v2852_v8 = vpop.f32.mrf.mxu0 }
0x13f2   : > { %v4604_v9 = vpop.f32.mrf.mxu0 }
0x1477   : > { %v2857_v17 = vpop.xlane.xlu0 %2856 }
0x1478   : > { %v2858_v18 = vsub.f32 %v2849_v3, %v2857_v17  ;;  %v4778_v3 = vld [vmem:[%s5653_s16 + $0x20] sm:$0xff]  }
0x147a   : > { %v2859_v19 = vmul.f32 1.442695, %v2858_v18 }
0x147c   : > { %4813 = vpow2.f32 %v2859_v19 }
0x1489   : > { %v4814_v20 = vpop.eup %4813 }
0x148a   : > { %v2861_v21 = vsel %vm1057_vm2, %v4814_v20, 0.0 }
0x148b   : > { %2862 = vadd.xlane.f32.xlu1 %v2861_v21 }
0x1514   : > { %v2863_v24 = vpop.xlane.xlu1 %2862 }
0x1515   : > { %4815 = vrcp.f32 %v2863_v24  ;;  %v3318_v24 = vsel %vm1120_vm3, %v4193_v23, 0 }
0x1522   : > { %v4816_v25 = vpop.eup %4815 }
0x1523   : > { %v2865_v27 = vmul.f32 %v4816_v25, %v4814_v20 }
0x1525   : > { %v2866_v28 = vpack.c.bf16 %v2865_v27, %v2865_v27 }
0x1527   : > { %4608 = vmatmul.mubr.msk.bf16.vlgmr.msra.gmra.mxu1 %vm1057_vm2, %v2866_v28  ;;  %v4779_v28 = vld [vmem:[%s5700_s5 + $0x38] sm:$0xff]  }
0x1528   : > { %4618 = vmatpush3.bf16.msra.mxu1 %v2967_v29  ;;  %4619 = vmatprep.mubr.msk.bf16.mxu1 %vm4838_vm0, %v4837_v1 }
0x1529   : > { %4631 = vmatprep.subr.bf16.mxu1 %v4837_v1 }
0x152f   : > { %4620 = vmatmul.mubr.msk.bf16.vlgmr.msra.gmra.mxu1 %vm1057_vm2, %v2610_v31 }
0x1530   : > { %4632 = vmatpush3.bf16.msra.mxu1 %v4773_v30  ;;  %4635 = vmatprep.mubr.msk.bf16.mxu1 %vm4838_vm0, %v4837_v1  ;;  %v4780_v30 = vld [vmem:[%s5700_s5 + $0x30] sm:$0xff]  }
0x1531   : > { %4633 = vmatprep.subr.bf16.mxu1 %v4837_v1 }
0x1534   : > { %4634 = vmatpush3.bf16.msra.mxu1 %v4774_v32  ;;  %v4781_v32 = vld [vmem:[%s5651_s14 + $0x38] sm:$0xff]  }
0x1535   : > { %4647 = vmatprep.subr.bf16.mxu1 %v4837_v1 }
0x1537   : > { %4636 = vmatmul.mubr.msk.bf16.vlgmr.msra.gmra.mxu1 %vm885_vm1, %v5300_v50 }
0x1538   : > { %4649 = vmatprep.mubr.msk.bf16.mxu1 %vm4838_vm0, %v4837_v1 }
0x15e7   : > { %v2908_v33 = vpop.f32.mrf.mxu1 }
0x15e8   : > { %v2914_v35 = vpack.c.bf16 %v2908_v33, %v2908_v33 }
0x15e9   : > { %v4609_v36 = vpop.f32.mrf.mxu1 }
0x15ea   : > { %4614 = vmatmul.mubr.msk.bf16.vlgmr.msra.gmra.mxu0 %vm1057_vm2, %v2914_v35  ;;  %v4782_v36 = vld [vmem:[%s5651_s14 + $0x30] sm:$0xff]  }
0x15eb   : > { %v2911_v37 = vpop.f32.mrf.mxu1  ;;  %4624 = vmatpush3.bf16.msra.mxu0 %v4775_v34  ;;  %4627 = vmatprep.mubr.msk.bf16.mxu0 %vm4838_vm0, %v4837_v1 }
0x15ec   : > { %4625 = vmatprep.subr.bf16.mxu0 %v4837_v1 }
0x15ed   : > { %v4610_v39 = vpop.f32.mrf.mxu1 }
0x15ef   : > { %v5460_v40 = vpop.f32.mrf.mxu1  ;;  %4626 = vmatpush3.bf16.msra.mxu0 %v4776_v38 }
0x15f0   : > { %4639 = vmatprep.subr.bf16.mxu0 %v4837_v1 }
0x15f1   : > { %v4621_v41 = vpop.f32.mrf.mxu1 }
0x15f2   : > { %4628 = vmatmul.mubr.msk.bf16.vlgmr.msra.gmra.mxu0 %vm885_vm1, %v5325_v58 }
0x15f3   : > { %v3006_v42 = vpop.f32.mrf.mxu1  ;;  %4643 = vmatprep.mubr.msk.bf16.mxu0 %vm4838_vm0, %v4837_v1  ;;  %4640 = vmatpush3.bf16.msra.mxu0 %v4777_v2 }
0x15f4   : > { %4641 = vmatprep.subr.bf16.mxu0 %v4837_v1 }
0x15f5   : > { %v4622_v43 = vpop.f32.mrf.mxu1 }
0x15f7   : > { %v3133_v45 = vpop.f32.mrf.mxu1  ;;  %4642 = vmatpush3.bf16.msra.mxu0 %v4778_v3 }
0x15f8   : > { %v3134_v47 = vadd.f32 %v4178_v44, %v3133_v45  ;;  %4653 = vmatprep.subr.bf16.mxu0 %v4837_v1 }
0x15f9   : > { %v4637_v48 = vpop.f32.mrf.mxu1 }
0x15fa   : > { %v3205_v5 = vpack.c.bf16 %v3134_v47, %v3134_v47  ;;  %4644 = vmatmul.mubr.msk.bf16.vlgmr.msra.gmra.mxu0 %vm885_vm1, %v5300_v50 }
0x15fb   : > { %v3136_v49 = vpop.f32.mrf.mxu1  ;;  %4655 = vmatprep.mubr.msk.bf16.mxu0 %vm4838_vm0, %v4837_v1 }
0x15fc   : > { %v3210_v51 = vsel %vm1057_vm2, %v3205_v5, 0  ;;  %v4209_v5 = vld [vmem:[%s5652_s15 + $0x3] ss:$0 sm:$0xff] }
0x15fd   : > { %v4638_v52 = vpop.f32.mrf.mxu1  ;;  %4648 = vmatpush3.bf16.xpose.msra.mxu1 %v3210_v51 }
0x15fe   : > { %4659 = vmatprep.subr.bf16.mxu1 %v4837_v1 }
0x16aa   : > { %v5472_v53 = vpop.f32.mrf.mxu0 }
0x16ab   : > { %v3004_v42 = vadd.f32 %v5460_v40, %v5472_v53 }
0x16ac   : > { %v4615_v54 = vpop.f32.mrf.mxu0 }
0x16ae   : > { %v2960_v55 = vpop.f32.mrf.mxu0 }
0x16af   : > { %v4200_v55 = vld [vmem:[%s5650_s13 + $0x3] ss:$0 sm:$0xff] }
0x16b0   : > { %v4616_v56 = vpop.f32.mrf.mxu0 }
0x16b2   : > { %v3068_v59 = vpop.f32.mrf.mxu0 }
0x16b3   : > { %v3069_v60 = vadd.f32 %v4169_v57, %v3068_v59 }
0x16b4   : > { %v4629_v61 = vpop.f32.mrf.mxu0 }
0x16b5   : > { %v3204_v62 = vpack.c.bf16 %v3069_v60, %v3069_v60  ;;  %v4783_v60 = vld [vmem:[%s5653_s16 + $0x38] sm:$0xff]   ;;  %v4784_v61 = vld [vmem:[%s5653_s16 + $0x30] sm:$0xff]  }
0x16b6   : > { %v3071_v63 = vpop.f32.mrf.mxu0 }
0x16b7   : > { %4650 = vmatmul.mubr.msk.bf16.vlgmr.msra.gmra.mxu1 %vm1057_vm2, %v3204_v62 }
0x16b8   : > { %v4630_v0 = vpop.f32.mrf.mxu0  ;;  %4661 = vmatprep.mubr.msk.bf16.mxu1 %vm4838_vm0, %v4837_v1  ;;  %4660 = vmatpush3.bf16.msra.mxu1 %v3318_v24 }
0x16b9   : > { %4673 = vmatprep.subr.bf16.mxu1 %v4837_v1 }
0x16ba   : > { %v3198_v16 = vpop.f32.mrf.mxu0 }
0x16bb   : > { %v3199_v17 = vadd.f32 %v4187_v15, %v3198_v16 }
0x16bc   : > { %v4645_v18 = vpop.f32.mrf.mxu0 }
0x16bd   : > { %v3264_v19 = vpack.c.bf16 %v3199_v17, %v3199_v17  ;;  %v4224_v17 = vld [vmem:[%s5655_s18 + $0xc] sm:$0xf] }
0x16be   : > { %v3201_v20 = vpop.f32.mrf.mxu0  ;;  %v3670_v18 = vsel %vm1120_vm3, %v4224_v17, 0 }
0x16bf   : > { %v3269_v21 = vsel %vm1120_vm3, %v3264_v19, 0 }
0x16c0   : > { %v4646_v22 = vpop.f32.mrf.mxu0  ;;  %4654 = vmatpush3.bf16.msra.mxu0 %v3269_v21 }
0x16c1   : > { %4665 = vmatprep.subr.bf16.mxu0 %v4837_v1 }
0x1777   : > { %v3246_v4 = vpop.f32.mrf.mxu1 }
0x1778   : > { %v3252_v7 = vsel %vm1057_vm2, %v3246_v4, -inf }
0x1779   : > { %3253 = vmax.xlane.f32.xlu0 %v3252_v7  ;;  %v4651_v8 = vpop.f32.mrf.mxu1 }
0x177b   : > { %v3249_v9 = vpop.f32.mrf.mxu1 }
0x177d   : > { %v4652_v10 = vpop.f32.mrf.mxu1 }
0x1802   : > { %v3254_v11 = vpop.xlane.xlu0 %3253 }
0x1803   : > { %v3255_v12 = vsub.f32 %v3246_v4, %v3254_v11 }
0x1805   : > { %v3256_v13 = vmul.f32 1.442695, %v3255_v12 }
0x1807   : > { %4817 = vpow2.f32 %v3256_v13 }
0x1814   : > { %v4818_v14 = vpop.eup %4817 }
0x1815   : > { %v3258_v6 = vsel %vm1057_vm2, %v4818_v14, 0.0 }
0x1816   : > { %3259 = vadd.xlane.f32.xlu1 %v3258_v6 }
0x189f   : > { %v3260_v25 = vpop.xlane.xlu1 %3259 }
0x18a0   : > { %4819 = vrcp.f32 %v3260_v25 }
0x18ad   : > { %v4820_v26 = vpop.eup %4819 }
0x18ae   : > { %v3262_v27 = vmul.f32 %v4820_v26, %v4818_v14 }
0x18b0   : > { %v3263_v29 = vpack.c.bf16 %v3262_v27, %v3262_v27 }
0x18b2   : > { %4656 = vmatmul.mubr.msk.bf16.vlgmr.msra.gmra.mxu0 %vm1057_vm2, %v3263_v29  ;;  %v4226_v29 = vld [vmem:[%s5656_s19] ss:$0 sm:$0xff] }
0x18b3   : > { %4666 = vmatpush3.bf16.msra.mxu0 %v4779_v28  ;;  %4669 = vmatprep.mubr.msk.bf16.mxu0 %vm4838_vm0, %v4837_v1 }
0x18b4   : > { %4667 = vmatprep.subr.bf16.mxu0 %v4837_v1 }
0x18b7   : > { %4668 = vmatpush3.bf16.msra.mxu0 %v4780_v30 }
0x18b8   : > { %4681 = vmatprep.subr.bf16.mxu0 %v4837_v1 }
0x18ba   : > { %4670 = vmatmul.mubr.msk.bf16.vlgmr.msra.gmra.mxu0 %vm885_vm1, %v5325_v58 }
0x18bb   : > { %4685 = vmatprep.mubr.msk.bf16.mxu0 %vm4838_vm0, %v4837_v1  ;;  %4682 = vmatpush3.bf16.msra.mxu0 %v4783_v60 }
0x18bc   : > { %4683 = vmatprep.subr.bf16.mxu0 %v4837_v1 }
0x18bf   : > { %4684 = vmatpush3.bf16.msra.mxu0 %v4784_v61 }
0x18c0   : > { %4695 = vmatprep.subr.bf16.mxu0 %v4837_v1 }
0x18c2   : > { %4686 = vmatmul.mubr.msk.bf16.vlgmr.msra.gmra.mxu0 %vm885_vm1, %v5300_v50 }
0x18c3   : > { %4697 = vmatprep.mubr.msk.bf16.mxu0 %vm4838_vm0, %v4837_v1 }
0x1972   : > { %v3305_v31 = vpop.f32.mrf.mxu0 }
0x1973   : > { %v3311_v33 = vpack.c.bf16 %v3305_v31, %v3305_v31 }
0x1974   : > { %v4657_v34 = vpop.f32.mrf.mxu0 }
0x1975   : > { %4662 = vmatmul.mubr.msk.bf16.vlgmr.msra.gmra.mxu1 %vm1057_vm2, %v3311_v33 }
0x1976   : > { %v3308_v35 = vpop.f32.mrf.mxu0  ;;  %4674 = vmatpush3.bf16.msra.mxu1 %v4781_v32  ;;  %4677 = vmatprep.mubr.msk.bf16.mxu1 %vm4838_vm0, %v4837_v1 }
0x1977   : > { %4675 = vmatprep.subr.bf16.mxu1 %v4837_v1 }
0x1978   : > { %v4658_v58 = vpop.f32.mrf.mxu0 }
0x197a   : > { %v3420_v37 = vpop.f32.mrf.mxu0  ;;  %4676 = vmatpush3.bf16.msra.mxu1 %v4782_v36 }
0x197b   : > { %4689 = vmatprep.subr.bf16.mxu1 %v4837_v1  ;;  %v3421_v57 = vadd.f32 %v4200_v55, %v3420_v37 }
0x197c   : > { %v4671_v38 = vpop.f32.mrf.mxu0 }
0x197d   : > { %4678 = vmatmul.mubr.msk.bf16.vlgmr.msra.gmra.mxu1 %vm885_vm1, %v5300_v50  ;;  %v3556_v59 = vpack.c.bf16 %v3421_v57, %v3421_v57  ;;  %v4218_v50 = vld [vmem:[%s5654_s17 + $0x3] ss:$0 sm:$0xff]  ;;  %v4229_v57 = vld [vmem:[%s5660_s23] ss:$0 sm:$0xff] }
0x197e   : > { %v3423_v39 = vpop.f32.mrf.mxu0  ;;  %4691 = vmatprep.mubr.msk.bf16.mxu1 %vm4838_vm0, %v4837_v1 }
0x1980   : > { %v4672_v41 = vpop.f32.mrf.mxu0 }
0x1982   : > { %v3550_v11 = vpop.f32.mrf.mxu0 }
0x1983   : > { %v3551_v12 = vadd.f32 %v4218_v50, %v3550_v11 }
0x1984   : > { %v4687_v13 = vpop.f32.mrf.mxu0 }
0x1985   : > { %v3616_v14 = vpack.c.bf16 %v3551_v12, %v3551_v12 }
0x1986   : > { %v3553_v6 = vpop.f32.mrf.mxu0 }
0x1987   : > { %v3621_v15 = vsel %vm1120_vm3, %v3616_v14, 0 }
0x1988   : > { %v4688_v16 = vpop.f32.mrf.mxu0  ;;  %4696 = vmatpush3.bf16.msra.mxu0 %v3621_v15 }
0x1989   : > { %4707 = vmatprep.subr.bf16.mxu0 %v4837_v1 }
0x1a35   : > { %v3354_v43 = vpop.f32.mrf.mxu1 }
0x1a36   : > { %v5536_v44 = vadd.f32 %v3354_v43, %v3004_v42  ;;  %v4785_v42 = vld [vmem:[%s5659_s22 + $0x8] sm:$0xff]   ;;  %v4787_v43 = vld [vmem:[%s5661_s24 + $0x18] sm:$0xff]  }
0x1a37   : > { %v4663_v45 = vpop.f32.mrf.mxu1 }
0x1a39   : > { %v3357_v47 = vpop.f32.mrf.mxu1 }
0x1a3b   : > { %v4664_v48 = vpop.f32.mrf.mxu1 }
0x1a3d   : > { %v3485_v49 = vpop.f32.mrf.mxu1 }
0x1a3e   : > { %v3486_v51 = vadd.f32 %v4209_v5, %v3485_v49  ;;  %v4227_v49 = vld [vmem:[%s5657_s20] ss:$0 sm:$0xff] }
0x1a3f   : > { %v4679_v52 = vpop.f32.mrf.mxu1 }
0x1a40   : > { %v3557_v54 = vpack.c.bf16 %v3486_v51, %v3486_v51  ;;  %v4228_v52 = vld [vmem:[%s5658_s21] ss:$0 sm:$0xff] }
0x1a41   : > { %v3488_v56 = vpop.f32.mrf.mxu1 }
0x1a42   : > { %v3562_v40 = vsel %vm1057_vm2, %v3557_v54, 0 }
0x1a43   : > { %v4680_v53 = vpop.f32.mrf.mxu1  ;;  %4690 = vmatpush3.bf16.xpose.msra.mxu1 %v3562_v40  ;;  %v4789_v40 = vld [vmem:[%s5661_s24 + $0x8] sm:$0xff]  }
0x1a44   : > { %4701 = vmatprep.subr.bf16.mxu1 %v4837_v1  ;;  %v4790_v53 = vld [vmem:[%s5661_s24] sm:$0xff]  }
0x1a4a   : > { %4692 = vmatmul.mubr.msk.bf16.vlgmr.msra.gmra.mxu1 %vm1057_vm2, %v3556_v59 }
0x1a4b   : > { %4703 = vmatprep.mubr.msk.bf16.mxu1 %vm4838_vm0, %v4837_v1  ;;  %4702 = vmatpush3.bf16.msra.mxu1 %v3670_v18 }
0x1a4c   : > { %4715 = vmatprep.subr.bf16.mxu1 %v4837_v1 }
0x1b0a   : > { %v3598_v62 = vpop.f32.mrf.mxu1 }
0x1b0b   : > { %v3604_v63 = vsel %vm1057_vm2, %v3598_v62, -inf }
0x1b0c   : > { %3605 = vmax.xlane.f32.xlu0 %v3604_v63  ;;  %v4693_v0 = vpop.f32.mrf.mxu1 }
0x1b0e   : > { %v3601_v2 = vpop.f32.mrf.mxu1 }
0x1b10   : > { %v4694_v3 = vpop.f32.mrf.mxu1 }
0x1b95   : > { %v3606_v4 = vpop.xlane.xlu0 %3605 }
0x1b96   : > { %v3607_v7 = vsub.f32 %v3598_v62, %v3606_v4 }
0x1b98   : > { %v3608_v8 = vmul.f32 1.442695, %v3607_v7 }
0x1b9a   : > { %4821 = vpow2.f32 %v3608_v8 }
0x1ba7   : > { %v4822_v9 = vpop.eup %4821 }
0x1ba8   : > { %v3610_v10 = vsel %vm1057_vm2, %v4822_v9, 0.0 }
0x1ba9   : > { %3611 = vadd.xlane.f32.xlu1 %v3610_v10 }
0x1c32   : > { %v3612_v19 = vpop.xlane.xlu1 %3611 }
0x1c33   : > { %4823 = vrcp.f32 %v3612_v19  ;;  %v4239_v19 = vld [vmem:[%s5663_s26] ss:$0 sm:$0xff] }
0x1c40   : > { %v4824_v20 = vpop.eup %4823 }
0x1c41   : > { %v3614_v21 = vmul.f32 %v4824_v20, %v4822_v9 }
0x1c43   : > { %v3615_v22 = vpack.c.bf16 %v3614_v21, %v3614_v21  ;;  %v4240_v21 = vld [vmem:[%s5664_s27] ss:$0 sm:$0xff] }
0x1c45   : > { %4698 = vmatmul.mubr.msk.bf16.vlgmr.msra.gmra.mxu0 %vm1057_vm2, %v3615_v22 }
0x1c46   : > { %4711 = vmatprep.mubr.msk.bf16.mxu0 %vm4838_vm0, %v4837_v1  ;;  %4708 = vmatpush3.bf16.msra.mxu0 %v4785_v42 }
0x1c47   : > { %4709 = vmatprep.subr.bf16.mxu0 %v4837_v1 }
0x1d05   : > { %v3657_v23 = vpop.f32.mrf.mxu0 }
0x1d06   : > { %v3663_v24 = vpack.c.bf16 %v3657_v23, %v3657_v23 }
0x1d07   : > { %v4699_v25 = vpop.f32.mrf.mxu0 }
0x1d08   : > { %4704 = vmatmul.mubr.msk.bf16.vlgmr.msra.gmra.mxu1 %vm1057_vm2, %v3663_v24 }
0x1d09   : > { %v3660_v26 = vpop.f32.mrf.mxu0  ;;  %4723 = vmatprep.mubr.msk.bf16.mxu1 %vm4838_vm0, %v4837_v1  ;;  %4716 = vmatpush3.bf16.msra.mxu1 %v4787_v43 }
0x1d0a   : > { %4717 = vmatprep.subr.bf16.mxu1 %v4837_v1 }
0x1d0b   : > { %v4700_v27 = vpop.f32.mrf.mxu0 }
0x1dc8   : > { %v3706_v28 = vpop.f32.mrf.mxu1 }
0x1dc9   : > { %v3712_v30 = vadd.f32 %v3706_v28, %v5536_v44  ;;  %v4788_v44 = vld [vmem:[%s5661_s24 + $0x10] sm:$0xff]  }
0x1dca   : > { %v4705_v31 = vpop.f32.mrf.mxu1  ;;  %4718 = vmatpush3.bf16.msra.mxu1 %v4788_v44 }
0x1dcb   : > { %v3720_v32 = vadd.f32 %v4226_v29, %v3712_v30  ;;  %4719 = vmatprep.subr.bf16.mxu1 %v4837_v1 }
0x1dcc   : > { %v3709_v33 = vpop.f32.mrf.mxu1 }
0x1dcd   : > { %v3721_v34 = vadd.f32 %v3720_v32, %v5321_v46  ;;  %v4786_v46 = vld [vmem:[%s5659_s22] sm:$0xff]  }
0x1dce   : > { %v4706_v35 = vpop.f32.mrf.mxu1  ;;  %4710 = vmatpush3.bf16.msra.mxu0 %v4786_v46  ;;  %4720 = vmatpush3.bf16.msra.mxu1 %v4789_v40 }
0x1dcf   : > { %v3724_v36 = vsel %vm885_vm1, %v3721_v34, 0.0  ;;  %4721 = vmatprep.subr.bf16.mxu1 %v4837_v1  ;;  %v4233_v1 = vld [vmem:[%s5662_s25] ss:$0 sm:$0xff] }
0x1dd0   : > { %3725 = vadd.xlane.f32.xlu0 %v3724_v36 }
0x1dd2   : > { %4722 = vmatpush3.bf16.msra.mxu1 %v4790_v53 }
0x1e59   : > { %v3726_v58 = vpop.xlane.xlu0 %3725 }
0x1e5a   : > { %v3727_v37 = vmul.f32 0.03125, %v3726_v58 }
0x1e5c   : > { %v3728_v38 = vsub.f32 %v3721_v34, %v3727_v37 }
0x1e5e   : > { %v3729_v39 = vmul.f32 %v3728_v38, %v3728_v38 }
0x1e60   : > { %v3730_v41 = vsel %vm885_vm1, %v3729_v39, 0.0 }
0x1e61   : > { %3731 = vadd.xlane.f32.xlu1 %v3730_v41 }
0x1eea   : > { %v3732_v45 = vpop.xlane.xlu1 %3731 }
0x1eeb   : > { %v3733_v47 = vmul.f32 0.03125, %v3732_v45 }
0x1eed   : > { %v3734_v48 = vadd.f32 1e-05, %v3733_v47 }
0x1eef   : > { %4825 = vrsqrt.f32 %v3734_v48 }
0x1efc   : > { %v4826_v5 = vpop.eup %4825 }
0x1efd   : > { %v3736_v51 = vmul.f32 %v4826_v5, %v3728_v38 }
0x1eff   : > { %v3743_v54 = vmul.f32 %v4227_v49, %v3736_v51 }
0x1f01   : > { %v3750_v55 = vadd.f32 %v4228_v52, %v3743_v54 }
0x1f03   : > { %v3751_v56 = vpack.c.bf16 %v3750_v55, %v3750_v55 }
0x1f05   : > { %4712 = vmatmul.mubr.msk.bf16.vlgmr.msra.gmra.mxu0 %vm885_vm1, %v3751_v56 }
0x1fc5   : > { %v3812_v59 = vpop.f32.mrf.mxu0 }
0x1fc6   : > { %v3813_v60 = vadd.f32 %v4229_v57, %v3812_v59 }
0x1fc7   : > { %v4713_v61 = vpop.f32.mrf.mxu0 }
0x1fc8   : > { %v3818_v62 = vmax.f32 %v3813_v60, 0.0 }
0x1fc9   : > { %v3815_v63 = vpop.f32.mrf.mxu0 }
0x1fca   : > { %v3819_v0 = vpack.c.bf16 %v3818_v62, %v3818_v62 }
0x1fcb   : > { %v4714_v2 = vpop.f32.mrf.mxu0 }
0x1fcc   : > { %4724 = vmatmul.mubr.msk.bf16.vlgmr.msra.gmra.mxu1 %vm3859_vm4, %v3819_v0 }
0x208c   : > { %v3897_v3 = vpop.f32.mrf.mxu1 }
0x208d   : > { %v3898_v4 = vadd.f32 %v4233_v1, %v3897_v3 }
0x208e   : > { %v4725_v7 = vpop.f32.mrf.mxu1 }
0x208f   : > { %v3903_v8 = vadd.f32 %v3898_v4, %v3750_v55 }
0x2090   : > { %v3900_v9 = vpop.f32.mrf.mxu1 }
0x2091   : > { %v3906_v10 = vsel %vm885_vm1, %v3903_v8, 0.0 }
0x2092   : > { %3907 = vadd.xlane.f32.xlu0 %v3906_v10  ;;  %v4726_v50 = vpop.f32.mrf.mxu1 }
0x211b   : > { %v3908_v11 = vpop.xlane.xlu0 %3907 }
0x211c   : > { %v3909_v12 = vmul.f32 0.03125, %v3908_v11 }
0x211e   : > { %v3910_v13 = vsub.f32 %v3903_v8, %v3909_v12 }
0x2120   : > { %v3911_v14 = vmul.f32 %v3910_v13, %v3910_v13 }
0x2122   : > { %v3912_v6 = vsel %vm885_vm1, %v3911_v14, 0.0 }
0x2123   : > { %3913 = vadd.xlane.f32.xlu1 %v3912_v6 }
0x21ac   : > { %v3914_v15 = vpop.xlane.xlu1 %3913 }
0x21ad   : > { %v3915_v16 = vmul.f32 0.03125, %v3914_v15 }
0x21af   : > { %v3916_v17 = vadd.f32 1e-05, %v3915_v16 }
0x21b1   : > { %4827 = vrsqrt.f32 %v3916_v17 }
0x21be   : > { %v4828_v18 = vpop.eup %4827 }
0x21bf   : > { %v3918_v20 = vmul.f32 %v4828_v18, %v3910_v13 }
0x21c1   : > { %v3925_v22 = vmul.f32 %v4239_v19, %v3918_v20 }
0x21c3   : > { %v3932_v23 = vadd.f32 %v4240_v21, %v3925_v22 }
0x21c5   : > { %3933 = vst.msk [vmem:[%s857_s2] sm:$0xff] %vm885_vm1, %v3932_v23 }
0x21c6 PF: > { %s38_s8 = sadd.s32 1, %s4835_s8  }
0x21c7   : > { %p35_p4 = scmp.ge.s32.totalorder %s38_s8, 4  }
0x21c9   :  { %37 = sbr.rel (!%p35_p4) target bundleno = 14 (0xe), region = 207 }

</bundles_post_ra>
